<compile_context>
chip_gen: v7x
topology: tpu7x:2x2x1
jax: 0.10.0
libtpu: 0.0.40
codegen_flags: <defaults>
</compile_context>

<pallas_src>
import math
import functools

import jax
import jax.numpy as jnp
from jax.experimental import pallas as pl
from jax.experimental.pallas import tpu as pltpu

# ---- small config consistent with the module's __init__ (scaled down) ----
INPUT_DIM = 11      # src vocab
OUTPUT_DIM = 13     # trg vocab
D_MODEL = 32
NHEAD = 4
HEAD_DIM = D_MODEL // NHEAD
DIM_FF = 64
NUM_ENC_LAYERS = 2
NUM_DEC_LAYERS = 2
LN_EPS = 1e-5
MAX_LEN = 64
OUT_PAD = 128          # lane-dense padded logits width (sliced back outside)
VOCAB_SRC_PAD = 16     # embedding tables padded to a sublane multiple
VOCAB_TRG_PAD = 16
NEG_INF = -1e30
ATTN_SCALE = 1.0 / math.sqrt(HEAD_DIM)


# =====================  in-kernel helpers (traced)  =====================

def _layer_norm(y, g, b):
    mean = jnp.mean(y, axis=-1, keepdims=True)
    c = y - mean
    var = jnp.mean(c * c, axis=-1, keepdims=True)
    return c * jax.lax.rsqrt(var + LN_EPS) * g + b


def _causal_mask(s):
    row = jax.lax.broadcasted_iota(jnp.int32, (s, s), 0)
    col = jax.lax.broadcasted_iota(jnp.int32, (s, s), 1)
    return jnp.where(col <= row, 0.0, NEG_INF).astype(jnp.float32)


def _attention(xq, xkv, wqkv_ref, bqkv_ref, wo_ref, layer, add_mask):
    """Per-head multi-head attention with the output projection folded in.

    xq: (s_q, d_model), xkv: (s_k, d_model).
    Weights are stored per-head so every access is a full leading-dim index:
      wqkv_ref: (L*3*H, d_model, head_dim)   index (layer, which[q/k/v], head)
      bqkv_ref: (L*3*H, 1, head_dim)
      wo_ref:   (L*H, head_dim, d_model)
    Returns the (s_q, d_model) head-summed, out-projected result (no bias).
    """
    acc = None
    for h in range(NHEAD):
        iq = (layer * 3 + 0) * NHEAD + h
        ik = (layer * 3 + 1) * NHEAD + h
        iv = (layer * 3 + 2) * NHEAD + h
        q = jnp.dot(xq, wqkv_ref[iq], preferred_element_type=jnp.float32) + bqkv_ref[iq]
        k = jnp.dot(xkv, wqkv_ref[ik], preferred_element_type=jnp.float32) + bqkv_ref[ik]
        v = jnp.dot(xkv, wqkv_ref[iv], preferred_element_type=jnp.float32) + bqkv_ref[iv]
        # scores = q @ k^T without materializing a transpose
        s = jax.lax.dot_general(q, k, (((1,), (1,)), ((), ())),
                                preferred_element_type=jnp.float32) * ATTN_SCALE
        if add_mask is not None:
            s = s + add_mask
        mx = jnp.max(s, axis=-1, keepdims=True)
        p = jnp.exp(s - mx)
        p = p * pl.reciprocal(jnp.sum(p, axis=-1, keepdims=True), approx=True)
        o = jnp.dot(p, v, preferred_element_type=jnp.float32)
        # fold the out-projection into the head loop (no attn scratch buffer)
        contrib = jnp.dot(o, wo_ref[layer * NHEAD + h],
                          preferred_element_type=jnp.float32)
        acc = contrib if acc is None else acc + contrib
    return acc


# =====================  fully fused transformer kernel  =====================

def _transformer_kernel(
        src_ids_ref, trg_ids_ref, pe_ref, src_emb_ref, trg_emb_ref,
        # encoder (stacked over layers; attention weights stacked per head)
        e_wqkv, e_bqkv, e_wo, e_bo, e_w1, e_bf1, e_w2, e_bf2, e_g, e_b, e_gf, e_bf,
        # decoder
        d_wqkv_s, d_bqkv_s, d_wo_s, d_bo_s,
        d_wqkv_c, d_bqkv_c, d_wo_c, d_bo_c,
        d_w1, d_bf1, d_w2, d_bf2, d_g, d_b, d_gf, d_bf,
        w_out, b_out,
        o_ref,
        *, s_src, s_trg, n_enc, n_dec):
    # ---- causal masks: built ONCE per grid step (hoisted out of all loops) ----
    mask_src = _causal_mask(s_src)
    mask_trg = _causal_mask(s_trg)

    # ---- source embedding (one-hot matmul gather) + positional encoding ----
    src_ids = src_ids_ref[...]                                   # (s_src, 1) int32
    onehot_s = (jax.lax.broadcasted_iota(jnp.int32, (s_src, VOCAB_SRC_PAD), 1)
                == src_ids).astype(jnp.float32)
    x = jnp.dot(onehot_s, src_emb_ref[...], preferred_element_type=jnp.float32)
    x = x + pe_ref[0:s_src, :]

    # ---- encoder stack (causal self-attn, matching the reference forward) ----
    for l in range(n_enc):
        a = _attention(x, x, e_wqkv, e_bqkv, e_wo, l, mask_src) + e_bo[l]
        x = _layer_norm(x + a, e_g[2 * l], e_b[2 * l])
        h = jnp.maximum(
            jnp.dot(x, e_w1[l], preferred_element_type=jnp.float32) + e_bf1[l], 0.0)
        h = jnp.dot(h, e_w2[l], preferred_element_type=jnp.float32) + e_bf2[l]
        x = _layer_norm(x + h, e_g[2 * l + 1], e_b[2 * l + 1])
    memory = _layer_norm(x, e_gf[...], e_bf[...])     # stays in VMEM / vregs

    # ---- target embedding + positional encoding ----
    trg_ids = trg_ids_ref[...]                                   # (s_trg, 1) int32
    onehot_t = (jax.lax.broadcasted_iota(jnp.int32, (s_trg, VOCAB_TRG_PAD), 1)
                == trg_ids).astype(jnp.float32)
    y = jnp.dot(onehot_t, trg_emb_ref[...], preferred_element_type=jnp.float32)
    y = y + pe_ref[0:s_trg, :]

    # ---- decoder stack ----
    for l in range(n_dec):
        a = _attention(y, y, d_wqkv_s, d_bqkv_s, d_wo_s, l, mask_trg) + d_bo_s[l]
        y = _layer_norm(y + a, d_g[3 * l], d_b[3 * l])
        a = _attention(y, memory, d_wqkv_c, d_bqkv_c, d_wo_c, l, None) + d_bo_c[l]
        y = _layer_norm(y + a, d_g[3 * l + 1], d_b[3 * l + 1])
        h = jnp.maximum(
            jnp.dot(y, d_w1[l], preferred_element_type=jnp.float32) + d_bf1[l], 0.0)
        h = jnp.dot(h, d_w2[l], preferred_element_type=jnp.float32) + d_bf2[l]
        y = _layer_norm(y + h, d_g[3 * l + 2], d_b[3 * l + 2])
    y = _layer_norm(y, d_gf[...], d_bf[...])

    # ---- fc_out (padded to 128 lanes → lane-dense full-tile store) ----
    o_ref[...] = jnp.dot(y, w_out[...], preferred_element_type=jnp.float32) + b_out[...]


# =====================  pallas_call wrapper  =====================

def _const_spec(shape):
    """Full-array block whose index is constant across the batch grid axis
    (weights stay VMEM-resident; no re-DMA between grid steps)."""
    zeros = (0,) * len(shape)
    return pl.BlockSpec(shape, lambda b, _z=zeros: _z)


def transformer_pallas(params, src_ids, trg_ids, *, n_batch, s_src, s_trg):
    enc, dec = params["encoder"], params["decoder"]

    weight_inputs = [
        params["pe"], params["src_emb"], params["trg_emb"],
        enc["wqkv"], enc["bqkv"], enc["wo"], enc["bo"],
        enc["w1"], enc["bf1"], enc["w2"], enc["bf2"],
        enc["g"], enc["b"], enc["gf"], enc["bf"],
        dec["wqkv_s"], dec["bqkv_s"], dec["wo_s"], dec["bo_s"],
        dec["wqkv_c"], dec["bqkv_c"], dec["wo_c"], dec["bo_c"],
        dec["w1"], dec["bf1"], dec["w2"], dec["bf2"],
        dec["g"], dec["b"], dec["gf"], dec["bf"],
        dec["wout"], dec["bout"],
    ]

    in_specs = [
        pl.BlockSpec((s_src, 1), lambda b: (b, 0)),   # src token ids (per batch)
        pl.BlockSpec((s_trg, 1), lambda b: (b, 0)),   # trg token ids (per batch)
    ] + [_const_spec(wgt.shape) for wgt in weight_inputs]

    kernel = functools.partial(_transformer_kernel, s_src=s_src, s_trg=s_trg,
                               n_enc=NUM_ENC_LAYERS, n_dec=NUM_DEC_LAYERS)

    return pl.pallas_call(
        kernel,
        out_shape=jax.ShapeDtypeStruct((n_batch * s_trg, OUT_PAD), jnp.float32),
        grid=(n_batch,),
        in_specs=in_specs,
        out_specs=pl.BlockSpec((s_trg, OUT_PAD), lambda b: (b, 0)),
        compiler_params=pltpu.CompilerParams(
            dimension_semantics=("parallel",)),   # uses both TCs on v7x
    )(src_ids, trg_ids, *weight_inputs)


# =====================  model glue (plain JAX)  =====================

@jax.jit
def transformer_forward(params, src, trg):
    # src: (S_src, N) int32, trg: (S_trg, N) int32  (sequence-first, like PyTorch)
    S_src, N = src.shape
    S_trg = trg.shape[0]
    # batch-major id columns for the in-kernel one-hot gather (tiny int reshapes)
    src_ids = src.T.reshape(N * S_src, 1).astype(jnp.int32)
    trg_ids = trg.T.reshape(N * S_trg, 1).astype(jnp.int32)

    logits_pad = transformer_pallas(params, src_ids, trg_ids,
                                    n_batch=N, s_src=S_src, s_trg=S_trg)
    logits = logits_pad[:, :OUTPUT_DIM].reshape(N, S_trg, OUTPUT_DIM)
    return logits.transpose(1, 0, 2)               # (S_trg, N, OUTPUT_DIM)


def make_positional_encoding(max_len, d_model):
    position = jnp.arange(max_len, dtype=jnp.float32)[:, None]
    div_term = jnp.exp(jnp.arange(0, d_model, 2, dtype=jnp.float32)
                       * (-math.log(10000.0) / d_model))
    pe = jnp.zeros((max_len, d_model), jnp.float32)
    pe = pe.at[:, 0::2].set(jnp.sin(position * div_term))
    pe = pe.at[:, 1::2].set(jnp.cos(position * div_term))
    return pe                                       # (max_len, d_model)


# =====================  deterministic parameter init  =====================
# Attention weights stored per-head, pre-transposed, stacked over layers:
#   wqkv: (L*3*H, d_model, head_dim)   [layer, which(q/k/v), head] flattened
#   wo:   (L*H, head_dim, d_model)
# FFN / LN / output weights stacked over layers; fc_out padded to OUT_PAD lanes.

def init_params(key):
    keys = iter(jax.random.split(key, 64))

    def w(shape, scale=0.02):
        return (scale * jax.random.normal(next(keys), shape)).astype(jnp.float32)

    def ones(shape):
        return jnp.ones(shape, jnp.float32)

    def zeros(shape):
        return jnp.zeros(shape, jnp.float32)

    Le, Ld = NUM_ENC_LAYERS, NUM_DEC_LAYERS
    H, D, HD, FF = NHEAD, D_MODEL, HEAD_DIM, DIM_FF

    encoder = {
        "wqkv": w((Le * 3 * H, D, HD)), "bqkv": zeros((Le * 3 * H, 1, HD)),
        "wo": w((Le * H, HD, D)), "bo": zeros((Le, 1, D)),
        "w1": w((Le, D, FF)), "bf1": zeros((Le, 1, FF)),
        "w2": w((Le, FF, D)), "bf2": zeros((Le, 1, D)),
        "g": ones((Le * 2, 1, D)), "b": zeros((Le * 2, 1, D)),
        "gf": ones((1, D)), "bf": zeros((1, D)),
    }

    fc_w = w((D, OUTPUT_DIM))
    wout = jnp.zeros((D, OUT_PAD), jnp.float32).at[:, :OUTPUT_DIM].set(fc_w)

    decoder = {
        "wqkv_s": w((Ld * 3 * H, D, HD)), "bqkv_s": zeros((Ld * 3 * H, 1, HD)),
        "wo_s": w((Ld * H, HD, D)), "bo_s": zeros((Ld, 1, D)),
        "wqkv_c": w((Ld * 3 * H, D, HD)), "bqkv_c": zeros((Ld * 3 * H, 1, HD)),
        "wo_c": w((Ld * H, HD, D)), "bo_c": zeros((Ld, 1, D)),
        "w1": w((Ld, D, FF)), "bf1": zeros((Ld, 1, FF)),
        "w2": w((Ld, FF, D)), "bf2": zeros((Ld, 1, D)),
        "g": ones((Ld * 3, 1, D)), "b": zeros((Ld * 3, 1, D)),
        "gf": ones((1, D)), "bf": zeros((1, D)),
        "wout": wout, "bout": zeros((1, OUT_PAD)),
    }

    src_emb = jnp.zeros((VOCAB_SRC_PAD, D), jnp.float32).at[:INPUT_DIM, :].set(
        w((INPUT_DIM, D), scale=1.0))
    trg_emb = jnp.zeros((VOCAB_TRG_PAD, D), jnp.float32).at[:OUTPUT_DIM, :].set(
        w((OUTPUT_DIM, D), scale=1.0))

    return {
        "src_emb": src_emb,
        "trg_emb": trg_emb,
        "pe": make_positional_encoding(MAX_LEN, D),
        "encoder": encoder,
        "decoder": decoder,
    }


if __name__ == "__main__":
    key = jax.random.PRNGKey(0)
    pkey, skey, tkey = jax.random.split(key, 3)

    params = init_params(pkey)

    S_SRC, S_TRG, BATCH = 8, 8, 2
    src = jax.random.randint(skey, (S_SRC, BATCH), 0, INPUT_DIM, dtype=jnp.int32)
    trg = jax.random.randint(tkey, (S_TRG, BATCH), 0, OUTPUT_DIM, dtype=jnp.int32)

    out = transformer_forward(params, src, trg)
    out = jax.block_until_ready(out)
    assert out.shape == (S_TRG, BATCH, OUTPUT_DIM)
    assert bool(jnp.all(jnp.isfinite(out)))
    print("KERNEL_OK")
</pallas_src>

<mosaic_0001>
module attributes {stable_mosaic.version = 11 : i64} {
  func.func @_transformer_kernel(%arg0: i32, %arg1: memref<8x1xi32, #tpu.memory_space<vmem>>, %arg2: memref<8x1xi32, #tpu.memory_space<vmem>>, %arg3: memref<64x32xf32, #tpu.memory_space<vmem>>, %arg4: memref<16x32xf32, #tpu.memory_space<vmem>>, %arg5: memref<16x32xf32, #tpu.memory_space<vmem>>, %arg6: memref<24x32x8xf32, #tpu.memory_space<vmem>>, %arg7: memref<24x1x8xf32, #tpu.memory_space<vmem>>, %arg8: memref<8x8x32xf32, #tpu.memory_space<vmem>>, %arg9: memref<2x1x32xf32, #tpu.memory_space<vmem>>, %arg10: memref<2x32x64xf32, #tpu.memory_space<vmem>>, %arg11: memref<2x1x64xf32, #tpu.memory_space<vmem>>, %arg12: memref<2x64x32xf32, #tpu.memory_space<vmem>>, %arg13: memref<2x1x32xf32, #tpu.memory_space<vmem>>, %arg14: memref<4x1x32xf32, #tpu.memory_space<vmem>>, %arg15: memref<4x1x32xf32, #tpu.memory_space<vmem>>, %arg16: memref<1x32xf32, #tpu.memory_space<vmem>>, %arg17: memref<1x32xf32, #tpu.memory_space<vmem>>, %arg18: memref<24x32x8xf32, #tpu.memory_space<vmem>>, %arg19: memref<24x1x8xf32, #tpu.memory_space<vmem>>, %arg20: memref<8x8x32xf32, #tpu.memory_space<vmem>>, %arg21: memref<2x1x32xf32, #tpu.memory_space<vmem>>, %arg22: memref<24x32x8xf32, #tpu.memory_space<vmem>>, %arg23: memref<24x1x8xf32, #tpu.memory_space<vmem>>, %arg24: memref<8x8x32xf32, #tpu.memory_space<vmem>>, %arg25: memref<2x1x32xf32, #tpu.memory_space<vmem>>, %arg26: memref<2x32x64xf32, #tpu.memory_space<vmem>>, %arg27: memref<2x1x64xf32, #tpu.memory_space<vmem>>, %arg28: memref<2x64x32xf32, #tpu.memory_space<vmem>>, %arg29: memref<2x1x32xf32, #tpu.memory_space<vmem>>, %arg30: memref<6x1x32xf32, #tpu.memory_space<vmem>>, %arg31: memref<6x1x32xf32, #tpu.memory_space<vmem>>, %arg32: memref<1x32xf32, #tpu.memory_space<vmem>>, %arg33: memref<1x32xf32, #tpu.memory_space<vmem>>, %arg34: memref<32x128xf32, #tpu.memory_space<vmem>>, %arg35: memref<1x128xf32, #tpu.memory_space<vmem>>, %arg36: memref<8x128xf32, #tpu.memory_space<vmem>>) attributes {dimension_semantics = [#tpu.dimension_semantics<parallel>], iteration_bounds = array<i64: 2>, scalar_prefetch = 0 : i64, scratch_operands = 0 : i64, tpu.core_type = #tpu.core_type<tc>, window_params = [{transform_indices = @transform_0, window_bounds = array<i64: 8, 1>}, {transform_indices = @transform_1, window_bounds = array<i64: 8, 1>}, {pipeline_mode = #tpu.pipeline_mode<synchronous>, transform_indices = @transform_2, window_bounds = array<i64: 64, 32>}, {pipeline_mode = #tpu.pipeline_mode<synchronous>, transform_indices = @transform_3, window_bounds = array<i64: 16, 32>}, {pipeline_mode = #tpu.pipeline_mode<synchronous>, transform_indices = @transform_4, window_bounds = array<i64: 16, 32>}, {pipeline_mode = #tpu.pipeline_mode<synchronous>, transform_indices = @transform_5, window_bounds = array<i64: 24, 32, 8>}, {pipeline_mode = #tpu.pipeline_mode<synchronous>, transform_indices = @transform_6, window_bounds = array<i64: 24, 1, 8>}, {pipeline_mode = #tpu.pipeline_mode<synchronous>, transform_indices = @transform_7, window_bounds = array<i64: 8, 8, 32>}, {pipeline_mode = #tpu.pipeline_mode<synchronous>, transform_indices = @transform_8, window_bounds = array<i64: 2, 1, 32>}, {pipeline_mode = #tpu.pipeline_mode<synchronous>, transform_indices = @transform_9, window_bounds = array<i64: 2, 32, 64>}, {pipeline_mode = #tpu.pipeline_mode<synchronous>, transform_indices = @transform_10, window_bounds = array<i64: 2, 1, 64>}, {pipeline_mode = #tpu.pipeline_mode<synchronous>, transform_indices = @transform_11, window_bounds = array<i64: 2, 64, 32>}, {pipeline_mode = #tpu.pipeline_mode<synchronous>, transform_indices = @transform_12, window_bounds = array<i64: 2, 1, 32>}, {pipeline_mode = #tpu.pipeline_mode<synchronous>, transform_indices = @transform_13, window_bounds = array<i64: 4, 1, 32>}, {pipeline_mode = #tpu.pipeline_mode<synchronous>, transform_indices = @transform_14, window_bounds = array<i64: 4, 1, 32>}, {pipeline_mode = #tpu.pipeline_mode<synchronous>, transform_indices = @transform_15, window_bounds = array<i64: 1, 32>}, {pipeline_mode = #tpu.pipeline_mode<synchronous>, transform_indices = @transform_16, window_bounds = array<i64: 1, 32>}, {pipeline_mode = #tpu.pipeline_mode<synchronous>, transform_indices = @transform_17, window_bounds = array<i64: 24, 32, 8>}, {pipeline_mode = #tpu.pipeline_mode<synchronous>, transform_indices = @transform_18, window_bounds = array<i64: 24, 1, 8>}, {pipeline_mode = #tpu.pipeline_mode<synchronous>, transform_indices = @transform_19, window_bounds = array<i64: 8, 8, 32>}, {pipeline_mode = #tpu.pipeline_mode<synchronous>, transform_indices = @transform_20, window_bounds = array<i64: 2, 1, 32>}, {pipeline_mode = #tpu.pipeline_mode<synchronous>, transform_indices = @transform_21, window_bounds = array<i64: 24, 32, 8>}, {pipeline_mode = #tpu.pipeline_mode<synchronous>, transform_indices = @transform_22, window_bounds = array<i64: 24, 1, 8>}, {pipeline_mode = #tpu.pipeline_mode<synchronous>, transform_indices = @transform_23, window_bounds = array<i64: 8, 8, 32>}, {pipeline_mode = #tpu.pipeline_mode<synchronous>, transform_indices = @transform_24, window_bounds = array<i64: 2, 1, 32>}, {pipeline_mode = #tpu.pipeline_mode<synchronous>, transform_indices = @transform_25, window_bounds = array<i64: 2, 32, 64>}, {pipeline_mode = #tpu.pipeline_mode<synchronous>, transform_indices = @transform_26, window_bounds = array<i64: 2, 1, 64>}, {pipeline_mode = #tpu.pipeline_mode<synchronous>, transform_indices = @transform_27, window_bounds = array<i64: 2, 64, 32>}, {pipeline_mode = #tpu.pipeline_mode<synchronous>, transform_indices = @transform_28, window_bounds = array<i64: 2, 1, 32>}, {pipeline_mode = #tpu.pipeline_mode<synchronous>, transform_indices = @transform_29, window_bounds = array<i64: 6, 1, 32>}, {pipeline_mode = #tpu.pipeline_mode<synchronous>, transform_indices = @transform_30, window_bounds = array<i64: 6, 1, 32>}, {pipeline_mode = #tpu.pipeline_mode<synchronous>, transform_indices = @transform_31, window_bounds = array<i64: 1, 32>}, {pipeline_mode = #tpu.pipeline_mode<synchronous>, transform_indices = @transform_32, window_bounds = array<i64: 1, 32>}, {pipeline_mode = #tpu.pipeline_mode<synchronous>, transform_indices = @transform_33, window_bounds = array<i64: 32, 128>}, {pipeline_mode = #tpu.pipeline_mode<synchronous>, transform_indices = @transform_34, window_bounds = array<i64: 1, 128>}, {transform_indices = @transform_35, window_bounds = array<i64: 8, 128>}]} {
    %0 = tpu.iota {dimensions = array<i32: 0>} : vector<8x8xi32>
    %1 = tpu.iota {dimensions = array<i32: 1>} : vector<8x8xi32>
    %2 = arith.cmpi sle, %1, %0 : vector<8x8xi32>
    %cst = arith.constant 0.000000e+00 : f32
    %cst_0 = arith.constant -1.000000e+30 : f32
    %3 = vector.broadcast %cst : f32 to vector<8x8xf32>
    %4 = vector.broadcast %cst_0 : f32 to vector<8x8xf32>
    %5 = arith.select %2, %3, %4 : vector<8x8xi1>, vector<8x8xf32>
    %6 = tpu.iota {dimensions = array<i32: 0>} : vector<8x8xi32>
    %7 = tpu.iota {dimensions = array<i32: 1>} : vector<8x8xi32>
    %8 = arith.cmpi sle, %7, %6 : vector<8x8xi32>
    %cst_1 = arith.constant 0.000000e+00 : f32
    %cst_2 = arith.constant -1.000000e+30 : f32
    %9 = vector.broadcast %cst_1 : f32 to vector<8x8xf32>
    %10 = vector.broadcast %cst_2 : f32 to vector<8x8xf32>
    %11 = arith.select %8, %9, %10 : vector<8x8xi1>, vector<8x8xf32>
    %c0 = arith.constant 0 : index
    %c0_3 = arith.constant 0 : index
    %12 = vector.load %arg1[%c0, %c0_3] : memref<8x1xi32, #tpu.memory_space<vmem>>, vector<8x1xi32>
    %13 = tpu.iota {dimensions = array<i32: 1>} : vector<8x16xi32>
    %14 = vector.broadcast %12 : vector<8x1xi32> to vector<8x16xi32>
    %15 = arith.cmpi eq, %13, %14 : vector<8x16xi32>
    %16 = arith.extui %15 : vector<8x16xi1> to vector<8x16xi32>
    %17 = arith.sitofp %16 : vector<8x16xi32> to vector<8x16xf32>
    %c0_4 = arith.constant 0 : index
    %c0_5 = arith.constant 0 : index
    %18 = vector.load %arg4[%c0_4, %c0_5] : memref<16x32xf32, #tpu.memory_space<vmem>>, vector<16x32xf32>
    %cst_6 = arith.constant dense<0.000000e+00> : vector<8x32xf32>
    %19 = tpu.matmul %17, %18, %cst_6 {dimension_numbers = #tpu.dot_dimension_numbers<[1], [0], [0], [1], [0, 0, 1, 1], [], []>} : vector<8x16xf32>, vector<16x32xf32>, vector<8x32xf32> -> vector<8x32xf32>
    %c0_7 = arith.constant 0 : index
    %c0_8 = arith.constant 0 : index
    %20 = vector.load %arg3[%c0_7, %c0_8] : memref<64x32xf32, #tpu.memory_space<vmem>>, vector<8x32xf32>
    %21 = arith.addf %19, %20 : vector<8x32xf32>
    %c0_9 = arith.constant 0 : index
    %c0_10 = arith.constant 0 : index
    %c0_11 = arith.constant 0 : index
    %22 = vector.load %arg6[%c0_9, %c0_10, %c0_11] : memref<24x32x8xf32, #tpu.memory_space<vmem>>, vector<1x32x8xf32>
    %23 = vector.shape_cast %22 : vector<1x32x8xf32> to vector<32x8xf32>
    %cst_12 = arith.constant dense<0.000000e+00> : vector<8x8xf32>
    %24 = tpu.matmul %21, %23, %cst_12 {dimension_numbers = #tpu.dot_dimension_numbers<[1], [0], [0], [1], [0, 0, 1, 1], [], []>} : vector<8x32xf32>, vector<32x8xf32>, vector<8x8xf32> -> vector<8x8xf32>
    %c0_13 = arith.constant 0 : index
    %c0_14 = arith.constant 0 : index
    %c0_15 = arith.constant 0 : index
    %25 = vector.load %arg7[%c0_13, %c0_14, %c0_15] : memref<24x1x8xf32, #tpu.memory_space<vmem>>, vector<1x1x8xf32>
    %26 = vector.shape_cast %25 : vector<1x1x8xf32> to vector<1x8xf32>
    %27 = vector.broadcast %26 : vector<1x8xf32> to vector<8x8xf32>
    %28 = arith.addf %24, %27 : vector<8x8xf32>
    %c4 = arith.constant 4 : index
    %c0_16 = arith.constant 0 : index
    %c0_17 = arith.constant 0 : index
    %29 = vector.load %arg6[%c4, %c0_16, %c0_17] : memref<24x32x8xf32, #tpu.memory_space<vmem>>, vector<1x32x8xf32>
    %30 = vector.shape_cast %29 : vector<1x32x8xf32> to vector<32x8xf32>
    %cst_18 = arith.constant dense<0.000000e+00> : vector<8x8xf32>
    %31 = tpu.matmul %21, %30, %cst_18 {dimension_numbers = #tpu.dot_dimension_numbers<[1], [0], [0], [1], [0, 0, 1, 1], [], []>} : vector<8x32xf32>, vector<32x8xf32>, vector<8x8xf32> -> vector<8x8xf32>
    %c4_19 = arith.constant 4 : index
    %c0_20 = arith.constant 0 : index
    %c0_21 = arith.constant 0 : index
    %32 = vector.load %arg7[%c4_19, %c0_20, %c0_21] : memref<24x1x8xf32, #tpu.memory_space<vmem>>, vector<1x1x8xf32>
    %33 = vector.shape_cast %32 : vector<1x1x8xf32> to vector<1x8xf32>
    %34 = vector.broadcast %33 : vector<1x8xf32> to vector<8x8xf32>
    %35 = arith.addf %31, %34 : vector<8x8xf32>
    %c8 = arith.constant 8 : index
    %c0_22 = arith.constant 0 : index
    %c0_23 = arith.constant 0 : index
    %36 = vector.load %arg6[%c8, %c0_22, %c0_23] : memref<24x32x8xf32, #tpu.memory_space<vmem>>, vector<1x32x8xf32>
    %37 = vector.shape_cast %36 : vector<1x32x8xf32> to vector<32x8xf32>
    %cst_24 = arith.constant dense<0.000000e+00> : vector<8x8xf32>
    %38 = tpu.matmul %21, %37, %cst_24 {dimension_numbers = #tpu.dot_dimension_numbers<[1], [0], [0], [1], [0, 0, 1, 1], [], []>} : vector<8x32xf32>, vector<32x8xf32>, vector<8x8xf32> -> vector<8x8xf32>
    %c8_25 = arith.constant 8 : index
    %c0_26 = arith.constant 0 : index
    %c0_27 = arith.constant 0 : index
    %39 = vector.load %arg7[%c8_25, %c0_26, %c0_27] : memref<24x1x8xf32, #tpu.memory_space<vmem>>, vector<1x1x8xf32>
    %40 = vector.shape_cast %39 : vector<1x1x8xf32> to vector<1x8xf32>
    %41 = vector.broadcast %40 : vector<1x8xf32> to vector<8x8xf32>
    %42 = arith.addf %38, %41 : vector<8x8xf32>
    %cst_28 = arith.constant dense<0.000000e+00> : vector<8x8xf32>
    %43 = tpu.matmul %28, %35, %cst_28 {dimension_numbers = #tpu.dot_dimension_numbers<[1], [1], [0], [0], [0, 0, 1, 0], [], []>} : vector<8x8xf32>, vector<8x8xf32>, vector<8x8xf32> -> vector<8x8xf32>
    %cst_29 = arith.constant 0.353553385 : f32
    %44 = vector.broadcast %cst_29 : f32 to vector<8x8xf32>
    %45 = arith.mulf %43, %44 : vector<8x8xf32>
    %46 = arith.addf %45, %5 : vector<8x8xf32>
    %cst_30 = arith.constant dense<0xFF800000> : vector<8xf32>
    %47 = vector.multi_reduction <maximumf>, %46, %cst_30 [1] : vector<8x8xf32> to vector<8xf32>
    %48 = vector.shape_cast %47 : vector<8xf32> to vector<8x1xf32>
    %49 = vector.broadcast %48 : vector<8x1xf32> to vector<8x8xf32>
    %50 = arith.subf %46, %49 : vector<8x8xf32>
    %51 = math.exp %50 : vector<8x8xf32>
    %cst_31 = arith.constant dense<0.000000e+00> : vector<8xf32>
    %52 = vector.multi_reduction <add>, %51, %cst_31 [1] : vector<8x8xf32> to vector<8xf32>
    %53 = vector.shape_cast %52 : vector<8xf32> to vector<8x1xf32>
    %54 = tpu.reciprocal %53 {approx = true} : vector<8x1xf32> -> vector<8x1xf32>
    %55 = vector.broadcast %54 : vector<8x1xf32> to vector<8x8xf32>
    %56 = arith.mulf %51, %55 : vector<8x8xf32>
    %cst_32 = arith.constant dense<0.000000e+00> : vector<8x8xf32>
    %57 = tpu.matmul %56, %42, %cst_32 {dimension_numbers = #tpu.dot_dimension_numbers<[1], [0], [0], [1], [0, 0, 1, 1], [], []>} : vector<8x8xf32>, vector<8x8xf32>, vector<8x8xf32> -> vector<8x8xf32>
    %c0_33 = arith.constant 0 : index
    %c0_34 = arith.constant 0 : index
    %c0_35 = arith.constant 0 : index
    %58 = vector.load %arg8[%c0_33, %c0_34, %c0_35] : memref<8x8x32xf32, #tpu.memory_space<vmem>>, vector<1x8x32xf32>
    %59 = vector.shape_cast %58 : vector<1x8x32xf32> to vector<8x32xf32>
    %cst_36 = arith.constant dense<0.000000e+00> : vector<8x32xf32>
    %60 = tpu.matmul %57, %59, %cst_36 {dimension_numbers = #tpu.dot_dimension_numbers<[1], [0], [0], [1], [0, 0, 1, 1], [], []>} : vector<8x8xf32>, vector<8x32xf32>, vector<8x32xf32> -> vector<8x32xf32>
    %c1 = arith.constant 1 : index
    %c0_37 = arith.constant 0 : index
    %c0_38 = arith.constant 0 : index
    %61 = vector.load %arg6[%c1, %c0_37, %c0_38] : memref<24x32x8xf32, #tpu.memory_space<vmem>>, vector<1x32x8xf32>
    %62 = vector.shape_cast %61 : vector<1x32x8xf32> to vector<32x8xf32>
    %cst_39 = arith.constant dense<0.000000e+00> : vector<8x8xf32>
    %63 = tpu.matmul %21, %62, %cst_39 {dimension_numbers = #tpu.dot_dimension_numbers<[1], [0], [0], [1], [0, 0, 1, 1], [], []>} : vector<8x32xf32>, vector<32x8xf32>, vector<8x8xf32> -> vector<8x8xf32>
    %c1_40 = arith.constant 1 : index
    %c0_41 = arith.constant 0 : index
    %c0_42 = arith.constant 0 : index
    %64 = vector.load %arg7[%c1_40, %c0_41, %c0_42] : memref<24x1x8xf32, #tpu.memory_space<vmem>>, vector<1x1x8xf32>
    %65 = vector.shape_cast %64 : vector<1x1x8xf32> to vector<1x8xf32>
    %66 = vector.broadcast %65 : vector<1x8xf32> to vector<8x8xf32>
    %67 = arith.addf %63, %66 : vector<8x8xf32>
    %c5 = arith.constant 5 : index
    %c0_43 = arith.constant 0 : index
    %c0_44 = arith.constant 0 : index
    %68 = vector.load %arg6[%c5, %c0_43, %c0_44] : memref<24x32x8xf32, #tpu.memory_space<vmem>>, vector<1x32x8xf32>
    %69 = vector.shape_cast %68 : vector<1x32x8xf32> to vector<32x8xf32>
    %cst_45 = arith.constant dense<0.000000e+00> : vector<8x8xf32>
    %70 = tpu.matmul %21, %69, %cst_45 {dimension_numbers = #tpu.dot_dimension_numbers<[1], [0], [0], [1], [0, 0, 1, 1], [], []>} : vector<8x32xf32>, vector<32x8xf32>, vector<8x8xf32> -> vector<8x8xf32>
    %c5_46 = arith.constant 5 : index
    %c0_47 = arith.constant 0 : index
    %c0_48 = arith.constant 0 : index
    %71 = vector.load %arg7[%c5_46, %c0_47, %c0_48] : memref<24x1x8xf32, #tpu.memory_space<vmem>>, vector<1x1x8xf32>
    %72 = vector.shape_cast %71 : vector<1x1x8xf32> to vector<1x8xf32>
    %73 = vector.broadcast %72 : vector<1x8xf32> to vector<8x8xf32>
    %74 = arith.addf %70, %73 : vector<8x8xf32>
    %c9 = arith.constant 9 : index
    %c0_49 = arith.constant 0 : index
    %c0_50 = arith.constant 0 : index
    %75 = vector.load %arg6[%c9, %c0_49, %c0_50] : memref<24x32x8xf32, #tpu.memory_space<vmem>>, vector<1x32x8xf32>
    %76 = vector.shape_cast %75 : vector<1x32x8xf32> to vector<32x8xf32>
    %cst_51 = arith.constant dense<0.000000e+00> : vector<8x8xf32>
    %77 = tpu.matmul %21, %76, %cst_51 {dimension_numbers = #tpu.dot_dimension_numbers<[1], [0], [0], [1], [0, 0, 1, 1], [], []>} : vector<8x32xf32>, vector<32x8xf32>, vector<8x8xf32> -> vector<8x8xf32>
    %c9_52 = arith.constant 9 : index
    %c0_53 = arith.constant 0 : index
    %c0_54 = arith.constant 0 : index
    %78 = vector.load %arg7[%c9_52, %c0_53, %c0_54] : memref<24x1x8xf32, #tpu.memory_space<vmem>>, vector<1x1x8xf32>
    %79 = vector.shape_cast %78 : vector<1x1x8xf32> to vector<1x8xf32>
    %80 = vector.broadcast %79 : vector<1x8xf32> to vector<8x8xf32>
    %81 = arith.addf %77, %80 : vector<8x8xf32>
    %cst_55 = arith.constant dense<0.000000e+00> : vector<8x8xf32>
    %82 = tpu.matmul %67, %74, %cst_55 {dimension_numbers = #tpu.dot_dimension_numbers<[1], [1], [0], [0], [0, 0, 1, 0], [], []>} : vector<8x8xf32>, vector<8x8xf32>, vector<8x8xf32> -> vector<8x8xf32>
    %cst_56 = arith.constant 0.353553385 : f32
    %83 = vector.broadcast %cst_56 : f32 to vector<8x8xf32>
    %84 = arith.mulf %82, %83 : vector<8x8xf32>
    %85 = arith.addf %84, %5 : vector<8x8xf32>
    %cst_57 = arith.constant dense<0xFF800000> : vector<8xf32>
    %86 = vector.multi_reduction <maximumf>, %85, %cst_57 [1] : vector<8x8xf32> to vector<8xf32>
    %87 = vector.shape_cast %86 : vector<8xf32> to vector<8x1xf32>
    %88 = vector.broadcast %87 : vector<8x1xf32> to vector<8x8xf32>
    %89 = arith.subf %85, %88 : vector<8x8xf32>
    %90 = math.exp %89 : vector<8x8xf32>
    %cst_58 = arith.constant dense<0.000000e+00> : vector<8xf32>
    %91 = vector.multi_reduction <add>, %90, %cst_58 [1] : vector<8x8xf32> to vector<8xf32>
    %92 = vector.shape_cast %91 : vector<8xf32> to vector<8x1xf32>
    %93 = tpu.reciprocal %92 {approx = true} : vector<8x1xf32> -> vector<8x1xf32>
    %94 = vector.broadcast %93 : vector<8x1xf32> to vector<8x8xf32>
    %95 = arith.mulf %90, %94 : vector<8x8xf32>
    %cst_59 = arith.constant dense<0.000000e+00> : vector<8x8xf32>
    %96 = tpu.matmul %95, %81, %cst_59 {dimension_numbers = #tpu.dot_dimension_numbers<[1], [0], [0], [1], [0, 0, 1, 1], [], []>} : vector<8x8xf32>, vector<8x8xf32>, vector<8x8xf32> -> vector<8x8xf32>
    %c1_60 = arith.constant 1 : index
    %c0_61 = arith.constant 0 : index
    %c0_62 = arith.constant 0 : index
    %97 = vector.load %arg8[%c1_60, %c0_61, %c0_62] : memref<8x8x32xf32, #tpu.memory_space<vmem>>, vector<1x8x32xf32>
    %98 = vector.shape_cast %97 : vector<1x8x32xf32> to vector<8x32xf32>
    %cst_63 = arith.constant dense<0.000000e+00> : vector<8x32xf32>
    %99 = tpu.matmul %96, %98, %cst_63 {dimension_numbers = #tpu.dot_dimension_numbers<[1], [0], [0], [1], [0, 0, 1, 1], [], []>} : vector<8x8xf32>, vector<8x32xf32>, vector<8x32xf32> -> vector<8x32xf32>
    %100 = arith.addf %60, %99 : vector<8x32xf32>
    %c2 = arith.constant 2 : index
    %c0_64 = arith.constant 0 : index
    %c0_65 = arith.constant 0 : index
    %101 = vector.load %arg6[%c2, %c0_64, %c0_65] : memref<24x32x8xf32, #tpu.memory_space<vmem>>, vector<1x32x8xf32>
    %102 = vector.shape_cast %101 : vector<1x32x8xf32> to vector<32x8xf32>
    %cst_66 = arith.constant dense<0.000000e+00> : vector<8x8xf32>
    %103 = tpu.matmul %21, %102, %cst_66 {dimension_numbers = #tpu.dot_dimension_numbers<[1], [0], [0], [1], [0, 0, 1, 1], [], []>} : vector<8x32xf32>, vector<32x8xf32>, vector<8x8xf32> -> vector<8x8xf32>
    %c2_67 = arith.constant 2 : index
    %c0_68 = arith.constant 0 : index
    %c0_69 = arith.constant 0 : index
    %104 = vector.load %arg7[%c2_67, %c0_68, %c0_69] : memref<24x1x8xf32, #tpu.memory_space<vmem>>, vector<1x1x8xf32>
    %105 = vector.shape_cast %104 : vector<1x1x8xf32> to vector<1x8xf32>
    %106 = vector.broadcast %105 : vector<1x8xf32> to vector<8x8xf32>
    %107 = arith.addf %103, %106 : vector<8x8xf32>
    %c6 = arith.constant 6 : index
    %c0_70 = arith.constant 0 : index
    %c0_71 = arith.constant 0 : index
    %108 = vector.load %arg6[%c6, %c0_70, %c0_71] : memref<24x32x8xf32, #tpu.memory_space<vmem>>, vector<1x32x8xf32>
    %109 = vector.shape_cast %108 : vector<1x32x8xf32> to vector<32x8xf32>
    %cst_72 = arith.constant dense<0.000000e+00> : vector<8x8xf32>
    %110 = tpu.matmul %21, %109, %cst_72 {dimension_numbers = #tpu.dot_dimension_numbers<[1], [0], [0], [1], [0, 0, 1, 1], [], []>} : vector<8x32xf32>, vector<32x8xf32>, vector<8x8xf32> -> vector<8x8xf32>
    %c6_73 = arith.constant 6 : index
    %c0_74 = arith.constant 0 : index
    %c0_75 = arith.constant 0 : index
    %111 = vector.load %arg7[%c6_73, %c0_74, %c0_75] : memref<24x1x8xf32, #tpu.memory_space<vmem>>, vector<1x1x8xf32>
    %112 = vector.shape_cast %111 : vector<1x1x8xf32> to vector<1x8xf32>
    %113 = vector.broadcast %112 : vector<1x8xf32> to vector<8x8xf32>
    %114 = arith.addf %110, %113 : vector<8x8xf32>
    %c10 = arith.constant 10 : index
    %c0_76 = arith.constant 0 : index
    %c0_77 = arith.constant 0 : index
    %115 = vector.load %arg6[%c10, %c0_76, %c0_77] : memref<24x32x8xf32, #tpu.memory_space<vmem>>, vector<1x32x8xf32>
    %116 = vector.shape_cast %115 : vector<1x32x8xf32> to vector<32x8xf32>
    %cst_78 = arith.constant dense<0.000000e+00> : vector<8x8xf32>
    %117 = tpu.matmul %21, %116, %cst_78 {dimension_numbers = #tpu.dot_dimension_numbers<[1], [0], [0], [1], [0, 0, 1, 1], [], []>} : vector<8x32xf32>, vector<32x8xf32>, vector<8x8xf32> -> vector<8x8xf32>
    %c10_79 = arith.constant 10 : index
    %c0_80 = arith.constant 0 : index
    %c0_81 = arith.constant 0 : index
    %118 = vector.load %arg7[%c10_79, %c0_80, %c0_81] : memref<24x1x8xf32, #tpu.memory_space<vmem>>, vector<1x1x8xf32>
    %119 = vector.shape_cast %118 : vector<1x1x8xf32> to vector<1x8xf32>
    %120 = vector.broadcast %119 : vector<1x8xf32> to vector<8x8xf32>
    %121 = arith.addf %117, %120 : vector<8x8xf32>
    %cst_82 = arith.constant dense<0.000000e+00> : vector<8x8xf32>
    %122 = tpu.matmul %107, %114, %cst_82 {dimension_numbers = #tpu.dot_dimension_numbers<[1], [1], [0], [0], [0, 0, 1, 0], [], []>} : vector<8x8xf32>, vector<8x8xf32>, vector<8x8xf32> -> vector<8x8xf32>
    %cst_83 = arith.constant 0.353553385 : f32
    %123 = vector.broadcast %cst_83 : f32 to vector<8x8xf32>
    %124 = arith.mulf %122, %123 : vector<8x8xf32>
    %125 = arith.addf %124, %5 : vector<8x8xf32>
    %cst_84 = arith.constant dense<0xFF800000> : vector<8xf32>
    %126 = vector.multi_reduction <maximumf>, %125, %cst_84 [1] : vector<8x8xf32> to vector<8xf32>
    %127 = vector.shape_cast %126 : vector<8xf32> to vector<8x1xf32>
    %128 = vector.broadcast %127 : vector<8x1xf32> to vector<8x8xf32>
    %129 = arith.subf %125, %128 : vector<8x8xf32>
    %130 = math.exp %129 : vector<8x8xf32>
    %cst_85 = arith.constant dense<0.000000e+00> : vector<8xf32>
    %131 = vector.multi_reduction <add>, %130, %cst_85 [1] : vector<8x8xf32> to vector<8xf32>
    %132 = vector.shape_cast %131 : vector<8xf32> to vector<8x1xf32>
    %133 = tpu.reciprocal %132 {approx = true} : vector<8x1xf32> -> vector<8x1xf32>
    %134 = vector.broadcast %133 : vector<8x1xf32> to vector<8x8xf32>
    %135 = arith.mulf %130, %134 : vector<8x8xf32>
    %cst_86 = arith.constant dense<0.000000e+00> : vector<8x8xf32>
    %136 = tpu.matmul %135, %121, %cst_86 {dimension_numbers = #tpu.dot_dimension_numbers<[1], [0], [0], [1], [0, 0, 1, 1], [], []>} : vector<8x8xf32>, vector<8x8xf32>, vector<8x8xf32> -> vector<8x8xf32>
    %c2_87 = arith.constant 2 : index
    %c0_88 = arith.constant 0 : index
    %c0_89 = arith.constant 0 : index
    %137 = vector.load %arg8[%c2_87, %c0_88, %c0_89] : memref<8x8x32xf32, #tpu.memory_space<vmem>>, vector<1x8x32xf32>
    %138 = vector.shape_cast %137 : vector<1x8x32xf32> to vector<8x32xf32>
    %cst_90 = arith.constant dense<0.000000e+00> : vector<8x32xf32>
    %139 = tpu.matmul %136, %138, %cst_90 {dimension_numbers = #tpu.dot_dimension_numbers<[1], [0], [0], [1], [0, 0, 1, 1], [], []>} : vector<8x8xf32>, vector<8x32xf32>, vector<8x32xf32> -> vector<8x32xf32>
    %140 = arith.addf %100, %139 : vector<8x32xf32>
    %c3 = arith.constant 3 : index
    %c0_91 = arith.constant 0 : index
    %c0_92 = arith.constant 0 : index
    %141 = vector.load %arg6[%c3, %c0_91, %c0_92] : memref<24x32x8xf32, #tpu.memory_space<vmem>>, vector<1x32x8xf32>
    %142 = vector.shape_cast %141 : vector<1x32x8xf32> to vector<32x8xf32>
    %cst_93 = arith.constant dense<0.000000e+00> : vector<8x8xf32>
    %143 = tpu.matmul %21, %142, %cst_93 {dimension_numbers = #tpu.dot_dimension_numbers<[1], [0], [0], [1], [0, 0, 1, 1], [], []>} : vector<8x32xf32>, vector<32x8xf32>, vector<8x8xf32> -> vector<8x8xf32>
    %c3_94 = arith.constant 3 : index
    %c0_95 = arith.constant 0 : index
    %c0_96 = arith.constant 0 : index
    %144 = vector.load %arg7[%c3_94, %c0_95, %c0_96] : memref<24x1x8xf32, #tpu.memory_space<vmem>>, vector<1x1x8xf32>
    %145 = vector.shape_cast %144 : vector<1x1x8xf32> to vector<1x8xf32>
    %146 = vector.broadcast %145 : vector<1x8xf32> to vector<8x8xf32>
    %147 = arith.addf %143, %146 : vector<8x8xf32>
    %c7 = arith.constant 7 : index
    %c0_97 = arith.constant 0 : index
    %c0_98 = arith.constant 0 : index
    %148 = vector.load %arg6[%c7, %c0_97, %c0_98] : memref<24x32x8xf32, #tpu.memory_space<vmem>>, vector<1x32x8xf32>
    %149 = vector.shape_cast %148 : vector<1x32x8xf32> to vector<32x8xf32>
    %cst_99 = arith.constant dense<0.000000e+00> : vector<8x8xf32>
    %150 = tpu.matmul %21, %149, %cst_99 {dimension_numbers = #tpu.dot_dimension_numbers<[1], [0], [0], [1], [0, 0, 1, 1], [], []>} : vector<8x32xf32>, vector<32x8xf32>, vector<8x8xf32> -> vector<8x8xf32>
    %c7_100 = arith.constant 7 : index
    %c0_101 = arith.constant 0 : index
    %c0_102 = arith.constant 0 : index
    %151 = vector.load %arg7[%c7_100, %c0_101, %c0_102] : memref<24x1x8xf32, #tpu.memory_space<vmem>>, vector<1x1x8xf32>
    %152 = vector.shape_cast %151 : vector<1x1x8xf32> to vector<1x8xf32>
    %153 = vector.broadcast %152 : vector<1x8xf32> to vector<8x8xf32>
    %154 = arith.addf %150, %153 : vector<8x8xf32>
    %c11 = arith.constant 11 : index
    %c0_103 = arith.constant 0 : index
    %c0_104 = arith.constant 0 : index
    %155 = vector.load %arg6[%c11, %c0_103, %c0_104] : memref<24x32x8xf32, #tpu.memory_space<vmem>>, vector<1x32x8xf32>
    %156 = vector.shape_cast %155 : vector<1x32x8xf32> to vector<32x8xf32>
    %cst_105 = arith.constant dense<0.000000e+00> : vector<8x8xf32>
    %157 = tpu.matmul %21, %156, %cst_105 {dimension_numbers = #tpu.dot_dimension_numbers<[1], [0], [0], [1], [0, 0, 1, 1], [], []>} : vector<8x32xf32>, vector<32x8xf32>, vector<8x8xf32> -> vector<8x8xf32>
    %c11_106 = arith.constant 11 : index
    %c0_107 = arith.constant 0 : index
    %c0_108 = arith.constant 0 : index
    %158 = vector.load %arg7[%c11_106, %c0_107, %c0_108] : memref<24x1x8xf32, #tpu.memory_space<vmem>>, vector<1x1x8xf32>
    %159 = vector.shape_cast %158 : vector<1x1x8xf32> to vector<1x8xf32>
    %160 = vector.broadcast %159 : vector<1x8xf32> to vector<8x8xf32>
    %161 = arith.addf %157, %160 : vector<8x8xf32>
    %cst_109 = arith.constant dense<0.000000e+00> : vector<8x8xf32>
    %162 = tpu.matmul %147, %154, %cst_109 {dimension_numbers = #tpu.dot_dimension_numbers<[1], [1], [0], [0], [0, 0, 1, 0], [], []>} : vector<8x8xf32>, vector<8x8xf32>, vector<8x8xf32> -> vector<8x8xf32>
    %cst_110 = arith.constant 0.353553385 : f32
    %163 = vector.broadcast %cst_110 : f32 to vector<8x8xf32>
    %164 = arith.mulf %162, %163 : vector<8x8xf32>
    %165 = arith.addf %164, %5 : vector<8x8xf32>
    %cst_111 = arith.constant dense<0xFF800000> : vector<8xf32>
    %166 = vector.multi_reduction <maximumf>, %165, %cst_111 [1] : vector<8x8xf32> to vector<8xf32>
    %167 = vector.shape_cast %166 : vector<8xf32> to vector<8x1xf32>
    %168 = vector.broadcast %167 : vector<8x1xf32> to vector<8x8xf32>
    %169 = arith.subf %165, %168 : vector<8x8xf32>
    %170 = math.exp %169 : vector<8x8xf32>
    %cst_112 = arith.constant dense<0.000000e+00> : vector<8xf32>
    %171 = vector.multi_reduction <add>, %170, %cst_112 [1] : vector<8x8xf32> to vector<8xf32>
    %172 = vector.shape_cast %171 : vector<8xf32> to vector<8x1xf32>
    %173 = tpu.reciprocal %172 {approx = true} : vector<8x1xf32> -> vector<8x1xf32>
    %174 = vector.broadcast %173 : vector<8x1xf32> to vector<8x8xf32>
    %175 = arith.mulf %170, %174 : vector<8x8xf32>
    %cst_113 = arith.constant dense<0.000000e+00> : vector<8x8xf32>
    %176 = tpu.matmul %175, %161, %cst_113 {dimension_numbers = #tpu.dot_dimension_numbers<[1], [0], [0], [1], [0, 0, 1, 1], [], []>} : vector<8x8xf32>, vector<8x8xf32>, vector<8x8xf32> -> vector<8x8xf32>
    %c3_114 = arith.constant 3 : index
    %c0_115 = arith.constant 0 : index
    %c0_116 = arith.constant 0 : index
    %177 = vector.load %arg8[%c3_114, %c0_115, %c0_116] : memref<8x8x32xf32, #tpu.memory_space<vmem>>, vector<1x8x32xf32>
    %178 = vector.shape_cast %177 : vector<1x8x32xf32> to vector<8x32xf32>
    %cst_117 = arith.constant dense<0.000000e+00> : vector<8x32xf32>
    %179 = tpu.matmul %176, %178, %cst_117 {dimension_numbers = #tpu.dot_dimension_numbers<[1], [0], [0], [1], [0, 0, 1, 1], [], []>} : vector<8x8xf32>, vector<8x32xf32>, vector<8x32xf32> -> vector<8x32xf32>
    %180 = arith.addf %140, %179 : vector<8x32xf32>
    %c0_118 = arith.constant 0 : index
    %c0_119 = arith.constant 0 : index
    %c0_120 = arith.constant 0 : index
    %181 = vector.load %arg9[%c0_118, %c0_119, %c0_120] : memref<2x1x32xf32, #tpu.memory_space<vmem>>, vector<1x1x32xf32>
    %182 = vector.shape_cast %181 : vector<1x1x32xf32> to vector<1x32xf32>
    %183 = vector.broadcast %182 : vector<1x32xf32> to vector<8x32xf32>
    %184 = arith.addf %180, %183 : vector<8x32xf32>
    %185 = arith.addf %21, %184 : vector<8x32xf32>
    %c0_121 = arith.constant 0 : index
    %c0_122 = arith.constant 0 : index
    %c0_123 = arith.constant 0 : index
    %186 = vector.load %arg14[%c0_121, %c0_122, %c0_123] : memref<4x1x32xf32, #tpu.memory_space<vmem>>, vector<1x1x32xf32>
    %187 = vector.shape_cast %186 : vector<1x1x32xf32> to vector<1x32xf32>
    %c0_124 = arith.constant 0 : index
    %c0_125 = arith.constant 0 : index
    %c0_126 = arith.constant 0 : index
    %188 = vector.load %arg15[%c0_124, %c0_125, %c0_126] : memref<4x1x32xf32, #tpu.memory_space<vmem>>, vector<1x1x32xf32>
    %189 = vector.shape_cast %188 : vector<1x1x32xf32> to vector<1x32xf32>
    %cst_127 = arith.constant dense<0.000000e+00> : vector<8xf32>
    %190 = vector.multi_reduction <add>, %185, %cst_127 [1] : vector<8x32xf32> to vector<8xf32>
    %191 = vector.shape_cast %190 : vector<8xf32> to vector<8x1xf32>
    %cst_128 = arith.constant 3.200000e+01 : f32
    %192 = vector.broadcast %cst_128 : f32 to vector<8x1xf32>
    %193 = arith.divf %191, %192 : vector<8x1xf32>
    %194 = vector.broadcast %193 : vector<8x1xf32> to vector<8x32xf32>
    %195 = arith.subf %185, %194 : vector<8x32xf32>
    %196 = arith.mulf %195, %195 : vector<8x32xf32>
    %cst_129 = arith.constant dense<0.000000e+00> : vector<8xf32>
    %197 = vector.multi_reduction <add>, %196, %cst_129 [1] : vector<8x32xf32> to vector<8xf32>
    %198 = vector.shape_cast %197 : vector<8xf32> to vector<8x1xf32>
    %cst_130 = arith.constant 3.200000e+01 : f32
    %199 = vector.broadcast %cst_130 : f32 to vector<8x1xf32>
    %200 = arith.divf %198, %199 : vector<8x1xf32>
    %cst_131 = arith.constant 9.99999974E-6 : f32
    %201 = vector.broadcast %cst_131 : f32 to vector<8x1xf32>
    %202 = arith.addf %200, %201 : vector<8x1xf32>
    %203 = math.rsqrt %202 : vector<8x1xf32>
    %204 = vector.broadcast %203 : vector<8x1xf32> to vector<8x32xf32>
    %205 = arith.mulf %195, %204 : vector<8x32xf32>
    %206 = vector.broadcast %187 : vector<1x32xf32> to vector<8x32xf32>
    %207 = arith.mulf %205, %206 : vector<8x32xf32>
    %208 = vector.broadcast %189 : vector<1x32xf32> to vector<8x32xf32>
    %209 = arith.addf %207, %208 : vector<8x32xf32>
    %c0_132 = arith.constant 0 : index
    %c0_133 = arith.constant 0 : index
    %c0_134 = arith.constant 0 : index
    %210 = vector.load %arg10[%c0_132, %c0_133, %c0_134] : memref<2x32x64xf32, #tpu.memory_space<vmem>>, vector<1x32x64xf32>
    %211 = vector.shape_cast %210 : vector<1x32x64xf32> to vector<32x64xf32>
    %cst_135 = arith.constant dense<0.000000e+00> : vector<8x64xf32>
    %212 = tpu.matmul %209, %211, %cst_135 {dimension_numbers = #tpu.dot_dimension_numbers<[1], [0], [0], [1], [0, 0, 1, 1], [], []>} : vector<8x32xf32>, vector<32x64xf32>, vector<8x64xf32> -> vector<8x64xf32>
    %c0_136 = arith.constant 0 : index
    %c0_137 = arith.constant 0 : index
    %c0_138 = arith.constant 0 : index
    %213 = vector.load %arg11[%c0_136, %c0_137, %c0_138] : memref<2x1x64xf32, #tpu.memory_space<vmem>>, vector<1x1x64xf32>
    %214 = vector.shape_cast %213 : vector<1x1x64xf32> to vector<1x64xf32>
    %215 = vector.broadcast %214 : vector<1x64xf32> to vector<8x64xf32>
    %216 = arith.addf %212, %215 : vector<8x64xf32>
    %cst_139 = arith.constant 0.000000e+00 : f32
    %217 = vector.broadcast %cst_139 : f32 to vector<8x64xf32>
    %218 = arith.maximumf %216, %217 : vector<8x64xf32>
    %c0_140 = arith.constant 0 : index
    %c0_141 = arith.constant 0 : index
    %c0_142 = arith.constant 0 : index
    %219 = vector.load %arg12[%c0_140, %c0_141, %c0_142] : memref<2x64x32xf32, #tpu.memory_space<vmem>>, vector<1x64x32xf32>
    %220 = vector.shape_cast %219 : vector<1x64x32xf32> to vector<64x32xf32>
    %cst_143 = arith.constant dense<0.000000e+00> : vector<8x32xf32>
    %221 = tpu.matmul %218, %220, %cst_143 {dimension_numbers = #tpu.dot_dimension_numbers<[1], [0], [0], [1], [0, 0, 1, 1], [], []>} : vector<8x64xf32>, vector<64x32xf32>, vector<8x32xf32> -> vector<8x32xf32>
    %c0_144 = arith.constant 0 : index
    %c0_145 = arith.constant 0 : index
    %c0_146 = arith.constant 0 : index
    %222 = vector.load %arg13[%c0_144, %c0_145, %c0_146] : memref<2x1x32xf32, #tpu.memory_space<vmem>>, vector<1x1x32xf32>
    %223 = vector.shape_cast %222 : vector<1x1x32xf32> to vector<1x32xf32>
    %224 = vector.broadcast %223 : vector<1x32xf32> to vector<8x32xf32>
    %225 = arith.addf %221, %224 : vector<8x32xf32>
    %226 = arith.addf %209, %225 : vector<8x32xf32>
    %c1_147 = arith.constant 1 : index
    %c0_148 = arith.constant 0 : index
    %c0_149 = arith.constant 0 : index
    %227 = vector.load %arg14[%c1_147, %c0_148, %c0_149] : memref<4x1x32xf32, #tpu.memory_space<vmem>>, vector<1x1x32xf32>
    %228 = vector.shape_cast %227 : vector<1x1x32xf32> to vector<1x32xf32>
    %c1_150 = arith.constant 1 : index
    %c0_151 = arith.constant 0 : index
    %c0_152 = arith.constant 0 : index
    %229 = vector.load %arg15[%c1_150, %c0_151, %c0_152] : memref<4x1x32xf32, #tpu.memory_space<vmem>>, vector<1x1x32xf32>
    %230 = vector.shape_cast %229 : vector<1x1x32xf32> to vector<1x32xf32>
    %cst_153 = arith.constant dense<0.000000e+00> : vector<8xf32>
    %231 = vector.multi_reduction <add>, %226, %cst_153 [1] : vector<8x32xf32> to vector<8xf32>
    %232 = vector.shape_cast %231 : vector<8xf32> to vector<8x1xf32>
    %cst_154 = arith.constant 3.200000e+01 : f32
    %233 = vector.broadcast %cst_154 : f32 to vector<8x1xf32>
    %234 = arith.divf %232, %233 : vector<8x1xf32>
    %235 = vector.broadcast %234 : vector<8x1xf32> to vector<8x32xf32>
    %236 = arith.subf %226, %235 : vector<8x32xf32>
    %237 = arith.mulf %236, %236 : vector<8x32xf32>
    %cst_155 = arith.constant dense<0.000000e+00> : vector<8xf32>
    %238 = vector.multi_reduction <add>, %237, %cst_155 [1] : vector<8x32xf32> to vector<8xf32>
    %239 = vector.shape_cast %238 : vector<8xf32> to vector<8x1xf32>
    %cst_156 = arith.constant 3.200000e+01 : f32
    %240 = vector.broadcast %cst_156 : f32 to vector<8x1xf32>
    %241 = arith.divf %239, %240 : vector<8x1xf32>
    %cst_157 = arith.constant 9.99999974E-6 : f32
    %242 = vector.broadcast %cst_157 : f32 to vector<8x1xf32>
    %243 = arith.addf %241, %242 : vector<8x1xf32>
    %244 = math.rsqrt %243 : vector<8x1xf32>
    %245 = vector.broadcast %244 : vector<8x1xf32> to vector<8x32xf32>
    %246 = arith.mulf %236, %245 : vector<8x32xf32>
    %247 = vector.broadcast %228 : vector<1x32xf32> to vector<8x32xf32>
    %248 = arith.mulf %246, %247 : vector<8x32xf32>
    %249 = vector.broadcast %230 : vector<1x32xf32> to vector<8x32xf32>
    %250 = arith.addf %248, %249 : vector<8x32xf32>
    %c12 = arith.constant 12 : index
    %c0_158 = arith.constant 0 : index
    %c0_159 = arith.constant 0 : index
    %251 = vector.load %arg6[%c12, %c0_158, %c0_159] : memref<24x32x8xf32, #tpu.memory_space<vmem>>, vector<1x32x8xf32>
    %252 = vector.shape_cast %251 : vector<1x32x8xf32> to vector<32x8xf32>
    %cst_160 = arith.constant dense<0.000000e+00> : vector<8x8xf32>
    %253 = tpu.matmul %250, %252, %cst_160 {dimension_numbers = #tpu.dot_dimension_numbers<[1], [0], [0], [1], [0, 0, 1, 1], [], []>} : vector<8x32xf32>, vector<32x8xf32>, vector<8x8xf32> -> vector<8x8xf32>
    %c12_161 = arith.constant 12 : index
    %c0_162 = arith.constant 0 : index
    %c0_163 = arith.constant 0 : index
    %254 = vector.load %arg7[%c12_161, %c0_162, %c0_163] : memref<24x1x8xf32, #tpu.memory_space<vmem>>, vector<1x1x8xf32>
    %255 = vector.shape_cast %254 : vector<1x1x8xf32> to vector<1x8xf32>
    %256 = vector.broadcast %255 : vector<1x8xf32> to vector<8x8xf32>
    %257 = arith.addf %253, %256 : vector<8x8xf32>
    %c16 = arith.constant 16 : index
    %c0_164 = arith.constant 0 : index
    %c0_165 = arith.constant 0 : index
    %258 = vector.load %arg6[%c16, %c0_164, %c0_165] : memref<24x32x8xf32, #tpu.memory_space<vmem>>, vector<1x32x8xf32>
    %259 = vector.shape_cast %258 : vector<1x32x8xf32> to vector<32x8xf32>
    %cst_166 = arith.constant dense<0.000000e+00> : vector<8x8xf32>
    %260 = tpu.matmul %250, %259, %cst_166 {dimension_numbers = #tpu.dot_dimension_numbers<[1], [0], [0], [1], [0, 0, 1, 1], [], []>} : vector<8x32xf32>, vector<32x8xf32>, vector<8x8xf32> -> vector<8x8xf32>
    %c16_167 = arith.constant 16 : index
    %c0_168 = arith.constant 0 : index
    %c0_169 = arith.constant 0 : index
    %261 = vector.load %arg7[%c16_167, %c0_168, %c0_169] : memref<24x1x8xf32, #tpu.memory_space<vmem>>, vector<1x1x8xf32>
    %262 = vector.shape_cast %261 : vector<1x1x8xf32> to vector<1x8xf32>
    %263 = vector.broadcast %262 : vector<1x8xf32> to vector<8x8xf32>
    %264 = arith.addf %260, %263 : vector<8x8xf32>
    %c20 = arith.constant 20 : index
    %c0_170 = arith.constant 0 : index
    %c0_171 = arith.constant 0 : index
    %265 = vector.load %arg6[%c20, %c0_170, %c0_171] : memref<24x32x8xf32, #tpu.memory_space<vmem>>, vector<1x32x8xf32>
    %266 = vector.shape_cast %265 : vector<1x32x8xf32> to vector<32x8xf32>
    %cst_172 = arith.constant dense<0.000000e+00> : vector<8x8xf32>
    %267 = tpu.matmul %250, %266, %cst_172 {dimension_numbers = #tpu.dot_dimension_numbers<[1], [0], [0], [1], [0, 0, 1, 1], [], []>} : vector<8x32xf32>, vector<32x8xf32>, vector<8x8xf32> -> vector<8x8xf32>
    %c20_173 = arith.constant 20 : index
    %c0_174 = arith.constant 0 : index
    %c0_175 = arith.constant 0 : index
    %268 = vector.load %arg7[%c20_173, %c0_174, %c0_175] : memref<24x1x8xf32, #tpu.memory_space<vmem>>, vector<1x1x8xf32>
    %269 = vector.shape_cast %268 : vector<1x1x8xf32> to vector<1x8xf32>
    %270 = vector.broadcast %269 : vector<1x8xf32> to vector<8x8xf32>
    %271 = arith.addf %267, %270 : vector<8x8xf32>
    %cst_176 = arith.constant dense<0.000000e+00> : vector<8x8xf32>
    %272 = tpu.matmul %257, %264, %cst_176 {dimension_numbers = #tpu.dot_dimension_numbers<[1], [1], [0], [0], [0, 0, 1, 0], [], []>} : vector<8x8xf32>, vector<8x8xf32>, vector<8x8xf32> -> vector<8x8xf32>
    %cst_177 = arith.constant 0.353553385 : f32
    %273 = vector.broadcast %cst_177 : f32 to vector<8x8xf32>
    %274 = arith.mulf %272, %273 : vector<8x8xf32>
    %275 = arith.addf %274, %5 : vector<8x8xf32>
    %cst_178 = arith.constant dense<0xFF800000> : vector<8xf32>
    %276 = vector.multi_reduction <maximumf>, %275, %cst_178 [1] : vector<8x8xf32> to vector<8xf32>
    %277 = vector.shape_cast %276 : vector<8xf32> to vector<8x1xf32>
    %278 = vector.broadcast %277 : vector<8x1xf32> to vector<8x8xf32>
    %279 = arith.subf %275, %278 : vector<8x8xf32>
    %280 = math.exp %279 : vector<8x8xf32>
    %cst_179 = arith.constant dense<0.000000e+00> : vector<8xf32>
    %281 = vector.multi_reduction <add>, %280, %cst_179 [1] : vector<8x8xf32> to vector<8xf32>
    %282 = vector.shape_cast %281 : vector<8xf32> to vector<8x1xf32>
    %283 = tpu.reciprocal %282 {approx = true} : vector<8x1xf32> -> vector<8x1xf32>
    %284 = vector.broadcast %283 : vector<8x1xf32> to vector<8x8xf32>
    %285 = arith.mulf %280, %284 : vector<8x8xf32>
    %cst_180 = arith.constant dense<0.000000e+00> : vector<8x8xf32>
    %286 = tpu.matmul %285, %271, %cst_180 {dimension_numbers = #tpu.dot_dimension_numbers<[1], [0], [0], [1], [0, 0, 1, 1], [], []>} : vector<8x8xf32>, vector<8x8xf32>, vector<8x8xf32> -> vector<8x8xf32>
    %c4_181 = arith.constant 4 : index
    %c0_182 = arith.constant 0 : index
    %c0_183 = arith.constant 0 : index
    %287 = vector.load %arg8[%c4_181, %c0_182, %c0_183] : memref<8x8x32xf32, #tpu.memory_space<vmem>>, vector<1x8x32xf32>
    %288 = vector.shape_cast %287 : vector<1x8x32xf32> to vector<8x32xf32>
    %cst_184 = arith.constant dense<0.000000e+00> : vector<8x32xf32>
    %289 = tpu.matmul %286, %288, %cst_184 {dimension_numbers = #tpu.dot_dimension_numbers<[1], [0], [0], [1], [0, 0, 1, 1], [], []>} : vector<8x8xf32>, vector<8x32xf32>, vector<8x32xf32> -> vector<8x32xf32>
    %c13 = arith.constant 13 : index
    %c0_185 = arith.constant 0 : index
    %c0_186 = arith.constant 0 : index
    %290 = vector.load %arg6[%c13, %c0_185, %c0_186] : memref<24x32x8xf32, #tpu.memory_space<vmem>>, vector<1x32x8xf32>
    %291 = vector.shape_cast %290 : vector<1x32x8xf32> to vector<32x8xf32>
    %cst_187 = arith.constant dense<0.000000e+00> : vector<8x8xf32>
    %292 = tpu.matmul %250, %291, %cst_187 {dimension_numbers = #tpu.dot_dimension_numbers<[1], [0], [0], [1], [0, 0, 1, 1], [], []>} : vector<8x32xf32>, vector<32x8xf32>, vector<8x8xf32> -> vector<8x8xf32>
    %c13_188 = arith.constant 13 : index
    %c0_189 = arith.constant 0 : index
    %c0_190 = arith.constant 0 : index
    %293 = vector.load %arg7[%c13_188, %c0_189, %c0_190] : memref<24x1x8xf32, #tpu.memory_space<vmem>>, vector<1x1x8xf32>
    %294 = vector.shape_cast %293 : vector<1x1x8xf32> to vector<1x8xf32>
    %295 = vector.broadcast %294 : vector<1x8xf32> to vector<8x8xf32>
    %296 = arith.addf %292, %295 : vector<8x8xf32>
    %c17 = arith.constant 17 : index
    %c0_191 = arith.constant 0 : index
    %c0_192 = arith.constant 0 : index
    %297 = vector.load %arg6[%c17, %c0_191, %c0_192] : memref<24x32x8xf32, #tpu.memory_space<vmem>>, vector<1x32x8xf32>
    %298 = vector.shape_cast %297 : vector<1x32x8xf32> to vector<32x8xf32>
    %cst_193 = arith.constant dense<0.000000e+00> : vector<8x8xf32>
    %299 = tpu.matmul %250, %298, %cst_193 {dimension_numbers = #tpu.dot_dimension_numbers<[1], [0], [0], [1], [0, 0, 1, 1], [], []>} : vector<8x32xf32>, vector<32x8xf32>, vector<8x8xf32> -> vector<8x8xf32>
    %c17_194 = arith.constant 17 : index
    %c0_195 = arith.constant 0 : index
    %c0_196 = arith.constant 0 : index
    %300 = vector.load %arg7[%c17_194, %c0_195, %c0_196] : memref<24x1x8xf32, #tpu.memory_space<vmem>>, vector<1x1x8xf32>
    %301 = vector.shape_cast %300 : vector<1x1x8xf32> to vector<1x8xf32>
    %302 = vector.broadcast %301 : vector<1x8xf32> to vector<8x8xf32>
    %303 = arith.addf %299, %302 : vector<8x8xf32>
    %c21 = arith.constant 21 : index
    %c0_197 = arith.constant 0 : index
    %c0_198 = arith.constant 0 : index
    %304 = vector.load %arg6[%c21, %c0_197, %c0_198] : memref<24x32x8xf32, #tpu.memory_space<vmem>>, vector<1x32x8xf32>
    %305 = vector.shape_cast %304 : vector<1x32x8xf32> to vector<32x8xf32>
    %cst_199 = arith.constant dense<0.000000e+00> : vector<8x8xf32>
    %306 = tpu.matmul %250, %305, %cst_199 {dimension_numbers = #tpu.dot_dimension_numbers<[1], [0], [0], [1], [0, 0, 1, 1], [], []>} : vector<8x32xf32>, vector<32x8xf32>, vector<8x8xf32> -> vector<8x8xf32>
    %c21_200 = arith.constant 21 : index
    %c0_201 = arith.constant 0 : index
    %c0_202 = arith.constant 0 : index
    %307 = vector.load %arg7[%c21_200, %c0_201, %c0_202] : memref<24x1x8xf32, #tpu.memory_space<vmem>>, vector<1x1x8xf32>
    %308 = vector.shape_cast %307 : vector<1x1x8xf32> to vector<1x8xf32>
    %309 = vector.broadcast %308 : vector<1x8xf32> to vector<8x8xf32>
    %310 = arith.addf %306, %309 : vector<8x8xf32>
    %cst_203 = arith.constant dense<0.000000e+00> : vector<8x8xf32>
    %311 = tpu.matmul %296, %303, %cst_203 {dimension_numbers = #tpu.dot_dimension_numbers<[1], [1], [0], [0], [0, 0, 1, 0], [], []>} : vector<8x8xf32>, vector<8x8xf32>, vector<8x8xf32> -> vector<8x8xf32>
    %cst_204 = arith.constant 0.353553385 : f32
    %312 = vector.broadcast %cst_204 : f32 to vector<8x8xf32>
    %313 = arith.mulf %311, %312 : vector<8x8xf32>
    %314 = arith.addf %313, %5 : vector<8x8xf32>
    %cst_205 = arith.constant dense<0xFF800000> : vector<8xf32>
    %315 = vector.multi_reduction <maximumf>, %314, %cst_205 [1] : vector<8x8xf32> to vector<8xf32>
    %316 = vector.shape_cast %315 : vector<8xf32> to vector<8x1xf32>
    %317 = vector.broadcast %316 : vector<8x1xf32> to vector<8x8xf32>
    %318 = arith.subf %314, %317 : vector<8x8xf32>
    %319 = math.exp %318 : vector<8x8xf32>
    %cst_206 = arith.constant dense<0.000000e+00> : vector<8xf32>
    %320 = vector.multi_reduction <add>, %319, %cst_206 [1] : vector<8x8xf32> to vector<8xf32>
    %321 = vector.shape_cast %320 : vector<8xf32> to vector<8x1xf32>
    %322 = tpu.reciprocal %321 {approx = true} : vector<8x1xf32> -> vector<8x1xf32>
    %323 = vector.broadcast %322 : vector<8x1xf32> to vector<8x8xf32>
    %324 = arith.mulf %319, %323 : vector<8x8xf32>
    %cst_207 = arith.constant dense<0.000000e+00> : vector<8x8xf32>
    %325 = tpu.matmul %324, %310, %cst_207 {dimension_numbers = #tpu.dot_dimension_numbers<[1], [0], [0], [1], [0, 0, 1, 1], [], []>} : vector<8x8xf32>, vector<8x8xf32>, vector<8x8xf32> -> vector<8x8xf32>
    %c5_208 = arith.constant 5 : index
    %c0_209 = arith.constant 0 : index
    %c0_210 = arith.constant 0 : index
    %326 = vector.load %arg8[%c5_208, %c0_209, %c0_210] : memref<8x8x32xf32, #tpu.memory_space<vmem>>, vector<1x8x32xf32>
    %327 = vector.shape_cast %326 : vector<1x8x32xf32> to vector<8x32xf32>
    %cst_211 = arith.constant dense<0.000000e+00> : vector<8x32xf32>
    %328 = tpu.matmul %325, %327, %cst_211 {dimension_numbers = #tpu.dot_dimension_numbers<[1], [0], [0], [1], [0, 0, 1, 1], [], []>} : vector<8x8xf32>, vector<8x32xf32>, vector<8x32xf32> -> vector<8x32xf32>
    %329 = arith.addf %289, %328 : vector<8x32xf32>
    %c14 = arith.constant 14 : index
    %c0_212 = arith.constant 0 : index
    %c0_213 = arith.constant 0 : index
    %330 = vector.load %arg6[%c14, %c0_212, %c0_213] : memref<24x32x8xf32, #tpu.memory_space<vmem>>, vector<1x32x8xf32>
    %331 = vector.shape_cast %330 : vector<1x32x8xf32> to vector<32x8xf32>
    %cst_214 = arith.constant dense<0.000000e+00> : vector<8x8xf32>
    %332 = tpu.matmul %250, %331, %cst_214 {dimension_numbers = #tpu.dot_dimension_numbers<[1], [0], [0], [1], [0, 0, 1, 1], [], []>} : vector<8x32xf32>, vector<32x8xf32>, vector<8x8xf32> -> vector<8x8xf32>
    %c14_215 = arith.constant 14 : index
    %c0_216 = arith.constant 0 : index
    %c0_217 = arith.constant 0 : index
    %333 = vector.load %arg7[%c14_215, %c0_216, %c0_217] : memref<24x1x8xf32, #tpu.memory_space<vmem>>, vector<1x1x8xf32>
    %334 = vector.shape_cast %333 : vector<1x1x8xf32> to vector<1x8xf32>
    %335 = vector.broadcast %334 : vector<1x8xf32> to vector<8x8xf32>
    %336 = arith.addf %332, %335 : vector<8x8xf32>
    %c18 = arith.constant 18 : index
    %c0_218 = arith.constant 0 : index
    %c0_219 = arith.constant 0 : index
    %337 = vector.load %arg6[%c18, %c0_218, %c0_219] : memref<24x32x8xf32, #tpu.memory_space<vmem>>, vector<1x32x8xf32>
    %338 = vector.shape_cast %337 : vector<1x32x8xf32> to vector<32x8xf32>
    %cst_220 = arith.constant dense<0.000000e+00> : vector<8x8xf32>
    %339 = tpu.matmul %250, %338, %cst_220 {dimension_numbers = #tpu.dot_dimension_numbers<[1], [0], [0], [1], [0, 0, 1, 1], [], []>} : vector<8x32xf32>, vector<32x8xf32>, vector<8x8xf32> -> vector<8x8xf32>
    %c18_221 = arith.constant 18 : index
    %c0_222 = arith.constant 0 : index
    %c0_223 = arith.constant 0 : index
    %340 = vector.load %arg7[%c18_221, %c0_222, %c0_223] : memref<24x1x8xf32, #tpu.memory_space<vmem>>, vector<1x1x8xf32>
    %341 = vector.shape_cast %340 : vector<1x1x8xf32> to vector<1x8xf32>
    %342 = vector.broadcast %341 : vector<1x8xf32> to vector<8x8xf32>
    %343 = arith.addf %339, %342 : vector<8x8xf32>
    %c22 = arith.constant 22 : index
    %c0_224 = arith.constant 0 : index
    %c0_225 = arith.constant 0 : index
    %344 = vector.load %arg6[%c22, %c0_224, %c0_225] : memref<24x32x8xf32, #tpu.memory_space<vmem>>, vector<1x32x8xf32>
    %345 = vector.shape_cast %344 : vector<1x32x8xf32> to vector<32x8xf32>
    %cst_226 = arith.constant dense<0.000000e+00> : vector<8x8xf32>
    %346 = tpu.matmul %250, %345, %cst_226 {dimension_numbers = #tpu.dot_dimension_numbers<[1], [0], [0], [1], [0, 0, 1, 1], [], []>} : vector<8x32xf32>, vector<32x8xf32>, vector<8x8xf32> -> vector<8x8xf32>
    %c22_227 = arith.constant 22 : index
    %c0_228 = arith.constant 0 : index
    %c0_229 = arith.constant 0 : index
    %347 = vector.load %arg7[%c22_227, %c0_228, %c0_229] : memref<24x1x8xf32, #tpu.memory_space<vmem>>, vector<1x1x8xf32>
    %348 = vector.shape_cast %347 : vector<1x1x8xf32> to vector<1x8xf32>
    %349 = vector.broadcast %348 : vector<1x8xf32> to vector<8x8xf32>
    %350 = arith.addf %346, %349 : vector<8x8xf32>
    %cst_230 = arith.constant dense<0.000000e+00> : vector<8x8xf32>
    %351 = tpu.matmul %336, %343, %cst_230 {dimension_numbers = #tpu.dot_dimension_numbers<[1], [1], [0], [0], [0, 0, 1, 0], [], []>} : vector<8x8xf32>, vector<8x8xf32>, vector<8x8xf32> -> vector<8x8xf32>
    %cst_231 = arith.constant 0.353553385 : f32
    %352 = vector.broadcast %cst_231 : f32 to vector<8x8xf32>
    %353 = arith.mulf %351, %352 : vector<8x8xf32>
    %354 = arith.addf %353, %5 : vector<8x8xf32>
    %cst_232 = arith.constant dense<0xFF800000> : vector<8xf32>
    %355 = vector.multi_reduction <maximumf>, %354, %cst_232 [1] : vector<8x8xf32> to vector<8xf32>
    %356 = vector.shape_cast %355 : vector<8xf32> to vector<8x1xf32>
    %357 = vector.broadcast %356 : vector<8x1xf32> to vector<8x8xf32>
    %358 = arith.subf %354, %357 : vector<8x8xf32>
    %359 = math.exp %358 : vector<8x8xf32>
    %cst_233 = arith.constant dense<0.000000e+00> : vector<8xf32>
    %360 = vector.multi_reduction <add>, %359, %cst_233 [1] : vector<8x8xf32> to vector<8xf32>
    %361 = vector.shape_cast %360 : vector<8xf32> to vector<8x1xf32>
    %362 = tpu.reciprocal %361 {approx = true} : vector<8x1xf32> -> vector<8x1xf32>
    %363 = vector.broadcast %362 : vector<8x1xf32> to vector<8x8xf32>
    %364 = arith.mulf %359, %363 : vector<8x8xf32>
    %cst_234 = arith.constant dense<0.000000e+00> : vector<8x8xf32>
    %365 = tpu.matmul %364, %350, %cst_234 {dimension_numbers = #tpu.dot_dimension_numbers<[1], [0], [0], [1], [0, 0, 1, 1], [], []>} : vector<8x8xf32>, vector<8x8xf32>, vector<8x8xf32> -> vector<8x8xf32>
    %c6_235 = arith.constant 6 : index
    %c0_236 = arith.constant 0 : index
    %c0_237 = arith.constant 0 : index
    %366 = vector.load %arg8[%c6_235, %c0_236, %c0_237] : memref<8x8x32xf32, #tpu.memory_space<vmem>>, vector<1x8x32xf32>
    %367 = vector.shape_cast %366 : vector<1x8x32xf32> to vector<8x32xf32>
    %cst_238 = arith.constant dense<0.000000e+00> : vector<8x32xf32>
    %368 = tpu.matmul %365, %367, %cst_238 {dimension_numbers = #tpu.dot_dimension_numbers<[1], [0], [0], [1], [0, 0, 1, 1], [], []>} : vector<8x8xf32>, vector<8x32xf32>, vector<8x32xf32> -> vector<8x32xf32>
    %369 = arith.addf %329, %368 : vector<8x32xf32>
    %c15 = arith.constant 15 : index
    %c0_239 = arith.constant 0 : index
    %c0_240 = arith.constant 0 : index
    %370 = vector.load %arg6[%c15, %c0_239, %c0_240] : memref<24x32x8xf32, #tpu.memory_space<vmem>>, vector<1x32x8xf32>
    %371 = vector.shape_cast %370 : vector<1x32x8xf32> to vector<32x8xf32>
    %cst_241 = arith.constant dense<0.000000e+00> : vector<8x8xf32>
    %372 = tpu.matmul %250, %371, %cst_241 {dimension_numbers = #tpu.dot_dimension_numbers<[1], [0], [0], [1], [0, 0, 1, 1], [], []>} : vector<8x32xf32>, vector<32x8xf32>, vector<8x8xf32> -> vector<8x8xf32>
    %c15_242 = arith.constant 15 : index
    %c0_243 = arith.constant 0 : index
    %c0_244 = arith.constant 0 : index
    %373 = vector.load %arg7[%c15_242, %c0_243, %c0_244] : memref<24x1x8xf32, #tpu.memory_space<vmem>>, vector<1x1x8xf32>
    %374 = vector.shape_cast %373 : vector<1x1x8xf32> to vector<1x8xf32>
    %375 = vector.broadcast %374 : vector<1x8xf32> to vector<8x8xf32>
    %376 = arith.addf %372, %375 : vector<8x8xf32>
    %c19 = arith.constant 19 : index
    %c0_245 = arith.constant 0 : index
    %c0_246 = arith.constant 0 : index
    %377 = vector.load %arg6[%c19, %c0_245, %c0_246] : memref<24x32x8xf32, #tpu.memory_space<vmem>>, vector<1x32x8xf32>
    %378 = vector.shape_cast %377 : vector<1x32x8xf32> to vector<32x8xf32>
    %cst_247 = arith.constant dense<0.000000e+00> : vector<8x8xf32>
    %379 = tpu.matmul %250, %378, %cst_247 {dimension_numbers = #tpu.dot_dimension_numbers<[1], [0], [0], [1], [0, 0, 1, 1], [], []>} : vector<8x32xf32>, vector<32x8xf32>, vector<8x8xf32> -> vector<8x8xf32>
    %c19_248 = arith.constant 19 : index
    %c0_249 = arith.constant 0 : index
    %c0_250 = arith.constant 0 : index
    %380 = vector.load %arg7[%c19_248, %c0_249, %c0_250] : memref<24x1x8xf32, #tpu.memory_space<vmem>>, vector<1x1x8xf32>
    %381 = vector.shape_cast %380 : vector<1x1x8xf32> to vector<1x8xf32>
    %382 = vector.broadcast %381 : vector<1x8xf32> to vector<8x8xf32>
    %383 = arith.addf %379, %382 : vector<8x8xf32>
    %c23 = arith.constant 23 : index
    %c0_251 = arith.constant 0 : index
    %c0_252 = arith.constant 0 : index
    %384 = vector.load %arg6[%c23, %c0_251, %c0_252] : memref<24x32x8xf32, #tpu.memory_space<vmem>>, vector<1x32x8xf32>
    %385 = vector.shape_cast %384 : vector<1x32x8xf32> to vector<32x8xf32>
    %cst_253 = arith.constant dense<0.000000e+00> : vector<8x8xf32>
    %386 = tpu.matmul %250, %385, %cst_253 {dimension_numbers = #tpu.dot_dimension_numbers<[1], [0], [0], [1], [0, 0, 1, 1], [], []>} : vector<8x32xf32>, vector<32x8xf32>, vector<8x8xf32> -> vector<8x8xf32>
    %c23_254 = arith.constant 23 : index
    %c0_255 = arith.constant 0 : index
    %c0_256 = arith.constant 0 : index
    %387 = vector.load %arg7[%c23_254, %c0_255, %c0_256] : memref<24x1x8xf32, #tpu.memory_space<vmem>>, vector<1x1x8xf32>
    %388 = vector.shape_cast %387 : vector<1x1x8xf32> to vector<1x8xf32>
    %389 = vector.broadcast %388 : vector<1x8xf32> to vector<8x8xf32>
    %390 = arith.addf %386, %389 : vector<8x8xf32>
    %cst_257 = arith.constant dense<0.000000e+00> : vector<8x8xf32>
    %391 = tpu.matmul %376, %383, %cst_257 {dimension_numbers = #tpu.dot_dimension_numbers<[1], [1], [0], [0], [0, 0, 1, 0], [], []>} : vector<8x8xf32>, vector<8x8xf32>, vector<8x8xf32> -> vector<8x8xf32>
    %cst_258 = arith.constant 0.353553385 : f32
    %392 = vector.broadcast %cst_258 : f32 to vector<8x8xf32>
    %393 = arith.mulf %391, %392 : vector<8x8xf32>
    %394 = arith.addf %393, %5 : vector<8x8xf32>
    %cst_259 = arith.constant dense<0xFF800000> : vector<8xf32>
    %395 = vector.multi_reduction <maximumf>, %394, %cst_259 [1] : vector<8x8xf32> to vector<8xf32>
    %396 = vector.shape_cast %395 : vector<8xf32> to vector<8x1xf32>
    %397 = vector.broadcast %396 : vector<8x1xf32> to vector<8x8xf32>
    %398 = arith.subf %394, %397 : vector<8x8xf32>
    %399 = math.exp %398 : vector<8x8xf32>
    %cst_260 = arith.constant dense<0.000000e+00> : vector<8xf32>
    %400 = vector.multi_reduction <add>, %399, %cst_260 [1] : vector<8x8xf32> to vector<8xf32>
    %401 = vector.shape_cast %400 : vector<8xf32> to vector<8x1xf32>
    %402 = tpu.reciprocal %401 {approx = true} : vector<8x1xf32> -> vector<8x1xf32>
    %403 = vector.broadcast %402 : vector<8x1xf32> to vector<8x8xf32>
    %404 = arith.mulf %399, %403 : vector<8x8xf32>
    %cst_261 = arith.constant dense<0.000000e+00> : vector<8x8xf32>
    %405 = tpu.matmul %404, %390, %cst_261 {dimension_numbers = #tpu.dot_dimension_numbers<[1], [0], [0], [1], [0, 0, 1, 1], [], []>} : vector<8x8xf32>, vector<8x8xf32>, vector<8x8xf32> -> vector<8x8xf32>
    %c7_262 = arith.constant 7 : index
    %c0_263 = arith.constant 0 : index
    %c0_264 = arith.constant 0 : index
    %406 = vector.load %arg8[%c7_262, %c0_263, %c0_264] : memref<8x8x32xf32, #tpu.memory_space<vmem>>, vector<1x8x32xf32>
    %407 = vector.shape_cast %406 : vector<1x8x32xf32> to vector<8x32xf32>
    %cst_265 = arith.constant dense<0.000000e+00> : vector<8x32xf32>
    %408 = tpu.matmul %405, %407, %cst_265 {dimension_numbers = #tpu.dot_dimension_numbers<[1], [0], [0], [1], [0, 0, 1, 1], [], []>} : vector<8x8xf32>, vector<8x32xf32>, vector<8x32xf32> -> vector<8x32xf32>
    %409 = arith.addf %369, %408 : vector<8x32xf32>
    %c1_266 = arith.constant 1 : index
    %c0_267 = arith.constant 0 : index
    %c0_268 = arith.constant 0 : index
    %410 = vector.load %arg9[%c1_266, %c0_267, %c0_268] : memref<2x1x32xf32, #tpu.memory_space<vmem>>, vector<1x1x32xf32>
    %411 = vector.shape_cast %410 : vector<1x1x32xf32> to vector<1x32xf32>
    %412 = vector.broadcast %411 : vector<1x32xf32> to vector<8x32xf32>
    %413 = arith.addf %409, %412 : vector<8x32xf32>
    %414 = arith.addf %250, %413 : vector<8x32xf32>
    %c2_269 = arith.constant 2 : index
    %c0_270 = arith.constant 0 : index
    %c0_271 = arith.constant 0 : index
    %415 = vector.load %arg14[%c2_269, %c0_270, %c0_271] : memref<4x1x32xf32, #tpu.memory_space<vmem>>, vector<1x1x32xf32>
    %416 = vector.shape_cast %415 : vector<1x1x32xf32> to vector<1x32xf32>
    %c2_272 = arith.constant 2 : index
    %c0_273 = arith.constant 0 : index
    %c0_274 = arith.constant 0 : index
    %417 = vector.load %arg15[%c2_272, %c0_273, %c0_274] : memref<4x1x32xf32, #tpu.memory_space<vmem>>, vector<1x1x32xf32>
    %418 = vector.shape_cast %417 : vector<1x1x32xf32> to vector<1x32xf32>
    %cst_275 = arith.constant dense<0.000000e+00> : vector<8xf32>
    %419 = vector.multi_reduction <add>, %414, %cst_275 [1] : vector<8x32xf32> to vector<8xf32>
    %420 = vector.shape_cast %419 : vector<8xf32> to vector<8x1xf32>
    %cst_276 = arith.constant 3.200000e+01 : f32
    %421 = vector.broadcast %cst_276 : f32 to vector<8x1xf32>
    %422 = arith.divf %420, %421 : vector<8x1xf32>
    %423 = vector.broadcast %422 : vector<8x1xf32> to vector<8x32xf32>
    %424 = arith.subf %414, %423 : vector<8x32xf32>
    %425 = arith.mulf %424, %424 : vector<8x32xf32>
    %cst_277 = arith.constant dense<0.000000e+00> : vector<8xf32>
    %426 = vector.multi_reduction <add>, %425, %cst_277 [1] : vector<8x32xf32> to vector<8xf32>
    %427 = vector.shape_cast %426 : vector<8xf32> to vector<8x1xf32>
    %cst_278 = arith.constant 3.200000e+01 : f32
    %428 = vector.broadcast %cst_278 : f32 to vector<8x1xf32>
    %429 = arith.divf %427, %428 : vector<8x1xf32>
    %cst_279 = arith.constant 9.99999974E-6 : f32
    %430 = vector.broadcast %cst_279 : f32 to vector<8x1xf32>
    %431 = arith.addf %429, %430 : vector<8x1xf32>
    %432 = math.rsqrt %431 : vector<8x1xf32>
    %433 = vector.broadcast %432 : vector<8x1xf32> to vector<8x32xf32>
    %434 = arith.mulf %424, %433 : vector<8x32xf32>
    %435 = vector.broadcast %416 : vector<1x32xf32> to vector<8x32xf32>
    %436 = arith.mulf %434, %435 : vector<8x32xf32>
    %437 = vector.broadcast %418 : vector<1x32xf32> to vector<8x32xf32>
    %438 = arith.addf %436, %437 : vector<8x32xf32>
    %c1_280 = arith.constant 1 : index
    %c0_281 = arith.constant 0 : index
    %c0_282 = arith.constant 0 : index
    %439 = vector.load %arg10[%c1_280, %c0_281, %c0_282] : memref<2x32x64xf32, #tpu.memory_space<vmem>>, vector<1x32x64xf32>
    %440 = vector.shape_cast %439 : vector<1x32x64xf32> to vector<32x64xf32>
    %cst_283 = arith.constant dense<0.000000e+00> : vector<8x64xf32>
    %441 = tpu.matmul %438, %440, %cst_283 {dimension_numbers = #tpu.dot_dimension_numbers<[1], [0], [0], [1], [0, 0, 1, 1], [], []>} : vector<8x32xf32>, vector<32x64xf32>, vector<8x64xf32> -> vector<8x64xf32>
    %c1_284 = arith.constant 1 : index
    %c0_285 = arith.constant 0 : index
    %c0_286 = arith.constant 0 : index
    %442 = vector.load %arg11[%c1_284, %c0_285, %c0_286] : memref<2x1x64xf32, #tpu.memory_space<vmem>>, vector<1x1x64xf32>
    %443 = vector.shape_cast %442 : vector<1x1x64xf32> to vector<1x64xf32>
    %444 = vector.broadcast %443 : vector<1x64xf32> to vector<8x64xf32>
    %445 = arith.addf %441, %444 : vector<8x64xf32>
    %cst_287 = arith.constant 0.000000e+00 : f32
    %446 = vector.broadcast %cst_287 : f32 to vector<8x64xf32>
    %447 = arith.maximumf %445, %446 : vector<8x64xf32>
    %c1_288 = arith.constant 1 : index
    %c0_289 = arith.constant 0 : index
    %c0_290 = arith.constant 0 : index
    %448 = vector.load %arg12[%c1_288, %c0_289, %c0_290] : memref<2x64x32xf32, #tpu.memory_space<vmem>>, vector<1x64x32xf32>
    %449 = vector.shape_cast %448 : vector<1x64x32xf32> to vector<64x32xf32>
    %cst_291 = arith.constant dense<0.000000e+00> : vector<8x32xf32>
    %450 = tpu.matmul %447, %449, %cst_291 {dimension_numbers = #tpu.dot_dimension_numbers<[1], [0], [0], [1], [0, 0, 1, 1], [], []>} : vector<8x64xf32>, vector<64x32xf32>, vector<8x32xf32> -> vector<8x32xf32>
    %c1_292 = arith.constant 1 : index
    %c0_293 = arith.constant 0 : index
    %c0_294 = arith.constant 0 : index
    %451 = vector.load %arg13[%c1_292, %c0_293, %c0_294] : memref<2x1x32xf32, #tpu.memory_space<vmem>>, vector<1x1x32xf32>
    %452 = vector.shape_cast %451 : vector<1x1x32xf32> to vector<1x32xf32>
    %453 = vector.broadcast %452 : vector<1x32xf32> to vector<8x32xf32>
    %454 = arith.addf %450, %453 : vector<8x32xf32>
    %455 = arith.addf %438, %454 : vector<8x32xf32>
    %c3_295 = arith.constant 3 : index
    %c0_296 = arith.constant 0 : index
    %c0_297 = arith.constant 0 : index
    %456 = vector.load %arg14[%c3_295, %c0_296, %c0_297] : memref<4x1x32xf32, #tpu.memory_space<vmem>>, vector<1x1x32xf32>
    %457 = vector.shape_cast %456 : vector<1x1x32xf32> to vector<1x32xf32>
    %c3_298 = arith.constant 3 : index
    %c0_299 = arith.constant 0 : index
    %c0_300 = arith.constant 0 : index
    %458 = vector.load %arg15[%c3_298, %c0_299, %c0_300] : memref<4x1x32xf32, #tpu.memory_space<vmem>>, vector<1x1x32xf32>
    %459 = vector.shape_cast %458 : vector<1x1x32xf32> to vector<1x32xf32>
    %cst_301 = arith.constant dense<0.000000e+00> : vector<8xf32>
    %460 = vector.multi_reduction <add>, %455, %cst_301 [1] : vector<8x32xf32> to vector<8xf32>
    %461 = vector.shape_cast %460 : vector<8xf32> to vector<8x1xf32>
    %cst_302 = arith.constant 3.200000e+01 : f32
    %462 = vector.broadcast %cst_302 : f32 to vector<8x1xf32>
    %463 = arith.divf %461, %462 : vector<8x1xf32>
    %464 = vector.broadcast %463 : vector<8x1xf32> to vector<8x32xf32>
    %465 = arith.subf %455, %464 : vector<8x32xf32>
    %466 = arith.mulf %465, %465 : vector<8x32xf32>
    %cst_303 = arith.constant dense<0.000000e+00> : vector<8xf32>
    %467 = vector.multi_reduction <add>, %466, %cst_303 [1] : vector<8x32xf32> to vector<8xf32>
    %468 = vector.shape_cast %467 : vector<8xf32> to vector<8x1xf32>
    %cst_304 = arith.constant 3.200000e+01 : f32
    %469 = vector.broadcast %cst_304 : f32 to vector<8x1xf32>
    %470 = arith.divf %468, %469 : vector<8x1xf32>
    %cst_305 = arith.constant 9.99999974E-6 : f32
    %471 = vector.broadcast %cst_305 : f32 to vector<8x1xf32>
    %472 = arith.addf %470, %471 : vector<8x1xf32>
    %473 = math.rsqrt %472 : vector<8x1xf32>
    %474 = vector.broadcast %473 : vector<8x1xf32> to vector<8x32xf32>
    %475 = arith.mulf %465, %474 : vector<8x32xf32>
    %476 = vector.broadcast %457 : vector<1x32xf32> to vector<8x32xf32>
    %477 = arith.mulf %475, %476 : vector<8x32xf32>
    %478 = vector.broadcast %459 : vector<1x32xf32> to vector<8x32xf32>
    %479 = arith.addf %477, %478 : vector<8x32xf32>
    %c0_306 = arith.constant 0 : index
    %c0_307 = arith.constant 0 : index
    %480 = vector.load %arg16[%c0_306, %c0_307] : memref<1x32xf32, #tpu.memory_space<vmem>>, vector<1x32xf32>
    %c0_308 = arith.constant 0 : index
    %c0_309 = arith.constant 0 : index
    %481 = vector.load %arg17[%c0_308, %c0_309] : memref<1x32xf32, #tpu.memory_space<vmem>>, vector<1x32xf32>
    %cst_310 = arith.constant dense<0.000000e+00> : vector<8xf32>
    %482 = vector.multi_reduction <add>, %479, %cst_310 [1] : vector<8x32xf32> to vector<8xf32>
    %483 = vector.shape_cast %482 : vector<8xf32> to vector<8x1xf32>
    %cst_311 = arith.constant 3.200000e+01 : f32
    %484 = vector.broadcast %cst_311 : f32 to vector<8x1xf32>
    %485 = arith.divf %483, %484 : vector<8x1xf32>
    %486 = vector.broadcast %485 : vector<8x1xf32> to vector<8x32xf32>
    %487 = arith.subf %479, %486 : vector<8x32xf32>
    %488 = arith.mulf %487, %487 : vector<8x32xf32>
    %cst_312 = arith.constant dense<0.000000e+00> : vector<8xf32>
    %489 = vector.multi_reduction <add>, %488, %cst_312 [1] : vector<8x32xf32> to vector<8xf32>
    %490 = vector.shape_cast %489 : vector<8xf32> to vector<8x1xf32>
    %cst_313 = arith.constant 3.200000e+01 : f32
    %491 = vector.broadcast %cst_313 : f32 to vector<8x1xf32>
    %492 = arith.divf %490, %491 : vector<8x1xf32>
    %cst_314 = arith.constant 9.99999974E-6 : f32
    %493 = vector.broadcast %cst_314 : f32 to vector<8x1xf32>
    %494 = arith.addf %492, %493 : vector<8x1xf32>
    %495 = math.rsqrt %494 : vector<8x1xf32>
    %496 = vector.broadcast %495 : vector<8x1xf32> to vector<8x32xf32>
    %497 = arith.mulf %487, %496 : vector<8x32xf32>
    %498 = vector.broadcast %480 : vector<1x32xf32> to vector<8x32xf32>
    %499 = arith.mulf %497, %498 : vector<8x32xf32>
    %500 = vector.broadcast %481 : vector<1x32xf32> to vector<8x32xf32>
    %501 = arith.addf %499, %500 : vector<8x32xf32>
    %c0_315 = arith.constant 0 : index
    %c0_316 = arith.constant 0 : index
    %502 = vector.load %arg2[%c0_315, %c0_316] : memref<8x1xi32, #tpu.memory_space<vmem>>, vector<8x1xi32>
    %503 = tpu.iota {dimensions = array<i32: 1>} : vector<8x16xi32>
    %504 = vector.broadcast %502 : vector<8x1xi32> to vector<8x16xi32>
    %505 = arith.cmpi eq, %503, %504 : vector<8x16xi32>
    %506 = arith.extui %505 : vector<8x16xi1> to vector<8x16xi32>
    %507 = arith.sitofp %506 : vector<8x16xi32> to vector<8x16xf32>
    %c0_317 = arith.constant 0 : index
    %c0_318 = arith.constant 0 : index
    %508 = vector.load %arg5[%c0_317, %c0_318] : memref<16x32xf32, #tpu.memory_space<vmem>>, vector<16x32xf32>
    %cst_319 = arith.constant dense<0.000000e+00> : vector<8x32xf32>
    %509 = tpu.matmul %507, %508, %cst_319 {dimension_numbers = #tpu.dot_dimension_numbers<[1], [0], [0], [1], [0, 0, 1, 1], [], []>} : vector<8x16xf32>, vector<16x32xf32>, vector<8x32xf32> -> vector<8x32xf32>
    %c0_320 = arith.constant 0 : index
    %c0_321 = arith.constant 0 : index
    %510 = vector.load %arg3[%c0_320, %c0_321] : memref<64x32xf32, #tpu.memory_space<vmem>>, vector<8x32xf32>
    %511 = arith.addf %509, %510 : vector<8x32xf32>
    %c0_322 = arith.constant 0 : index
    %c0_323 = arith.constant 0 : index
    %c0_324 = arith.constant 0 : index
    %512 = vector.load %arg18[%c0_322, %c0_323, %c0_324] : memref<24x32x8xf32, #tpu.memory_space<vmem>>, vector<1x32x8xf32>
    %513 = vector.shape_cast %512 : vector<1x32x8xf32> to vector<32x8xf32>
    %cst_325 = arith.constant dense<0.000000e+00> : vector<8x8xf32>
    %514 = tpu.matmul %511, %513, %cst_325 {dimension_numbers = #tpu.dot_dimension_numbers<[1], [0], [0], [1], [0, 0, 1, 1], [], []>} : vector<8x32xf32>, vector<32x8xf32>, vector<8x8xf32> -> vector<8x8xf32>
    %c0_326 = arith.constant 0 : index
    %c0_327 = arith.constant 0 : index
    %c0_328 = arith.constant 0 : index
    %515 = vector.load %arg19[%c0_326, %c0_327, %c0_328] : memref<24x1x8xf32, #tpu.memory_space<vmem>>, vector<1x1x8xf32>
    %516 = vector.shape_cast %515 : vector<1x1x8xf32> to vector<1x8xf32>
    %517 = vector.broadcast %516 : vector<1x8xf32> to vector<8x8xf32>
    %518 = arith.addf %514, %517 : vector<8x8xf32>
    %c4_329 = arith.constant 4 : index
    %c0_330 = arith.constant 0 : index
    %c0_331 = arith.constant 0 : index
    %519 = vector.load %arg18[%c4_329, %c0_330, %c0_331] : memref<24x32x8xf32, #tpu.memory_space<vmem>>, vector<1x32x8xf32>
    %520 = vector.shape_cast %519 : vector<1x32x8xf32> to vector<32x8xf32>
    %cst_332 = arith.constant dense<0.000000e+00> : vector<8x8xf32>
    %521 = tpu.matmul %511, %520, %cst_332 {dimension_numbers = #tpu.dot_dimension_numbers<[1], [0], [0], [1], [0, 0, 1, 1], [], []>} : vector<8x32xf32>, vector<32x8xf32>, vector<8x8xf32> -> vector<8x8xf32>
    %c4_333 = arith.constant 4 : index
    %c0_334 = arith.constant 0 : index
    %c0_335 = arith.constant 0 : index
    %522 = vector.load %arg19[%c4_333, %c0_334, %c0_335] : memref<24x1x8xf32, #tpu.memory_space<vmem>>, vector<1x1x8xf32>
    %523 = vector.shape_cast %522 : vector<1x1x8xf32> to vector<1x8xf32>
    %524 = vector.broadcast %523 : vector<1x8xf32> to vector<8x8xf32>
    %525 = arith.addf %521, %524 : vector<8x8xf32>
    %c8_336 = arith.constant 8 : index
    %c0_337 = arith.constant 0 : index
    %c0_338 = arith.constant 0 : index
    %526 = vector.load %arg18[%c8_336, %c0_337, %c0_338] : memref<24x32x8xf32, #tpu.memory_space<vmem>>, vector<1x32x8xf32>
    %527 = vector.shape_cast %526 : vector<1x32x8xf32> to vector<32x8xf32>
    %cst_339 = arith.constant dense<0.000000e+00> : vector<8x8xf32>
    %528 = tpu.matmul %511, %527, %cst_339 {dimension_numbers = #tpu.dot_dimension_numbers<[1], [0], [0], [1], [0, 0, 1, 1], [], []>} : vector<8x32xf32>, vector<32x8xf32>, vector<8x8xf32> -> vector<8x8xf32>
    %c8_340 = arith.constant 8 : index
    %c0_341 = arith.constant 0 : index
    %c0_342 = arith.constant 0 : index
    %529 = vector.load %arg19[%c8_340, %c0_341, %c0_342] : memref<24x1x8xf32, #tpu.memory_space<vmem>>, vector<1x1x8xf32>
    %530 = vector.shape_cast %529 : vector<1x1x8xf32> to vector<1x8xf32>
    %531 = vector.broadcast %530 : vector<1x8xf32> to vector<8x8xf32>
    %532 = arith.addf %528, %531 : vector<8x8xf32>
    %cst_343 = arith.constant dense<0.000000e+00> : vector<8x8xf32>
    %533 = tpu.matmul %518, %525, %cst_343 {dimension_numbers = #tpu.dot_dimension_numbers<[1], [1], [0], [0], [0, 0, 1, 0], [], []>} : vector<8x8xf32>, vector<8x8xf32>, vector<8x8xf32> -> vector<8x8xf32>
    %cst_344 = arith.constant 0.353553385 : f32
    %534 = vector.broadcast %cst_344 : f32 to vector<8x8xf32>
    %535 = arith.mulf %533, %534 : vector<8x8xf32>
    %536 = arith.addf %535, %11 : vector<8x8xf32>
    %cst_345 = arith.constant dense<0xFF800000> : vector<8xf32>
    %537 = vector.multi_reduction <maximumf>, %536, %cst_345 [1] : vector<8x8xf32> to vector<8xf32>
    %538 = vector.shape_cast %537 : vector<8xf32> to vector<8x1xf32>
    %539 = vector.broadcast %538 : vector<8x1xf32> to vector<8x8xf32>
    %540 = arith.subf %536, %539 : vector<8x8xf32>
    %541 = math.exp %540 : vector<8x8xf32>
    %cst_346 = arith.constant dense<0.000000e+00> : vector<8xf32>
    %542 = vector.multi_reduction <add>, %541, %cst_346 [1] : vector<8x8xf32> to vector<8xf32>
    %543 = vector.shape_cast %542 : vector<8xf32> to vector<8x1xf32>
    %544 = tpu.reciprocal %543 {approx = true} : vector<8x1xf32> -> vector<8x1xf32>
    %545 = vector.broadcast %544 : vector<8x1xf32> to vector<8x8xf32>
    %546 = arith.mulf %541, %545 : vector<8x8xf32>
    %cst_347 = arith.constant dense<0.000000e+00> : vector<8x8xf32>
    %547 = tpu.matmul %546, %532, %cst_347 {dimension_numbers = #tpu.dot_dimension_numbers<[1], [0], [0], [1], [0, 0, 1, 1], [], []>} : vector<8x8xf32>, vector<8x8xf32>, vector<8x8xf32> -> vector<8x8xf32>
    %c0_348 = arith.constant 0 : index
    %c0_349 = arith.constant 0 : index
    %c0_350 = arith.constant 0 : index
    %548 = vector.load %arg20[%c0_348, %c0_349, %c0_350] : memref<8x8x32xf32, #tpu.memory_space<vmem>>, vector<1x8x32xf32>
    %549 = vector.shape_cast %548 : vector<1x8x32xf32> to vector<8x32xf32>
    %cst_351 = arith.constant dense<0.000000e+00> : vector<8x32xf32>
    %550 = tpu.matmul %547, %549, %cst_351 {dimension_numbers = #tpu.dot_dimension_numbers<[1], [0], [0], [1], [0, 0, 1, 1], [], []>} : vector<8x8xf32>, vector<8x32xf32>, vector<8x32xf32> -> vector<8x32xf32>
    %c1_352 = arith.constant 1 : index
    %c0_353 = arith.constant 0 : index
    %c0_354 = arith.constant 0 : index
    %551 = vector.load %arg18[%c1_352, %c0_353, %c0_354] : memref<24x32x8xf32, #tpu.memory_space<vmem>>, vector<1x32x8xf32>
    %552 = vector.shape_cast %551 : vector<1x32x8xf32> to vector<32x8xf32>
    %cst_355 = arith.constant dense<0.000000e+00> : vector<8x8xf32>
    %553 = tpu.matmul %511, %552, %cst_355 {dimension_numbers = #tpu.dot_dimension_numbers<[1], [0], [0], [1], [0, 0, 1, 1], [], []>} : vector<8x32xf32>, vector<32x8xf32>, vector<8x8xf32> -> vector<8x8xf32>
    %c1_356 = arith.constant 1 : index
    %c0_357 = arith.constant 0 : index
    %c0_358 = arith.constant 0 : index
    %554 = vector.load %arg19[%c1_356, %c0_357, %c0_358] : memref<24x1x8xf32, #tpu.memory_space<vmem>>, vector<1x1x8xf32>
    %555 = vector.shape_cast %554 : vector<1x1x8xf32> to vector<1x8xf32>
    %556 = vector.broadcast %555 : vector<1x8xf32> to vector<8x8xf32>
    %557 = arith.addf %553, %556 : vector<8x8xf32>
    %c5_359 = arith.constant 5 : index
    %c0_360 = arith.constant 0 : index
    %c0_361 = arith.constant 0 : index
    %558 = vector.load %arg18[%c5_359, %c0_360, %c0_361] : memref<24x32x8xf32, #tpu.memory_space<vmem>>, vector<1x32x8xf32>
    %559 = vector.shape_cast %558 : vector<1x32x8xf32> to vector<32x8xf32>
    %cst_362 = arith.constant dense<0.000000e+00> : vector<8x8xf32>
    %560 = tpu.matmul %511, %559, %cst_362 {dimension_numbers = #tpu.dot_dimension_numbers<[1], [0], [0], [1], [0, 0, 1, 1], [], []>} : vector<8x32xf32>, vector<32x8xf32>, vector<8x8xf32> -> vector<8x8xf32>
    %c5_363 = arith.constant 5 : index
    %c0_364 = arith.constant 0 : index
    %c0_365 = arith.constant 0 : index
    %561 = vector.load %arg19[%c5_363, %c0_364, %c0_365] : memref<24x1x8xf32, #tpu.memory_space<vmem>>, vector<1x1x8xf32>
    %562 = vector.shape_cast %561 : vector<1x1x8xf32> to vector<1x8xf32>
    %563 = vector.broadcast %562 : vector<1x8xf32> to vector<8x8xf32>
    %564 = arith.addf %560, %563 : vector<8x8xf32>
    %c9_366 = arith.constant 9 : index
    %c0_367 = arith.constant 0 : index
    %c0_368 = arith.constant 0 : index
    %565 = vector.load %arg18[%c9_366, %c0_367, %c0_368] : memref<24x32x8xf32, #tpu.memory_space<vmem>>, vector<1x32x8xf32>
    %566 = vector.shape_cast %565 : vector<1x32x8xf32> to vector<32x8xf32>
    %cst_369 = arith.constant dense<0.000000e+00> : vector<8x8xf32>
    %567 = tpu.matmul %511, %566, %cst_369 {dimension_numbers = #tpu.dot_dimension_numbers<[1], [0], [0], [1], [0, 0, 1, 1], [], []>} : vector<8x32xf32>, vector<32x8xf32>, vector<8x8xf32> -> vector<8x8xf32>
    %c9_370 = arith.constant 9 : index
    %c0_371 = arith.constant 0 : index
    %c0_372 = arith.constant 0 : index
    %568 = vector.load %arg19[%c9_370, %c0_371, %c0_372] : memref<24x1x8xf32, #tpu.memory_space<vmem>>, vector<1x1x8xf32>
    %569 = vector.shape_cast %568 : vector<1x1x8xf32> to vector<1x8xf32>
    %570 = vector.broadcast %569 : vector<1x8xf32> to vector<8x8xf32>
    %571 = arith.addf %567, %570 : vector<8x8xf32>
    %cst_373 = arith.constant dense<0.000000e+00> : vector<8x8xf32>
    %572 = tpu.matmul %557, %564, %cst_373 {dimension_numbers = #tpu.dot_dimension_numbers<[1], [1], [0], [0], [0, 0, 1, 0], [], []>} : vector<8x8xf32>, vector<8x8xf32>, vector<8x8xf32> -> vector<8x8xf32>
    %cst_374 = arith.constant 0.353553385 : f32
    %573 = vector.broadcast %cst_374 : f32 to vector<8x8xf32>
    %574 = arith.mulf %572, %573 : vector<8x8xf32>
    %575 = arith.addf %574, %11 : vector<8x8xf32>
    %cst_375 = arith.constant dense<0xFF800000> : vector<8xf32>
    %576 = vector.multi_reduction <maximumf>, %575, %cst_375 [1] : vector<8x8xf32> to vector<8xf32>
    %577 = vector.shape_cast %576 : vector<8xf32> to vector<8x1xf32>
    %578 = vector.broadcast %577 : vector<8x1xf32> to vector<8x8xf32>
    %579 = arith.subf %575, %578 : vector<8x8xf32>
    %580 = math.exp %579 : vector<8x8xf32>
    %cst_376 = arith.constant dense<0.000000e+00> : vector<8xf32>
    %581 = vector.multi_reduction <add>, %580, %cst_376 [1] : vector<8x8xf32> to vector<8xf32>
    %582 = vector.shape_cast %581 : vector<8xf32> to vector<8x1xf32>
    %583 = tpu.reciprocal %582 {approx = true} : vector<8x1xf32> -> vector<8x1xf32>
    %584 = vector.broadcast %583 : vector<8x1xf32> to vector<8x8xf32>
    %585 = arith.mulf %580, %584 : vector<8x8xf32>
    %cst_377 = arith.constant dense<0.000000e+00> : vector<8x8xf32>
    %586 = tpu.matmul %585, %571, %cst_377 {dimension_numbers = #tpu.dot_dimension_numbers<[1], [0], [0], [1], [0, 0, 1, 1], [], []>} : vector<8x8xf32>, vector<8x8xf32>, vector<8x8xf32> -> vector<8x8xf32>
    %c1_378 = arith.constant 1 : index
    %c0_379 = arith.constant 0 : index
    %c0_380 = arith.constant 0 : index
    %587 = vector.load %arg20[%c1_378, %c0_379, %c0_380] : memref<8x8x32xf32, #tpu.memory_space<vmem>>, vector<1x8x32xf32>
    %588 = vector.shape_cast %587 : vector<1x8x32xf32> to vector<8x32xf32>
    %cst_381 = arith.constant dense<0.000000e+00> : vector<8x32xf32>
    %589 = tpu.matmul %586, %588, %cst_381 {dimension_numbers = #tpu.dot_dimension_numbers<[1], [0], [0], [1], [0, 0, 1, 1], [], []>} : vector<8x8xf32>, vector<8x32xf32>, vector<8x32xf32> -> vector<8x32xf32>
    %590 = arith.addf %550, %589 : vector<8x32xf32>
    %c2_382 = arith.constant 2 : index
    %c0_383 = arith.constant 0 : index
    %c0_384 = arith.constant 0 : index
    %591 = vector.load %arg18[%c2_382, %c0_383, %c0_384] : memref<24x32x8xf32, #tpu.memory_space<vmem>>, vector<1x32x8xf32>
    %592 = vector.shape_cast %591 : vector<1x32x8xf32> to vector<32x8xf32>
    %cst_385 = arith.constant dense<0.000000e+00> : vector<8x8xf32>
    %593 = tpu.matmul %511, %592, %cst_385 {dimension_numbers = #tpu.dot_dimension_numbers<[1], [0], [0], [1], [0, 0, 1, 1], [], []>} : vector<8x32xf32>, vector<32x8xf32>, vector<8x8xf32> -> vector<8x8xf32>
    %c2_386 = arith.constant 2 : index
    %c0_387 = arith.constant 0 : index
    %c0_388 = arith.constant 0 : index
    %594 = vector.load %arg19[%c2_386, %c0_387, %c0_388] : memref<24x1x8xf32, #tpu.memory_space<vmem>>, vector<1x1x8xf32>
    %595 = vector.shape_cast %594 : vector<1x1x8xf32> to vector<1x8xf32>
    %596 = vector.broadcast %595 : vector<1x8xf32> to vector<8x8xf32>
    %597 = arith.addf %593, %596 : vector<8x8xf32>
    %c6_389 = arith.constant 6 : index
    %c0_390 = arith.constant 0 : index
    %c0_391 = arith.constant 0 : index
    %598 = vector.load %arg18[%c6_389, %c0_390, %c0_391] : memref<24x32x8xf32, #tpu.memory_space<vmem>>, vector<1x32x8xf32>
    %599 = vector.shape_cast %598 : vector<1x32x8xf32> to vector<32x8xf32>
    %cst_392 = arith.constant dense<0.000000e+00> : vector<8x8xf32>
    %600 = tpu.matmul %511, %599, %cst_392 {dimension_numbers = #tpu.dot_dimension_numbers<[1], [0], [0], [1], [0, 0, 1, 1], [], []>} : vector<8x32xf32>, vector<32x8xf32>, vector<8x8xf32> -> vector<8x8xf32>
    %c6_393 = arith.constant 6 : index
    %c0_394 = arith.constant 0 : index
    %c0_395 = arith.constant 0 : index
    %601 = vector.load %arg19[%c6_393, %c0_394, %c0_395] : memref<24x1x8xf32, #tpu.memory_space<vmem>>, vector<1x1x8xf32>
    %602 = vector.shape_cast %601 : vector<1x1x8xf32> to vector<1x8xf32>
    %603 = vector.broadcast %602 : vector<1x8xf32> to vector<8x8xf32>
    %604 = arith.addf %600, %603 : vector<8x8xf32>
    %c10_396 = arith.constant 10 : index
    %c0_397 = arith.constant 0 : index
    %c0_398 = arith.constant 0 : index
    %605 = vector.load %arg18[%c10_396, %c0_397, %c0_398] : memref<24x32x8xf32, #tpu.memory_space<vmem>>, vector<1x32x8xf32>
    %606 = vector.shape_cast %605 : vector<1x32x8xf32> to vector<32x8xf32>
    %cst_399 = arith.constant dense<0.000000e+00> : vector<8x8xf32>
    %607 = tpu.matmul %511, %606, %cst_399 {dimension_numbers = #tpu.dot_dimension_numbers<[1], [0], [0], [1], [0, 0, 1, 1], [], []>} : vector<8x32xf32>, vector<32x8xf32>, vector<8x8xf32> -> vector<8x8xf32>
    %c10_400 = arith.constant 10 : index
    %c0_401 = arith.constant 0 : index
    %c0_402 = arith.constant 0 : index
    %608 = vector.load %arg19[%c10_400, %c0_401, %c0_402] : memref<24x1x8xf32, #tpu.memory_space<vmem>>, vector<1x1x8xf32>
    %609 = vector.shape_cast %608 : vector<1x1x8xf32> to vector<1x8xf32>
    %610 = vector.broadcast %609 : vector<1x8xf32> to vector<8x8xf32>
    %611 = arith.addf %607, %610 : vector<8x8xf32>
    %cst_403 = arith.constant dense<0.000000e+00> : vector<8x8xf32>
    %612 = tpu.matmul %597, %604, %cst_403 {dimension_numbers = #tpu.dot_dimension_numbers<[1], [1], [0], [0], [0, 0, 1, 0], [], []>} : vector<8x8xf32>, vector<8x8xf32>, vector<8x8xf32> -> vector<8x8xf32>
    %cst_404 = arith.constant 0.353553385 : f32
    %613 = vector.broadcast %cst_404 : f32 to vector<8x8xf32>
    %614 = arith.mulf %612, %613 : vector<8x8xf32>
    %615 = arith.addf %614, %11 : vector<8x8xf32>
    %cst_405 = arith.constant dense<0xFF800000> : vector<8xf32>
    %616 = vector.multi_reduction <maximumf>, %615, %cst_405 [1] : vector<8x8xf32> to vector<8xf32>
    %617 = vector.shape_cast %616 : vector<8xf32> to vector<8x1xf32>
    %618 = vector.broadcast %617 : vector<8x1xf32> to vector<8x8xf32>
    %619 = arith.subf %615, %618 : vector<8x8xf32>
    %620 = math.exp %619 : vector<8x8xf32>
    %cst_406 = arith.constant dense<0.000000e+00> : vector<8xf32>
    %621 = vector.multi_reduction <add>, %620, %cst_406 [1] : vector<8x8xf32> to vector<8xf32>
    %622 = vector.shape_cast %621 : vector<8xf32> to vector<8x1xf32>
    %623 = tpu.reciprocal %622 {approx = true} : vector<8x1xf32> -> vector<8x1xf32>
    %624 = vector.broadcast %623 : vector<8x1xf32> to vector<8x8xf32>
    %625 = arith.mulf %620, %624 : vector<8x8xf32>
    %cst_407 = arith.constant dense<0.000000e+00> : vector<8x8xf32>
    %626 = tpu.matmul %625, %611, %cst_407 {dimension_numbers = #tpu.dot_dimension_numbers<[1], [0], [0], [1], [0, 0, 1, 1], [], []>} : vector<8x8xf32>, vector<8x8xf32>, vector<8x8xf32> -> vector<8x8xf32>
    %c2_408 = arith.constant 2 : index
    %c0_409 = arith.constant 0 : index
    %c0_410 = arith.constant 0 : index
    %627 = vector.load %arg20[%c2_408, %c0_409, %c0_410] : memref<8x8x32xf32, #tpu.memory_space<vmem>>, vector<1x8x32xf32>
    %628 = vector.shape_cast %627 : vector<1x8x32xf32> to vector<8x32xf32>
    %cst_411 = arith.constant dense<0.000000e+00> : vector<8x32xf32>
    %629 = tpu.matmul %626, %628, %cst_411 {dimension_numbers = #tpu.dot_dimension_numbers<[1], [0], [0], [1], [0, 0, 1, 1], [], []>} : vector<8x8xf32>, vector<8x32xf32>, vector<8x32xf32> -> vector<8x32xf32>
    %630 = arith.addf %590, %629 : vector<8x32xf32>
    %c3_412 = arith.constant 3 : index
    %c0_413 = arith.constant 0 : index
    %c0_414 = arith.constant 0 : index
    %631 = vector.load %arg18[%c3_412, %c0_413, %c0_414] : memref<24x32x8xf32, #tpu.memory_space<vmem>>, vector<1x32x8xf32>
    %632 = vector.shape_cast %631 : vector<1x32x8xf32> to vector<32x8xf32>
    %cst_415 = arith.constant dense<0.000000e+00> : vector<8x8xf32>
    %633 = tpu.matmul %511, %632, %cst_415 {dimension_numbers = #tpu.dot_dimension_numbers<[1], [0], [0], [1], [0, 0, 1, 1], [], []>} : vector<8x32xf32>, vector<32x8xf32>, vector<8x8xf32> -> vector<8x8xf32>
    %c3_416 = arith.constant 3 : index
    %c0_417 = arith.constant 0 : index
    %c0_418 = arith.constant 0 : index
    %634 = vector.load %arg19[%c3_416, %c0_417, %c0_418] : memref<24x1x8xf32, #tpu.memory_space<vmem>>, vector<1x1x8xf32>
    %635 = vector.shape_cast %634 : vector<1x1x8xf32> to vector<1x8xf32>
    %636 = vector.broadcast %635 : vector<1x8xf32> to vector<8x8xf32>
    %637 = arith.addf %633, %636 : vector<8x8xf32>
    %c7_419 = arith.constant 7 : index
    %c0_420 = arith.constant 0 : index
    %c0_421 = arith.constant 0 : index
    %638 = vector.load %arg18[%c7_419, %c0_420, %c0_421] : memref<24x32x8xf32, #tpu.memory_space<vmem>>, vector<1x32x8xf32>
    %639 = vector.shape_cast %638 : vector<1x32x8xf32> to vector<32x8xf32>
    %cst_422 = arith.constant dense<0.000000e+00> : vector<8x8xf32>
    %640 = tpu.matmul %511, %639, %cst_422 {dimension_numbers = #tpu.dot_dimension_numbers<[1], [0], [0], [1], [0, 0, 1, 1], [], []>} : vector<8x32xf32>, vector<32x8xf32>, vector<8x8xf32> -> vector<8x8xf32>
    %c7_423 = arith.constant 7 : index
    %c0_424 = arith.constant 0 : index
    %c0_425 = arith.constant 0 : index
    %641 = vector.load %arg19[%c7_423, %c0_424, %c0_425] : memref<24x1x8xf32, #tpu.memory_space<vmem>>, vector<1x1x8xf32>
    %642 = vector.shape_cast %641 : vector<1x1x8xf32> to vector<1x8xf32>
    %643 = vector.broadcast %642 : vector<1x8xf32> to vector<8x8xf32>
    %644 = arith.addf %640, %643 : vector<8x8xf32>
    %c11_426 = arith.constant 11 : index
    %c0_427 = arith.constant 0 : index
    %c0_428 = arith.constant 0 : index
    %645 = vector.load %arg18[%c11_426, %c0_427, %c0_428] : memref<24x32x8xf32, #tpu.memory_space<vmem>>, vector<1x32x8xf32>
    %646 = vector.shape_cast %645 : vector<1x32x8xf32> to vector<32x8xf32>
    %cst_429 = arith.constant dense<0.000000e+00> : vector<8x8xf32>
    %647 = tpu.matmul %511, %646, %cst_429 {dimension_numbers = #tpu.dot_dimension_numbers<[1], [0], [0], [1], [0, 0, 1, 1], [], []>} : vector<8x32xf32>, vector<32x8xf32>, vector<8x8xf32> -> vector<8x8xf32>
    %c11_430 = arith.constant 11 : index
    %c0_431 = arith.constant 0 : index
    %c0_432 = arith.constant 0 : index
    %648 = vector.load %arg19[%c11_430, %c0_431, %c0_432] : memref<24x1x8xf32, #tpu.memory_space<vmem>>, vector<1x1x8xf32>
    %649 = vector.shape_cast %648 : vector<1x1x8xf32> to vector<1x8xf32>
    %650 = vector.broadcast %649 : vector<1x8xf32> to vector<8x8xf32>
    %651 = arith.addf %647, %650 : vector<8x8xf32>
    %cst_433 = arith.constant dense<0.000000e+00> : vector<8x8xf32>
    %652 = tpu.matmul %637, %644, %cst_433 {dimension_numbers = #tpu.dot_dimension_numbers<[1], [1], [0], [0], [0, 0, 1, 0], [], []>} : vector<8x8xf32>, vector<8x8xf32>, vector<8x8xf32> -> vector<8x8xf32>
    %cst_434 = arith.constant 0.353553385 : f32
    %653 = vector.broadcast %cst_434 : f32 to vector<8x8xf32>
    %654 = arith.mulf %652, %653 : vector<8x8xf32>
    %655 = arith.addf %654, %11 : vector<8x8xf32>
    %cst_435 = arith.constant dense<0xFF800000> : vector<8xf32>
    %656 = vector.multi_reduction <maximumf>, %655, %cst_435 [1] : vector<8x8xf32> to vector<8xf32>
    %657 = vector.shape_cast %656 : vector<8xf32> to vector<8x1xf32>
    %658 = vector.broadcast %657 : vector<8x1xf32> to vector<8x8xf32>
    %659 = arith.subf %655, %658 : vector<8x8xf32>
    %660 = math.exp %659 : vector<8x8xf32>
    %cst_436 = arith.constant dense<0.000000e+00> : vector<8xf32>
    %661 = vector.multi_reduction <add>, %660, %cst_436 [1] : vector<8x8xf32> to vector<8xf32>
    %662 = vector.shape_cast %661 : vector<8xf32> to vector<8x1xf32>
    %663 = tpu.reciprocal %662 {approx = true} : vector<8x1xf32> -> vector<8x1xf32>
    %664 = vector.broadcast %663 : vector<8x1xf32> to vector<8x8xf32>
    %665 = arith.mulf %660, %664 : vector<8x8xf32>
    %cst_437 = arith.constant dense<0.000000e+00> : vector<8x8xf32>
    %666 = tpu.matmul %665, %651, %cst_437 {dimension_numbers = #tpu.dot_dimension_numbers<[1], [0], [0], [1], [0, 0, 1, 1], [], []>} : vector<8x8xf32>, vector<8x8xf32>, vector<8x8xf32> -> vector<8x8xf32>
    %c3_438 = arith.constant 3 : index
    %c0_439 = arith.constant 0 : index
    %c0_440 = arith.constant 0 : index
    %667 = vector.load %arg20[%c3_438, %c0_439, %c0_440] : memref<8x8x32xf32, #tpu.memory_space<vmem>>, vector<1x8x32xf32>
    %668 = vector.shape_cast %667 : vector<1x8x32xf32> to vector<8x32xf32>
    %cst_441 = arith.constant dense<0.000000e+00> : vector<8x32xf32>
    %669 = tpu.matmul %666, %668, %cst_441 {dimension_numbers = #tpu.dot_dimension_numbers<[1], [0], [0], [1], [0, 0, 1, 1], [], []>} : vector<8x8xf32>, vector<8x32xf32>, vector<8x32xf32> -> vector<8x32xf32>
    %670 = arith.addf %630, %669 : vector<8x32xf32>
    %c0_442 = arith.constant 0 : index
    %c0_443 = arith.constant 0 : index
    %c0_444 = arith.constant 0 : index
    %671 = vector.load %arg21[%c0_442, %c0_443, %c0_444] : memref<2x1x32xf32, #tpu.memory_space<vmem>>, vector<1x1x32xf32>
    %672 = vector.shape_cast %671 : vector<1x1x32xf32> to vector<1x32xf32>
    %673 = vector.broadcast %672 : vector<1x32xf32> to vector<8x32xf32>
    %674 = arith.addf %670, %673 : vector<8x32xf32>
    %675 = arith.addf %511, %674 : vector<8x32xf32>
    %c0_445 = arith.constant 0 : index
    %c0_446 = arith.constant 0 : index
    %c0_447 = arith.constant 0 : index
    %676 = vector.load %arg30[%c0_445, %c0_446, %c0_447] : memref<6x1x32xf32, #tpu.memory_space<vmem>>, vector<1x1x32xf32>
    %677 = vector.shape_cast %676 : vector<1x1x32xf32> to vector<1x32xf32>
    %c0_448 = arith.constant 0 : index
    %c0_449 = arith.constant 0 : index
    %c0_450 = arith.constant 0 : index
    %678 = vector.load %arg31[%c0_448, %c0_449, %c0_450] : memref<6x1x32xf32, #tpu.memory_space<vmem>>, vector<1x1x32xf32>
    %679 = vector.shape_cast %678 : vector<1x1x32xf32> to vector<1x32xf32>
    %cst_451 = arith.constant dense<0.000000e+00> : vector<8xf32>
    %680 = vector.multi_reduction <add>, %675, %cst_451 [1] : vector<8x32xf32> to vector<8xf32>
    %681 = vector.shape_cast %680 : vector<8xf32> to vector<8x1xf32>
    %cst_452 = arith.constant 3.200000e+01 : f32
    %682 = vector.broadcast %cst_452 : f32 to vector<8x1xf32>
    %683 = arith.divf %681, %682 : vector<8x1xf32>
    %684 = vector.broadcast %683 : vector<8x1xf32> to vector<8x32xf32>
    %685 = arith.subf %675, %684 : vector<8x32xf32>
    %686 = arith.mulf %685, %685 : vector<8x32xf32>
    %cst_453 = arith.constant dense<0.000000e+00> : vector<8xf32>
    %687 = vector.multi_reduction <add>, %686, %cst_453 [1] : vector<8x32xf32> to vector<8xf32>
    %688 = vector.shape_cast %687 : vector<8xf32> to vector<8x1xf32>
    %cst_454 = arith.constant 3.200000e+01 : f32
    %689 = vector.broadcast %cst_454 : f32 to vector<8x1xf32>
    %690 = arith.divf %688, %689 : vector<8x1xf32>
    %cst_455 = arith.constant 9.99999974E-6 : f32
    %691 = vector.broadcast %cst_455 : f32 to vector<8x1xf32>
    %692 = arith.addf %690, %691 : vector<8x1xf32>
    %693 = math.rsqrt %692 : vector<8x1xf32>
    %694 = vector.broadcast %693 : vector<8x1xf32> to vector<8x32xf32>
    %695 = arith.mulf %685, %694 : vector<8x32xf32>
    %696 = vector.broadcast %677 : vector<1x32xf32> to vector<8x32xf32>
    %697 = arith.mulf %695, %696 : vector<8x32xf32>
    %698 = vector.broadcast %679 : vector<1x32xf32> to vector<8x32xf32>
    %699 = arith.addf %697, %698 : vector<8x32xf32>
    %c0_456 = arith.constant 0 : index
    %c0_457 = arith.constant 0 : index
    %c0_458 = arith.constant 0 : index
    %700 = vector.load %arg22[%c0_456, %c0_457, %c0_458] : memref<24x32x8xf32, #tpu.memory_space<vmem>>, vector<1x32x8xf32>
    %701 = vector.shape_cast %700 : vector<1x32x8xf32> to vector<32x8xf32>
    %cst_459 = arith.constant dense<0.000000e+00> : vector<8x8xf32>
    %702 = tpu.matmul %699, %701, %cst_459 {dimension_numbers = #tpu.dot_dimension_numbers<[1], [0], [0], [1], [0, 0, 1, 1], [], []>} : vector<8x32xf32>, vector<32x8xf32>, vector<8x8xf32> -> vector<8x8xf32>
    %c0_460 = arith.constant 0 : index
    %c0_461 = arith.constant 0 : index
    %c0_462 = arith.constant 0 : index
    %703 = vector.load %arg23[%c0_460, %c0_461, %c0_462] : memref<24x1x8xf32, #tpu.memory_space<vmem>>, vector<1x1x8xf32>
    %704 = vector.shape_cast %703 : vector<1x1x8xf32> to vector<1x8xf32>
    %705 = vector.broadcast %704 : vector<1x8xf32> to vector<8x8xf32>
    %706 = arith.addf %702, %705 : vector<8x8xf32>
    %c4_463 = arith.constant 4 : index
    %c0_464 = arith.constant 0 : index
    %c0_465 = arith.constant 0 : index
    %707 = vector.load %arg22[%c4_463, %c0_464, %c0_465] : memref<24x32x8xf32, #tpu.memory_space<vmem>>, vector<1x32x8xf32>
    %708 = vector.shape_cast %707 : vector<1x32x8xf32> to vector<32x8xf32>
    %cst_466 = arith.constant dense<0.000000e+00> : vector<8x8xf32>
    %709 = tpu.matmul %501, %708, %cst_466 {dimension_numbers = #tpu.dot_dimension_numbers<[1], [0], [0], [1], [0, 0, 1, 1], [], []>} : vector<8x32xf32>, vector<32x8xf32>, vector<8x8xf32> -> vector<8x8xf32>
    %c4_467 = arith.constant 4 : index
    %c0_468 = arith.constant 0 : index
    %c0_469 = arith.constant 0 : index
    %710 = vector.load %arg23[%c4_467, %c0_468, %c0_469] : memref<24x1x8xf32, #tpu.memory_space<vmem>>, vector<1x1x8xf32>
    %711 = vector.shape_cast %710 : vector<1x1x8xf32> to vector<1x8xf32>
    %712 = vector.broadcast %711 : vector<1x8xf32> to vector<8x8xf32>
    %713 = arith.addf %709, %712 : vector<8x8xf32>
    %c8_470 = arith.constant 8 : index
    %c0_471 = arith.constant 0 : index
    %c0_472 = arith.constant 0 : index
    %714 = vector.load %arg22[%c8_470, %c0_471, %c0_472] : memref<24x32x8xf32, #tpu.memory_space<vmem>>, vector<1x32x8xf32>
    %715 = vector.shape_cast %714 : vector<1x32x8xf32> to vector<32x8xf32>
    %cst_473 = arith.constant dense<0.000000e+00> : vector<8x8xf32>
    %716 = tpu.matmul %501, %715, %cst_473 {dimension_numbers = #tpu.dot_dimension_numbers<[1], [0], [0], [1], [0, 0, 1, 1], [], []>} : vector<8x32xf32>, vector<32x8xf32>, vector<8x8xf32> -> vector<8x8xf32>
    %c8_474 = arith.constant 8 : index
    %c0_475 = arith.constant 0 : index
    %c0_476 = arith.constant 0 : index
    %717 = vector.load %arg23[%c8_474, %c0_475, %c0_476] : memref<24x1x8xf32, #tpu.memory_space<vmem>>, vector<1x1x8xf32>
    %718 = vector.shape_cast %717 : vector<1x1x8xf32> to vector<1x8xf32>
    %719 = vector.broadcast %718 : vector<1x8xf32> to vector<8x8xf32>
    %720 = arith.addf %716, %719 : vector<8x8xf32>
    %cst_477 = arith.constant dense<0.000000e+00> : vector<8x8xf32>
    %721 = tpu.matmul %706, %713, %cst_477 {dimension_numbers = #tpu.dot_dimension_numbers<[1], [1], [0], [0], [0, 0, 1, 0], [], []>} : vector<8x8xf32>, vector<8x8xf32>, vector<8x8xf32> -> vector<8x8xf32>
    %cst_478 = arith.constant 0.353553385 : f32
    %722 = vector.broadcast %cst_478 : f32 to vector<8x8xf32>
    %723 = arith.mulf %721, %722 : vector<8x8xf32>
    %cst_479 = arith.constant dense<0xFF800000> : vector<8xf32>
    %724 = vector.multi_reduction <maximumf>, %723, %cst_479 [1] : vector<8x8xf32> to vector<8xf32>
    %725 = vector.shape_cast %724 : vector<8xf32> to vector<8x1xf32>
    %726 = vector.broadcast %725 : vector<8x1xf32> to vector<8x8xf32>
    %727 = arith.subf %723, %726 : vector<8x8xf32>
    %728 = math.exp %727 : vector<8x8xf32>
    %cst_480 = arith.constant dense<0.000000e+00> : vector<8xf32>
    %729 = vector.multi_reduction <add>, %728, %cst_480 [1] : vector<8x8xf32> to vector<8xf32>
    %730 = vector.shape_cast %729 : vector<8xf32> to vector<8x1xf32>
    %731 = tpu.reciprocal %730 {approx = true} : vector<8x1xf32> -> vector<8x1xf32>
    %732 = vector.broadcast %731 : vector<8x1xf32> to vector<8x8xf32>
    %733 = arith.mulf %728, %732 : vector<8x8xf32>
    %cst_481 = arith.constant dense<0.000000e+00> : vector<8x8xf32>
    %734 = tpu.matmul %733, %720, %cst_481 {dimension_numbers = #tpu.dot_dimension_numbers<[1], [0], [0], [1], [0, 0, 1, 1], [], []>} : vector<8x8xf32>, vector<8x8xf32>, vector<8x8xf32> -> vector<8x8xf32>
    %c0_482 = arith.constant 0 : index
    %c0_483 = arith.constant 0 : index
    %c0_484 = arith.constant 0 : index
    %735 = vector.load %arg24[%c0_482, %c0_483, %c0_484] : memref<8x8x32xf32, #tpu.memory_space<vmem>>, vector<1x8x32xf32>
    %736 = vector.shape_cast %735 : vector<1x8x32xf32> to vector<8x32xf32>
    %cst_485 = arith.constant dense<0.000000e+00> : vector<8x32xf32>
    %737 = tpu.matmul %734, %736, %cst_485 {dimension_numbers = #tpu.dot_dimension_numbers<[1], [0], [0], [1], [0, 0, 1, 1], [], []>} : vector<8x8xf32>, vector<8x32xf32>, vector<8x32xf32> -> vector<8x32xf32>
    %c1_486 = arith.constant 1 : index
    %c0_487 = arith.constant 0 : index
    %c0_488 = arith.constant 0 : index
    %738 = vector.load %arg22[%c1_486, %c0_487, %c0_488] : memref<24x32x8xf32, #tpu.memory_space<vmem>>, vector<1x32x8xf32>
    %739 = vector.shape_cast %738 : vector<1x32x8xf32> to vector<32x8xf32>
    %cst_489 = arith.constant dense<0.000000e+00> : vector<8x8xf32>
    %740 = tpu.matmul %699, %739, %cst_489 {dimension_numbers = #tpu.dot_dimension_numbers<[1], [0], [0], [1], [0, 0, 1, 1], [], []>} : vector<8x32xf32>, vector<32x8xf32>, vector<8x8xf32> -> vector<8x8xf32>
    %c1_490 = arith.constant 1 : index
    %c0_491 = arith.constant 0 : index
    %c0_492 = arith.constant 0 : index
    %741 = vector.load %arg23[%c1_490, %c0_491, %c0_492] : memref<24x1x8xf32, #tpu.memory_space<vmem>>, vector<1x1x8xf32>
    %742 = vector.shape_cast %741 : vector<1x1x8xf32> to vector<1x8xf32>
    %743 = vector.broadcast %742 : vector<1x8xf32> to vector<8x8xf32>
    %744 = arith.addf %740, %743 : vector<8x8xf32>
    %c5_493 = arith.constant 5 : index
    %c0_494 = arith.constant 0 : index
    %c0_495 = arith.constant 0 : index
    %745 = vector.load %arg22[%c5_493, %c0_494, %c0_495] : memref<24x32x8xf32, #tpu.memory_space<vmem>>, vector<1x32x8xf32>
    %746 = vector.shape_cast %745 : vector<1x32x8xf32> to vector<32x8xf32>
    %cst_496 = arith.constant dense<0.000000e+00> : vector<8x8xf32>
    %747 = tpu.matmul %501, %746, %cst_496 {dimension_numbers = #tpu.dot_dimension_numbers<[1], [0], [0], [1], [0, 0, 1, 1], [], []>} : vector<8x32xf32>, vector<32x8xf32>, vector<8x8xf32> -> vector<8x8xf32>
    %c5_497 = arith.constant 5 : index
    %c0_498 = arith.constant 0 : index
    %c0_499 = arith.constant 0 : index
    %748 = vector.load %arg23[%c5_497, %c0_498, %c0_499] : memref<24x1x8xf32, #tpu.memory_space<vmem>>, vector<1x1x8xf32>
    %749 = vector.shape_cast %748 : vector<1x1x8xf32> to vector<1x8xf32>
    %750 = vector.broadcast %749 : vector<1x8xf32> to vector<8x8xf32>
    %751 = arith.addf %747, %750 : vector<8x8xf32>
    %c9_500 = arith.constant 9 : index
    %c0_501 = arith.constant 0 : index
    %c0_502 = arith.constant 0 : index
    %752 = vector.load %arg22[%c9_500, %c0_501, %c0_502] : memref<24x32x8xf32, #tpu.memory_space<vmem>>, vector<1x32x8xf32>
    %753 = vector.shape_cast %752 : vector<1x32x8xf32> to vector<32x8xf32>
    %cst_503 = arith.constant dense<0.000000e+00> : vector<8x8xf32>
    %754 = tpu.matmul %501, %753, %cst_503 {dimension_numbers = #tpu.dot_dimension_numbers<[1], [0], [0], [1], [0, 0, 1, 1], [], []>} : vector<8x32xf32>, vector<32x8xf32>, vector<8x8xf32> -> vector<8x8xf32>
    %c9_504 = arith.constant 9 : index
    %c0_505 = arith.constant 0 : index
    %c0_506 = arith.constant 0 : index
    %755 = vector.load %arg23[%c9_504, %c0_505, %c0_506] : memref<24x1x8xf32, #tpu.memory_space<vmem>>, vector<1x1x8xf32>
    %756 = vector.shape_cast %755 : vector<1x1x8xf32> to vector<1x8xf32>
    %757 = vector.broadcast %756 : vector<1x8xf32> to vector<8x8xf32>
    %758 = arith.addf %754, %757 : vector<8x8xf32>
    %cst_507 = arith.constant dense<0.000000e+00> : vector<8x8xf32>
    %759 = tpu.matmul %744, %751, %cst_507 {dimension_numbers = #tpu.dot_dimension_numbers<[1], [1], [0], [0], [0, 0, 1, 0], [], []>} : vector<8x8xf32>, vector<8x8xf32>, vector<8x8xf32> -> vector<8x8xf32>
    %cst_508 = arith.constant 0.353553385 : f32
    %760 = vector.broadcast %cst_508 : f32 to vector<8x8xf32>
    %761 = arith.mulf %759, %760 : vector<8x8xf32>
    %cst_509 = arith.constant dense<0xFF800000> : vector<8xf32>
    %762 = vector.multi_reduction <maximumf>, %761, %cst_509 [1] : vector<8x8xf32> to vector<8xf32>
    %763 = vector.shape_cast %762 : vector<8xf32> to vector<8x1xf32>
    %764 = vector.broadcast %763 : vector<8x1xf32> to vector<8x8xf32>
    %765 = arith.subf %761, %764 : vector<8x8xf32>
    %766 = math.exp %765 : vector<8x8xf32>
    %cst_510 = arith.constant dense<0.000000e+00> : vector<8xf32>
    %767 = vector.multi_reduction <add>, %766, %cst_510 [1] : vector<8x8xf32> to vector<8xf32>
    %768 = vector.shape_cast %767 : vector<8xf32> to vector<8x1xf32>
    %769 = tpu.reciprocal %768 {approx = true} : vector<8x1xf32> -> vector<8x1xf32>
    %770 = vector.broadcast %769 : vector<8x1xf32> to vector<8x8xf32>
    %771 = arith.mulf %766, %770 : vector<8x8xf32>
    %cst_511 = arith.constant dense<0.000000e+00> : vector<8x8xf32>
    %772 = tpu.matmul %771, %758, %cst_511 {dimension_numbers = #tpu.dot_dimension_numbers<[1], [0], [0], [1], [0, 0, 1, 1], [], []>} : vector<8x8xf32>, vector<8x8xf32>, vector<8x8xf32> -> vector<8x8xf32>
    %c1_512 = arith.constant 1 : index
    %c0_513 = arith.constant 0 : index
    %c0_514 = arith.constant 0 : index
    %773 = vector.load %arg24[%c1_512, %c0_513, %c0_514] : memref<8x8x32xf32, #tpu.memory_space<vmem>>, vector<1x8x32xf32>
    %774 = vector.shape_cast %773 : vector<1x8x32xf32> to vector<8x32xf32>
    %cst_515 = arith.constant dense<0.000000e+00> : vector<8x32xf32>
    %775 = tpu.matmul %772, %774, %cst_515 {dimension_numbers = #tpu.dot_dimension_numbers<[1], [0], [0], [1], [0, 0, 1, 1], [], []>} : vector<8x8xf32>, vector<8x32xf32>, vector<8x32xf32> -> vector<8x32xf32>
    %776 = arith.addf %737, %775 : vector<8x32xf32>
    %c2_516 = arith.constant 2 : index
    %c0_517 = arith.constant 0 : index
    %c0_518 = arith.constant 0 : index
    %777 = vector.load %arg22[%c2_516, %c0_517, %c0_518] : memref<24x32x8xf32, #tpu.memory_space<vmem>>, vector<1x32x8xf32>
    %778 = vector.shape_cast %777 : vector<1x32x8xf32> to vector<32x8xf32>
    %cst_519 = arith.constant dense<0.000000e+00> : vector<8x8xf32>
    %779 = tpu.matmul %699, %778, %cst_519 {dimension_numbers = #tpu.dot_dimension_numbers<[1], [0], [0], [1], [0, 0, 1, 1], [], []>} : vector<8x32xf32>, vector<32x8xf32>, vector<8x8xf32> -> vector<8x8xf32>
    %c2_520 = arith.constant 2 : index
    %c0_521 = arith.constant 0 : index
    %c0_522 = arith.constant 0 : index
    %780 = vector.load %arg23[%c2_520, %c0_521, %c0_522] : memref<24x1x8xf32, #tpu.memory_space<vmem>>, vector<1x1x8xf32>
    %781 = vector.shape_cast %780 : vector<1x1x8xf32> to vector<1x8xf32>
    %782 = vector.broadcast %781 : vector<1x8xf32> to vector<8x8xf32>
    %783 = arith.addf %779, %782 : vector<8x8xf32>
    %c6_523 = arith.constant 6 : index
    %c0_524 = arith.constant 0 : index
    %c0_525 = arith.constant 0 : index
    %784 = vector.load %arg22[%c6_523, %c0_524, %c0_525] : memref<24x32x8xf32, #tpu.memory_space<vmem>>, vector<1x32x8xf32>
    %785 = vector.shape_cast %784 : vector<1x32x8xf32> to vector<32x8xf32>
    %cst_526 = arith.constant dense<0.000000e+00> : vector<8x8xf32>
    %786 = tpu.matmul %501, %785, %cst_526 {dimension_numbers = #tpu.dot_dimension_numbers<[1], [0], [0], [1], [0, 0, 1, 1], [], []>} : vector<8x32xf32>, vector<32x8xf32>, vector<8x8xf32> -> vector<8x8xf32>
    %c6_527 = arith.constant 6 : index
    %c0_528 = arith.constant 0 : index
    %c0_529 = arith.constant 0 : index
    %787 = vector.load %arg23[%c6_527, %c0_528, %c0_529] : memref<24x1x8xf32, #tpu.memory_space<vmem>>, vector<1x1x8xf32>
    %788 = vector.shape_cast %787 : vector<1x1x8xf32> to vector<1x8xf32>
    %789 = vector.broadcast %788 : vector<1x8xf32> to vector<8x8xf32>
    %790 = arith.addf %786, %789 : vector<8x8xf32>
    %c10_530 = arith.constant 10 : index
    %c0_531 = arith.constant 0 : index
    %c0_532 = arith.constant 0 : index
    %791 = vector.load %arg22[%c10_530, %c0_531, %c0_532] : memref<24x32x8xf32, #tpu.memory_space<vmem>>, vector<1x32x8xf32>
    %792 = vector.shape_cast %791 : vector<1x32x8xf32> to vector<32x8xf32>
    %cst_533 = arith.constant dense<0.000000e+00> : vector<8x8xf32>
    %793 = tpu.matmul %501, %792, %cst_533 {dimension_numbers = #tpu.dot_dimension_numbers<[1], [0], [0], [1], [0, 0, 1, 1], [], []>} : vector<8x32xf32>, vector<32x8xf32>, vector<8x8xf32> -> vector<8x8xf32>
    %c10_534 = arith.constant 10 : index
    %c0_535 = arith.constant 0 : index
    %c0_536 = arith.constant 0 : index
    %794 = vector.load %arg23[%c10_534, %c0_535, %c0_536] : memref<24x1x8xf32, #tpu.memory_space<vmem>>, vector<1x1x8xf32>
    %795 = vector.shape_cast %794 : vector<1x1x8xf32> to vector<1x8xf32>
    %796 = vector.broadcast %795 : vector<1x8xf32> to vector<8x8xf32>
    %797 = arith.addf %793, %796 : vector<8x8xf32>
    %cst_537 = arith.constant dense<0.000000e+00> : vector<8x8xf32>
    %798 = tpu.matmul %783, %790, %cst_537 {dimension_numbers = #tpu.dot_dimension_numbers<[1], [1], [0], [0], [0, 0, 1, 0], [], []>} : vector<8x8xf32>, vector<8x8xf32>, vector<8x8xf32> -> vector<8x8xf32>
    %cst_538 = arith.constant 0.353553385 : f32
    %799 = vector.broadcast %cst_538 : f32 to vector<8x8xf32>
    %800 = arith.mulf %798, %799 : vector<8x8xf32>
    %cst_539 = arith.constant dense<0xFF800000> : vector<8xf32>
    %801 = vector.multi_reduction <maximumf>, %800, %cst_539 [1] : vector<8x8xf32> to vector<8xf32>
    %802 = vector.shape_cast %801 : vector<8xf32> to vector<8x1xf32>
    %803 = vector.broadcast %802 : vector<8x1xf32> to vector<8x8xf32>
    %804 = arith.subf %800, %803 : vector<8x8xf32>
    %805 = math.exp %804 : vector<8x8xf32>
    %cst_540 = arith.constant dense<0.000000e+00> : vector<8xf32>
    %806 = vector.multi_reduction <add>, %805, %cst_540 [1] : vector<8x8xf32> to vector<8xf32>
    %807 = vector.shape_cast %806 : vector<8xf32> to vector<8x1xf32>
    %808 = tpu.reciprocal %807 {approx = true} : vector<8x1xf32> -> vector<8x1xf32>
    %809 = vector.broadcast %808 : vector<8x1xf32> to vector<8x8xf32>
    %810 = arith.mulf %805, %809 : vector<8x8xf32>
    %cst_541 = arith.constant dense<0.000000e+00> : vector<8x8xf32>
    %811 = tpu.matmul %810, %797, %cst_541 {dimension_numbers = #tpu.dot_dimension_numbers<[1], [0], [0], [1], [0, 0, 1, 1], [], []>} : vector<8x8xf32>, vector<8x8xf32>, vector<8x8xf32> -> vector<8x8xf32>
    %c2_542 = arith.constant 2 : index
    %c0_543 = arith.constant 0 : index
    %c0_544 = arith.constant 0 : index
    %812 = vector.load %arg24[%c2_542, %c0_543, %c0_544] : memref<8x8x32xf32, #tpu.memory_space<vmem>>, vector<1x8x32xf32>
    %813 = vector.shape_cast %812 : vector<1x8x32xf32> to vector<8x32xf32>
    %cst_545 = arith.constant dense<0.000000e+00> : vector<8x32xf32>
    %814 = tpu.matmul %811, %813, %cst_545 {dimension_numbers = #tpu.dot_dimension_numbers<[1], [0], [0], [1], [0, 0, 1, 1], [], []>} : vector<8x8xf32>, vector<8x32xf32>, vector<8x32xf32> -> vector<8x32xf32>
    %815 = arith.addf %776, %814 : vector<8x32xf32>
    %c3_546 = arith.constant 3 : index
    %c0_547 = arith.constant 0 : index
    %c0_548 = arith.constant 0 : index
    %816 = vector.load %arg22[%c3_546, %c0_547, %c0_548] : memref<24x32x8xf32, #tpu.memory_space<vmem>>, vector<1x32x8xf32>
    %817 = vector.shape_cast %816 : vector<1x32x8xf32> to vector<32x8xf32>
    %cst_549 = arith.constant dense<0.000000e+00> : vector<8x8xf32>
    %818 = tpu.matmul %699, %817, %cst_549 {dimension_numbers = #tpu.dot_dimension_numbers<[1], [0], [0], [1], [0, 0, 1, 1], [], []>} : vector<8x32xf32>, vector<32x8xf32>, vector<8x8xf32> -> vector<8x8xf32>
    %c3_550 = arith.constant 3 : index
    %c0_551 = arith.constant 0 : index
    %c0_552 = arith.constant 0 : index
    %819 = vector.load %arg23[%c3_550, %c0_551, %c0_552] : memref<24x1x8xf32, #tpu.memory_space<vmem>>, vector<1x1x8xf32>
    %820 = vector.shape_cast %819 : vector<1x1x8xf32> to vector<1x8xf32>
    %821 = vector.broadcast %820 : vector<1x8xf32> to vector<8x8xf32>
    %822 = arith.addf %818, %821 : vector<8x8xf32>
    %c7_553 = arith.constant 7 : index
    %c0_554 = arith.constant 0 : index
    %c0_555 = arith.constant 0 : index
    %823 = vector.load %arg22[%c7_553, %c0_554, %c0_555] : memref<24x32x8xf32, #tpu.memory_space<vmem>>, vector<1x32x8xf32>
    %824 = vector.shape_cast %823 : vector<1x32x8xf32> to vector<32x8xf32>
    %cst_556 = arith.constant dense<0.000000e+00> : vector<8x8xf32>
    %825 = tpu.matmul %501, %824, %cst_556 {dimension_numbers = #tpu.dot_dimension_numbers<[1], [0], [0], [1], [0, 0, 1, 1], [], []>} : vector<8x32xf32>, vector<32x8xf32>, vector<8x8xf32> -> vector<8x8xf32>
    %c7_557 = arith.constant 7 : index
    %c0_558 = arith.constant 0 : index
    %c0_559 = arith.constant 0 : index
    %826 = vector.load %arg23[%c7_557, %c0_558, %c0_559] : memref<24x1x8xf32, #tpu.memory_space<vmem>>, vector<1x1x8xf32>
    %827 = vector.shape_cast %826 : vector<1x1x8xf32> to vector<1x8xf32>
    %828 = vector.broadcast %827 : vector<1x8xf32> to vector<8x8xf32>
    %829 = arith.addf %825, %828 : vector<8x8xf32>
    %c11_560 = arith.constant 11 : index
    %c0_561 = arith.constant 0 : index
    %c0_562 = arith.constant 0 : index
    %830 = vector.load %arg22[%c11_560, %c0_561, %c0_562] : memref<24x32x8xf32, #tpu.memory_space<vmem>>, vector<1x32x8xf32>
    %831 = vector.shape_cast %830 : vector<1x32x8xf32> to vector<32x8xf32>
    %cst_563 = arith.constant dense<0.000000e+00> : vector<8x8xf32>
    %832 = tpu.matmul %501, %831, %cst_563 {dimension_numbers = #tpu.dot_dimension_numbers<[1], [0], [0], [1], [0, 0, 1, 1], [], []>} : vector<8x32xf32>, vector<32x8xf32>, vector<8x8xf32> -> vector<8x8xf32>
    %c11_564 = arith.constant 11 : index
    %c0_565 = arith.constant 0 : index
    %c0_566 = arith.constant 0 : index
    %833 = vector.load %arg23[%c11_564, %c0_565, %c0_566] : memref<24x1x8xf32, #tpu.memory_space<vmem>>, vector<1x1x8xf32>
    %834 = vector.shape_cast %833 : vector<1x1x8xf32> to vector<1x8xf32>
    %835 = vector.broadcast %834 : vector<1x8xf32> to vector<8x8xf32>
    %836 = arith.addf %832, %835 : vector<8x8xf32>
    %cst_567 = arith.constant dense<0.000000e+00> : vector<8x8xf32>
    %837 = tpu.matmul %822, %829, %cst_567 {dimension_numbers = #tpu.dot_dimension_numbers<[1], [1], [0], [0], [0, 0, 1, 0], [], []>} : vector<8x8xf32>, vector<8x8xf32>, vector<8x8xf32> -> vector<8x8xf32>
    %cst_568 = arith.constant 0.353553385 : f32
    %838 = vector.broadcast %cst_568 : f32 to vector<8x8xf32>
    %839 = arith.mulf %837, %838 : vector<8x8xf32>
    %cst_569 = arith.constant dense<0xFF800000> : vector<8xf32>
    %840 = vector.multi_reduction <maximumf>, %839, %cst_569 [1] : vector<8x8xf32> to vector<8xf32>
    %841 = vector.shape_cast %840 : vector<8xf32> to vector<8x1xf32>
    %842 = vector.broadcast %841 : vector<8x1xf32> to vector<8x8xf32>
    %843 = arith.subf %839, %842 : vector<8x8xf32>
    %844 = math.exp %843 : vector<8x8xf32>
    %cst_570 = arith.constant dense<0.000000e+00> : vector<8xf32>
    %845 = vector.multi_reduction <add>, %844, %cst_570 [1] : vector<8x8xf32> to vector<8xf32>
    %846 = vector.shape_cast %845 : vector<8xf32> to vector<8x1xf32>
    %847 = tpu.reciprocal %846 {approx = true} : vector<8x1xf32> -> vector<8x1xf32>
    %848 = vector.broadcast %847 : vector<8x1xf32> to vector<8x8xf32>
    %849 = arith.mulf %844, %848 : vector<8x8xf32>
    %cst_571 = arith.constant dense<0.000000e+00> : vector<8x8xf32>
    %850 = tpu.matmul %849, %836, %cst_571 {dimension_numbers = #tpu.dot_dimension_numbers<[1], [0], [0], [1], [0, 0, 1, 1], [], []>} : vector<8x8xf32>, vector<8x8xf32>, vector<8x8xf32> -> vector<8x8xf32>
    %c3_572 = arith.constant 3 : index
    %c0_573 = arith.constant 0 : index
    %c0_574 = arith.constant 0 : index
    %851 = vector.load %arg24[%c3_572, %c0_573, %c0_574] : memref<8x8x32xf32, #tpu.memory_space<vmem>>, vector<1x8x32xf32>
    %852 = vector.shape_cast %851 : vector<1x8x32xf32> to vector<8x32xf32>
    %cst_575 = arith.constant dense<0.000000e+00> : vector<8x32xf32>
    %853 = tpu.matmul %850, %852, %cst_575 {dimension_numbers = #tpu.dot_dimension_numbers<[1], [0], [0], [1], [0, 0, 1, 1], [], []>} : vector<8x8xf32>, vector<8x32xf32>, vector<8x32xf32> -> vector<8x32xf32>
    %854 = arith.addf %815, %853 : vector<8x32xf32>
    %c0_576 = arith.constant 0 : index
    %c0_577 = arith.constant 0 : index
    %c0_578 = arith.constant 0 : index
    %855 = vector.load %arg25[%c0_576, %c0_577, %c0_578] : memref<2x1x32xf32, #tpu.memory_space<vmem>>, vector<1x1x32xf32>
    %856 = vector.shape_cast %855 : vector<1x1x32xf32> to vector<1x32xf32>
    %857 = vector.broadcast %856 : vector<1x32xf32> to vector<8x32xf32>
    %858 = arith.addf %854, %857 : vector<8x32xf32>
    %859 = arith.addf %699, %858 : vector<8x32xf32>
    %c1_579 = arith.constant 1 : index
    %c0_580 = arith.constant 0 : index
    %c0_581 = arith.constant 0 : index
    %860 = vector.load %arg30[%c1_579, %c0_580, %c0_581] : memref<6x1x32xf32, #tpu.memory_space<vmem>>, vector<1x1x32xf32>
    %861 = vector.shape_cast %860 : vector<1x1x32xf32> to vector<1x32xf32>
    %c1_582 = arith.constant 1 : index
    %c0_583 = arith.constant 0 : index
    %c0_584 = arith.constant 0 : index
    %862 = vector.load %arg31[%c1_582, %c0_583, %c0_584] : memref<6x1x32xf32, #tpu.memory_space<vmem>>, vector<1x1x32xf32>
    %863 = vector.shape_cast %862 : vector<1x1x32xf32> to vector<1x32xf32>
    %cst_585 = arith.constant dense<0.000000e+00> : vector<8xf32>
    %864 = vector.multi_reduction <add>, %859, %cst_585 [1] : vector<8x32xf32> to vector<8xf32>
    %865 = vector.shape_cast %864 : vector<8xf32> to vector<8x1xf32>
    %cst_586 = arith.constant 3.200000e+01 : f32
    %866 = vector.broadcast %cst_586 : f32 to vector<8x1xf32>
    %867 = arith.divf %865, %866 : vector<8x1xf32>
    %868 = vector.broadcast %867 : vector<8x1xf32> to vector<8x32xf32>
    %869 = arith.subf %859, %868 : vector<8x32xf32>
    %870 = arith.mulf %869, %869 : vector<8x32xf32>
    %cst_587 = arith.constant dense<0.000000e+00> : vector<8xf32>
    %871 = vector.multi_reduction <add>, %870, %cst_587 [1] : vector<8x32xf32> to vector<8xf32>
    %872 = vector.shape_cast %871 : vector<8xf32> to vector<8x1xf32>
    %cst_588 = arith.constant 3.200000e+01 : f32
    %873 = vector.broadcast %cst_588 : f32 to vector<8x1xf32>
    %874 = arith.divf %872, %873 : vector<8x1xf32>
    %cst_589 = arith.constant 9.99999974E-6 : f32
    %875 = vector.broadcast %cst_589 : f32 to vector<8x1xf32>
    %876 = arith.addf %874, %875 : vector<8x1xf32>
    %877 = math.rsqrt %876 : vector<8x1xf32>
    %878 = vector.broadcast %877 : vector<8x1xf32> to vector<8x32xf32>
    %879 = arith.mulf %869, %878 : vector<8x32xf32>
    %880 = vector.broadcast %861 : vector<1x32xf32> to vector<8x32xf32>
    %881 = arith.mulf %879, %880 : vector<8x32xf32>
    %882 = vector.broadcast %863 : vector<1x32xf32> to vector<8x32xf32>
    %883 = arith.addf %881, %882 : vector<8x32xf32>
    %c0_590 = arith.constant 0 : index
    %c0_591 = arith.constant 0 : index
    %c0_592 = arith.constant 0 : index
    %884 = vector.load %arg26[%c0_590, %c0_591, %c0_592] : memref<2x32x64xf32, #tpu.memory_space<vmem>>, vector<1x32x64xf32>
    %885 = vector.shape_cast %884 : vector<1x32x64xf32> to vector<32x64xf32>
    %cst_593 = arith.constant dense<0.000000e+00> : vector<8x64xf32>
    %886 = tpu.matmul %883, %885, %cst_593 {dimension_numbers = #tpu.dot_dimension_numbers<[1], [0], [0], [1], [0, 0, 1, 1], [], []>} : vector<8x32xf32>, vector<32x64xf32>, vector<8x64xf32> -> vector<8x64xf32>
    %c0_594 = arith.constant 0 : index
    %c0_595 = arith.constant 0 : index
    %c0_596 = arith.constant 0 : index
    %887 = vector.load %arg27[%c0_594, %c0_595, %c0_596] : memref<2x1x64xf32, #tpu.memory_space<vmem>>, vector<1x1x64xf32>
    %888 = vector.shape_cast %887 : vector<1x1x64xf32> to vector<1x64xf32>
    %889 = vector.broadcast %888 : vector<1x64xf32> to vector<8x64xf32>
    %890 = arith.addf %886, %889 : vector<8x64xf32>
    %cst_597 = arith.constant 0.000000e+00 : f32
    %891 = vector.broadcast %cst_597 : f32 to vector<8x64xf32>
    %892 = arith.maximumf %890, %891 : vector<8x64xf32>
    %c0_598 = arith.constant 0 : index
    %c0_599 = arith.constant 0 : index
    %c0_600 = arith.constant 0 : index
    %893 = vector.load %arg28[%c0_598, %c0_599, %c0_600] : memref<2x64x32xf32, #tpu.memory_space<vmem>>, vector<1x64x32xf32>
    %894 = vector.shape_cast %893 : vector<1x64x32xf32> to vector<64x32xf32>
    %cst_601 = arith.constant dense<0.000000e+00> : vector<8x32xf32>
    %895 = tpu.matmul %892, %894, %cst_601 {dimension_numbers = #tpu.dot_dimension_numbers<[1], [0], [0], [1], [0, 0, 1, 1], [], []>} : vector<8x64xf32>, vector<64x32xf32>, vector<8x32xf32> -> vector<8x32xf32>
    %c0_602 = arith.constant 0 : index
    %c0_603 = arith.constant 0 : index
    %c0_604 = arith.constant 0 : index
    %896 = vector.load %arg29[%c0_602, %c0_603, %c0_604] : memref<2x1x32xf32, #tpu.memory_space<vmem>>, vector<1x1x32xf32>
    %897 = vector.shape_cast %896 : vector<1x1x32xf32> to vector<1x32xf32>
    %898 = vector.broadcast %897 : vector<1x32xf32> to vector<8x32xf32>
    %899 = arith.addf %895, %898 : vector<8x32xf32>
    %900 = arith.addf %883, %899 : vector<8x32xf32>
    %c2_605 = arith.constant 2 : index
    %c0_606 = arith.constant 0 : index
    %c0_607 = arith.constant 0 : index
    %901 = vector.load %arg30[%c2_605, %c0_606, %c0_607] : memref<6x1x32xf32, #tpu.memory_space<vmem>>, vector<1x1x32xf32>
    %902 = vector.shape_cast %901 : vector<1x1x32xf32> to vector<1x32xf32>
    %c2_608 = arith.constant 2 : index
    %c0_609 = arith.constant 0 : index
    %c0_610 = arith.constant 0 : index
    %903 = vector.load %arg31[%c2_608, %c0_609, %c0_610] : memref<6x1x32xf32, #tpu.memory_space<vmem>>, vector<1x1x32xf32>
    %904 = vector.shape_cast %903 : vector<1x1x32xf32> to vector<1x32xf32>
    %cst_611 = arith.constant dense<0.000000e+00> : vector<8xf32>
    %905 = vector.multi_reduction <add>, %900, %cst_611 [1] : vector<8x32xf32> to vector<8xf32>
    %906 = vector.shape_cast %905 : vector<8xf32> to vector<8x1xf32>
    %cst_612 = arith.constant 3.200000e+01 : f32
    %907 = vector.broadcast %cst_612 : f32 to vector<8x1xf32>
    %908 = arith.divf %906, %907 : vector<8x1xf32>
    %909 = vector.broadcast %908 : vector<8x1xf32> to vector<8x32xf32>
    %910 = arith.subf %900, %909 : vector<8x32xf32>
    %911 = arith.mulf %910, %910 : vector<8x32xf32>
    %cst_613 = arith.constant dense<0.000000e+00> : vector<8xf32>
    %912 = vector.multi_reduction <add>, %911, %cst_613 [1] : vector<8x32xf32> to vector<8xf32>
    %913 = vector.shape_cast %912 : vector<8xf32> to vector<8x1xf32>
    %cst_614 = arith.constant 3.200000e+01 : f32
    %914 = vector.broadcast %cst_614 : f32 to vector<8x1xf32>
    %915 = arith.divf %913, %914 : vector<8x1xf32>
    %cst_615 = arith.constant 9.99999974E-6 : f32
    %916 = vector.broadcast %cst_615 : f32 to vector<8x1xf32>
    %917 = arith.addf %915, %916 : vector<8x1xf32>
    %918 = math.rsqrt %917 : vector<8x1xf32>
    %919 = vector.broadcast %918 : vector<8x1xf32> to vector<8x32xf32>
    %920 = arith.mulf %910, %919 : vector<8x32xf32>
    %921 = vector.broadcast %902 : vector<1x32xf32> to vector<8x32xf32>
    %922 = arith.mulf %920, %921 : vector<8x32xf32>
    %923 = vector.broadcast %904 : vector<1x32xf32> to vector<8x32xf32>
    %924 = arith.addf %922, %923 : vector<8x32xf32>
    %c12_616 = arith.constant 12 : index
    %c0_617 = arith.constant 0 : index
    %c0_618 = arith.constant 0 : index
    %925 = vector.load %arg18[%c12_616, %c0_617, %c0_618] : memref<24x32x8xf32, #tpu.memory_space<vmem>>, vector<1x32x8xf32>
    %926 = vector.shape_cast %925 : vector<1x32x8xf32> to vector<32x8xf32>
    %cst_619 = arith.constant dense<0.000000e+00> : vector<8x8xf32>
    %927 = tpu.matmul %924, %926, %cst_619 {dimension_numbers = #tpu.dot_dimension_numbers<[1], [0], [0], [1], [0, 0, 1, 1], [], []>} : vector<8x32xf32>, vector<32x8xf32>, vector<8x8xf32> -> vector<8x8xf32>
    %c12_620 = arith.constant 12 : index
    %c0_621 = arith.constant 0 : index
    %c0_622 = arith.constant 0 : index
    %928 = vector.load %arg19[%c12_620, %c0_621, %c0_622] : memref<24x1x8xf32, #tpu.memory_space<vmem>>, vector<1x1x8xf32>
    %929 = vector.shape_cast %928 : vector<1x1x8xf32> to vector<1x8xf32>
    %930 = vector.broadcast %929 : vector<1x8xf32> to vector<8x8xf32>
    %931 = arith.addf %927, %930 : vector<8x8xf32>
    %c16_623 = arith.constant 16 : index
    %c0_624 = arith.constant 0 : index
    %c0_625 = arith.constant 0 : index
    %932 = vector.load %arg18[%c16_623, %c0_624, %c0_625] : memref<24x32x8xf32, #tpu.memory_space<vmem>>, vector<1x32x8xf32>
    %933 = vector.shape_cast %932 : vector<1x32x8xf32> to vector<32x8xf32>
    %cst_626 = arith.constant dense<0.000000e+00> : vector<8x8xf32>
    %934 = tpu.matmul %924, %933, %cst_626 {dimension_numbers = #tpu.dot_dimension_numbers<[1], [0], [0], [1], [0, 0, 1, 1], [], []>} : vector<8x32xf32>, vector<32x8xf32>, vector<8x8xf32> -> vector<8x8xf32>
    %c16_627 = arith.constant 16 : index
    %c0_628 = arith.constant 0 : index
    %c0_629 = arith.constant 0 : index
    %935 = vector.load %arg19[%c16_627, %c0_628, %c0_629] : memref<24x1x8xf32, #tpu.memory_space<vmem>>, vector<1x1x8xf32>
    %936 = vector.shape_cast %935 : vector<1x1x8xf32> to vector<1x8xf32>
    %937 = vector.broadcast %936 : vector<1x8xf32> to vector<8x8xf32>
    %938 = arith.addf %934, %937 : vector<8x8xf32>
    %c20_630 = arith.constant 20 : index
    %c0_631 = arith.constant 0 : index
    %c0_632 = arith.constant 0 : index
    %939 = vector.load %arg18[%c20_630, %c0_631, %c0_632] : memref<24x32x8xf32, #tpu.memory_space<vmem>>, vector<1x32x8xf32>
    %940 = vector.shape_cast %939 : vector<1x32x8xf32> to vector<32x8xf32>
    %cst_633 = arith.constant dense<0.000000e+00> : vector<8x8xf32>
    %941 = tpu.matmul %924, %940, %cst_633 {dimension_numbers = #tpu.dot_dimension_numbers<[1], [0], [0], [1], [0, 0, 1, 1], [], []>} : vector<8x32xf32>, vector<32x8xf32>, vector<8x8xf32> -> vector<8x8xf32>
    %c20_634 = arith.constant 20 : index
    %c0_635 = arith.constant 0 : index
    %c0_636 = arith.constant 0 : index
    %942 = vector.load %arg19[%c20_634, %c0_635, %c0_636] : memref<24x1x8xf32, #tpu.memory_space<vmem>>, vector<1x1x8xf32>
    %943 = vector.shape_cast %942 : vector<1x1x8xf32> to vector<1x8xf32>
    %944 = vector.broadcast %943 : vector<1x8xf32> to vector<8x8xf32>
    %945 = arith.addf %941, %944 : vector<8x8xf32>
    %cst_637 = arith.constant dense<0.000000e+00> : vector<8x8xf32>
    %946 = tpu.matmul %931, %938, %cst_637 {dimension_numbers = #tpu.dot_dimension_numbers<[1], [1], [0], [0], [0, 0, 1, 0], [], []>} : vector<8x8xf32>, vector<8x8xf32>, vector<8x8xf32> -> vector<8x8xf32>
    %cst_638 = arith.constant 0.353553385 : f32
    %947 = vector.broadcast %cst_638 : f32 to vector<8x8xf32>
    %948 = arith.mulf %946, %947 : vector<8x8xf32>
    %949 = arith.addf %948, %11 : vector<8x8xf32>
    %cst_639 = arith.constant dense<0xFF800000> : vector<8xf32>
    %950 = vector.multi_reduction <maximumf>, %949, %cst_639 [1] : vector<8x8xf32> to vector<8xf32>
    %951 = vector.shape_cast %950 : vector<8xf32> to vector<8x1xf32>
    %952 = vector.broadcast %951 : vector<8x1xf32> to vector<8x8xf32>
    %953 = arith.subf %949, %952 : vector<8x8xf32>
    %954 = math.exp %953 : vector<8x8xf32>
    %cst_640 = arith.constant dense<0.000000e+00> : vector<8xf32>
    %955 = vector.multi_reduction <add>, %954, %cst_640 [1] : vector<8x8xf32> to vector<8xf32>
    %956 = vector.shape_cast %955 : vector<8xf32> to vector<8x1xf32>
    %957 = tpu.reciprocal %956 {approx = true} : vector<8x1xf32> -> vector<8x1xf32>
    %958 = vector.broadcast %957 : vector<8x1xf32> to vector<8x8xf32>
    %959 = arith.mulf %954, %958 : vector<8x8xf32>
    %cst_641 = arith.constant dense<0.000000e+00> : vector<8x8xf32>
    %960 = tpu.matmul %959, %945, %cst_641 {dimension_numbers = #tpu.dot_dimension_numbers<[1], [0], [0], [1], [0, 0, 1, 1], [], []>} : vector<8x8xf32>, vector<8x8xf32>, vector<8x8xf32> -> vector<8x8xf32>
    %c4_642 = arith.constant 4 : index
    %c0_643 = arith.constant 0 : index
    %c0_644 = arith.constant 0 : index
    %961 = vector.load %arg20[%c4_642, %c0_643, %c0_644] : memref<8x8x32xf32, #tpu.memory_space<vmem>>, vector<1x8x32xf32>
    %962 = vector.shape_cast %961 : vector<1x8x32xf32> to vector<8x32xf32>
    %cst_645 = arith.constant dense<0.000000e+00> : vector<8x32xf32>
    %963 = tpu.matmul %960, %962, %cst_645 {dimension_numbers = #tpu.dot_dimension_numbers<[1], [0], [0], [1], [0, 0, 1, 1], [], []>} : vector<8x8xf32>, vector<8x32xf32>, vector<8x32xf32> -> vector<8x32xf32>
    %c13_646 = arith.constant 13 : index
    %c0_647 = arith.constant 0 : index
    %c0_648 = arith.constant 0 : index
    %964 = vector.load %arg18[%c13_646, %c0_647, %c0_648] : memref<24x32x8xf32, #tpu.memory_space<vmem>>, vector<1x32x8xf32>
    %965 = vector.shape_cast %964 : vector<1x32x8xf32> to vector<32x8xf32>
    %cst_649 = arith.constant dense<0.000000e+00> : vector<8x8xf32>
    %966 = tpu.matmul %924, %965, %cst_649 {dimension_numbers = #tpu.dot_dimension_numbers<[1], [0], [0], [1], [0, 0, 1, 1], [], []>} : vector<8x32xf32>, vector<32x8xf32>, vector<8x8xf32> -> vector<8x8xf32>
    %c13_650 = arith.constant 13 : index
    %c0_651 = arith.constant 0 : index
    %c0_652 = arith.constant 0 : index
    %967 = vector.load %arg19[%c13_650, %c0_651, %c0_652] : memref<24x1x8xf32, #tpu.memory_space<vmem>>, vector<1x1x8xf32>
    %968 = vector.shape_cast %967 : vector<1x1x8xf32> to vector<1x8xf32>
    %969 = vector.broadcast %968 : vector<1x8xf32> to vector<8x8xf32>
    %970 = arith.addf %966, %969 : vector<8x8xf32>
    %c17_653 = arith.constant 17 : index
    %c0_654 = arith.constant 0 : index
    %c0_655 = arith.constant 0 : index
    %971 = vector.load %arg18[%c17_653, %c0_654, %c0_655] : memref<24x32x8xf32, #tpu.memory_space<vmem>>, vector<1x32x8xf32>
    %972 = vector.shape_cast %971 : vector<1x32x8xf32> to vector<32x8xf32>
    %cst_656 = arith.constant dense<0.000000e+00> : vector<8x8xf32>
    %973 = tpu.matmul %924, %972, %cst_656 {dimension_numbers = #tpu.dot_dimension_numbers<[1], [0], [0], [1], [0, 0, 1, 1], [], []>} : vector<8x32xf32>, vector<32x8xf32>, vector<8x8xf32> -> vector<8x8xf32>
    %c17_657 = arith.constant 17 : index
    %c0_658 = arith.constant 0 : index
    %c0_659 = arith.constant 0 : index
    %974 = vector.load %arg19[%c17_657, %c0_658, %c0_659] : memref<24x1x8xf32, #tpu.memory_space<vmem>>, vector<1x1x8xf32>
    %975 = vector.shape_cast %974 : vector<1x1x8xf32> to vector<1x8xf32>
    %976 = vector.broadcast %975 : vector<1x8xf32> to vector<8x8xf32>
    %977 = arith.addf %973, %976 : vector<8x8xf32>
    %c21_660 = arith.constant 21 : index
    %c0_661 = arith.constant 0 : index
    %c0_662 = arith.constant 0 : index
    %978 = vector.load %arg18[%c21_660, %c0_661, %c0_662] : memref<24x32x8xf32, #tpu.memory_space<vmem>>, vector<1x32x8xf32>
    %979 = vector.shape_cast %978 : vector<1x32x8xf32> to vector<32x8xf32>
    %cst_663 = arith.constant dense<0.000000e+00> : vector<8x8xf32>
    %980 = tpu.matmul %924, %979, %cst_663 {dimension_numbers = #tpu.dot_dimension_numbers<[1], [0], [0], [1], [0, 0, 1, 1], [], []>} : vector<8x32xf32>, vector<32x8xf32>, vector<8x8xf32> -> vector<8x8xf32>
    %c21_664 = arith.constant 21 : index
    %c0_665 = arith.constant 0 : index
    %c0_666 = arith.constant 0 : index
    %981 = vector.load %arg19[%c21_664, %c0_665, %c0_666] : memref<24x1x8xf32, #tpu.memory_space<vmem>>, vector<1x1x8xf32>
    %982 = vector.shape_cast %981 : vector<1x1x8xf32> to vector<1x8xf32>
    %983 = vector.broadcast %982 : vector<1x8xf32> to vector<8x8xf32>
    %984 = arith.addf %980, %983 : vector<8x8xf32>
    %cst_667 = arith.constant dense<0.000000e+00> : vector<8x8xf32>
    %985 = tpu.matmul %970, %977, %cst_667 {dimension_numbers = #tpu.dot_dimension_numbers<[1], [1], [0], [0], [0, 0, 1, 0], [], []>} : vector<8x8xf32>, vector<8x8xf32>, vector<8x8xf32> -> vector<8x8xf32>
    %cst_668 = arith.constant 0.353553385 : f32
    %986 = vector.broadcast %cst_668 : f32 to vector<8x8xf32>
    %987 = arith.mulf %985, %986 : vector<8x8xf32>
    %988 = arith.addf %987, %11 : vector<8x8xf32>
    %cst_669 = arith.constant dense<0xFF800000> : vector<8xf32>
    %989 = vector.multi_reduction <maximumf>, %988, %cst_669 [1] : vector<8x8xf32> to vector<8xf32>
    %990 = vector.shape_cast %989 : vector<8xf32> to vector<8x1xf32>
    %991 = vector.broadcast %990 : vector<8x1xf32> to vector<8x8xf32>
    %992 = arith.subf %988, %991 : vector<8x8xf32>
    %993 = math.exp %992 : vector<8x8xf32>
    %cst_670 = arith.constant dense<0.000000e+00> : vector<8xf32>
    %994 = vector.multi_reduction <add>, %993, %cst_670 [1] : vector<8x8xf32> to vector<8xf32>
    %995 = vector.shape_cast %994 : vector<8xf32> to vector<8x1xf32>
    %996 = tpu.reciprocal %995 {approx = true} : vector<8x1xf32> -> vector<8x1xf32>
    %997 = vector.broadcast %996 : vector<8x1xf32> to vector<8x8xf32>
    %998 = arith.mulf %993, %997 : vector<8x8xf32>
    %cst_671 = arith.constant dense<0.000000e+00> : vector<8x8xf32>
    %999 = tpu.matmul %998, %984, %cst_671 {dimension_numbers = #tpu.dot_dimension_numbers<[1], [0], [0], [1], [0, 0, 1, 1], [], []>} : vector<8x8xf32>, vector<8x8xf32>, vector<8x8xf32> -> vector<8x8xf32>
    %c5_672 = arith.constant 5 : index
    %c0_673 = arith.constant 0 : index
    %c0_674 = arith.constant 0 : index
    %1000 = vector.load %arg20[%c5_672, %c0_673, %c0_674] : memref<8x8x32xf32, #tpu.memory_space<vmem>>, vector<1x8x32xf32>
    %1001 = vector.shape_cast %1000 : vector<1x8x32xf32> to vector<8x32xf32>
    %cst_675 = arith.constant dense<0.000000e+00> : vector<8x32xf32>
    %1002 = tpu.matmul %999, %1001, %cst_675 {dimension_numbers = #tpu.dot_dimension_numbers<[1], [0], [0], [1], [0, 0, 1, 1], [], []>} : vector<8x8xf32>, vector<8x32xf32>, vector<8x32xf32> -> vector<8x32xf32>
    %1003 = arith.addf %963, %1002 : vector<8x32xf32>
    %c14_676 = arith.constant 14 : index
    %c0_677 = arith.constant 0 : index
    %c0_678 = arith.constant 0 : index
    %1004 = vector.load %arg18[%c14_676, %c0_677, %c0_678] : memref<24x32x8xf32, #tpu.memory_space<vmem>>, vector<1x32x8xf32>
    %1005 = vector.shape_cast %1004 : vector<1x32x8xf32> to vector<32x8xf32>
    %cst_679 = arith.constant dense<0.000000e+00> : vector<8x8xf32>
    %1006 = tpu.matmul %924, %1005, %cst_679 {dimension_numbers = #tpu.dot_dimension_numbers<[1], [0], [0], [1], [0, 0, 1, 1], [], []>} : vector<8x32xf32>, vector<32x8xf32>, vector<8x8xf32> -> vector<8x8xf32>
    %c14_680 = arith.constant 14 : index
    %c0_681 = arith.constant 0 : index
    %c0_682 = arith.constant 0 : index
    %1007 = vector.load %arg19[%c14_680, %c0_681, %c0_682] : memref<24x1x8xf32, #tpu.memory_space<vmem>>, vector<1x1x8xf32>
    %1008 = vector.shape_cast %1007 : vector<1x1x8xf32> to vector<1x8xf32>
    %1009 = vector.broadcast %1008 : vector<1x8xf32> to vector<8x8xf32>
    %1010 = arith.addf %1006, %1009 : vector<8x8xf32>
    %c18_683 = arith.constant 18 : index
    %c0_684 = arith.constant 0 : index
    %c0_685 = arith.constant 0 : index
    %1011 = vector.load %arg18[%c18_683, %c0_684, %c0_685] : memref<24x32x8xf32, #tpu.memory_space<vmem>>, vector<1x32x8xf32>
    %1012 = vector.shape_cast %1011 : vector<1x32x8xf32> to vector<32x8xf32>
    %cst_686 = arith.constant dense<0.000000e+00> : vector<8x8xf32>
    %1013 = tpu.matmul %924, %1012, %cst_686 {dimension_numbers = #tpu.dot_dimension_numbers<[1], [0], [0], [1], [0, 0, 1, 1], [], []>} : vector<8x32xf32>, vector<32x8xf32>, vector<8x8xf32> -> vector<8x8xf32>
    %c18_687 = arith.constant 18 : index
    %c0_688 = arith.constant 0 : index
    %c0_689 = arith.constant 0 : index
    %1014 = vector.load %arg19[%c18_687, %c0_688, %c0_689] : memref<24x1x8xf32, #tpu.memory_space<vmem>>, vector<1x1x8xf32>
    %1015 = vector.shape_cast %1014 : vector<1x1x8xf32> to vector<1x8xf32>
    %1016 = vector.broadcast %1015 : vector<1x8xf32> to vector<8x8xf32>
    %1017 = arith.addf %1013, %1016 : vector<8x8xf32>
    %c22_690 = arith.constant 22 : index
    %c0_691 = arith.constant 0 : index
    %c0_692 = arith.constant 0 : index
    %1018 = vector.load %arg18[%c22_690, %c0_691, %c0_692] : memref<24x32x8xf32, #tpu.memory_space<vmem>>, vector<1x32x8xf32>
    %1019 = vector.shape_cast %1018 : vector<1x32x8xf32> to vector<32x8xf32>
    %cst_693 = arith.constant dense<0.000000e+00> : vector<8x8xf32>
    %1020 = tpu.matmul %924, %1019, %cst_693 {dimension_numbers = #tpu.dot_dimension_numbers<[1], [0], [0], [1], [0, 0, 1, 1], [], []>} : vector<8x32xf32>, vector<32x8xf32>, vector<8x8xf32> -> vector<8x8xf32>
    %c22_694 = arith.constant 22 : index
    %c0_695 = arith.constant 0 : index
    %c0_696 = arith.constant 0 : index
    %1021 = vector.load %arg19[%c22_694, %c0_695, %c0_696] : memref<24x1x8xf32, #tpu.memory_space<vmem>>, vector<1x1x8xf32>
    %1022 = vector.shape_cast %1021 : vector<1x1x8xf32> to vector<1x8xf32>
    %1023 = vector.broadcast %1022 : vector<1x8xf32> to vector<8x8xf32>
    %1024 = arith.addf %1020, %1023 : vector<8x8xf32>
    %cst_697 = arith.constant dense<0.000000e+00> : vector<8x8xf32>
    %1025 = tpu.matmul %1010, %1017, %cst_697 {dimension_numbers = #tpu.dot_dimension_numbers<[1], [1], [0], [0], [0, 0, 1, 0], [], []>} : vector<8x8xf32>, vector<8x8xf32>, vector<8x8xf32> -> vector<8x8xf32>
    %cst_698 = arith.constant 0.353553385 : f32
    %1026 = vector.broadcast %cst_698 : f32 to vector<8x8xf32>
    %1027 = arith.mulf %1025, %1026 : vector<8x8xf32>
    %1028 = arith.addf %1027, %11 : vector<8x8xf32>
    %cst_699 = arith.constant dense<0xFF800000> : vector<8xf32>
    %1029 = vector.multi_reduction <maximumf>, %1028, %cst_699 [1] : vector<8x8xf32> to vector<8xf32>
    %1030 = vector.shape_cast %1029 : vector<8xf32> to vector<8x1xf32>
    %1031 = vector.broadcast %1030 : vector<8x1xf32> to vector<8x8xf32>
    %1032 = arith.subf %1028, %1031 : vector<8x8xf32>
    %1033 = math.exp %1032 : vector<8x8xf32>
    %cst_700 = arith.constant dense<0.000000e+00> : vector<8xf32>
    %1034 = vector.multi_reduction <add>, %1033, %cst_700 [1] : vector<8x8xf32> to vector<8xf32>
    %1035 = vector.shape_cast %1034 : vector<8xf32> to vector<8x1xf32>
    %1036 = tpu.reciprocal %1035 {approx = true} : vector<8x1xf32> -> vector<8x1xf32>
    %1037 = vector.broadcast %1036 : vector<8x1xf32> to vector<8x8xf32>
    %1038 = arith.mulf %1033, %1037 : vector<8x8xf32>
    %cst_701 = arith.constant dense<0.000000e+00> : vector<8x8xf32>
    %1039 = tpu.matmul %1038, %1024, %cst_701 {dimension_numbers = #tpu.dot_dimension_numbers<[1], [0], [0], [1], [0, 0, 1, 1], [], []>} : vector<8x8xf32>, vector<8x8xf32>, vector<8x8xf32> -> vector<8x8xf32>
    %c6_702 = arith.constant 6 : index
    %c0_703 = arith.constant 0 : index
    %c0_704 = arith.constant 0 : index
    %1040 = vector.load %arg20[%c6_702, %c0_703, %c0_704] : memref<8x8x32xf32, #tpu.memory_space<vmem>>, vector<1x8x32xf32>
    %1041 = vector.shape_cast %1040 : vector<1x8x32xf32> to vector<8x32xf32>
    %cst_705 = arith.constant dense<0.000000e+00> : vector<8x32xf32>
    %1042 = tpu.matmul %1039, %1041, %cst_705 {dimension_numbers = #tpu.dot_dimension_numbers<[1], [0], [0], [1], [0, 0, 1, 1], [], []>} : vector<8x8xf32>, vector<8x32xf32>, vector<8x32xf32> -> vector<8x32xf32>
    %1043 = arith.addf %1003, %1042 : vector<8x32xf32>
    %c15_706 = arith.constant 15 : index
    %c0_707 = arith.constant 0 : index
    %c0_708 = arith.constant 0 : index
    %1044 = vector.load %arg18[%c15_706, %c0_707, %c0_708] : memref<24x32x8xf32, #tpu.memory_space<vmem>>, vector<1x32x8xf32>
    %1045 = vector.shape_cast %1044 : vector<1x32x8xf32> to vector<32x8xf32>
    %cst_709 = arith.constant dense<0.000000e+00> : vector<8x8xf32>
    %1046 = tpu.matmul %924, %1045, %cst_709 {dimension_numbers = #tpu.dot_dimension_numbers<[1], [0], [0], [1], [0, 0, 1, 1], [], []>} : vector<8x32xf32>, vector<32x8xf32>, vector<8x8xf32> -> vector<8x8xf32>
    %c15_710 = arith.constant 15 : index
    %c0_711 = arith.constant 0 : index
    %c0_712 = arith.constant 0 : index
    %1047 = vector.load %arg19[%c15_710, %c0_711, %c0_712] : memref<24x1x8xf32, #tpu.memory_space<vmem>>, vector<1x1x8xf32>
    %1048 = vector.shape_cast %1047 : vector<1x1x8xf32> to vector<1x8xf32>
    %1049 = vector.broadcast %1048 : vector<1x8xf32> to vector<8x8xf32>
    %1050 = arith.addf %1046, %1049 : vector<8x8xf32>
    %c19_713 = arith.constant 19 : index
    %c0_714 = arith.constant 0 : index
    %c0_715 = arith.constant 0 : index
    %1051 = vector.load %arg18[%c19_713, %c0_714, %c0_715] : memref<24x32x8xf32, #tpu.memory_space<vmem>>, vector<1x32x8xf32>
    %1052 = vector.shape_cast %1051 : vector<1x32x8xf32> to vector<32x8xf32>
    %cst_716 = arith.constant dense<0.000000e+00> : vector<8x8xf32>
    %1053 = tpu.matmul %924, %1052, %cst_716 {dimension_numbers = #tpu.dot_dimension_numbers<[1], [0], [0], [1], [0, 0, 1, 1], [], []>} : vector<8x32xf32>, vector<32x8xf32>, vector<8x8xf32> -> vector<8x8xf32>
    %c19_717 = arith.constant 19 : index
    %c0_718 = arith.constant 0 : index
    %c0_719 = arith.constant 0 : index
    %1054 = vector.load %arg19[%c19_717, %c0_718, %c0_719] : memref<24x1x8xf32, #tpu.memory_space<vmem>>, vector<1x1x8xf32>
    %1055 = vector.shape_cast %1054 : vector<1x1x8xf32> to vector<1x8xf32>
    %1056 = vector.broadcast %1055 : vector<1x8xf32> to vector<8x8xf32>
    %1057 = arith.addf %1053, %1056 : vector<8x8xf32>
    %c23_720 = arith.constant 23 : index
    %c0_721 = arith.constant 0 : index
    %c0_722 = arith.constant 0 : index
    %1058 = vector.load %arg18[%c23_720, %c0_721, %c0_722] : memref<24x32x8xf32, #tpu.memory_space<vmem>>, vector<1x32x8xf32>
    %1059 = vector.shape_cast %1058 : vector<1x32x8xf32> to vector<32x8xf32>
    %cst_723 = arith.constant dense<0.000000e+00> : vector<8x8xf32>
    %1060 = tpu.matmul %924, %1059, %cst_723 {dimension_numbers = #tpu.dot_dimension_numbers<[1], [0], [0], [1], [0, 0, 1, 1], [], []>} : vector<8x32xf32>, vector<32x8xf32>, vector<8x8xf32> -> vector<8x8xf32>
    %c23_724 = arith.constant 23 : index
    %c0_725 = arith.constant 0 : index
    %c0_726 = arith.constant 0 : index
    %1061 = vector.load %arg19[%c23_724, %c0_725, %c0_726] : memref<24x1x8xf32, #tpu.memory_space<vmem>>, vector<1x1x8xf32>
    %1062 = vector.shape_cast %1061 : vector<1x1x8xf32> to vector<1x8xf32>
    %1063 = vector.broadcast %1062 : vector<1x8xf32> to vector<8x8xf32>
    %1064 = arith.addf %1060, %1063 : vector<8x8xf32>
    %cst_727 = arith.constant dense<0.000000e+00> : vector<8x8xf32>
    %1065 = tpu.matmul %1050, %1057, %cst_727 {dimension_numbers = #tpu.dot_dimension_numbers<[1], [1], [0], [0], [0, 0, 1, 0], [], []>} : vector<8x8xf32>, vector<8x8xf32>, vector<8x8xf32> -> vector<8x8xf32>
    %cst_728 = arith.constant 0.353553385 : f32
    %1066 = vector.broadcast %cst_728 : f32 to vector<8x8xf32>
    %1067 = arith.mulf %1065, %1066 : vector<8x8xf32>
    %1068 = arith.addf %1067, %11 : vector<8x8xf32>
    %cst_729 = arith.constant dense<0xFF800000> : vector<8xf32>
    %1069 = vector.multi_reduction <maximumf>, %1068, %cst_729 [1] : vector<8x8xf32> to vector<8xf32>
    %1070 = vector.shape_cast %1069 : vector<8xf32> to vector<8x1xf32>
    %1071 = vector.broadcast %1070 : vector<8x1xf32> to vector<8x8xf32>
    %1072 = arith.subf %1068, %1071 : vector<8x8xf32>
    %1073 = math.exp %1072 : vector<8x8xf32>
    %cst_730 = arith.constant dense<0.000000e+00> : vector<8xf32>
    %1074 = vector.multi_reduction <add>, %1073, %cst_730 [1] : vector<8x8xf32> to vector<8xf32>
    %1075 = vector.shape_cast %1074 : vector<8xf32> to vector<8x1xf32>
    %1076 = tpu.reciprocal %1075 {approx = true} : vector<8x1xf32> -> vector<8x1xf32>
    %1077 = vector.broadcast %1076 : vector<8x1xf32> to vector<8x8xf32>
    %1078 = arith.mulf %1073, %1077 : vector<8x8xf32>
    %cst_731 = arith.constant dense<0.000000e+00> : vector<8x8xf32>
    %1079 = tpu.matmul %1078, %1064, %cst_731 {dimension_numbers = #tpu.dot_dimension_numbers<[1], [0], [0], [1], [0, 0, 1, 1], [], []>} : vector<8x8xf32>, vector<8x8xf32>, vector<8x8xf32> -> vector<8x8xf32>
    %c7_732 = arith.constant 7 : index
    %c0_733 = arith.constant 0 : index
    %c0_734 = arith.constant 0 : index
    %1080 = vector.load %arg20[%c7_732, %c0_733, %c0_734] : memref<8x8x32xf32, #tpu.memory_space<vmem>>, vector<1x8x32xf32>
    %1081 = vector.shape_cast %1080 : vector<1x8x32xf32> to vector<8x32xf32>
    %cst_735 = arith.constant dense<0.000000e+00> : vector<8x32xf32>
    %1082 = tpu.matmul %1079, %1081, %cst_735 {dimension_numbers = #tpu.dot_dimension_numbers<[1], [0], [0], [1], [0, 0, 1, 1], [], []>} : vector<8x8xf32>, vector<8x32xf32>, vector<8x32xf32> -> vector<8x32xf32>
    %1083 = arith.addf %1043, %1082 : vector<8x32xf32>
    %c1_736 = arith.constant 1 : index
    %c0_737 = arith.constant 0 : index
    %c0_738 = arith.constant 0 : index
    %1084 = vector.load %arg21[%c1_736, %c0_737, %c0_738] : memref<2x1x32xf32, #tpu.memory_space<vmem>>, vector<1x1x32xf32>
    %1085 = vector.shape_cast %1084 : vector<1x1x32xf32> to vector<1x32xf32>
    %1086 = vector.broadcast %1085 : vector<1x32xf32> to vector<8x32xf32>
    %1087 = arith.addf %1083, %1086 : vector<8x32xf32>
    %1088 = arith.addf %924, %1087 : vector<8x32xf32>
    %c3_739 = arith.constant 3 : index
    %c0_740 = arith.constant 0 : index
    %c0_741 = arith.constant 0 : index
    %1089 = vector.load %arg30[%c3_739, %c0_740, %c0_741] : memref<6x1x32xf32, #tpu.memory_space<vmem>>, vector<1x1x32xf32>
    %1090 = vector.shape_cast %1089 : vector<1x1x32xf32> to vector<1x32xf32>
    %c3_742 = arith.constant 3 : index
    %c0_743 = arith.constant 0 : index
    %c0_744 = arith.constant 0 : index
    %1091 = vector.load %arg31[%c3_742, %c0_743, %c0_744] : memref<6x1x32xf32, #tpu.memory_space<vmem>>, vector<1x1x32xf32>
    %1092 = vector.shape_cast %1091 : vector<1x1x32xf32> to vector<1x32xf32>
    %cst_745 = arith.constant dense<0.000000e+00> : vector<8xf32>
    %1093 = vector.multi_reduction <add>, %1088, %cst_745 [1] : vector<8x32xf32> to vector<8xf32>
    %1094 = vector.shape_cast %1093 : vector<8xf32> to vector<8x1xf32>
    %cst_746 = arith.constant 3.200000e+01 : f32
    %1095 = vector.broadcast %cst_746 : f32 to vector<8x1xf32>
    %1096 = arith.divf %1094, %1095 : vector<8x1xf32>
    %1097 = vector.broadcast %1096 : vector<8x1xf32> to vector<8x32xf32>
    %1098 = arith.subf %1088, %1097 : vector<8x32xf32>
    %1099 = arith.mulf %1098, %1098 : vector<8x32xf32>
    %cst_747 = arith.constant dense<0.000000e+00> : vector<8xf32>
    %1100 = vector.multi_reduction <add>, %1099, %cst_747 [1] : vector<8x32xf32> to vector<8xf32>
    %1101 = vector.shape_cast %1100 : vector<8xf32> to vector<8x1xf32>
    %cst_748 = arith.constant 3.200000e+01 : f32
    %1102 = vector.broadcast %cst_748 : f32 to vector<8x1xf32>
    %1103 = arith.divf %1101, %1102 : vector<8x1xf32>
    %cst_749 = arith.constant 9.99999974E-6 : f32
    %1104 = vector.broadcast %cst_749 : f32 to vector<8x1xf32>
    %1105 = arith.addf %1103, %1104 : vector<8x1xf32>
    %1106 = math.rsqrt %1105 : vector<8x1xf32>
    %1107 = vector.broadcast %1106 : vector<8x1xf32> to vector<8x32xf32>
    %1108 = arith.mulf %1098, %1107 : vector<8x32xf32>
    %1109 = vector.broadcast %1090 : vector<1x32xf32> to vector<8x32xf32>
    %1110 = arith.mulf %1108, %1109 : vector<8x32xf32>
    %1111 = vector.broadcast %1092 : vector<1x32xf32> to vector<8x32xf32>
    %1112 = arith.addf %1110, %1111 : vector<8x32xf32>
    %c12_750 = arith.constant 12 : index
    %c0_751 = arith.constant 0 : index
    %c0_752 = arith.constant 0 : index
    %1113 = vector.load %arg22[%c12_750, %c0_751, %c0_752] : memref<24x32x8xf32, #tpu.memory_space<vmem>>, vector<1x32x8xf32>
    %1114 = vector.shape_cast %1113 : vector<1x32x8xf32> to vector<32x8xf32>
    %cst_753 = arith.constant dense<0.000000e+00> : vector<8x8xf32>
    %1115 = tpu.matmul %1112, %1114, %cst_753 {dimension_numbers = #tpu.dot_dimension_numbers<[1], [0], [0], [1], [0, 0, 1, 1], [], []>} : vector<8x32xf32>, vector<32x8xf32>, vector<8x8xf32> -> vector<8x8xf32>
    %c12_754 = arith.constant 12 : index
    %c0_755 = arith.constant 0 : index
    %c0_756 = arith.constant 0 : index
    %1116 = vector.load %arg23[%c12_754, %c0_755, %c0_756] : memref<24x1x8xf32, #tpu.memory_space<vmem>>, vector<1x1x8xf32>
    %1117 = vector.shape_cast %1116 : vector<1x1x8xf32> to vector<1x8xf32>
    %1118 = vector.broadcast %1117 : vector<1x8xf32> to vector<8x8xf32>
    %1119 = arith.addf %1115, %1118 : vector<8x8xf32>
    %c16_757 = arith.constant 16 : index
    %c0_758 = arith.constant 0 : index
    %c0_759 = arith.constant 0 : index
    %1120 = vector.load %arg22[%c16_757, %c0_758, %c0_759] : memref<24x32x8xf32, #tpu.memory_space<vmem>>, vector<1x32x8xf32>
    %1121 = vector.shape_cast %1120 : vector<1x32x8xf32> to vector<32x8xf32>
    %cst_760 = arith.constant dense<0.000000e+00> : vector<8x8xf32>
    %1122 = tpu.matmul %501, %1121, %cst_760 {dimension_numbers = #tpu.dot_dimension_numbers<[1], [0], [0], [1], [0, 0, 1, 1], [], []>} : vector<8x32xf32>, vector<32x8xf32>, vector<8x8xf32> -> vector<8x8xf32>
    %c16_761 = arith.constant 16 : index
    %c0_762 = arith.constant 0 : index
    %c0_763 = arith.constant 0 : index
    %1123 = vector.load %arg23[%c16_761, %c0_762, %c0_763] : memref<24x1x8xf32, #tpu.memory_space<vmem>>, vector<1x1x8xf32>
    %1124 = vector.shape_cast %1123 : vector<1x1x8xf32> to vector<1x8xf32>
    %1125 = vector.broadcast %1124 : vector<1x8xf32> to vector<8x8xf32>
    %1126 = arith.addf %1122, %1125 : vector<8x8xf32>
    %c20_764 = arith.constant 20 : index
    %c0_765 = arith.constant 0 : index
    %c0_766 = arith.constant 0 : index
    %1127 = vector.load %arg22[%c20_764, %c0_765, %c0_766] : memref<24x32x8xf32, #tpu.memory_space<vmem>>, vector<1x32x8xf32>
    %1128 = vector.shape_cast %1127 : vector<1x32x8xf32> to vector<32x8xf32>
    %cst_767 = arith.constant dense<0.000000e+00> : vector<8x8xf32>
    %1129 = tpu.matmul %501, %1128, %cst_767 {dimension_numbers = #tpu.dot_dimension_numbers<[1], [0], [0], [1], [0, 0, 1, 1], [], []>} : vector<8x32xf32>, vector<32x8xf32>, vector<8x8xf32> -> vector<8x8xf32>
    %c20_768 = arith.constant 20 : index
    %c0_769 = arith.constant 0 : index
    %c0_770 = arith.constant 0 : index
    %1130 = vector.load %arg23[%c20_768, %c0_769, %c0_770] : memref<24x1x8xf32, #tpu.memory_space<vmem>>, vector<1x1x8xf32>
    %1131 = vector.shape_cast %1130 : vector<1x1x8xf32> to vector<1x8xf32>
    %1132 = vector.broadcast %1131 : vector<1x8xf32> to vector<8x8xf32>
    %1133 = arith.addf %1129, %1132 : vector<8x8xf32>
    %cst_771 = arith.constant dense<0.000000e+00> : vector<8x8xf32>
    %1134 = tpu.matmul %1119, %1126, %cst_771 {dimension_numbers = #tpu.dot_dimension_numbers<[1], [1], [0], [0], [0, 0, 1, 0], [], []>} : vector<8x8xf32>, vector<8x8xf32>, vector<8x8xf32> -> vector<8x8xf32>
    %cst_772 = arith.constant 0.353553385 : f32
    %1135 = vector.broadcast %cst_772 : f32 to vector<8x8xf32>
    %1136 = arith.mulf %1134, %1135 : vector<8x8xf32>
    %cst_773 = arith.constant dense<0xFF800000> : vector<8xf32>
    %1137 = vector.multi_reduction <maximumf>, %1136, %cst_773 [1] : vector<8x8xf32> to vector<8xf32>
    %1138 = vector.shape_cast %1137 : vector<8xf32> to vector<8x1xf32>
    %1139 = vector.broadcast %1138 : vector<8x1xf32> to vector<8x8xf32>
    %1140 = arith.subf %1136, %1139 : vector<8x8xf32>
    %1141 = math.exp %1140 : vector<8x8xf32>
    %cst_774 = arith.constant dense<0.000000e+00> : vector<8xf32>
    %1142 = vector.multi_reduction <add>, %1141, %cst_774 [1] : vector<8x8xf32> to vector<8xf32>
    %1143 = vector.shape_cast %1142 : vector<8xf32> to vector<8x1xf32>
    %1144 = tpu.reciprocal %1143 {approx = true} : vector<8x1xf32> -> vector<8x1xf32>
    %1145 = vector.broadcast %1144 : vector<8x1xf32> to vector<8x8xf32>
    %1146 = arith.mulf %1141, %1145 : vector<8x8xf32>
    %cst_775 = arith.constant dense<0.000000e+00> : vector<8x8xf32>
    %1147 = tpu.matmul %1146, %1133, %cst_775 {dimension_numbers = #tpu.dot_dimension_numbers<[1], [0], [0], [1], [0, 0, 1, 1], [], []>} : vector<8x8xf32>, vector<8x8xf32>, vector<8x8xf32> -> vector<8x8xf32>
    %c4_776 = arith.constant 4 : index
    %c0_777 = arith.constant 0 : index
    %c0_778 = arith.constant 0 : index
    %1148 = vector.load %arg24[%c4_776, %c0_777, %c0_778] : memref<8x8x32xf32, #tpu.memory_space<vmem>>, vector<1x8x32xf32>
    %1149 = vector.shape_cast %1148 : vector<1x8x32xf32> to vector<8x32xf32>
    %cst_779 = arith.constant dense<0.000000e+00> : vector<8x32xf32>
    %1150 = tpu.matmul %1147, %1149, %cst_779 {dimension_numbers = #tpu.dot_dimension_numbers<[1], [0], [0], [1], [0, 0, 1, 1], [], []>} : vector<8x8xf32>, vector<8x32xf32>, vector<8x32xf32> -> vector<8x32xf32>
    %c13_780 = arith.constant 13 : index
    %c0_781 = arith.constant 0 : index
    %c0_782 = arith.constant 0 : index
    %1151 = vector.load %arg22[%c13_780, %c0_781, %c0_782] : memref<24x32x8xf32, #tpu.memory_space<vmem>>, vector<1x32x8xf32>
    %1152 = vector.shape_cast %1151 : vector<1x32x8xf32> to vector<32x8xf32>
    %cst_783 = arith.constant dense<0.000000e+00> : vector<8x8xf32>
    %1153 = tpu.matmul %1112, %1152, %cst_783 {dimension_numbers = #tpu.dot_dimension_numbers<[1], [0], [0], [1], [0, 0, 1, 1], [], []>} : vector<8x32xf32>, vector<32x8xf32>, vector<8x8xf32> -> vector<8x8xf32>
    %c13_784 = arith.constant 13 : index
    %c0_785 = arith.constant 0 : index
    %c0_786 = arith.constant 0 : index
    %1154 = vector.load %arg23[%c13_784, %c0_785, %c0_786] : memref<24x1x8xf32, #tpu.memory_space<vmem>>, vector<1x1x8xf32>
    %1155 = vector.shape_cast %1154 : vector<1x1x8xf32> to vector<1x8xf32>
    %1156 = vector.broadcast %1155 : vector<1x8xf32> to vector<8x8xf32>
    %1157 = arith.addf %1153, %1156 : vector<8x8xf32>
    %c17_787 = arith.constant 17 : index
    %c0_788 = arith.constant 0 : index
    %c0_789 = arith.constant 0 : index
    %1158 = vector.load %arg22[%c17_787, %c0_788, %c0_789] : memref<24x32x8xf32, #tpu.memory_space<vmem>>, vector<1x32x8xf32>
    %1159 = vector.shape_cast %1158 : vector<1x32x8xf32> to vector<32x8xf32>
    %cst_790 = arith.constant dense<0.000000e+00> : vector<8x8xf32>
    %1160 = tpu.matmul %501, %1159, %cst_790 {dimension_numbers = #tpu.dot_dimension_numbers<[1], [0], [0], [1], [0, 0, 1, 1], [], []>} : vector<8x32xf32>, vector<32x8xf32>, vector<8x8xf32> -> vector<8x8xf32>
    %c17_791 = arith.constant 17 : index
    %c0_792 = arith.constant 0 : index
    %c0_793 = arith.constant 0 : index
    %1161 = vector.load %arg23[%c17_791, %c0_792, %c0_793] : memref<24x1x8xf32, #tpu.memory_space<vmem>>, vector<1x1x8xf32>
    %1162 = vector.shape_cast %1161 : vector<1x1x8xf32> to vector<1x8xf32>
    %1163 = vector.broadcast %1162 : vector<1x8xf32> to vector<8x8xf32>
    %1164 = arith.addf %1160, %1163 : vector<8x8xf32>
    %c21_794 = arith.constant 21 : index
    %c0_795 = arith.constant 0 : index
    %c0_796 = arith.constant 0 : index
    %1165 = vector.load %arg22[%c21_794, %c0_795, %c0_796] : memref<24x32x8xf32, #tpu.memory_space<vmem>>, vector<1x32x8xf32>
    %1166 = vector.shape_cast %1165 : vector<1x32x8xf32> to vector<32x8xf32>
    %cst_797 = arith.constant dense<0.000000e+00> : vector<8x8xf32>
    %1167 = tpu.matmul %501, %1166, %cst_797 {dimension_numbers = #tpu.dot_dimension_numbers<[1], [0], [0], [1], [0, 0, 1, 1], [], []>} : vector<8x32xf32>, vector<32x8xf32>, vector<8x8xf32> -> vector<8x8xf32>
    %c21_798 = arith.constant 21 : index
    %c0_799 = arith.constant 0 : index
    %c0_800 = arith.constant 0 : index
    %1168 = vector.load %arg23[%c21_798, %c0_799, %c0_800] : memref<24x1x8xf32, #tpu.memory_space<vmem>>, vector<1x1x8xf32>
    %1169 = vector.shape_cast %1168 : vector<1x1x8xf32> to vector<1x8xf32>
    %1170 = vector.broadcast %1169 : vector<1x8xf32> to vector<8x8xf32>
    %1171 = arith.addf %1167, %1170 : vector<8x8xf32>
    %cst_801 = arith.constant dense<0.000000e+00> : vector<8x8xf32>
    %1172 = tpu.matmul %1157, %1164, %cst_801 {dimension_numbers = #tpu.dot_dimension_numbers<[1], [1], [0], [0], [0, 0, 1, 0], [], []>} : vector<8x8xf32>, vector<8x8xf32>, vector<8x8xf32> -> vector<8x8xf32>
    %cst_802 = arith.constant 0.353553385 : f32
    %1173 = vector.broadcast %cst_802 : f32 to vector<8x8xf32>
    %1174 = arith.mulf %1172, %1173 : vector<8x8xf32>
    %cst_803 = arith.constant dense<0xFF800000> : vector<8xf32>
    %1175 = vector.multi_reduction <maximumf>, %1174, %cst_803 [1] : vector<8x8xf32> to vector<8xf32>
    %1176 = vector.shape_cast %1175 : vector<8xf32> to vector<8x1xf32>
    %1177 = vector.broadcast %1176 : vector<8x1xf32> to vector<8x8xf32>
    %1178 = arith.subf %1174, %1177 : vector<8x8xf32>
    %1179 = math.exp %1178 : vector<8x8xf32>
    %cst_804 = arith.constant dense<0.000000e+00> : vector<8xf32>
    %1180 = vector.multi_reduction <add>, %1179, %cst_804 [1] : vector<8x8xf32> to vector<8xf32>
    %1181 = vector.shape_cast %1180 : vector<8xf32> to vector<8x1xf32>
    %1182 = tpu.reciprocal %1181 {approx = true} : vector<8x1xf32> -> vector<8x1xf32>
    %1183 = vector.broadcast %1182 : vector<8x1xf32> to vector<8x8xf32>
    %1184 = arith.mulf %1179, %1183 : vector<8x8xf32>
    %cst_805 = arith.constant dense<0.000000e+00> : vector<8x8xf32>
    %1185 = tpu.matmul %1184, %1171, %cst_805 {dimension_numbers = #tpu.dot_dimension_numbers<[1], [0], [0], [1], [0, 0, 1, 1], [], []>} : vector<8x8xf32>, vector<8x8xf32>, vector<8x8xf32> -> vector<8x8xf32>
    %c5_806 = arith.constant 5 : index
    %c0_807 = arith.constant 0 : index
    %c0_808 = arith.constant 0 : index
    %1186 = vector.load %arg24[%c5_806, %c0_807, %c0_808] : memref<8x8x32xf32, #tpu.memory_space<vmem>>, vector<1x8x32xf32>
    %1187 = vector.shape_cast %1186 : vector<1x8x32xf32> to vector<8x32xf32>
    %cst_809 = arith.constant dense<0.000000e+00> : vector<8x32xf32>
    %1188 = tpu.matmul %1185, %1187, %cst_809 {dimension_numbers = #tpu.dot_dimension_numbers<[1], [0], [0], [1], [0, 0, 1, 1], [], []>} : vector<8x8xf32>, vector<8x32xf32>, vector<8x32xf32> -> vector<8x32xf32>
    %1189 = arith.addf %1150, %1188 : vector<8x32xf32>
    %c14_810 = arith.constant 14 : index
    %c0_811 = arith.constant 0 : index
    %c0_812 = arith.constant 0 : index
    %1190 = vector.load %arg22[%c14_810, %c0_811, %c0_812] : memref<24x32x8xf32, #tpu.memory_space<vmem>>, vector<1x32x8xf32>
    %1191 = vector.shape_cast %1190 : vector<1x32x8xf32> to vector<32x8xf32>
    %cst_813 = arith.constant dense<0.000000e+00> : vector<8x8xf32>
    %1192 = tpu.matmul %1112, %1191, %cst_813 {dimension_numbers = #tpu.dot_dimension_numbers<[1], [0], [0], [1], [0, 0, 1, 1], [], []>} : vector<8x32xf32>, vector<32x8xf32>, vector<8x8xf32> -> vector<8x8xf32>
    %c14_814 = arith.constant 14 : index
    %c0_815 = arith.constant 0 : index
    %c0_816 = arith.constant 0 : index
    %1193 = vector.load %arg23[%c14_814, %c0_815, %c0_816] : memref<24x1x8xf32, #tpu.memory_space<vmem>>, vector<1x1x8xf32>
    %1194 = vector.shape_cast %1193 : vector<1x1x8xf32> to vector<1x8xf32>
    %1195 = vector.broadcast %1194 : vector<1x8xf32> to vector<8x8xf32>
    %1196 = arith.addf %1192, %1195 : vector<8x8xf32>
    %c18_817 = arith.constant 18 : index
    %c0_818 = arith.constant 0 : index
    %c0_819 = arith.constant 0 : index
    %1197 = vector.load %arg22[%c18_817, %c0_818, %c0_819] : memref<24x32x8xf32, #tpu.memory_space<vmem>>, vector<1x32x8xf32>
    %1198 = vector.shape_cast %1197 : vector<1x32x8xf32> to vector<32x8xf32>
    %cst_820 = arith.constant dense<0.000000e+00> : vector<8x8xf32>
    %1199 = tpu.matmul %501, %1198, %cst_820 {dimension_numbers = #tpu.dot_dimension_numbers<[1], [0], [0], [1], [0, 0, 1, 1], [], []>} : vector<8x32xf32>, vector<32x8xf32>, vector<8x8xf32> -> vector<8x8xf32>
    %c18_821 = arith.constant 18 : index
    %c0_822 = arith.constant 0 : index
    %c0_823 = arith.constant 0 : index
    %1200 = vector.load %arg23[%c18_821, %c0_822, %c0_823] : memref<24x1x8xf32, #tpu.memory_space<vmem>>, vector<1x1x8xf32>
    %1201 = vector.shape_cast %1200 : vector<1x1x8xf32> to vector<1x8xf32>
    %1202 = vector.broadcast %1201 : vector<1x8xf32> to vector<8x8xf32>
    %1203 = arith.addf %1199, %1202 : vector<8x8xf32>
    %c22_824 = arith.constant 22 : index
    %c0_825 = arith.constant 0 : index
    %c0_826 = arith.constant 0 : index
    %1204 = vector.load %arg22[%c22_824, %c0_825, %c0_826] : memref<24x32x8xf32, #tpu.memory_space<vmem>>, vector<1x32x8xf32>
    %1205 = vector.shape_cast %1204 : vector<1x32x8xf32> to vector<32x8xf32>
    %cst_827 = arith.constant dense<0.000000e+00> : vector<8x8xf32>
    %1206 = tpu.matmul %501, %1205, %cst_827 {dimension_numbers = #tpu.dot_dimension_numbers<[1], [0], [0], [1], [0, 0, 1, 1], [], []>} : vector<8x32xf32>, vector<32x8xf32>, vector<8x8xf32> -> vector<8x8xf32>
    %c22_828 = arith.constant 22 : index
    %c0_829 = arith.constant 0 : index
    %c0_830 = arith.constant 0 : index
    %1207 = vector.load %arg23[%c22_828, %c0_829, %c0_830] : memref<24x1x8xf32, #tpu.memory_space<vmem>>, vector<1x1x8xf32>
    %1208 = vector.shape_cast %1207 : vector<1x1x8xf32> to vector<1x8xf32>
    %1209 = vector.broadcast %1208 : vector<1x8xf32> to vector<8x8xf32>
    %1210 = arith.addf %1206, %1209 : vector<8x8xf32>
    %cst_831 = arith.constant dense<0.000000e+00> : vector<8x8xf32>
    %1211 = tpu.matmul %1196, %1203, %cst_831 {dimension_numbers = #tpu.dot_dimension_numbers<[1], [1], [0], [0], [0, 0, 1, 0], [], []>} : vector<8x8xf32>, vector<8x8xf32>, vector<8x8xf32> -> vector<8x8xf32>
    %cst_832 = arith.constant 0.353553385 : f32
    %1212 = vector.broadcast %cst_832 : f32 to vector<8x8xf32>
    %1213 = arith.mulf %1211, %1212 : vector<8x8xf32>
    %cst_833 = arith.constant dense<0xFF800000> : vector<8xf32>
    %1214 = vector.multi_reduction <maximumf>, %1213, %cst_833 [1] : vector<8x8xf32> to vector<8xf32>
    %1215 = vector.shape_cast %1214 : vector<8xf32> to vector<8x1xf32>
    %1216 = vector.broadcast %1215 : vector<8x1xf32> to vector<8x8xf32>
    %1217 = arith.subf %1213, %1216 : vector<8x8xf32>
    %1218 = math.exp %1217 : vector<8x8xf32>
    %cst_834 = arith.constant dense<0.000000e+00> : vector<8xf32>
    %1219 = vector.multi_reduction <add>, %1218, %cst_834 [1] : vector<8x8xf32> to vector<8xf32>
    %1220 = vector.shape_cast %1219 : vector<8xf32> to vector<8x1xf32>
    %1221 = tpu.reciprocal %1220 {approx = true} : vector<8x1xf32> -> vector<8x1xf32>
    %1222 = vector.broadcast %1221 : vector<8x1xf32> to vector<8x8xf32>
    %1223 = arith.mulf %1218, %1222 : vector<8x8xf32>
    %cst_835 = arith.constant dense<0.000000e+00> : vector<8x8xf32>
    %1224 = tpu.matmul %1223, %1210, %cst_835 {dimension_numbers = #tpu.dot_dimension_numbers<[1], [0], [0], [1], [0, 0, 1, 1], [], []>} : vector<8x8xf32>, vector<8x8xf32>, vector<8x8xf32> -> vector<8x8xf32>
    %c6_836 = arith.constant 6 : index
    %c0_837 = arith.constant 0 : index
    %c0_838 = arith.constant 0 : index
    %1225 = vector.load %arg24[%c6_836, %c0_837, %c0_838] : memref<8x8x32xf32, #tpu.memory_space<vmem>>, vector<1x8x32xf32>
    %1226 = vector.shape_cast %1225 : vector<1x8x32xf32> to vector<8x32xf32>
    %cst_839 = arith.constant dense<0.000000e+00> : vector<8x32xf32>
    %1227 = tpu.matmul %1224, %1226, %cst_839 {dimension_numbers = #tpu.dot_dimension_numbers<[1], [0], [0], [1], [0, 0, 1, 1], [], []>} : vector<8x8xf32>, vector<8x32xf32>, vector<8x32xf32> -> vector<8x32xf32>
    %1228 = arith.addf %1189, %1227 : vector<8x32xf32>
    %c15_840 = arith.constant 15 : index
    %c0_841 = arith.constant 0 : index
    %c0_842 = arith.constant 0 : index
    %1229 = vector.load %arg22[%c15_840, %c0_841, %c0_842] : memref<24x32x8xf32, #tpu.memory_space<vmem>>, vector<1x32x8xf32>
    %1230 = vector.shape_cast %1229 : vector<1x32x8xf32> to vector<32x8xf32>
    %cst_843 = arith.constant dense<0.000000e+00> : vector<8x8xf32>
    %1231 = tpu.matmul %1112, %1230, %cst_843 {dimension_numbers = #tpu.dot_dimension_numbers<[1], [0], [0], [1], [0, 0, 1, 1], [], []>} : vector<8x32xf32>, vector<32x8xf32>, vector<8x8xf32> -> vector<8x8xf32>
    %c15_844 = arith.constant 15 : index
    %c0_845 = arith.constant 0 : index
    %c0_846 = arith.constant 0 : index
    %1232 = vector.load %arg23[%c15_844, %c0_845, %c0_846] : memref<24x1x8xf32, #tpu.memory_space<vmem>>, vector<1x1x8xf32>
    %1233 = vector.shape_cast %1232 : vector<1x1x8xf32> to vector<1x8xf32>
    %1234 = vector.broadcast %1233 : vector<1x8xf32> to vector<8x8xf32>
    %1235 = arith.addf %1231, %1234 : vector<8x8xf32>
    %c19_847 = arith.constant 19 : index
    %c0_848 = arith.constant 0 : index
    %c0_849 = arith.constant 0 : index
    %1236 = vector.load %arg22[%c19_847, %c0_848, %c0_849] : memref<24x32x8xf32, #tpu.memory_space<vmem>>, vector<1x32x8xf32>
    %1237 = vector.shape_cast %1236 : vector<1x32x8xf32> to vector<32x8xf32>
    %cst_850 = arith.constant dense<0.000000e+00> : vector<8x8xf32>
    %1238 = tpu.matmul %501, %1237, %cst_850 {dimension_numbers = #tpu.dot_dimension_numbers<[1], [0], [0], [1], [0, 0, 1, 1], [], []>} : vector<8x32xf32>, vector<32x8xf32>, vector<8x8xf32> -> vector<8x8xf32>
    %c19_851 = arith.constant 19 : index
    %c0_852 = arith.constant 0 : index
    %c0_853 = arith.constant 0 : index
    %1239 = vector.load %arg23[%c19_851, %c0_852, %c0_853] : memref<24x1x8xf32, #tpu.memory_space<vmem>>, vector<1x1x8xf32>
    %1240 = vector.shape_cast %1239 : vector<1x1x8xf32> to vector<1x8xf32>
    %1241 = vector.broadcast %1240 : vector<1x8xf32> to vector<8x8xf32>
    %1242 = arith.addf %1238, %1241 : vector<8x8xf32>
    %c23_854 = arith.constant 23 : index
    %c0_855 = arith.constant 0 : index
    %c0_856 = arith.constant 0 : index
    %1243 = vector.load %arg22[%c23_854, %c0_855, %c0_856] : memref<24x32x8xf32, #tpu.memory_space<vmem>>, vector<1x32x8xf32>
    %1244 = vector.shape_cast %1243 : vector<1x32x8xf32> to vector<32x8xf32>
    %cst_857 = arith.constant dense<0.000000e+00> : vector<8x8xf32>
    %1245 = tpu.matmul %501, %1244, %cst_857 {dimension_numbers = #tpu.dot_dimension_numbers<[1], [0], [0], [1], [0, 0, 1, 1], [], []>} : vector<8x32xf32>, vector<32x8xf32>, vector<8x8xf32> -> vector<8x8xf32>
    %c23_858 = arith.constant 23 : index
    %c0_859 = arith.constant 0 : index
    %c0_860 = arith.constant 0 : index
    %1246 = vector.load %arg23[%c23_858, %c0_859, %c0_860] : memref<24x1x8xf32, #tpu.memory_space<vmem>>, vector<1x1x8xf32>
    %1247 = vector.shape_cast %1246 : vector<1x1x8xf32> to vector<1x8xf32>
    %1248 = vector.broadcast %1247 : vector<1x8xf32> to vector<8x8xf32>
    %1249 = arith.addf %1245, %1248 : vector<8x8xf32>
    %cst_861 = arith.constant dense<0.000000e+00> : vector<8x8xf32>
    %1250 = tpu.matmul %1235, %1242, %cst_861 {dimension_numbers = #tpu.dot_dimension_numbers<[1], [1], [0], [0], [0, 0, 1, 0], [], []>} : vector<8x8xf32>, vector<8x8xf32>, vector<8x8xf32> -> vector<8x8xf32>
    %cst_862 = arith.constant 0.353553385 : f32
    %1251 = vector.broadcast %cst_862 : f32 to vector<8x8xf32>
    %1252 = arith.mulf %1250, %1251 : vector<8x8xf32>
    %cst_863 = arith.constant dense<0xFF800000> : vector<8xf32>
    %1253 = vector.multi_reduction <maximumf>, %1252, %cst_863 [1] : vector<8x8xf32> to vector<8xf32>
    %1254 = vector.shape_cast %1253 : vector<8xf32> to vector<8x1xf32>
    %1255 = vector.broadcast %1254 : vector<8x1xf32> to vector<8x8xf32>
    %1256 = arith.subf %1252, %1255 : vector<8x8xf32>
    %1257 = math.exp %1256 : vector<8x8xf32>
    %cst_864 = arith.constant dense<0.000000e+00> : vector<8xf32>
    %1258 = vector.multi_reduction <add>, %1257, %cst_864 [1] : vector<8x8xf32> to vector<8xf32>
    %1259 = vector.shape_cast %1258 : vector<8xf32> to vector<8x1xf32>
    %1260 = tpu.reciprocal %1259 {approx = true} : vector<8x1xf32> -> vector<8x1xf32>
    %1261 = vector.broadcast %1260 : vector<8x1xf32> to vector<8x8xf32>
    %1262 = arith.mulf %1257, %1261 : vector<8x8xf32>
    %cst_865 = arith.constant dense<0.000000e+00> : vector<8x8xf32>
    %1263 = tpu.matmul %1262, %1249, %cst_865 {dimension_numbers = #tpu.dot_dimension_numbers<[1], [0], [0], [1], [0, 0, 1, 1], [], []>} : vector<8x8xf32>, vector<8x8xf32>, vector<8x8xf32> -> vector<8x8xf32>
    %c7_866 = arith.constant 7 : index
    %c0_867 = arith.constant 0 : index
    %c0_868 = arith.constant 0 : index
    %1264 = vector.load %arg24[%c7_866, %c0_867, %c0_868] : memref<8x8x32xf32, #tpu.memory_space<vmem>>, vector<1x8x32xf32>
    %1265 = vector.shape_cast %1264 : vector<1x8x32xf32> to vector<8x32xf32>
    %cst_869 = arith.constant dense<0.000000e+00> : vector<8x32xf32>
    %1266 = tpu.matmul %1263, %1265, %cst_869 {dimension_numbers = #tpu.dot_dimension_numbers<[1], [0], [0], [1], [0, 0, 1, 1], [], []>} : vector<8x8xf32>, vector<8x32xf32>, vector<8x32xf32> -> vector<8x32xf32>
    %1267 = arith.addf %1228, %1266 : vector<8x32xf32>
    %c1_870 = arith.constant 1 : index
    %c0_871 = arith.constant 0 : index
    %c0_872 = arith.constant 0 : index
    %1268 = vector.load %arg25[%c1_870, %c0_871, %c0_872] : memref<2x1x32xf32, #tpu.memory_space<vmem>>, vector<1x1x32xf32>
    %1269 = vector.shape_cast %1268 : vector<1x1x32xf32> to vector<1x32xf32>
    %1270 = vector.broadcast %1269 : vector<1x32xf32> to vector<8x32xf32>
    %1271 = arith.addf %1267, %1270 : vector<8x32xf32>
    %1272 = arith.addf %1112, %1271 : vector<8x32xf32>
    %c4_873 = arith.constant 4 : index
    %c0_874 = arith.constant 0 : index
    %c0_875 = arith.constant 0 : index
    %1273 = vector.load %arg30[%c4_873, %c0_874, %c0_875] : memref<6x1x32xf32, #tpu.memory_space<vmem>>, vector<1x1x32xf32>
    %1274 = vector.shape_cast %1273 : vector<1x1x32xf32> to vector<1x32xf32>
    %c4_876 = arith.constant 4 : index
    %c0_877 = arith.constant 0 : index
    %c0_878 = arith.constant 0 : index
    %1275 = vector.load %arg31[%c4_876, %c0_877, %c0_878] : memref<6x1x32xf32, #tpu.memory_space<vmem>>, vector<1x1x32xf32>
    %1276 = vector.shape_cast %1275 : vector<1x1x32xf32> to vector<1x32xf32>
    %cst_879 = arith.constant dense<0.000000e+00> : vector<8xf32>
    %1277 = vector.multi_reduction <add>, %1272, %cst_879 [1] : vector<8x32xf32> to vector<8xf32>
    %1278 = vector.shape_cast %1277 : vector<8xf32> to vector<8x1xf32>
    %cst_880 = arith.constant 3.200000e+01 : f32
    %1279 = vector.broadcast %cst_880 : f32 to vector<8x1xf32>
    %1280 = arith.divf %1278, %1279 : vector<8x1xf32>
    %1281 = vector.broadcast %1280 : vector<8x1xf32> to vector<8x32xf32>
    %1282 = arith.subf %1272, %1281 : vector<8x32xf32>
    %1283 = arith.mulf %1282, %1282 : vector<8x32xf32>
    %cst_881 = arith.constant dense<0.000000e+00> : vector<8xf32>
    %1284 = vector.multi_reduction <add>, %1283, %cst_881 [1] : vector<8x32xf32> to vector<8xf32>
    %1285 = vector.shape_cast %1284 : vector<8xf32> to vector<8x1xf32>
    %cst_882 = arith.constant 3.200000e+01 : f32
    %1286 = vector.broadcast %cst_882 : f32 to vector<8x1xf32>
    %1287 = arith.divf %1285, %1286 : vector<8x1xf32>
    %cst_883 = arith.constant 9.99999974E-6 : f32
    %1288 = vector.broadcast %cst_883 : f32 to vector<8x1xf32>
    %1289 = arith.addf %1287, %1288 : vector<8x1xf32>
    %1290 = math.rsqrt %1289 : vector<8x1xf32>
    %1291 = vector.broadcast %1290 : vector<8x1xf32> to vector<8x32xf32>
    %1292 = arith.mulf %1282, %1291 : vector<8x32xf32>
    %1293 = vector.broadcast %1274 : vector<1x32xf32> to vector<8x32xf32>
    %1294 = arith.mulf %1292, %1293 : vector<8x32xf32>
    %1295 = vector.broadcast %1276 : vector<1x32xf32> to vector<8x32xf32>
    %1296 = arith.addf %1294, %1295 : vector<8x32xf32>
    %c1_884 = arith.constant 1 : index
    %c0_885 = arith.constant 0 : index
    %c0_886 = arith.constant 0 : index
    %1297 = vector.load %arg26[%c1_884, %c0_885, %c0_886] : memref<2x32x64xf32, #tpu.memory_space<vmem>>, vector<1x32x64xf32>
    %1298 = vector.shape_cast %1297 : vector<1x32x64xf32> to vector<32x64xf32>
    %cst_887 = arith.constant dense<0.000000e+00> : vector<8x64xf32>
    %1299 = tpu.matmul %1296, %1298, %cst_887 {dimension_numbers = #tpu.dot_dimension_numbers<[1], [0], [0], [1], [0, 0, 1, 1], [], []>} : vector<8x32xf32>, vector<32x64xf32>, vector<8x64xf32> -> vector<8x64xf32>
    %c1_888 = arith.constant 1 : index
    %c0_889 = arith.constant 0 : index
    %c0_890 = arith.constant 0 : index
    %1300 = vector.load %arg27[%c1_888, %c0_889, %c0_890] : memref<2x1x64xf32, #tpu.memory_space<vmem>>, vector<1x1x64xf32>
    %1301 = vector.shape_cast %1300 : vector<1x1x64xf32> to vector<1x64xf32>
    %1302 = vector.broadcast %1301 : vector<1x64xf32> to vector<8x64xf32>
    %1303 = arith.addf %1299, %1302 : vector<8x64xf32>
    %cst_891 = arith.constant 0.000000e+00 : f32
    %1304 = vector.broadcast %cst_891 : f32 to vector<8x64xf32>
    %1305 = arith.maximumf %1303, %1304 : vector<8x64xf32>
    %c1_892 = arith.constant 1 : index
    %c0_893 = arith.constant 0 : index
    %c0_894 = arith.constant 0 : index
    %1306 = vector.load %arg28[%c1_892, %c0_893, %c0_894] : memref<2x64x32xf32, #tpu.memory_space<vmem>>, vector<1x64x32xf32>
    %1307 = vector.shape_cast %1306 : vector<1x64x32xf32> to vector<64x32xf32>
    %cst_895 = arith.constant dense<0.000000e+00> : vector<8x32xf32>
    %1308 = tpu.matmul %1305, %1307, %cst_895 {dimension_numbers = #tpu.dot_dimension_numbers<[1], [0], [0], [1], [0, 0, 1, 1], [], []>} : vector<8x64xf32>, vector<64x32xf32>, vector<8x32xf32> -> vector<8x32xf32>
    %c1_896 = arith.constant 1 : index
    %c0_897 = arith.constant 0 : index
    %c0_898 = arith.constant 0 : index
    %1309 = vector.load %arg29[%c1_896, %c0_897, %c0_898] : memref<2x1x32xf32, #tpu.memory_space<vmem>>, vector<1x1x32xf32>
    %1310 = vector.shape_cast %1309 : vector<1x1x32xf32> to vector<1x32xf32>
    %1311 = vector.broadcast %1310 : vector<1x32xf32> to vector<8x32xf32>
    %1312 = arith.addf %1308, %1311 : vector<8x32xf32>
    %1313 = arith.addf %1296, %1312 : vector<8x32xf32>
    %c5_899 = arith.constant 5 : index
    %c0_900 = arith.constant 0 : index
    %c0_901 = arith.constant 0 : index
    %1314 = vector.load %arg30[%c5_899, %c0_900, %c0_901] : memref<6x1x32xf32, #tpu.memory_space<vmem>>, vector<1x1x32xf32>
    %1315 = vector.shape_cast %1314 : vector<1x1x32xf32> to vector<1x32xf32>
    %c5_902 = arith.constant 5 : index
    %c0_903 = arith.constant 0 : index
    %c0_904 = arith.constant 0 : index
    %1316 = vector.load %arg31[%c5_902, %c0_903, %c0_904] : memref<6x1x32xf32, #tpu.memory_space<vmem>>, vector<1x1x32xf32>
    %1317 = vector.shape_cast %1316 : vector<1x1x32xf32> to vector<1x32xf32>
    %cst_905 = arith.constant dense<0.000000e+00> : vector<8xf32>
    %1318 = vector.multi_reduction <add>, %1313, %cst_905 [1] : vector<8x32xf32> to vector<8xf32>
    %1319 = vector.shape_cast %1318 : vector<8xf32> to vector<8x1xf32>
    %cst_906 = arith.constant 3.200000e+01 : f32
    %1320 = vector.broadcast %cst_906 : f32 to vector<8x1xf32>
    %1321 = arith.divf %1319, %1320 : vector<8x1xf32>
    %1322 = vector.broadcast %1321 : vector<8x1xf32> to vector<8x32xf32>
    %1323 = arith.subf %1313, %1322 : vector<8x32xf32>
    %1324 = arith.mulf %1323, %1323 : vector<8x32xf32>
    %cst_907 = arith.constant dense<0.000000e+00> : vector<8xf32>
    %1325 = vector.multi_reduction <add>, %1324, %cst_907 [1] : vector<8x32xf32> to vector<8xf32>
    %1326 = vector.shape_cast %1325 : vector<8xf32> to vector<8x1xf32>
    %cst_908 = arith.constant 3.200000e+01 : f32
    %1327 = vector.broadcast %cst_908 : f32 to vector<8x1xf32>
    %1328 = arith.divf %1326, %1327 : vector<8x1xf32>
    %cst_909 = arith.constant 9.99999974E-6 : f32
    %1329 = vector.broadcast %cst_909 : f32 to vector<8x1xf32>
    %1330 = arith.addf %1328, %1329 : vector<8x1xf32>
    %1331 = math.rsqrt %1330 : vector<8x1xf32>
    %1332 = vector.broadcast %1331 : vector<8x1xf32> to vector<8x32xf32>
    %1333 = arith.mulf %1323, %1332 : vector<8x32xf32>
    %1334 = vector.broadcast %1315 : vector<1x32xf32> to vector<8x32xf32>
    %1335 = arith.mulf %1333, %1334 : vector<8x32xf32>
    %1336 = vector.broadcast %1317 : vector<1x32xf32> to vector<8x32xf32>
    %1337 = arith.addf %1335, %1336 : vector<8x32xf32>
    %c0_910 = arith.constant 0 : index
    %c0_911 = arith.constant 0 : index
    %1338 = vector.load %arg32[%c0_910, %c0_911] : memref<1x32xf32, #tpu.memory_space<vmem>>, vector<1x32xf32>
    %c0_912 = arith.constant 0 : index
    %c0_913 = arith.constant 0 : index
    %1339 = vector.load %arg33[%c0_912, %c0_913] : memref<1x32xf32, #tpu.memory_space<vmem>>, vector<1x32xf32>
    %cst_914 = arith.constant dense<0.000000e+00> : vector<8xf32>
    %1340 = vector.multi_reduction <add>, %1337, %cst_914 [1] : vector<8x32xf32> to vector<8xf32>
    %1341 = vector.shape_cast %1340 : vector<8xf32> to vector<8x1xf32>
    %cst_915 = arith.constant 3.200000e+01 : f32
    %1342 = vector.broadcast %cst_915 : f32 to vector<8x1xf32>
    %1343 = arith.divf %1341, %1342 : vector<8x1xf32>
    %1344 = vector.broadcast %1343 : vector<8x1xf32> to vector<8x32xf32>
    %1345 = arith.subf %1337, %1344 : vector<8x32xf32>
    %1346 = arith.mulf %1345, %1345 : vector<8x32xf32>
    %cst_916 = arith.constant dense<0.000000e+00> : vector<8xf32>
    %1347 = vector.multi_reduction <add>, %1346, %cst_916 [1] : vector<8x32xf32> to vector<8xf32>
    %1348 = vector.shape_cast %1347 : vector<8xf32> to vector<8x1xf32>
    %cst_917 = arith.constant 3.200000e+01 : f32
    %1349 = vector.broadcast %cst_917 : f32 to vector<8x1xf32>
    %1350 = arith.divf %1348, %1349 : vector<8x1xf32>
    %cst_918 = arith.constant 9.99999974E-6 : f32
    %1351 = vector.broadcast %cst_918 : f32 to vector<8x1xf32>
    %1352 = arith.addf %1350, %1351 : vector<8x1xf32>
    %1353 = math.rsqrt %1352 : vector<8x1xf32>
    %1354 = vector.broadcast %1353 : vector<8x1xf32> to vector<8x32xf32>
    %1355 = arith.mulf %1345, %1354 : vector<8x32xf32>
    %1356 = vector.broadcast %1338 : vector<1x32xf32> to vector<8x32xf32>
    %1357 = arith.mulf %1355, %1356 : vector<8x32xf32>
    %1358 = vector.broadcast %1339 : vector<1x32xf32> to vector<8x32xf32>
    %1359 = arith.addf %1357, %1358 : vector<8x32xf32>
    %c0_919 = arith.constant 0 : index
    %c0_920 = arith.constant 0 : index
    %1360 = vector.load %arg34[%c0_919, %c0_920] : memref<32x128xf32, #tpu.memory_space<vmem>>, vector<32x128xf32>
    %cst_921 = arith.constant dense<0.000000e+00> : vector<8x128xf32>
    %1361 = tpu.matmul %1359, %1360, %cst_921 {dimension_numbers = #tpu.dot_dimension_numbers<[1], [0], [0], [1], [0, 0, 1, 1], [], []>} : vector<8x32xf32>, vector<32x128xf32>, vector<8x128xf32> -> vector<8x128xf32>
    %c0_922 = arith.constant 0 : index
    %c0_923 = arith.constant 0 : index
    %1362 = vector.load %arg35[%c0_922, %c0_923] : memref<1x128xf32, #tpu.memory_space<vmem>>, vector<1x128xf32>
    %1363 = vector.broadcast %1362 : vector<1x128xf32> to vector<8x128xf32>
    %1364 = arith.addf %1361, %1363 : vector<8x128xf32>
    %c0_924 = arith.constant 0 : index
    %c0_925 = arith.constant 0 : index
    %1365 = vector.load %arg36[%c0_924, %c0_925] : memref<8x128xf32, #tpu.memory_space<vmem>>, vector<8x128xf32>
    tpu.vector_store %arg36[%c0_924, %c0_925], %1364 {strides = array<i32>} : memref<8x128xf32, #tpu.memory_space<vmem>>, vector<8x128xf32>,
    return
  }
  func.func @transform_0(%arg0: i32) -> (i32, i32) {
    %c0_i32 = arith.constant 0 : i32
    %c0_i32_0 = arith.constant 0 : i32
    return %arg0, %c0_i32 : i32, i32
  }
  func.func @transform_1(%arg0: i32) -> (i32, i32) {
    %c0_i32 = arith.constant 0 : i32
    %c0_i32_0 = arith.constant 0 : i32
    return %arg0, %c0_i32 : i32, i32
  }
  func.func @transform_2(%arg0: i32) -> (i32, i32) {
    %c0_i32 = arith.constant 0 : i32
    %c0_i32_0 = arith.constant 0 : i32
    %c0_i32_1 = arith.constant 0 : i32
    return %c0_i32, %c0_i32_0 : i32, i32
  }
  func.func @transform_3(%arg0: i32) -> (i32, i32) {
    %c0_i32 = arith.constant 0 : i32
    %c0_i32_0 = arith.constant 0 : i32
    %c0_i32_1 = arith.constant 0 : i32
    return %c0_i32, %c0_i32_0 : i32, i32
  }
  func.func @transform_4(%arg0: i32) -> (i32, i32) {
    %c0_i32 = arith.constant 0 : i32
    %c0_i32_0 = arith.constant 0 : i32
    %c0_i32_1 = arith.constant 0 : i32
    return %c0_i32, %c0_i32_0 : i32, i32
  }
  func.func @transform_5(%arg0: i32) -> (i32, i32, i32) {
    %c0_i32 = arith.constant 0 : i32
    %c0_i32_0 = arith.constant 0 : i32
    %c0_i32_1 = arith.constant 0 : i32
    %c0_i32_2 = arith.constant 0 : i32
    return %c0_i32, %c0_i32_0, %c0_i32_1 : i32, i32, i32
  }
  func.func @transform_6(%arg0: i32) -> (i32, i32, i32) {
    %c0_i32 = arith.constant 0 : i32
    %c0_i32_0 = arith.constant 0 : i32
    %c0_i32_1 = arith.constant 0 : i32
    %c0_i32_2 = arith.constant 0 : i32
    return %c0_i32, %c0_i32_0, %c0_i32_1 : i32, i32, i32
  }
  func.func @transform_7(%arg0: i32) -> (i32, i32, i32) {
    %c0_i32 = arith.constant 0 : i32
    %c0_i32_0 = arith.constant 0 : i32
    %c0_i32_1 = arith.constant 0 : i32
    %c0_i32_2 = arith.constant 0 : i32
    return %c0_i32, %c0_i32_0, %c0_i32_1 : i32, i32, i32
  }
  func.func @transform_8(%arg0: i32) -> (i32, i32, i32) {
    %c0_i32 = arith.constant 0 : i32
    %c0_i32_0 = arith.constant 0 : i32
    %c0_i32_1 = arith.constant 0 : i32
    %c0_i32_2 = arith.constant 0 : i32
    return %c0_i32, %c0_i32_0, %c0_i32_1 : i32, i32, i32
  }
  func.func @transform_9(%arg0: i32) -> (i32, i32, i32) {
    %c0_i32 = arith.constant 0 : i32
    %c0_i32_0 = arith.constant 0 : i32
    %c0_i32_1 = arith.constant 0 : i32
    %c0_i32_2 = arith.constant 0 : i32
    return %c0_i32, %c0_i32_0, %c0_i32_1 : i32, i32, i32
  }
  func.func @transform_10(%arg0: i32) -> (i32, i32, i32) {
    %c0_i32 = arith.constant 0 : i32
    %c0_i32_0 = arith.constant 0 : i32
    %c0_i32_1 = arith.constant 0 : i32
    %c0_i32_2 = arith.constant 0 : i32
    return %c0_i32, %c0_i32_0, %c0_i32_1 : i32, i32, i32
  }
  func.func @transform_11(%arg0: i32) -> (i32, i32, i32) {
    %c0_i32 = arith.constant 0 : i32
    %c0_i32_0 = arith.constant 0 : i32
    %c0_i32_1 = arith.constant 0 : i32
    %c0_i32_2 = arith.constant 0 : i32
    return %c0_i32, %c0_i32_0, %c0_i32_1 : i32, i32, i32
  }
  func.func @transform_12(%arg0: i32) -> (i32, i32, i32) {
    %c0_i32 = arith.constant 0 : i32
    %c0_i32_0 = arith.constant 0 : i32
    %c0_i32_1 = arith.constant 0 : i32
    %c0_i32_2 = arith.constant 0 : i32
    return %c0_i32, %c0_i32_0, %c0_i32_1 : i32, i32, i32
  }
  func.func @transform_13(%arg0: i32) -> (i32, i32, i32) {
    %c0_i32 = arith.constant 0 : i32
    %c0_i32_0 = arith.constant 0 : i32
    %c0_i32_1 = arith.constant 0 : i32
    %c0_i32_2 = arith.constant 0 : i32
    return %c0_i32, %c0_i32_0, %c0_i32_1 : i32, i32, i32
  }
  func.func @transform_14(%arg0: i32) -> (i32, i32, i32) {
    %c0_i32 = arith.constant 0 : i32
    %c0_i32_0 = arith.constant 0 : i32
    %c0_i32_1 = arith.constant 0 : i32
    %c0_i32_2 = arith.constant 0 : i32
    return %c0_i32, %c0_i32_0, %c0_i32_1 : i32, i32, i32
  }
  func.func @transform_15(%arg0: i32) -> (i32, i32) {
    %c0_i32 = arith.constant 0 : i32
    %c0_i32_0 = arith.constant 0 : i32
    %c0_i32_1 = arith.constant 0 : i32
    return %c0_i32, %c0_i32_0 : i32, i32
  }
  func.func @transform_16(%arg0: i32) -> (i32, i32) {
    %c0_i32 = arith.constant 0 : i32
    %c0_i32_0 = arith.constant 0 : i32
    %c0_i32_1 = arith.constant 0 : i32
    return %c0_i32, %c0_i32_0 : i32, i32
  }
  func.func @transform_17(%arg0: i32) -> (i32, i32, i32) {
    %c0_i32 = arith.constant 0 : i32
    %c0_i32_0 = arith.constant 0 : i32
    %c0_i32_1 = arith.constant 0 : i32
    %c0_i32_2 = arith.constant 0 : i32
    return %c0_i32, %c0_i32_0, %c0_i32_1 : i32, i32, i32
  }
  func.func @transform_18(%arg0: i32) -> (i32, i32, i32) {
    %c0_i32 = arith.constant 0 : i32
    %c0_i32_0 = arith.constant 0 : i32
    %c0_i32_1 = arith.constant 0 : i32
    %c0_i32_2 = arith.constant 0 : i32
    return %c0_i32, %c0_i32_0, %c0_i32_1 : i32, i32, i32
  }
  func.func @transform_19(%arg0: i32) -> (i32, i32, i32) {
    %c0_i32 = arith.constant 0 : i32
    %c0_i32_0 = arith.constant 0 : i32
    %c0_i32_1 = arith.constant 0 : i32
    %c0_i32_2 = arith.constant 0 : i32
    return %c0_i32, %c0_i32_0, %c0_i32_1 : i32, i32, i32
  }
  func.func @transform_20(%arg0: i32) -> (i32, i32, i32) {
    %c0_i32 = arith.constant 0 : i32
    %c0_i32_0 = arith.constant 0 : i32
    %c0_i32_1 = arith.constant 0 : i32
    %c0_i32_2 = arith.constant 0 : i32
    return %c0_i32, %c0_i32_0, %c0_i32_1 : i32, i32, i32
  }
  func.func @transform_21(%arg0: i32) -> (i32, i32, i32) {
    %c0_i32 = arith.constant 0 : i32
    %c0_i32_0 = arith.constant 0 : i32
    %c0_i32_1 = arith.constant 0 : i32
    %c0_i32_2 = arith.constant 0 : i32
    return %c0_i32, %c0_i32_0, %c0_i32_1 : i32, i32, i32
  }
  func.func @transform_22(%arg0: i32) -> (i32, i32, i32) {
    %c0_i32 = arith.constant 0 : i32
    %c0_i32_0 = arith.constant 0 : i32
    %c0_i32_1 = arith.constant 0 : i32
    %c0_i32_2 = arith.constant 0 : i32
    return %c0_i32, %c0_i32_0, %c0_i32_1 : i32, i32, i32
  }
  func.func @transform_23(%arg0: i32) -> (i32, i32, i32) {
    %c0_i32 = arith.constant 0 : i32
    %c0_i32_0 = arith.constant 0 : i32
    %c0_i32_1 = arith.constant 0 : i32
    %c0_i32_2 = arith.constant 0 : i32
    return %c0_i32, %c0_i32_0, %c0_i32_1 : i32, i32, i32
  }
  func.func @transform_24(%arg0: i32) -> (i32, i32, i32) {
    %c0_i32 = arith.constant 0 : i32
    %c0_i32_0 = arith.constant 0 : i32
    %c0_i32_1 = arith.constant 0 : i32
    %c0_i32_2 = arith.constant 0 : i32
    return %c0_i32, %c0_i32_0, %c0_i32_1 : i32, i32, i32
  }
  func.func @transform_25(%arg0: i32) -> (i32, i32, i32) {
    %c0_i32 = arith.constant 0 : i32
    %c0_i32_0 = arith.constant 0 : i32
    %c0_i32_1 = arith.constant 0 : i32
    %c0_i32_2 = arith.constant 0 : i32
    return %c0_i32, %c0_i32_0, %c0_i32_1 : i32, i32, i32
  }
  func.func @transform_26(%arg0: i32) -> (i32, i32, i32) {
    %c0_i32 = arith.constant 0 : i32
    %c0_i32_0 = arith.constant 0 : i32
    %c0_i32_1 = arith.constant 0 : i32
    %c0_i32_2 = arith.constant 0 : i32
    return %c0_i32, %c0_i32_0, %c0_i32_1 : i32, i32, i32
  }
  func.func @transform_27(%arg0: i32) -> (i32, i32, i32) {
    %c0_i32 = arith.constant 0 : i32
    %c0_i32_0 = arith.constant 0 : i32
    %c0_i32_1 = arith.constant 0 : i32
    %c0_i32_2 = arith.constant 0 : i32
    return %c0_i32, %c0_i32_0, %c0_i32_1 : i32, i32, i32
  }
  func.func @transform_28(%arg0: i32) -> (i32, i32, i32) {
    %c0_i32 = arith.constant 0 : i32
    %c0_i32_0 = arith.constant 0 : i32
    %c0_i32_1 = arith.constant 0 : i32
    %c0_i32_2 = arith.constant 0 : i32
    return %c0_i32, %c0_i32_0, %c0_i32_1 : i32, i32, i32
  }
  func.func @transform_29(%arg0: i32) -> (i32, i32, i32) {
    %c0_i32 = arith.constant 0 : i32
    %c0_i32_0 = arith.constant 0 : i32
    %c0_i32_1 = arith.constant 0 : i32
    %c0_i32_2 = arith.constant 0 : i32
    return %c0_i32, %c0_i32_0, %c0_i32_1 : i32, i32, i32
  }
  func.func @transform_30(%arg0: i32) -> (i32, i32, i32) {
    %c0_i32 = arith.constant 0 : i32
    %c0_i32_0 = arith.constant 0 : i32
    %c0_i32_1 = arith.constant 0 : i32
    %c0_i32_2 = arith.constant 0 : i32
    return %c0_i32, %c0_i32_0, %c0_i32_1 : i32, i32, i32
  }
  func.func @transform_31(%arg0: i32) -> (i32, i32) {
    %c0_i32 = arith.constant 0 : i32
    %c0_i32_0 = arith.constant 0 : i32
    %c0_i32_1 = arith.constant 0 : i32
    return %c0_i32, %c0_i32_0 : i32, i32
  }
  func.func @transform_32(%arg0: i32) -> (i32, i32) {
    %c0_i32 = arith.constant 0 : i32
    %c0_i32_0 = arith.constant 0 : i32
    %c0_i32_1 = arith.constant 0 : i32
    return %c0_i32, %c0_i32_0 : i32, i32
  }
  func.func @transform_33(%arg0: i32) -> (i32, i32) {
    %c0_i32 = arith.constant 0 : i32
    %c0_i32_0 = arith.constant 0 : i32
    %c0_i32_1 = arith.constant 0 : i32
    return %c0_i32, %c0_i32_0 : i32, i32
  }
  func.func @transform_34(%arg0: i32) -> (i32, i32) {
    %c0_i32 = arith.constant 0 : i32
    %c0_i32_0 = arith.constant 0 : i32
    %c0_i32_1 = arith.constant 0 : i32
    return %c0_i32, %c0_i32_0 : i32, i32
  }
  func.func @transform_35(%arg0: i32) -> (i32, i32) {
    %c0_i32 = arith.constant 0 : i32
    %c0_i32_0 = arith.constant 0 : i32
    return %arg0, %c0_i32 : i32, i32
  }
}

</mosaic_0001>

<bundles_post_ra>
// kernel: transformer_forward.1
= control target key start
LH: loop header
LB: loop body
LE: loop exit
PB: predicated region body
PF: predicated region fallthrough
CT: control target
= control target key end

     0   :  { %s17526_s6 = smov 1   ;;  %s17527_s10 = smov 2   ;;  %s19203_s0 = inlined_call_operand.smem [shape: u32[36], index: -1, kind: input, shape index: {}] }
   0x1   :  { %s17574_s5 = sld [smem:[%s19203_s0]]   ;;  %s17528_s14 = smov 3  }
   0x2   :  { %s17579_s9 = sld [smem:[%s19203_s0 + %s17526_s6]]   ;;  %s17529_s18 = smov 4  }
   0x3   :  { %s17584_s13 = sld [smem:[%s19203_s0 + %s17527_s10]]   ;;  %s17530_s22 = smov 5  }
   0x4   :  { %s17589_s17 = sld [smem:[%s19203_s0 + %s17528_s14]]   ;;  %s17531_s26 = smov 6  }
   0x5   :  { %s17594_s21 = sld [smem:[%s19203_s0 + %s17529_s18]]   ;;  %s17532_s30 = smov 7  }
   0x6   :  { %s17599_s25 = sld [smem:[%s19203_s0 + %s17530_s22]]   ;;  %s17533_s4 = smov 8  }
   0x7   :  { %19224 = sst [smem:[#allocation2_spill]] %s17574_s5  ;;  %s17534_s10 = smov 9  }
   0x8   :  { %s17604_s29 = sld [smem:[%s19203_s0 + %s17531_s26]]   ;;  %s17535_s15 = smov 10  }
   0x9   :  { %s17609_s3 = sld [smem:[%s19203_s0 + %s17532_s30]]   ;;  %s17536_s20 = smov 11  }
   0xa   :  { %s17614_s8 = sld [smem:[%s19203_s0 + %s17533_s4]]   ;;  %s17537_s26 = smov 12  }
   0xb   :  { %19225 = sst [smem:[#allocation3_spill]] %s17594_s21  ;;  %s17538_s1 = smov 13  }
   0xc   :  { %s17619_s14 = sld [smem:[%s19203_s0 + %s17534_s10]]   ;;  %s17539_s7 = smov 14  }
   0xd   :  { %s17624_s19 = sld [smem:[%s19203_s0 + %s17535_s15]]   ;;  %s17540_s15 = smov 15  }
   0xe   :  { %s17629_s24 = sld [smem:[%s19203_s0 + %s17536_s20]]   ;;  %s17541_s22 = smov 16  }
   0xf   :  { %19226 = sst [smem:[#allocation4_spill]] %s17609_s3  ;;  %s17542_s28 = smov 17  }
  0x10   :  { %s17634_s30 = sld [smem:[%s19203_s0 + %s17537_s26]]  }
  0x11   :  { %s17639_s6 = sld [smem:[%s19203_s0 + %s17538_s1]]  }
  0x12   :  { %s17644_s12 = sld [smem:[%s19203_s0 + %s17539_s7]]   ;;  %s17543_s7 = smov 18  }
  0x13   :  { %s17649_s20 = sld [smem:[%s19203_s0 + %s17540_s15]]   ;;  %s17544_s15 = smov 19  }
  0x14   :  { %s17654_s27 = sld [smem:[%s19203_s0 + %s17541_s22]]   ;;  %s17545_s22 = smov 20  }
  0x15   :  { %s17659_s4 = sld [smem:[%s19203_s0 + %s17542_s28]]   ;;  %s17546_s28 = smov 21  }
  0x16   :  { %s17664_s21 = sld [smem:[%s19203_s0 + %s17543_s7]]   ;;  %s17547_s7 = smov 22  }
  0x17   :  { %19227 = sst [smem:[#allocation5_spill]] %s17639_s6 }
  0x19   :  { %19228 = sst [smem:[#allocation6_spill]] %s17649_s20 }
  0x1a   :  { %19229 = sst [smem:[#allocation7_spill]] %s17654_s27 }
  0x1b   :  { %19230 = sst [smem:[#allocation8_spill]] %s17659_s4 }
  0x1c   :  { %19231 = sst [smem:[#allocation9_spill]] %s17664_s21 }
  0x1d   :  { %s17669_s20 = sld [smem:[%s19203_s0 + %s17544_s15]]   ;;  %s17548_s15 = smov 23  }
  0x1e   :  { %s17674_s27 = sld [smem:[%s19203_s0 + %s17545_s22]]   ;;  %s17549_s22 = smov 24  }
  0x1f   :  { %s17679_s4 = sld [smem:[%s19203_s0 + %s17546_s28]]   ;;  %s17550_s28 = smov 25  }
  0x20   :  { %s17684_s21 = sld [smem:[%s19203_s0 + %s17547_s7]]   ;;  %s17551_s7 = smov 26  }
  0x23   :  { %19232 = sst [smem:[#allocation10_spill]] %s17669_s20 }
  0x24   :  { %19233 = sst [smem:[#allocation11_spill]] %s17674_s27 }
  0x25   :  { %19234 = sst [smem:[#allocation12_spill]] %s17679_s4 }
  0x26   :  { %19235 = sst [smem:[#allocation13_spill]] %s17684_s21 }
  0x27   :  { %s17689_s20 = sld [smem:[%s19203_s0 + %s17548_s15]]   ;;  %s17552_s15 = smov 27  }
  0x28   :  { %s17694_s27 = sld [smem:[%s19203_s0 + %s17549_s22]]   ;;  %s17553_s22 = smov 28  }
  0x29   :  { %s17699_s4 = sld [smem:[%s19203_s0 + %s17550_s28]]   ;;  %s17554_s28 = smov 29  }
  0x2a   :  { %s17704_s21 = sld [smem:[%s19203_s0 + %s17551_s7]]   ;;  %s17555_s7 = smov 30  }
  0x2d   :  { %19236 = sst [smem:[#allocation14_spill]] %s17689_s20 }
  0x2e   :  { %19237 = sst [smem:[#allocation15_spill]] %s17694_s27 }
  0x2f   :  { %19238 = sst [smem:[#allocation16_spill]] %s17699_s4 }
  0x30   :  { %19239 = sst [smem:[#allocation17_spill]] %s17704_s21 }
  0x31   :  { %s17709_s20 = sld [smem:[%s19203_s0 + %s17552_s15]]   ;;  %s17556_s15 = smov 31  }
  0x32   :  { %s17714_s27 = sld [smem:[%s19203_s0 + %s17553_s22]]   ;;  %s17557_s22 = smov 32  }
  0x33   :  { %s17719_s4 = sld [smem:[%s19203_s0 + %s17554_s28]]   ;;  %s17558_s28 = smov 33  }
  0x34   :  { %s17724_s21 = sld [smem:[%s19203_s0 + %s17555_s7]]   ;;  %s17559_s7 = smov 34  }
  0x37   :  { %19240 = sst [smem:[#allocation18_spill]] %s17709_s20 }
  0x38   :  { %19241 = sst [smem:[#allocation19_spill]] %s17714_s27 }
  0x39   :  { %19242 = sst [smem:[#allocation20_spill]] %s17719_s4 }
  0x3a   :  { %19243 = sst [smem:[#allocation21_spill]] %s17724_s21 }
  0x3b   :  { %s17729_s20 = sld [smem:[%s19203_s0 + %s17556_s15]]   ;;  %s17560_s15 = smov 35  }
  0x3c   :  { %s17734_s27 = sld [smem:[%s19203_s0 + %s17557_s22]]   ;;  %s17751_s22 = smov 0  }
  0x3d   :  { %s17739_s4 = sld [smem:[%s19203_s0 + %s17558_s28]]  }
  0x3e   :  { %s17744_s21 = sld [smem:[%s19203_s0 + %s17559_s7]]  }
  0x41   :  { %19244 = sst [smem:[#allocation22_spill]] %s17729_s20 }
  0x42   :  { %s17749_s20 = sld [smem:[%s19203_s0 + %s17560_s15]]  }
  0x43 LB: > { %s19245_s6 = sld [smem:[#allocation5_spill]]  ;;  %s19246_s3 = sld [smem:[#allocation4_spill]]  ;;  %s17524_s22 = sphi %s17751_s22, %s81_s22  }
  0x44   : > { %s14249_s23 = sadd.s32 4294967295, %s17524_s22   ;;  %p14253_p0 = scmp.ge.s32.totalorder %s17524_s22, 1 }
  0x45   : > { %p981_p1 = scmp.lt.s32.totalorder %s17524_s22, 3 }
  0x47   : > { %p982_p2 = pnand %p14253_p0, %p981_p1 }
  0x48   : > { %p1071_p3 = scmp.lt.s32.totalorder (!%p982_p2), %s14249_s23, 1  ;;  %s19247_s5 = sld [smem:[#allocation2_spill]] (!%p982_p2)  ;;  %v1096_v0 = vld [vmem:[%s17589_s17] sm:$0xff] (!%p982_p2)  ;;  %v1097_v1 = vld [vmem:[%s17589_s17 + $0x8] sm:$0xff] (!%p982_p2)  ;;  %v17561_v2 = vmov (!%p982_p2), 0   ;;  %v17562_v3 = vmov (!%p982_p2), 0.0|0.0   ;;  %v1083_v13 = vlaneseq (!%p982_p2) }
  0x49   : > { %985 = sbr.rel (%p982_p2) target bundleno = 28465 (0x6f31), region = 160  ;;  %17396 = vset.pattern.permute.xlu0 (!%p982_p2), %v17561_v2  ;;  %16832 = vmatprep.subr.bf16.mxu0 (!%p982_p2), %v17562_v3  ;;  %v16833_v4 = vpack.c.bf16 (!%p982_p2), %v1097_v1, %v1096_v0  ;;  %vm17563_vm0 = vmmov (!%p982_p2), 0   ;;  %v17564_v6 = vmov (!%p982_p2), 0.0   ;;  %v1173_v7 = vld [vmem:[%s17599_s25] sm:$0xff] (!%p982_p2)  ;;  %v1174_v8 = vld [vmem:[%s17599_s25 + $0x8] sm:$0xff] (!%p982_p2)  ;;  %v1175_v10 = vld [vmem:[%s17599_s25 + $0x10] sm:$0xff] (!%p982_p2) }
  0x4a   : > { %16835 = vmatprep.subr.bf16.mxu1 (!%p982_p2), %v17562_v3  ;;  %15539 = vmatprep.mubr.msk.f32.mxu0 (!%p982_p2), %vm17563_vm0, %v17564_v6  ;;  %v16836_v9 = vpack.c.bf16 (!%p982_p2), %v1174_v8, %v1173_v7  ;;  %v1176_v11 = vld [vmem:[%s17599_s25 + $0x18] sm:$0xff] (!%p982_p2)  ;;  %v17779_v14 = vand.u32 (!%p982_p2), 127, %v1083_v13  ;;  %v14261_v15 = vld [vmem:[%s17599_s25 + $0x80] sm:$0xff] (!%p982_p2)  ;;  %v14262_v16 = vld [vmem:[%s17599_s25 + $0x88] sm:$0xff] (!%p982_p2)  ;;  %vm1099_vm1 = vcmask (!%p982_p2), 130048   ;;  %vm1184_vm3 = vcmask (!%p982_p2), 261120  }
  0x4b   : > { %16834 = vmatpush3.bf16.msra.mxu0 (!%p982_p2), %v16833_v4  ;;  %15550 = vmatprep.mubr.msk.f32.mxu1 (!%p982_p2), %vm17563_vm0, %v17564_v6  ;;  %v16839_v12 = vpack.c.bf16 (!%p982_p2), %v1176_v11, %v1175_v10  ;;  %v16842_v18 = vpack.c.bf16 (!%p982_p2), %v14262_v16, %v14261_v15  ;;  %v14263_v20 = vld [vmem:[%s17599_s25 + $0x90] sm:$0xff] (!%p982_p2)  ;;  %v14264_v21 = vld [vmem:[%s17599_s25 + $0x98] sm:$0xff] (!%p982_p2)  ;;  %v14268_v23 = vld [vmem:[%s17599_s25 + $0x100] sm:$0xff] (!%p982_p2)  ;;  %vm1424_vm4 = vcmask (!%p982_p2), 64512   ;;  %v1084_v61 = vshrl.u32 (!%p982_p2), %v1083_v13, 7  ;;  %s19248_s1 = sld [smem:[#allocation3_spill]] (!%p982_p2) }
  0x4c   : > { %16841 = vmatprep.subr.bf16.mxu0 (!%p982_p2), %v17562_v3  ;;  %16837 = vmatpush3.bf16.msra.mxu1 (!%p982_p2), %v16836_v9  ;;  %v16845_v22 = vpack.c.bf16 (!%p982_p2), %v14264_v21, %v14263_v20  ;;  %v14269_v24 = vld [vmem:[%s17599_s25 + $0x108] sm:$0xff] (!%p982_p2)  ;;  %v1098_v25 = vld [vmem:[%s17584_s13] sm:$0xff] (!%p982_p2)  ;;  %v14270_v30 = vld [vmem:[%s17599_s25 + $0x110] sm:$0xff] (!%p982_p2)  ;;  %v17565_v62 = vmov (!%p982_p2), -1e+30   ;;  %vm3260_vm6 = vcmask (!%p982_p2), 523264  }
  0x4d   : > { %16838 = vmatprep.subr.bf16.mxu1 (!%p982_p2), %v17562_v3  ;;  %v16848_v27 = vpack.c.bf16 (!%p982_p2), %v14269_v24, %v14268_v23  ;;  %v14271_v31 = vld [vmem:[%s17599_s25 + $0x118] sm:$0xff] (!%p982_p2)  ;;  %v14278_v33 = vld [vmem:[%s17599_s25 + $0x20] sm:$0xff] (!%p982_p2)  ;;  %v14279_v34 = vld [vmem:[%s17599_s25 + $0x28] sm:$0xff] (!%p982_p2)  ;;  %vm1087_vm5 = vcmp.le.s32.totalorder (!%p982_p2), %v17779_v14, %v1084_v61  ;;  %s19249_s2 = sld [smem:[#allocation8_spill]] (!%p982_p2)  ;;  %s19250_s7 = sld [smem:[#allocation9_spill]] (!%p982_p2) }
  0x4e   : > { %v16851_v32 = vpack.c.bf16 (!%p982_p2), %v14271_v31, %v14270_v30  ;;  %v16854_v35 = vpack.c.bf16 (!%p982_p2), %v14279_v34, %v14278_v33  ;;  %v14280_v36 = vld [vmem:[%s17599_s25 + $0x30] sm:$0xff] (!%p982_p2)  ;;  %v14281_v37 = vld [vmem:[%s17599_s25 + $0x38] sm:$0xff] (!%p982_p2)  ;;  %v14292_v39 = vld [vmem:[%s17599_s25 + $0x120] sm:$0xff] (!%p982_p2)  ;;  %v17844_v63 = vsel (!%p982_p2), %vm1087_vm5, 0.0, %v17565_v62  ;;  %s19251_s10 = sld [smem:[#allocation10_spill]] (!%p982_p2)  ;;  %s19252_s11 = sld [smem:[#allocation11_spill]] (!%p982_p2) }
  0x4f   : > { %v16857_v38 = vpack.c.bf16 (!%p982_p2), %v14281_v37, %v14280_v36  ;;  %v14293_v40 = vld [vmem:[%s17599_s25 + $0x128] sm:$0xff] (!%p982_p2)  ;;  %v14294_v42 = vld [vmem:[%s17599_s25 + $0x130] sm:$0xff] (!%p982_p2)  ;;  %v14295_v43 = vld [vmem:[%s17599_s25 + $0x138] sm:$0xff] (!%p982_p2)  ;;  %s19253_s15 = sld [smem:[#allocation12_spill]] (!%p982_p2)  ;;  %s19254_s16 = sld [smem:[#allocation6_spill]] (!%p982_p2) }
  0x50   : > { %s19267_s23 = smov (!%p1071_p3, %s14249_s23), 1  ;;  %16840 = vmatpush3.bf16.msra.mxu1 %v16839_v12  ;;  %v16866_v41 = vpack.c.bf16 %v14293_v40, %v14292_v39  ;;  %v16869_v44 = vpack.c.bf16 %v14295_v43, %v14294_v42  ;;  %v14266_v45 = vld [vmem:[%s17604_s29 + $0x4] ss:$0 sm:$0xff]  ;;  %v14259_v48 = vld [vmem:[%s17604_s29] ss:$0 sm:$0xff]  ;;  %v14286_v15 = vld [vmem:[%s17599_s25 + $0xa8] sm:$0xff] }
  0x51   : > { %s17763_s0 = sshll.u32 %s19267_s23, 3  ;;  %16847 = vmatprep.subr.bf16.mxu1 %v17562_v3  ;;  %v14273_v53 = vld [vmem:[%s17604_s29 + $0x8] ss:$0 sm:$0xff]  ;;  %v14285_v13 = vld [vmem:[%s17599_s25 + $0xa0] sm:$0xff]  ;;  %v14288_v20 = vld [vmem:[%s17599_s25 + $0xb8] sm:$0xff]  ;;  %s19255_s18 = sld [smem:[#allocation7_spill]] }
  0x52   : > { %s1074_s26 = scalar_lea.vmem %s19247_s5, %s17763_s0  ;;  %v14290_v24 = vld [vmem:[%s17604_s29 + $0x5] ss:$0 sm:$0xff]  ;;  %v14297_v30 = vld [vmem:[%s17604_s29 + $0x9] ss:$0 sm:$0xff]  ;;  %s1078_s28 = scalar_lea.vmem %s17579_s9, %s17763_s0 }
  0x53   : > { %v1089_v5 = vld [vmem:[%s1074_s26] sm:$0xff]  ;;  %v14302_v43 = vld [vmem:[%s19246_s3 + $0x8] sm:$0xff]  ;;  %s19256_s23 = sld [smem:[#allocation20_spill]]  ;;  %s19257_s26 = sld [smem:[#allocation21_spill]] }
  0x54   : > { %1091 = vperm.xlu0 %17396, %v1089_v5   ;;  %v14319_v62 = vld [vmem:[%s17599_s25 + $0x140] sm:$0xff]  ;;  %s19263_s5 = sld [smem:[#allocation17_spill]] }
  0xd3   : > { %v1092_v17 = vpop.permute.xlu0 %1091 }
  0xd4   : > { %vm1093_vm2 = vcmp.eq.s32.totalorder %v17779_v14, %v1092_v17  ;;  %v16860_v17 = vpack.c.bf16 %v14286_v15, %v14285_v13 }
  0xd5   : > { %v14257_v19 = vsel %vm1093_vm2, 1.0, %v17564_v6 }
  0xd6   : > { %15540 = vmatmul.mubr.msk.f32.vlgmr.msra.gmra.mrb[0].mxu0 %vm1099_vm1, %v14257_v19  ;;  %v14287_v19 = vld [vmem:[%s17599_s25 + $0xb0] sm:$0xff] }
  0xd7   : > { %16843 = vmatpush3.bf16.msra.mxu0 %v16842_v18  ;;  %15561 = vmatprep.mubr.msk.f32.mxu0 %vm17563_vm0, %v17564_v6  ;;  %v16863_v21 = vpack.c.bf16 %v14288_v20, %v14287_v19 }
  0xd8   : > { %16844 = vmatprep.subr.bf16.mxu0 %v17562_v3 }
  0xdb   : > { %16846 = vmatpush3.bf16.msra.mxu0 %v16845_v22 }
  0xdc   : > { %15575 = vmatprep.subr.mxu0 %v17564_v6 }
 0x1a9   : > { %v1169_v26 = vpop.f32.mrb[0].mxu0 }
 0x1aa   : > { %v17795_v28 = vadd.f32 %v1169_v26, %v1098_v25  ;;  %v15541_v29 = vpop.f32.mrb[1].mxu0  ;;  %v14283_v26 = vld [vmem:[%s17604_s29 + $0x1] ss:$0 sm:$0xff] }
 0x1ac   : > { %15551 = vmatmul.mubr.msk.f32.vlgmr.msra.gmra.mrb[0].mxu1 %vm1184_vm3, %v17795_v28  ;;  %15562 = vmatmul.mubr.msk.f32.vlgmr.msra.gmra.mrb[2].mxu0 %vm1184_vm3, %v17795_v28 }
 0x1ad   : > { %16849 = vmatpush3.bf16.msra.mxu1 %v16848_v27  ;;  %15572 = vmatprep.mubr.msk.f32.mxu1 %vm17563_vm0, %v17564_v6 }
 0x1ae   : > { %16850 = vmatprep.subr.bf16.mxu1 %v17562_v3  ;;  %15577 = vmatprep.mubr.msk.f32.mxu0 %vm17563_vm0, %v17564_v6 }
 0x1b1   : > { %16852 = vmatpush3.bf16.msra.mxu1 %v16851_v32 }
 0x1b2   : > { %16853 = vmatprep.subr.bf16.mxu1 %v17562_v3 }
 0x1b4   : > { %15573 = vmatmul.mubr.msk.f32.vlgmr.msra.gmra.mrb[2].mxu1 %vm1184_vm3, %v17795_v28 }
 0x1b5   : > { %16855 = vmatpush3.bf16.msra.mxu1 %v16854_v35  ;;  %15593 = vmatprep.mubr.msk.f32.mxu1 %vm17563_vm0, %v17564_v6 }
 0x1b6   : > { %16856 = vmatprep.subr.bf16.mxu1 %v17562_v3 }
 0x1b9   : > { %16858 = vmatpush3.bf16.msra.mxu1 %v16857_v38 }
 0x1ba   : > { %16865 = vmatprep.subr.bf16.mxu1 %v17562_v3 }
 0x1bc   : > { %15594 = vmatmul.mubr.msk.f32.vlgmr.msra.gmra.mrb[4].mxu1 %vm1184_vm3, %v17795_v28 }
 0x1bd   : > { %16867 = vmatpush3.bf16.msra.mxu1 %v16866_v41  ;;  %15615 = vmatprep.mubr.msk.f32.mxu1 %vm17563_vm0, %v17564_v6 }
 0x1be   : > { %16868 = vmatprep.subr.bf16.mxu1 %v17562_v3 }
 0x1c1   : > { %16870 = vmatpush3.bf16.msra.mxu1 %v16869_v44 }
 0x1c2   : > { %15628 = vmatprep.subr.mxu1 %v17564_v6 }
 0x1c4   : > { %15616 = vmatmul.mubr.msk.f32.vlgmr.msra.gmra.mrb[6].mxu1 %vm1184_vm3, %v17795_v28 }
 0x1c5   : > { %15630 = vmatprep.mubr.msk.f32.mxu1 %vm17563_vm0, %v17564_v6  ;;  %15629 = vmatpush3.msra.mxu1 %v14302_v43  ;;  %v14333_v43 = vld [vmem:[%s17599_s25 + $0x70] sm:$0xff] }
 0x1c6   : > { %16871 = vmatprep.subr.bf16.mxu1 %v17562_v3 }
 0x27f   : > { %v1254_v46 = vpop.f32.mrb[0].mxu1  ;;  %v1337_v47 = vpop.f32.mrb[2].mxu0 }
 0x280   : > { %v1338_v49 = vadd.f32 %v14266_v45, %v1337_v47  ;;  %v15552_v50 = vpop.f32.mrb[1].mxu1  ;;  %v15563_v51 = vpop.f32.mrb[3].mxu0  ;;  %v1255_v52 = vadd.f32 %v14259_v48, %v1254_v46  ;;  %v1587_v47 = vld [vmem:[%s19246_s3] sm:$0xff] }
 0x281   : > { %v14312_v48 = vld [vmem:[%s17599_s25 + $0xc0] sm:$0xff]  ;;  %v14314_v51 = vld [vmem:[%s17599_s25 + $0xd0] sm:$0xff] }
 0x282   : > { %15576 = vmatpush3.xpose.msk.msra.mxu0 %vm1424_vm4, %v1338_v49  ;;  %v14313_v49 = vld [vmem:[%s17599_s25 + $0xc8] sm:$0xff] }
 0x283   : > { %15580 = vmatprep.subr.mxu0 %v17564_v6  ;;  %v16878_v50 = vpack.c.bf16 %v14313_v49, %v14312_v48  ;;  %v14347_v49 = vld [vmem:[%s17599_s25 + $0x170] sm:$0xff] }
 0x285   : > { %15578 = vmatmul.mubr.msk.f32.vlgmr.msra.gmra.mrb[4].mxu0 %vm1424_vm4, %v1255_v52  ;;  %v14315_v52 = vld [vmem:[%s17599_s25 + $0xd8] sm:$0xff] }
 0x286   : > { %15582 = vmatprep.mubr.msk.f32.mxu0 %vm17563_vm0, %v17564_v6 }
 0x287   : > { %v1420_v54 = vpop.f32.mrb[2].mxu1 }
 0x288   : > { %v1421_v55 = vadd.f32 %v14273_v53, %v1420_v54  ;;  %v15574_v56 = vpop.f32.mrb[3].mxu1  ;;  %v16881_v53 = vpack.c.bf16 %v14315_v52, %v14314_v51  ;;  %v14305_v54 = vld [vmem:[%s17599_s25 + $0x40] sm:$0xff] }
 0x289   : > { %v14338_v52 = vld [vmem:[%s17599_s25 + $0xe0] sm:$0xff] }
 0x28a   : > { %15581 = vmatpush3.msra.mxu0 %v1421_v55  ;;  %v14306_v55 = vld [vmem:[%s17599_s25 + $0x48] sm:$0xff] }
 0x28b   : > { %16859 = vmatprep.subr.bf16.mxu0 %v17562_v3  ;;  %v16872_v56 = vpack.c.bf16 %v14306_v55, %v14305_v54  ;;  %v14340_v55 = vld [vmem:[%s17599_s25 + $0xf0] sm:$0xff] }
 0x28f   : > { %v1667_v57 = vpop.f32.mrb[4].mxu1 }
 0x290   : > { %v15595_v58 = vpop.f32.mrb[5].mxu1  ;;  %v1668_v31 = vadd.f32 %v14283_v26, %v1667_v57  ;;  %v14307_v57 = vld [vmem:[%s17599_s25 + $0x50] sm:$0xff] }
 0x291   : > { %v14308_v58 = vld [vmem:[%s17599_s25 + $0x58] sm:$0xff] }
 0x292   : > { %v16875_v61 = vpack.c.bf16 %v14308_v58, %v14307_v57 }
 0x297   : > { %v1833_v59 = vpop.f32.mrb[6].mxu1 }
 0x298   : > { %v15617_v60 = vpop.f32.mrb[7].mxu1  ;;  %v1834_v32 = vadd.f32 %v14297_v30, %v1833_v59 }
 0x358   : > { %v1497_v0 = vpop.f32.mrb[4].mxu0 }
 0x359   : > { %v1501_v1 = vmul.f32 0.35355338, %v1497_v0  ;;  %v15579_v2 = vpop.f32.mrb[5].mxu0  ;;  %v14320_v0 = vld [vmem:[%s17599_s25 + $0x148] sm:$0xff] }
 0x35b   : > { %v1502_v4 = vadd.f32 %v1501_v1, %v17844_v63 }
 0x35d   : > { %v1503_v5 = vsel %vm1424_vm4, %v1502_v4, -inf }
 0x35e   : > { %1504 = vmax.xlane.f32.xlu0 %v1503_v5  ;;  %v14321_v5 = vld [vmem:[%s17599_s25 + $0x150] sm:$0xff] }
 0x3eb   : > { %v1505_v7 = vpop.xlane.xlu0 %1504 }
 0x3ec   : > { %v1506_v8 = vsub.f32 %v1502_v4, %v1505_v7  ;;  %v16884_v4 = vpack.c.bf16 %v14320_v0, %v14319_v62  ;;  %v14322_v7 = vld [vmem:[%s17599_s25 + $0x158] sm:$0xff] }
 0x3ee   : > { %v1507_v9 = vmul.f32 1.442695, %v1506_v8  ;;  %v14317_v8 = vld [vmem:[%s17604_s29 + $0x6] ss:$0 sm:$0xff] }
 0x3f0   : > { %17397 = vpow2.f32 %v1507_v9  ;;  %v16887_v9 = vpack.c.bf16 %v14322_v7, %v14321_v5  ;;  %v14343_v5 = vld [vmem:[%s17604_s29 + $0x7] ss:$0 sm:$0xff] }
 0x3fa   : > { %v17398_v10 = vpop.eup %17397 }
 0x3fb   : > { %v1509_v11 = vsel %vm1424_vm4, %v17398_v10, 0.0 }
 0x3fc   : > { %1510 = vadd.xlane.f32.xlu1 %v1509_v11 }
 0x489   : > { %v1511_v12 = vpop.xlane.xlu1 %1510 }
 0x48a   : > { %17399 = vrcp.f32 %v1511_v12 }
 0x494   : > { %v17400_v16 = vpop.eup %17399 }
 0x495   : > { %v1513_v18 = vmul.f32 %v17400_v16, %v17398_v10 }
 0x497   : > { %15583 = vmatmul.mubr.msk.f32.vlgmr.msra.gmra.mrb[6].mxu0 %vm1424_vm4, %v1513_v18 }
 0x498   : > { %16861 = vmatpush3.bf16.msra.mxu0 %v16860_v17  ;;  %15604 = vmatprep.mubr.msk.f32.mxu0 %vm17563_vm0, %v17564_v6  ;;  %v14310_v17 = vld [vmem:[%s17604_s29 + $0x2] ss:$0 sm:$0xff] }
 0x499   : > { %16862 = vmatprep.subr.bf16.mxu0 %v17562_v3 }
 0x49c   : > { %16864 = vmatpush3.bf16.msra.mxu0 %v16863_v21  ;;  %v14324_v21 = vld [vmem:[%s17604_s29 + $0xa] ss:$0 sm:$0xff] }
 0x49d   : > { %15618 = vmatprep.subr.mxu0 %v17564_v6 }
 0x49f   : > { %15605 = vmatmul.mubr.msk.f32.vlgmr.msra.gmra.mrb[8].mxu0 %vm1184_vm3, %v17795_v28 }
 0x4a0   : > { %15620 = vmatprep.mubr.msk.f32.mxu0 %vm17563_vm0, %v17564_v6 }
 0x56a   : > { %v1583_v22 = vpop.f32.mrb[6].mxu0 }
 0x56b   : > { %v15584_v23 = vpop.f32.mrb[7].mxu0 }
 0x572   : > { %v1750_v25 = vpop.f32.mrb[8].mxu0 }
 0x573   : > { %v1751_v27 = vadd.f32 %v14290_v24, %v1750_v25  ;;  %v15606_v29 = vpop.f32.mrb[9].mxu0 }
 0x575   : > { %15619 = vmatpush3.xpose.msk.msra.mxu0 %vm1424_vm4, %v1751_v27 }
 0x576   : > { %15623 = vmatprep.subr.mxu0 %v17564_v6 }
 0x578   : > { %15621 = vmatmul.mubr.msk.f32.vlgmr.msra.gmra.mrb[10].mxu0 %vm1424_vm4, %v1668_v31 }
 0x579   : > { %15624 = vmatpush3.msra.mxu0 %v1834_v32  ;;  %15625 = vmatprep.mubr.msk.f32.mxu0 %vm17563_vm0, %v17564_v6 }
 0x57a   : > { %15633 = vmatprep.subr.mxu0 %v17564_v6 }
 0x64b   : > { %v1909_v33 = vpop.f32.mrb[10].mxu0 }
 0x64c   : > { %v1913_v34 = vmul.f32 0.35355338, %v1909_v33  ;;  %v15622_v35 = vpop.f32.mrb[11].mxu0 }
 0x64e   : > { %v1914_v36 = vadd.f32 %v1913_v34, %v17844_v63 }
 0x650   : > { %v1915_v37 = vsel %vm1424_vm4, %v1914_v36, -inf }
 0x651   : > { %1916 = vmax.xlane.f32.xlu1 %v1915_v37 }
 0x6de   : > { %v1917_v38 = vpop.xlane.xlu1 %1916 }
 0x6df   : > { %v1918_v39 = vsub.f32 %v1914_v36, %v1917_v38  ;;  %v14329_v36 = vld [vmem:[%s19246_s3 + $0x10] sm:$0xff]  ;;  %v14331_v38 = vld [vmem:[%s17599_s25 + $0x60] sm:$0xff] }
 0x6e1   : > { %v1919_v40 = vmul.f32 1.442695, %v1918_v39  ;;  %v14332_v39 = vld [vmem:[%s17599_s25 + $0x68] sm:$0xff] }
 0x6e3   : > { %17401 = vpow2.f32 %v1919_v40 }
 0x6ed   : > { %v17402_v41 = vpop.eup %17401 }
 0x6ee   : > { %v1921_v42 = vsel %vm1424_vm4, %v17402_v41, 0.0 }
 0x6ef   : > { %1922 = vadd.xlane.f32.xlu1 %v1921_v42 }
 0x77c   : > { %v1923_v44 = vpop.xlane.xlu1 %1922 }
 0x77d   : > { %17403 = vrcp.f32 %v1923_v44  ;;  %v14334_v44 = vld [vmem:[%s17599_s25 + $0x78] sm:$0xff] }
 0x787   : > { %v17404_v45 = vpop.eup %17403 }
 0x788   : > { %v1925_v46 = vmul.f32 %v17404_v45, %v17402_v41  ;;  %v16890_v41 = vpack.c.bf16 %v14332_v39, %v14331_v38  ;;  %v16893_v45 = vpack.c.bf16 %v14334_v44, %v14333_v43  ;;  %v3160_v44 = vld [vmem:[%s17619_s14] sm:$0xff] }
 0x78a   : > { %15626 = vmatmul.mubr.msk.f32.vlgmr.msra.gmra.mrb[12].mxu0 %vm1424_vm4, %v1925_v46  ;;  %v14345_v46 = vld [vmem:[%s17599_s25 + $0x160] sm:$0xff] }
 0x78b   : > { %15634 = vmatpush3.msra.mxu0 %v1587_v47  ;;  %15635 = vmatprep.mubr.msk.f32.mxu0 %vm17563_vm0, %v17564_v6  ;;  %v14346_v47 = vld [vmem:[%s17599_s25 + $0x168] sm:$0xff] }
 0x78c   : > { %16877 = vmatprep.subr.bf16.mxu0 %v17562_v3  ;;  %v16902_v48 = vpack.c.bf16 %v14346_v47, %v14345_v46  ;;  %v3163_v47 = vld [vmem:[%s17619_s14 + $0x18] sm:$0xff] }
 0x78e   : > { %15636 = vmatmul.mubr.msk.f32.vlgmr.msra.gmra.mrb[14].mxu0 %vm1424_vm4, %v1583_v22 }
 0x78f   : > { %16879 = vmatpush3.bf16.msra.mxu0 %v16878_v50  ;;  %15657 = vmatprep.mubr.msk.f32.mxu0 %vm17563_vm0, %v17564_v6  ;;  %v14348_v50 = vld [vmem:[%s17599_s25 + $0x178] sm:$0xff] }
 0x790   : > { %16880 = vmatprep.subr.bf16.mxu0 %v17562_v3  ;;  %v16905_v51 = vpack.c.bf16 %v14348_v50, %v14347_v49  ;;  %v3245_v49 = vld [vmem:[%s17629_s24] sm:$0xff]  ;;  %v3246_v50 = vld [vmem:[%s17629_s24 + $0x8] sm:$0xff] }
 0x793   : > { %16882 = vmatpush3.bf16.msra.mxu0 %v16881_v53  ;;  %v14339_v53 = vld [vmem:[%s17599_s25 + $0xe8] sm:$0xff] }
 0x794   : > { %15671 = vmatprep.subr.mxu0 %v17564_v6  ;;  %v16896_v54 = vpack.c.bf16 %v14339_v53, %v14338_v52  ;;  %v16914_v52 = vpack.c.bf16 %v3246_v50, %v3245_v49  ;;  %v3248_v53 = vld [vmem:[%s17629_s24 + $0x18] sm:$0xff]  ;;  %v14377_v50 = vld [vmem:[%s17599_s25 + $0x210] sm:$0xff] }
 0x796   : > { %15658 = vmatmul.mubr.msk.f32.vlgmr.msra.gmra.mrb[16].mxu0 %vm1184_vm3, %v17795_v28 }
 0x797   : > { %15673 = vmatprep.mubr.msk.f32.mxu0 %vm17563_vm0, %v17564_v6 }
 0x85d   : > { %v1995_v59 = vpop.f32.mrb[12].mxu0 }
 0x85e   : > { %v15627_v60 = vpop.f32.mrb[13].mxu0  ;;  %15631 = vmatmul.mubr.msk.f32.vlgmr.msra.gmra.mrb[8].mxu1 %vm1424_vm4, %v1995_v59 }
 0x85f   : > { %16873 = vmatpush3.bf16.msra.mxu1 %v16872_v56  ;;  %15646 = vmatprep.mubr.msk.f32.mxu1 %vm17563_vm0, %v17564_v6  ;;  %v14341_v56 = vld [vmem:[%s17599_s25 + $0xf8] sm:$0xff] }
 0x860   : > { %16874 = vmatprep.subr.bf16.mxu1 %v17562_v3  ;;  %v16899_v59 = vpack.c.bf16 %v14341_v56, %v14340_v55  ;;  %v3249_v55 = vld [vmem:[%s17629_s24 + $0x20] sm:$0xff]  ;;  %v3250_v56 = vld [vmem:[%s17629_s24 + $0x28] sm:$0xff] }
 0x861   : > { %v2143_v1 = vpop.f32.mrb[14].mxu0 }
 0x862   : > { %v15637_v2 = vpop.f32.mrb[15].mxu0 }
 0x863   : > { %16876 = vmatpush3.bf16.msra.mxu1 %v16875_v61 }
 0x864   : > { %16883 = vmatprep.subr.bf16.mxu1 %v17562_v3 }
 0x866   : > { %15647 = vmatmul.mubr.msk.f32.vlgmr.msra.gmra.mrb[10].mxu1 %vm1184_vm3, %v17795_v28 }
 0x867   : > { %16885 = vmatpush3.bf16.msra.mxu1 %v16884_v4  ;;  %15668 = vmatprep.mubr.msk.f32.mxu1 %vm17563_vm0, %v17564_v6 }
 0x868   : > { %16886 = vmatprep.subr.bf16.mxu1 %v17562_v3 }
 0x869   : > { %v2309_v10 = vpop.f32.mrb[16].mxu0 }
 0x86a   : > { %v2310_v11 = vadd.f32 %v14317_v8, %v2309_v10  ;;  %v15659_v12 = vpop.f32.mrb[17].mxu0  ;;  %v14336_v8 = vld [vmem:[%s17604_s29 + $0x3] ss:$0 sm:$0xff] }
 0x86b   : > { %16888 = vmatpush3.bf16.msra.mxu1 %v16887_v9 }
 0x86c   : > { %15672 = vmatpush3.xpose.msk.msra.mxu0 %vm1424_vm4, %v2310_v11  ;;  %15681 = vmatprep.subr.mxu1 %v17564_v6  ;;  %v14350_v11 = vld [vmem:[%s17604_s29 + $0xb] ss:$0 sm:$0xff] }
 0x86d   : > { %15676 = vmatprep.subr.mxu0 %v17564_v6 }
 0x86e   : > { %15669 = vmatmul.mubr.msk.f32.vlgmr.msra.gmra.mrb[12].mxu1 %vm1184_vm3, %v17795_v28 }
 0x86f   : > { %15683 = vmatprep.mubr.msk.f32.mxu1 %vm17563_vm0, %v17564_v6  ;;  %15682 = vmatpush3.msra.mxu1 %v14329_v36 }
 0x870   : > { %16895 = vmatprep.subr.bf16.mxu1 %v17562_v3 }
 0x931   : > { %v2070_v13 = vpop.f32.mrb[8].mxu1 }
 0x932   : > { %v17920_v15 = vadd.f32 %v2143_v1, %v2070_v13  ;;  %v15632_v16 = vpop.f32.mrb[9].mxu1 }
 0x939   : > { %v2226_v18 = vpop.f32.mrb[10].mxu1 }
 0x93a   : > { %v2227_v19 = vadd.f32 %v14310_v17, %v2226_v18  ;;  %v15648_v20 = vpop.f32.mrb[11].mxu1 }
 0x93c   : > { %15674 = vmatmul.mubr.msk.f32.vlgmr.msra.gmra.mrb[18].mxu0 %vm1424_vm4, %v2227_v19 }
 0x93d   : > { %15678 = vmatprep.mubr.msk.f32.mxu0 %vm17563_vm0, %v17564_v6 }
 0x941   : > { %v2392_v22 = vpop.f32.mrb[12].mxu1 }
 0x942   : > { %v2393_v23 = vadd.f32 %v14324_v21, %v2392_v22  ;;  %v15670_v24 = vpop.f32.mrb[13].mxu1 }
 0x944   : > { %15677 = vmatpush3.msra.mxu0 %v2393_v23 }
 0x945   : > { %16889 = vmatprep.subr.bf16.mxu0 %v17562_v3 }
 0xa0f   : > { %v2468_v25 = vpop.f32.mrb[18].mxu0 }
 0xa10   : > { %v2472_v26 = vmul.f32 0.35355338, %v2468_v25  ;;  %v15675_v27 = vpop.f32.mrb[19].mxu0  ;;  %v14355_v25 = vld [vmem:[%s19246_s3 + $0x18] sm:$0xff] }
 0xa12   : > { %v2473_v29 = vadd.f32 %v2472_v26, %v17844_v63 }
 0xa14   : > { %v2474_v30 = vsel %vm1424_vm4, %v2473_v29, -inf }
 0xa15   : > { %2475 = vmax.xlane.f32.xlu1 %v2474_v30 }
 0xaa2   : > { %v2476_v31 = vpop.xlane.xlu1 %2475 }
 0xaa3   : > { %v2477_v32 = vsub.f32 %v2473_v29, %v2476_v31 }
 0xaa5   : > { %v2478_v33 = vmul.f32 1.442695, %v2477_v32 }
 0xaa7   : > { %17405 = vpow2.f32 %v2478_v33  ;;  %v14357_v33 = vld [vmem:[%s17614_s8] ss:$0 sm:$0xff] }
 0xab1   : > { %v17406_v34 = vpop.eup %17405 }
 0xab2   : > { %v2480_v35 = vsel %vm1424_vm4, %v17406_v34, 0.0 }
 0xab3   : > { %2481 = vadd.xlane.f32.xlu1 %v2480_v35 }
 0xb40   : > { %v2482_v37 = vpop.xlane.xlu1 %2481 }
 0xb41   : > { %17407 = vrcp.f32 %v2482_v37 }
 0xb4b   : > { %v17408_v40 = vpop.eup %17407 }
 0xb4c   : > { %v2484_v42 = vmul.f32 %v17408_v40, %v17406_v34 }
 0xb4e   : > { %15679 = vmatmul.mubr.msk.f32.vlgmr.msra.gmra.mrb[20].mxu0 %vm1424_vm4, %v2484_v42 }
 0xb4f   : > { %16891 = vmatpush3.bf16.msra.mxu0 %v16890_v41  ;;  %15694 = vmatprep.mubr.msk.f32.mxu0 %vm17563_vm0, %v17564_v6 }
 0xb50   : > { %16892 = vmatprep.subr.bf16.mxu0 %v17562_v3 }
 0xb53   : > { %16894 = vmatpush3.bf16.msra.mxu0 %v16893_v45  ;;  %v3161_v45 = vld [vmem:[%s17619_s14 + $0x8] sm:$0xff] }
 0xb54   : > { %16901 = vmatprep.subr.bf16.mxu0 %v17562_v3  ;;  %v16908_v46 = vpack.c.bf16 %v3161_v45, %v3160_v44  ;;  %v14375_v45 = vld [vmem:[%s17599_s25 + $0x200] sm:$0xff] }
 0xb56   : > { %15695 = vmatmul.mubr.msk.f32.vlgmr.msra.gmra.mrb[22].mxu0 %vm1184_vm3, %v17795_v28 }
 0xb57   : > { %16903 = vmatpush3.bf16.msra.mxu0 %v16902_v48  ;;  %15716 = vmatprep.mubr.msk.f32.mxu0 %vm17563_vm0, %v17564_v6 }
 0xb58   : > { %16904 = vmatprep.subr.bf16.mxu0 %v17562_v3 }
 0xb5b   : > { %16906 = vmatpush3.bf16.msra.mxu0 %v16905_v51  ;;  %v3247_v51 = vld [vmem:[%s17629_s24 + $0x10] sm:$0xff] }
 0xb5c   : > { %15729 = vmatprep.subr.mxu0 %v17564_v6 }
 0xb5e   : > { %15717 = vmatmul.mubr.msk.f32.vlgmr.msra.gmra.mrb[24].mxu0 %vm1184_vm3, %v17795_v28 }
 0xb5f   : > { %15731 = vmatprep.mubr.msk.f32.mxu0 %vm17563_vm0, %v17564_v6  ;;  %15730 = vmatpush3.msra.mxu0 %v14355_v25 }
 0xb60   : > { %16913 = vmatprep.subr.bf16.mxu0 %v17562_v3 }
 0xc21   : > { %v2554_v57 = vpop.f32.mrb[20].mxu0 }
 0xc22   : > { %v15680_v58 = vpop.f32.mrb[21].mxu0  ;;  %15684 = vmatmul.mubr.msk.f32.vlgmr.msra.gmra.mrb[14].mxu1 %vm1424_vm4, %v2554_v57  ;;  %v16920_v57 = vpack.c.bf16 %v3250_v56, %v3249_v55 }
 0xc23   : > { %16897 = vmatpush3.bf16.msra.mxu1 %v16896_v54  ;;  %15705 = vmatprep.mubr.msk.f32.mxu1 %vm17563_vm0, %v17564_v6  ;;  %v16917_v54 = vpack.c.bf16 %v3248_v53, %v3247_v51  ;;  %v14378_v51 = vld [vmem:[%s17599_s25 + $0x218] sm:$0xff]  ;;  %v14387_v53 = vld [vmem:[%s17604_s29 + $0x14] ss:$0 sm:$0xff] }
 0xc24   : > { %16898 = vmatprep.subr.bf16.mxu1 %v17562_v3 }
 0xc27   : > { %16900 = vmatpush3.bf16.msra.mxu1 %v16899_v59 }
 0xc28   : > { %15719 = vmatprep.subr.mxu1 %v17564_v6 }
 0xc29   : > { %v2713_v60 = vpop.f32.mrb[22].mxu0 }
 0xc2a   : > { %v15696_v61 = vpop.f32.mrb[23].mxu0  ;;  %15706 = vmatmul.mubr.msk.f32.vlgmr.msra.gmra.mrb[16].mxu1 %vm1184_vm3, %v17795_v28  ;;  %v2714_v12 = vadd.f32 %v14336_v8, %v2713_v60 }
 0xc2b   : > { %15721 = vmatprep.mubr.msk.f32.mxu1 %vm17563_vm0, %v17564_v6 }
 0xc31   : > { %v2879_v62 = vpop.f32.mrb[24].mxu0 }
 0xc32   : > { %v15718_v0 = vpop.f32.mrb[25].mxu0  ;;  %v2880_v13 = vadd.f32 %v14350_v11, %v2879_v62  ;;  %v14358_v62 = vld [vmem:[%s19245_s6] ss:$0 sm:$0xff] }
 0xcf5   : > { %v2629_v1 = vpop.f32.mrb[14].mxu1 }
 0xcf6   : > { %v2633_v2 = vadd.f32 %v2629_v1, %v17920_v15  ;;  %v15685_v4 = vpop.f32.mrb[15].mxu1  ;;  %v14359_v1 = vld [vmem:[%s17644_s12] ss:$0 sm:$0xff] }
 0xcfd   : > { %v2796_v7 = vpop.f32.mrb[16].mxu1 }
 0xcfe   : > { %v2797_v9 = vadd.f32 %v14343_v5, %v2796_v7  ;;  %v15707_v10 = vpop.f32.mrb[17].mxu1  ;;  %v3251_v5 = vld [vmem:[%s17629_s24 + $0x30] sm:$0xff]  ;;  %v3252_v7 = vld [vmem:[%s17629_s24 + $0x38] sm:$0xff] }
 0xcff   : > { %v16923_v8 = vpack.c.bf16 %v3252_v7, %v3251_v5  ;;  %v14395_v7 = vld [vmem:[%s17599_s25 + $0x1b0] sm:$0xff] }
 0xd00   : > { %15720 = vmatpush3.xpose.msk.msra.mxu1 %vm1424_vm4, %v2797_v9  ;;  %v14360_v9 = vld [vmem:[%s17624_s19] ss:$0 sm:$0xff] }
 0xd01   : > { %15724 = vmatprep.subr.mxu1 %v17564_v6 }
 0xd03   : > { %15722 = vmatmul.mubr.msk.f32.vlgmr.msra.gmra.mrb[18].mxu1 %vm1424_vm4, %v2714_v12 }
 0xd04   : > { %15725 = vmatpush3.msra.mxu1 %v2880_v13  ;;  %15726 = vmatprep.mubr.msk.f32.mxu1 %vm17563_vm0, %v17564_v6 }
 0xd05   : > { %16907 = vmatprep.subr.bf16.mxu1 %v17562_v3 }
 0xdd6   : > { %v2955_v15 = vpop.f32.mrb[18].mxu1 }
 0xdd7   : > { %v2959_v16 = vmul.f32 0.35355338, %v2955_v15  ;;  %v15723_v17 = vpop.f32.mrb[19].mxu1  ;;  %v14362_v15 = vld [vmem:[%s17634_s30] ss:$0 sm:$0xff] }
 0xdd9   : > { %v2960_v18 = vadd.f32 %v2959_v16, %v17844_v63 }
 0xddb   : > { %v2961_v19 = vsel %vm1424_vm4, %v2960_v18, -inf }
 0xddc   : > { %2962 = vmax.xlane.f32.xlu1 %v2961_v19 }
 0xe69   : > { %v2963_v20 = vpop.xlane.xlu1 %2962 }
 0xe6a   : > { %v2964_v21 = vsub.f32 %v2960_v18, %v2963_v20 }
 0xe6c   : > { %v2965_v22 = vmul.f32 1.442695, %v2964_v21 }
 0xe6e   : > { %17409 = vpow2.f32 %v2965_v22 }
 0xe78   : > { %v17410_v23 = vpop.eup %17409 }
 0xe79   : > { %v2967_v24 = vsel %vm1424_vm4, %v17410_v23, 0.0 }
 0xe7a   : > { %2968 = vadd.xlane.f32.xlu1 %v2967_v24 }
 0xf07   : > { %v2969_v26 = vpop.xlane.xlu1 %2968 }
 0xf08   : > { %17411 = vrcp.f32 %v2969_v26  ;;  %v14368_v26 = vld [vmem:[%s17599_s25 + $0x180] sm:$0xff] }
 0xf12   : > { %v17412_v27 = vpop.eup %17411 }
 0xf13   : > { %v2971_v29 = vmul.f32 %v17412_v27, %v17410_v23  ;;  %v14369_v27 = vld [vmem:[%s17599_s25 + $0x188] sm:$0xff] }
 0xf15   : > { %15727 = vmatmul.mubr.msk.f32.vlgmr.msra.gmra.mrb[20].mxu1 %vm1424_vm4, %v2971_v29  ;;  %v16926_v29 = vpack.c.bf16 %v14369_v27, %v14368_v26 }
 0xf16   : > { %15742 = vmatprep.mubr.msk.f32.mxu1 %vm17563_vm0, %v17564_v6  ;;  %16909 = vmatpush3.bf16.msra.mxu1 %v16908_v46  ;;  %v14376_v46 = vld [vmem:[%s17599_s25 + $0x208] sm:$0xff] }
 0xf17   : > { %16910 = vmatprep.subr.bf16.mxu1 %v17562_v3 }
 0xfe8   : > { %v3041_v30 = vpop.f32.mrb[20].mxu1 }
 0xfe9   : > { %v15728_v31 = vpop.f32.mrb[21].mxu1  ;;  %15732 = vmatmul.mubr.msk.f32.vlgmr.msra.gmra.mrb[26].mxu0 %vm1424_vm4, %v3041_v30  ;;  %v14382_v30 = vld [vmem:[%s17599_s25 + $0x280] sm:$0xff] }
 0xfea   : > { %15761 = vmatprep.mubr.msk.f32.mxu0 %vm17563_vm0, %v17564_v6  ;;  %16915 = vmatpush3.bf16.msra.mxu0 %v16914_v52  ;;  %v14383_v31 = vld [vmem:[%s17599_s25 + $0x288] sm:$0xff]  ;;  %v16935_v52 = vpack.c.bf16 %v14378_v51, %v14377_v50 }
 0xfeb   : > { %16916 = vmatprep.subr.bf16.mxu0 %v17562_v3 }
 0xfee   : > { %16918 = vmatpush3.bf16.msra.mxu0 %v16917_v54 }
 0xfef   : > { %16919 = vmatprep.subr.bf16.mxu0 %v17562_v3 }
 0xff2   : > { %16921 = vmatpush3.bf16.msra.mxu0 %v16920_v57 }
 0xff3   : > { %16922 = vmatprep.subr.bf16.mxu0 %v17562_v3 }
 0xff6   : > { %16924 = vmatpush3.bf16.msra.mxu0 %v16923_v8  ;;  %v14396_v8 = vld [vmem:[%s17599_s25 + $0x1b8] sm:$0xff] }
 0xff7   : > { %16937 = vmatprep.subr.bf16.mxu0 %v17562_v3 }
0x10bc   : > { %v3116_v32 = vpop.f32.mrb[26].mxu0 }
0x10bd   : > { %v3120_v34 = vadd.f32 %v3116_v32, %v2633_v2  ;;  %v15733_v35 = vpop.f32.mrb[27].mxu0  ;;  %v16938_v32 = vpack.c.bf16 %v14383_v31, %v14382_v30 }
0x10bf   : > { %v3128_v36 = vadd.f32 %v14357_v33, %v3120_v34  ;;  %v14370_v33 = vld [vmem:[%s17599_s25 + $0x190] sm:$0xff]  ;;  %v14371_v34 = vld [vmem:[%s17599_s25 + $0x198] sm:$0xff] }
0x10c0   : > { %v16929_v35 = vpack.c.bf16 %v14371_v34, %v14370_v33  ;;  %v14400_v33 = vld [vmem:[%s17599_s25 + $0x220] sm:$0xff]  ;;  %v14401_v34 = vld [vmem:[%s17599_s25 + $0x228] sm:$0xff] }
0x10c1   : > { %v3129_v37 = vadd.f32 %v3128_v36, %v17795_v28  ;;  %v3162_v28 = vld [vmem:[%s17619_s14 + $0x10] sm:$0xff] }
0x10c2   : > { %v16911_v48 = vpack.c.bf16 %v3163_v47, %v3162_v28  ;;  %v14384_v36 = vld [vmem:[%s17599_s25 + $0x290] sm:$0xff]  ;;  %v14367_v28 = vld [vmem:[%s17644_s12 + $0x1] ss:$0 sm:$0xff] }
0x10c3   : > { %v3132_v38 = vsel %vm1184_vm3, %v3129_v37, 0.0 }
0x10c4   : > { %3133 = vadd.xlane.f32.xlu1 %v3132_v38  ;;  %16912 = vmatpush3.bf16.msra.mxu1 %v16911_v48  ;;  %v16932_v48 = vpack.c.bf16 %v14376_v46, %v14375_v45  ;;  %v14398_v45 = vld [vmem:[%s17604_s29 + $0xd] ss:$0 sm:$0xff] }
0x10c5   : > { %16925 = vmatprep.subr.bf16.mxu1 %v17562_v3 }
0x1151   : > { %v3134_v39 = vpop.xlane.xlu1 %3133 }
0x1152   : > { %v3136_v40 = vmul.f32 0.03125, %v3134_v39 }
0x1154   : > { %v3137_v41 = vsub.f32 %v3129_v37, %v3136_v40  ;;  %v14385_v37 = vld [vmem:[%s17599_s25 + $0x298] sm:$0xff] }
0x1155   : > { %v16941_v38 = vpack.c.bf16 %v14385_v37, %v14384_v36  ;;  %v16950_v36 = vpack.c.bf16 %v14401_v34, %v14400_v33 }
0x1156   : > { %v3138_v42 = vmul.f32 %v3137_v41, %v3137_v41 }
0x1158   : > { %v3139_v43 = vsel %vm1184_vm3, %v3138_v42, 0.0 }
0x1159   : > { %3140 = vadd.xlane.f32.xlu1 %v3139_v43  ;;  %v14366_v43 = vld [vmem:[%s19245_s6 + $0x1] ss:$0 sm:$0xff] }
0x11e6   : > { %v3141_v58 = vpop.xlane.xlu1 %3140 }
0x11e7   : > { %v3142_v59 = vmul.f32 0.03125, %v3141_v58 }
0x11e9   : > { %v3143_v60 = vadd.f32 1e-05, %v3142_v59  ;;  %v14380_v59 = vld [vmem:[%s17604_s29 + $0x10] ss:$0 sm:$0xff] }
0x11eb   : > { %17413 = vrsqrt.f32 %v3143_v60 }
0x11f5   : > { %v17414_v61 = vpop.eup %17413 }
0x11f6   : > { %v3145_v0 = vmul.f32 %v17414_v61, %v3137_v41  ;;  %v14393_v61 = vld [vmem:[%s17599_s25 + $0x1a0] sm:$0xff] }
0x11f8   : > { %v3152_v2 = vmul.f32 %v14358_v62, %v3145_v0  ;;  %v14394_v62 = vld [vmem:[%s17599_s25 + $0x1a8] sm:$0xff] }
0x11f9   : > { %v14373_v0 = vld [vmem:[%s17604_s29 + $0xc] ss:$0 sm:$0xff] }
0x11fa   : > { %v3159_v4 = vadd.f32 %v14359_v1, %v3152_v2 }
0x11fc   : > { %15743 = vmatmul.mubr.msk.f32.vlgmr.msra.gmra.mrb[22].mxu1 %vm1184_vm3, %v3159_v4 }
0x11fd   : > { %15772 = vmatprep.mubr.msk.f32.mxu1 %vm17563_vm0, %v17564_v6  ;;  %16927 = vmatpush3.bf16.msra.mxu1 %v16926_v29 }
0x11fe   : > { %16928 = vmatprep.subr.bf16.mxu1 %v17562_v3 }
0x1201   : > { %16930 = vmatpush3.bf16.msra.mxu1 %v16929_v35 }
0x1202   : > { %16931 = vmatprep.subr.bf16.mxu1 %v17562_v3 }
0x12cf   : > { %v3240_v10 = vpop.f32.mrb[22].mxu1 }
0x12d0   : > { %v3241_v11 = vadd.f32 %v14360_v9, %v3240_v10  ;;  %v15744_v12 = vpop.f32.mrb[23].mxu1  ;;  %v16947_v9 = vpack.c.bf16 %v14396_v8, %v14395_v7  ;;  %v14407_v10 = vld [vmem:[%s17599_s25 + $0x2a0] sm:$0xff]  ;;  %v14429_v8 = vld [vmem:[%s17599_s25 + $0x250] sm:$0xff] }
0x12d2   : > { %v3244_v13 = vmax.f32 %v3241_v11, 0.0  ;;  %v14408_v11 = vld [vmem:[%s17599_s25 + $0x2a8] sm:$0xff] }
0x12d3   : > { %v16956_v12 = vpack.c.bf16 %v14408_v11, %v14407_v10  ;;  %v14420_v11 = vld [vmem:[%s17599_s25 + $0x1c0] sm:$0xff] }
0x12d4   : > { %15762 = vmatmul.mubr.msk.f32.vlgmr.msra.gmra.mrb[28].mxu0 %vm3260_vm6, %v3244_v13  ;;  %v14409_v13 = vld [vmem:[%s17599_s25 + $0x2b0] sm:$0xff] }
0x12d5   : > { %15794 = vmatprep.mubr.msk.f32.mxu0 %vm17563_vm0, %v17564_v6  ;;  %16939 = vmatpush3.bf16.msra.mxu0 %v16938_v32 }
0x12d6   : > { %16940 = vmatprep.subr.bf16.mxu0 %v17562_v3 }
0x12d9   : > { %16942 = vmatpush3.bf16.msra.mxu0 %v16941_v38  ;;  %v14402_v38 = vld [vmem:[%s17599_s25 + $0x230] sm:$0xff] }
0x12da   : > { %15802 = vmatprep.subr.mxu0 %v17564_v6 }
0x13a7   : > { %v3330_v16 = vpop.f32.mrb[28].mxu0 }
0x13a8   : > { %v3331_v17 = vadd.f32 %v14362_v15, %v3330_v16  ;;  %v15763_v18 = vpop.f32.mrb[29].mxu0  ;;  %v14410_v15 = vld [vmem:[%s17599_s25 + $0x2b8] sm:$0xff] }
0x13a9   : > { %v16959_v16 = vpack.c.bf16 %v14410_v15, %v14409_v13  ;;  %v14422_v15 = vld [vmem:[%s17599_s25 + $0x1d0] sm:$0xff] }
0x13aa   : > { %v3334_v19 = vadd.f32 %v3331_v17, %v3159_v4  ;;  %v16944_v4 = vpack.c.bf16 %v14394_v62, %v14393_v61  ;;  %v14417_v61 = vld [vmem:[%s19246_s3 + $0x28] sm:$0xff] }
0x13ac   : > { %v3339_v20 = vsel %vm1184_vm3, %v3334_v19, 0.0 }
0x13ad   : > { %3340 = vadd.xlane.f32.xlu0 %v3339_v20 }
0x143a   : > { %v3341_v21 = vpop.xlane.xlu0 %3340 }
0x143b   : > { %v3342_v22 = vmul.f32 0.03125, %v3341_v21 }
0x143d   : > { %v3343_v23 = vsub.f32 %v3334_v19, %v3342_v22 }
0x143f   : > { %v3344_v24 = vmul.f32 %v3343_v23, %v3343_v23 }
0x1441   : > { %v3345_v25 = vsel %vm1184_vm3, %v3344_v24, 0.0 }
0x1442   : > { %3346 = vadd.xlane.f32.xlu1 %v3345_v25 }
0x14cf   : > { %v3347_v39 = vpop.xlane.xlu1 %3346 }
0x14d0   : > { %v3348_v40 = vmul.f32 0.03125, %v3347_v39  ;;  %v14403_v39 = vld [vmem:[%s17599_s25 + $0x238] sm:$0xff] }
0x14d2   : > { %v3349_v41 = vadd.f32 1e-05, %v3348_v40  ;;  %v16953_v40 = vpack.c.bf16 %v14403_v39, %v14402_v38 }
0x14d4   : > { %17415 = vrsqrt.f32 %v3349_v41 }
0x14de   : > { %v17416_v42 = vpop.eup %17415 }
0x14df   : > { %v3351_v44 = vmul.f32 %v17416_v42, %v3343_v23 }
0x14e1   : > { %v3358_v47 = vmul.f32 %v14366_v43, %v3351_v44  ;;  %v14405_v43 = vld [vmem:[%s17604_s29 + $0x11] ss:$0 sm:$0xff] }
0x14e3   : > { %v18040_v49 = vadd.f32 %v14367_v28, %v3358_v47  ;;  %v14412_v47 = vld [vmem:[%s17604_s29 + $0x15] ss:$0 sm:$0xff] }
0x14e5   : > { %15773 = vmatmul.mubr.msk.f32.vlgmr.msra.gmra.mrb[24].mxu1 %vm1184_vm3, %v18040_v49  ;;  %15795 = vmatmul.mubr.msk.f32.vlgmr.msra.gmra.mrb[30].mxu0 %vm1184_vm3, %v18040_v49 }
0x14e6   : > { %16933 = vmatpush3.bf16.msra.mxu1 %v16932_v48  ;;  %15783 = vmatprep.mubr.msk.f32.mxu1 %vm17563_vm0, %v17564_v6 }
0x14e7   : > { %16934 = vmatprep.subr.bf16.mxu1 %v17562_v3  ;;  %15804 = vmatprep.mubr.msk.f32.mxu0 %vm17563_vm0, %v17564_v6 }
0x14ea   : > { %16936 = vmatpush3.bf16.msra.mxu1 %v16935_v52 }
0x14eb   : > { %15797 = vmatprep.subr.mxu1 %v17564_v6 }
0x14ed   : > { %15784 = vmatmul.mubr.msk.f32.vlgmr.msra.gmra.mrb[26].mxu1 %vm1184_vm3, %v18040_v49 }
0x14ee   : > { %15799 = vmatprep.mubr.msk.f32.mxu1 %vm17563_vm0, %v17564_v6 }
0x15b8   : > { %v3448_v54 = vpop.f32.mrb[24].mxu1  ;;  %v3614_v55 = vpop.f32.mrb[30].mxu0 }
0x15b9   : > { %v3615_v56 = vadd.f32 %v14387_v53, %v3614_v55  ;;  %v15774_v57 = vpop.f32.mrb[25].mxu1  ;;  %v15796_v58 = vpop.f32.mrb[31].mxu0  ;;  %v3449_v5 = vadd.f32 %v14373_v0, %v3448_v54 }
0x15bb   : > { %15803 = vmatpush3.msra.mxu0 %v3615_v56 }
0x15bc   : > { %16949 = vmatprep.subr.bf16.mxu0 %v17562_v3 }
0x15c0   : > { %v3531_v60 = vpop.f32.mrb[26].mxu1 }
0x15c1   : > { %v3532_v1 = vadd.f32 %v14380_v59, %v3531_v60  ;;  %v15785_v2 = vpop.f32.mrb[27].mxu1 }
0x15c2   : > { %v14392_v2 = vld [vmem:[%s19246_s3 + $0x20] sm:$0xff] }
0x15c3   : > { %15798 = vmatpush3.xpose.msk.msra.mxu1 %vm1424_vm4, %v3532_v1 }
0x15c4   : > { %16943 = vmatprep.subr.bf16.mxu1 %v17562_v3 }
0x15c6   : > { %15800 = vmatmul.mubr.msk.f32.vlgmr.msra.gmra.mrb[28].mxu1 %vm1424_vm4, %v3449_v5  ;;  %v14428_v5 = vld [vmem:[%s17599_s25 + $0x248] sm:$0xff] }
0x15c7   : > { %16945 = vmatpush3.bf16.msra.mxu1 %v16944_v4  ;;  %15815 = vmatprep.mubr.msk.f32.mxu1 %vm17563_vm0, %v17564_v6  ;;  %v14427_v4 = vld [vmem:[%s17599_s25 + $0x240] sm:$0xff] }
0x15c8   : > { %16946 = vmatprep.subr.bf16.mxu1 %v17562_v3  ;;  %v16968_v7 = vpack.c.bf16 %v14428_v5, %v14427_v4  ;;  %v14462_v5 = vld [vmem:[%s17599_s25 + $0x2f0] sm:$0xff] }
0x15cb   : > { %16948 = vmatpush3.bf16.msra.mxu1 %v16947_v9  ;;  %v14430_v9 = vld [vmem:[%s17599_s25 + $0x258] sm:$0xff] }
0x15cc   : > { %16955 = vmatprep.subr.bf16.mxu1 %v17562_v3  ;;  %v16971_v10 = vpack.c.bf16 %v14430_v9, %v14429_v8  ;;  %v14453_v9 = vld [vmem:[%s17599_s25 + $0x260] sm:$0xff] }
0x15ce   : > { %15816 = vmatmul.mubr.msk.f32.vlgmr.msra.gmra.mrb[30].mxu1 %vm1184_vm3, %v18040_v49 }
0x15cf   : > { %16957 = vmatpush3.bf16.msra.mxu1 %v16956_v12  ;;  %15837 = vmatprep.mubr.msk.f32.mxu1 %vm17563_vm0, %v17564_v6  ;;  %v14421_v12 = vld [vmem:[%s17599_s25 + $0x1c8] sm:$0xff] }
0x15d0   : > { %16958 = vmatprep.subr.bf16.mxu1 %v17562_v3  ;;  %v16962_v13 = vpack.c.bf16 %v14421_v12, %v14420_v11  ;;  %v14455_v12 = vld [vmem:[%s17599_s25 + $0x270] sm:$0xff] }
0x15d3   : > { %16960 = vmatpush3.bf16.msra.mxu1 %v16959_v16  ;;  %v14423_v16 = vld [vmem:[%s17599_s25 + $0x1d8] sm:$0xff] }
0x15d4   : > { %15850 = vmatprep.subr.mxu1 %v17564_v6 }
0x15d6   : > { %15838 = vmatmul.mubr.msk.f32.vlgmr.msra.gmra.mrb[32].mxu1 %vm1184_vm3, %v18040_v49 }
0x15d7   : > { %15852 = vmatprep.mubr.msk.f32.mxu1 %vm17563_vm0, %v17564_v6  ;;  %15851 = vmatpush3.msra.mxu1 %v14417_v61  ;;  %v14448_v61 = vld [vmem:[%s17599_s25 + $0x1f0] sm:$0xff] }
0x15d8   : > { %16961 = vmatprep.subr.bf16.mxu1 %v17562_v3 }
0x1699   : > { %v3690_v17 = vpop.f32.mrb[28].mxu1 }
0x169a   : > { %v3694_v18 = vmul.f32 0.35355338, %v3690_v17  ;;  %v15801_v19 = vpop.f32.mrb[29].mxu1 }
0x169b   : > { %v16965_v19 = vpack.c.bf16 %v14423_v16, %v14422_v15 }
0x169c   : > { %v3695_v20 = vadd.f32 %v3694_v18, %v17844_v63 }
0x169e   : > { %v3696_v21 = vsel %vm1424_vm4, %v3695_v20, -inf }
0x169f   : > { %3697 = vmax.xlane.f32.xlu0 %v3696_v21  ;;  %v14435_v21 = vld [vmem:[%s17599_s25 + $0x2c8] sm:$0xff] }
0x16a1   : > { %v3861_v22 = vpop.f32.mrb[30].mxu1 }
0x16a2   : > { %v15817_v23 = vpop.f32.mrb[31].mxu1  ;;  %v3862_v48 = vadd.f32 %v14398_v45, %v3861_v22 }
0x16a9   : > { %v4027_v24 = vpop.f32.mrb[32].mxu1 }
0x16aa   : > { %v15839_v25 = vpop.f32.mrb[33].mxu1  ;;  %v4028_v50 = vadd.f32 %v14412_v47, %v4027_v24 }
0x16ab   : > { %v14436_v25 = vld [vmem:[%s17599_s25 + $0x2d0] sm:$0xff] }
0x172c   : > { %v3698_v26 = vpop.xlane.xlu0 %3697 }
0x172d   : > { %v3699_v27 = vsub.f32 %v3695_v20, %v3698_v26  ;;  %v14434_v20 = vld [vmem:[%s17599_s25 + $0x2c0] sm:$0xff]  ;;  %v14437_v26 = vld [vmem:[%s17599_s25 + $0x2d8] sm:$0xff] }
0x172e   : > { %v16974_v24 = vpack.c.bf16 %v14435_v21, %v14434_v20 }
0x172f   : > { %v3700_v29 = vmul.f32 1.442695, %v3699_v27  ;;  %v14432_v27 = vld [vmem:[%s17604_s29 + $0x12] ss:$0 sm:$0xff] }
0x1731   : > { %17417 = vpow2.f32 %v3700_v29  ;;  %v16977_v29 = vpack.c.bf16 %v14437_v26, %v14436_v25  ;;  %v14458_v25 = vld [vmem:[%s17604_s29 + $0x13] ss:$0 sm:$0xff] }
0x173b   : > { %v17418_v30 = vpop.eup %17417 }
0x173c   : > { %v3702_v31 = vsel %vm1424_vm4, %v17418_v30, 0.0 }
0x173d   : > { %3703 = vadd.xlane.f32.xlu1 %v3702_v31 }
0x17ca   : > { %v3704_v32 = vpop.xlane.xlu1 %3703 }
0x17cb   : > { %17419 = vrcp.f32 %v3704_v32 }
0x17d5   : > { %v17420_v35 = vpop.eup %17419 }
0x17d6   : > { %v3706_v37 = vmul.f32 %v17420_v35, %v17418_v30 }
0x17d8   : > { %15805 = vmatmul.mubr.msk.f32.vlgmr.msra.gmra.mrb[32].mxu0 %vm1424_vm4, %v3706_v37 }
0x17d9   : > { %16951 = vmatpush3.bf16.msra.mxu0 %v16950_v36  ;;  %15826 = vmatprep.mubr.msk.f32.mxu0 %vm17563_vm0, %v17564_v6  ;;  %v14425_v36 = vld [vmem:[%s17604_s29 + $0xe] ss:$0 sm:$0xff] }
0x17da   : > { %16952 = vmatprep.subr.bf16.mxu0 %v17562_v3 }
0x17dd   : > { %16954 = vmatpush3.bf16.msra.mxu0 %v16953_v40  ;;  %v14439_v40 = vld [vmem:[%s17604_s29 + $0x16] ss:$0 sm:$0xff] }
0x17de   : > { %15840 = vmatprep.subr.mxu0 %v17564_v6 }
0x17e0   : > { %15827 = vmatmul.mubr.msk.f32.vlgmr.msra.gmra.mrb[34].mxu0 %vm1184_vm3, %v18040_v49 }
0x17e1   : > { %15842 = vmatprep.mubr.msk.f32.mxu0 %vm17563_vm0, %v17564_v6 }
0x18ab   : > { %v3776_v41 = vpop.f32.mrb[32].mxu0 }
0x18ac   : > { %v15806_v42 = vpop.f32.mrb[33].mxu0 }
0x18b3   : > { %v3944_v44 = vpop.f32.mrb[34].mxu0 }
0x18b4   : > { %v3945_v46 = vadd.f32 %v14405_v43, %v3944_v44  ;;  %v15828_v28 = vpop.f32.mrb[35].mxu0 }
0x18b6   : > { %15841 = vmatpush3.xpose.msk.msra.mxu0 %vm1424_vm4, %v3945_v46 }
0x18b7   : > { %15845 = vmatprep.subr.mxu0 %v17564_v6 }
0x18b9   : > { %15843 = vmatmul.mubr.msk.f32.vlgmr.msra.gmra.mrb[36].mxu0 %vm1424_vm4, %v3862_v48 }
0x18ba   : > { %15846 = vmatpush3.msra.mxu0 %v4028_v50  ;;  %15847 = vmatprep.mubr.msk.f32.mxu0 %vm17563_vm0, %v17564_v6 }
0x18bb   : > { %15855 = vmatprep.subr.mxu0 %v17564_v6 }
0x198c   : > { %v4103_v51 = vpop.f32.mrb[36].mxu0 }
0x198d   : > { %v4107_v52 = vmul.f32 0.35355338, %v4103_v51  ;;  %v15844_v53 = vpop.f32.mrb[37].mxu0 }
0x198f   : > { %v4108_v54 = vadd.f32 %v4107_v52, %v17844_v63 }
0x1991   : > { %v4109_v55 = vsel %vm1424_vm4, %v4108_v54, -inf }
0x1992   : > { %4110 = vmax.xlane.f32.xlu0 %v4109_v55 }
0x1a1f   : > { %v4111_v56 = vpop.xlane.xlu0 %4110 }
0x1a20   : > { %v4112_v57 = vsub.f32 %v4108_v54, %v4111_v56  ;;  %v14444_v54 = vld [vmem:[%s19246_s3 + $0x30] sm:$0xff]  ;;  %v14446_v56 = vld [vmem:[%s17599_s25 + $0x1e0] sm:$0xff] }
0x1a22   : > { %v4113_v58 = vmul.f32 1.442695, %v4112_v57  ;;  %v14447_v57 = vld [vmem:[%s17599_s25 + $0x1e8] sm:$0xff] }
0x1a24   : > { %17421 = vpow2.f32 %v4113_v58 }
0x1a2e   : > { %v17422_v59 = vpop.eup %17421 }
0x1a2f   : > { %v4115_v60 = vsel %vm1424_vm4, %v17422_v59, 0.0 }
0x1a30   : > { %4116 = vadd.xlane.f32.xlu1 %v4115_v60 }
0x1abd   : > { %v4117_v62 = vpop.xlane.xlu1 %4116 }
0x1abe   : > { %17423 = vrcp.f32 %v4117_v62  ;;  %v14449_v62 = vld [vmem:[%s17599_s25 + $0x1f8] sm:$0xff] }
0x1ac8   : > { %v17424_v0 = vpop.eup %17423 }
0x1ac9   : > { %v4119_v1 = vmul.f32 %v17424_v0, %v17422_v59  ;;  %v16980_v59 = vpack.c.bf16 %v14447_v57, %v14446_v56  ;;  %v16983_v0 = vpack.c.bf16 %v14449_v62, %v14448_v61  ;;  %v5594_v57 = vld [vmem:[%s1078_s28] sm:$0xff]  ;;  %s19258_s28 = sld [smem:[#allocation13_spill]] }
0x1acb   : > { %15848 = vmatmul.mubr.msk.f32.vlgmr.msra.gmra.mrb[38].mxu0 %vm1424_vm4, %v4119_v1  ;;  %v14460_v1 = vld [vmem:[%s17599_s25 + $0x2e0] sm:$0xff] }
0x1acc   : > { %15856 = vmatpush3.msra.mxu0 %v14392_v2  ;;  %15857 = vmatprep.mubr.msk.f32.mxu0 %vm17563_vm0, %v17564_v6  ;;  %v14461_v2 = vld [vmem:[%s17599_s25 + $0x2e8] sm:$0xff] }
0x1acd   : > { %16967 = vmatprep.subr.bf16.mxu0 %v17562_v3  ;;  %v16992_v4 = vpack.c.bf16 %v14461_v2, %v14460_v1  ;;  %v14480_v2 = vld [vmem:[%s17619_s14 + $0x30] sm:$0xff] }
0x1acf   : > { %15858 = vmatmul.mubr.msk.f32.vlgmr.msra.gmra.mrb[40].mxu0 %vm1424_vm4, %v3776_v41 }
0x1ad0   : > { %16969 = vmatpush3.bf16.msra.mxu0 %v16968_v7  ;;  %15879 = vmatprep.mubr.msk.f32.mxu0 %vm17563_vm0, %v17564_v6  ;;  %v14463_v7 = vld [vmem:[%s17599_s25 + $0x2f8] sm:$0xff] }
0x1ad1   : > { %16970 = vmatprep.subr.bf16.mxu0 %v17562_v3  ;;  %v16995_v8 = vpack.c.bf16 %v14463_v7, %v14462_v5  ;;  %v14485_v7 = vld [vmem:[%s17629_s24 + $0x40] sm:$0xff] }
0x1ad4   : > { %16972 = vmatpush3.bf16.msra.mxu0 %v16971_v10  ;;  %v14454_v10 = vld [vmem:[%s17599_s25 + $0x268] sm:$0xff] }
0x1ad5   : > { %15893 = vmatprep.subr.mxu0 %v17564_v6  ;;  %v16986_v11 = vpack.c.bf16 %v14454_v10, %v14453_v9  ;;  %v14487_v9 = vld [vmem:[%s17629_s24 + $0x50] sm:$0xff] }
0x1ad7   : > { %15880 = vmatmul.mubr.msk.f32.vlgmr.msra.gmra.mrb[42].mxu0 %vm1184_vm3, %v18040_v49 }
0x1ad8   : > { %15895 = vmatprep.mubr.msk.f32.mxu0 %vm17563_vm0, %v17564_v6 }
0x1b9e   : > { %v4189_v17 = vpop.f32.mrb[38].mxu0 }
0x1b9f   : > { %v15849_v18 = vpop.f32.mrb[39].mxu0  ;;  %15853 = vmatmul.mubr.msk.f32.vlgmr.msra.gmra.mrb[34].mxu1 %vm1424_vm4, %v4189_v17 }
0x1ba0   : > { %16963 = vmatpush3.bf16.msra.mxu1 %v16962_v13  ;;  %15868 = vmatprep.mubr.msk.f32.mxu1 %vm17563_vm0, %v17564_v6  ;;  %v14456_v13 = vld [vmem:[%s17599_s25 + $0x278] sm:$0xff] }
0x1ba1   : > { %16964 = vmatprep.subr.bf16.mxu1 %v17562_v3  ;;  %v16989_v17 = vpack.c.bf16 %v14456_v13, %v14455_v12  ;;  %v14489_v13 = vld [vmem:[%s17629_s24 + $0x60] sm:$0xff] }
0x1ba2   : > { %v4337_v22 = vpop.f32.mrb[40].mxu0 }
0x1ba3   : > { %v15859_v23 = vpop.f32.mrb[41].mxu0 }
0x1ba4   : > { %16966 = vmatpush3.bf16.msra.mxu1 %v16965_v19 }
0x1ba5   : > { %16973 = vmatprep.subr.bf16.mxu1 %v17562_v3 }
0x1ba7   : > { %15869 = vmatmul.mubr.msk.f32.vlgmr.msra.gmra.mrb[36].mxu1 %vm1184_vm3, %v18040_v49 }
0x1ba8   : > { %16975 = vmatpush3.bf16.msra.mxu1 %v16974_v24  ;;  %15890 = vmatprep.mubr.msk.f32.mxu1 %vm17563_vm0, %v17564_v6 }
0x1ba9   : > { %16976 = vmatprep.subr.bf16.mxu1 %v17562_v3 }
0x1baa   : > { %v4503_v30 = vpop.f32.mrb[42].mxu0 }
0x1bab   : > { %v4504_v31 = vadd.f32 %v14432_v27, %v4503_v30  ;;  %v15881_v32 = vpop.f32.mrb[43].mxu0  ;;  %v14451_v27 = vld [vmem:[%s17604_s29 + $0xf] ss:$0 sm:$0xff] }
0x1bac   : > { %16978 = vmatpush3.bf16.msra.mxu1 %v16977_v29 }
0x1bad   : > { %15894 = vmatpush3.xpose.msk.msra.mxu0 %vm1424_vm4, %v4504_v31  ;;  %15903 = vmatprep.subr.mxu1 %v17564_v6  ;;  %v14465_v31 = vld [vmem:[%s17604_s29 + $0x17] ss:$0 sm:$0xff] }
0x1bae   : > { %15898 = vmatprep.subr.mxu0 %v17564_v6 }
0x1baf   : > { %15891 = vmatmul.mubr.msk.f32.vlgmr.msra.gmra.mrb[38].mxu1 %vm1184_vm3, %v18040_v49 }
0x1bb0   : > { %15905 = vmatprep.mubr.msk.f32.mxu1 %vm17563_vm0, %v17564_v6  ;;  %15904 = vmatpush3.msra.mxu1 %v14444_v54 }
0x1bb1   : > { %16985 = vmatprep.subr.bf16.mxu1 %v17562_v3 }
0x1c72   : > { %v4264_v33 = vpop.f32.mrb[34].mxu1 }
0x1c73   : > { %v18161_v34 = vadd.f32 %v4337_v22, %v4264_v33  ;;  %v15854_v35 = vpop.f32.mrb[35].mxu1 }
0x1c7a   : > { %v4420_v37 = vpop.f32.mrb[36].mxu1 }
0x1c7b   : > { %v4421_v38 = vadd.f32 %v14425_v36, %v4420_v37  ;;  %v15870_v39 = vpop.f32.mrb[37].mxu1 }
0x1c7d   : > { %15896 = vmatmul.mubr.msk.f32.vlgmr.msra.gmra.mrb[44].mxu0 %vm1424_vm4, %v4421_v38 }
0x1c7e   : > { %15900 = vmatprep.mubr.msk.f32.mxu0 %vm17563_vm0, %v17564_v6 }
0x1c82   : > { %v4586_v41 = vpop.f32.mrb[38].mxu1 }
0x1c83   : > { %v4587_v42 = vadd.f32 %v14439_v40, %v4586_v41  ;;  %v15892_v43 = vpop.f32.mrb[39].mxu1 }
0x1c85   : > { %15899 = vmatpush3.msra.mxu0 %v4587_v42 }
0x1c86   : > { %16979 = vmatprep.subr.bf16.mxu0 %v17562_v3 }
0x1d50   : > { %v4662_v44 = vpop.f32.mrb[44].mxu0 }
0x1d51   : > { %v4666_v45 = vmul.f32 0.35355338, %v4662_v44  ;;  %v15897_v46 = vpop.f32.mrb[45].mxu0  ;;  %v14470_v44 = vld [vmem:[%s19246_s3 + $0x38] sm:$0xff]  ;;  %s19262_s3 = sld [smem:[#allocation18_spill]] }
0x1d53   : > { %v4667_v28 = vadd.f32 %v4666_v45, %v17844_v63 }
0x1d55   : > { %v4668_v47 = vsel %vm1424_vm4, %v4667_v28, -inf }
0x1d56   : > { %4669 = vmax.xlane.f32.xlu0 %v4668_v47 }
0x1de3   : > { %v4670_v48 = vpop.xlane.xlu0 %4669 }
0x1de4   : > { %v4671_v50 = vsub.f32 %v4667_v28, %v4670_v48 }
0x1de6   : > { %v4672_v51 = vmul.f32 1.442695, %v4671_v50 }
0x1de8   : > { %17425 = vpow2.f32 %v4672_v51  ;;  %v14473_v51 = vld [vmem:[%s17614_s8 + $0x1] ss:$0 sm:$0xff] }
0x1df2   : > { %v17426_v52 = vpop.eup %17425 }
0x1df3   : > { %v4674_v53 = vsel %vm1424_vm4, %v17426_v52, 0.0 }
0x1df4   : > { %4675 = vadd.xlane.f32.xlu1 %v4674_v53 }
0x1e81   : > { %v4676_v55 = vpop.xlane.xlu1 %4675 }
0x1e82   : > { %17427 = vrcp.f32 %v4676_v55 }
0x1e8c   : > { %v17428_v58 = vpop.eup %17427 }
0x1e8d   : > { %v4678_v60 = vmul.f32 %v17428_v58, %v17426_v52 }
0x1e8f   : > { %15901 = vmatmul.mubr.msk.f32.vlgmr.msra.gmra.mrb[46].mxu0 %vm1424_vm4, %v4678_v60 }
0x1e90   : > { %16981 = vmatpush3.bf16.msra.mxu0 %v16980_v59  ;;  %15916 = vmatprep.mubr.msk.f32.mxu0 %vm17563_vm0, %v17564_v6 }
0x1e91   : > { %16982 = vmatprep.subr.bf16.mxu0 %v17562_v3 }
0x1e94   : > { %16984 = vmatpush3.bf16.msra.mxu0 %v16983_v0  ;;  %v14479_v0 = vld [vmem:[%s17619_s14 + $0x28] sm:$0xff] }
0x1e95   : > { %16991 = vmatprep.subr.bf16.mxu0 %v17562_v3 }
0x1e97   : > { %15917 = vmatmul.mubr.msk.f32.vlgmr.msra.gmra.mrb[48].mxu0 %vm1184_vm3, %v18040_v49 }
0x1e98   : > { %16993 = vmatpush3.bf16.msra.mxu0 %v16992_v4  ;;  %15938 = vmatprep.mubr.msk.f32.mxu0 %vm17563_vm0, %v17564_v6  ;;  %v14481_v4 = vld [vmem:[%s17619_s14 + $0x38] sm:$0xff] }
0x1e99   : > { %16994 = vmatprep.subr.bf16.mxu0 %v17562_v3  ;;  %v17001_v5 = vpack.c.bf16 %v14481_v4, %v14480_v2  ;;  %v14518_v4 = vld [vmem:[%s19250_s7 + $0x8] ss:$0 sm:$0xff] }
0x1e9c   : > { %16996 = vmatpush3.bf16.msra.mxu0 %v16995_v8  ;;  %v14486_v8 = vld [vmem:[%s17629_s24 + $0x48] sm:$0xff] }
0x1e9d   : > { %15951 = vmatprep.subr.mxu0 %v17564_v6  ;;  %v17004_v10 = vpack.c.bf16 %v14486_v8, %v14485_v7  ;;  %v14524_v7 = vld [vmem:[%s19249_s2 + $0x28] sm:$0xff]  ;;  %v14504_v8 = vld [vmem:[%s19250_s7] ss:$0 sm:$0xff] }
0x1e9f   : > { %15939 = vmatmul.mubr.msk.f32.vlgmr.msra.gmra.mrb[50].mxu0 %vm1184_vm3, %v18040_v49 }
0x1ea0   : > { %15953 = vmatprep.mubr.msk.f32.mxu0 %vm17563_vm0, %v17564_v6  ;;  %15952 = vmatpush3.msra.mxu0 %v14470_v44 }
0x1ea1   : > { %17003 = vmatprep.subr.bf16.mxu0 %v17562_v3 }
0x1f62   : > { %v4748_v15 = vpop.f32.mrb[46].mxu0 }
0x1f63   : > { %v15902_v16 = vpop.f32.mrb[47].mxu0  ;;  %15906 = vmatmul.mubr.msk.f32.vlgmr.msra.gmra.mrb[40].mxu1 %vm1424_vm4, %v4748_v15  ;;  %v14490_v15 = vld [vmem:[%s17629_s24 + $0x68] sm:$0xff] }
0x1f64   : > { %16987 = vmatpush3.bf16.msra.mxu1 %v16986_v11  ;;  %15927 = vmatprep.mubr.msk.f32.mxu1 %vm17563_vm0, %v17564_v6  ;;  %v14488_v11 = vld [vmem:[%s17629_s24 + $0x58] sm:$0xff]  ;;  %v17010_v16 = vpack.c.bf16 %v14490_v15, %v14489_v13 }
0x1f65   : > { %16988 = vmatprep.subr.bf16.mxu1 %v17562_v3  ;;  %v17007_v12 = vpack.c.bf16 %v14488_v11, %v14487_v9 }
0x1f68   : > { %16990 = vmatpush3.bf16.msra.mxu1 %v16989_v17 }
0x1f69   : > { %15941 = vmatprep.subr.mxu1 %v17564_v6 }
0x1f6a   : > { %v4907_v18 = vpop.f32.mrb[48].mxu0 }
0x1f6b   : > { %v15918_v19 = vpop.f32.mrb[49].mxu0  ;;  %15928 = vmatmul.mubr.msk.f32.vlgmr.msra.gmra.mrb[42].mxu1 %vm1184_vm3, %v18040_v49  ;;  %v4908_v32 = vadd.f32 %v14451_v27, %v4907_v18 }
0x1f6c   : > { %15943 = vmatprep.mubr.msk.f32.mxu1 %vm17563_vm0, %v17564_v6 }
0x1f72   : > { %v5073_v20 = vpop.f32.mrb[50].mxu0 }
0x1f73   : > { %v15940_v21 = vpop.f32.mrb[51].mxu0  ;;  %v5074_v33 = vadd.f32 %v14465_v31, %v5073_v20  ;;  %v5676_v31 = vld [vmem:[%s19249_s2] sm:$0xff] }
0x1f74   : > { %v14476_v21 = vld [vmem:[%s19245_s6 + $0x2] ss:$0 sm:$0xff] }
0x2036   : > { %v4823_v22 = vpop.f32.mrb[40].mxu1 }
0x2037   : > { %v4827_v23 = vadd.f32 %v4823_v22, %v18161_v34  ;;  %v15907_v24 = vpop.f32.mrb[41].mxu1 }
0x2038   : > { %v5602_v24 = vld [vmem:[%s19248_s1 + $0x8] sm:$0xff] }
0x203e   : > { %v4990_v26 = vpop.f32.mrb[42].mxu1 }
0x203f   : > { %v4991_v29 = vadd.f32 %v14458_v25, %v4990_v26  ;;  %v15929_v30 = vpop.f32.mrb[43].mxu1  ;;  %v14477_v25 = vld [vmem:[%s17644_s12 + $0x2] ss:$0 sm:$0xff] }
0x2041   : > { %15942 = vmatpush3.xpose.msk.msra.mxu1 %vm1424_vm4, %v4991_v29 }
0x2042   : > { %15946 = vmatprep.subr.mxu1 %v17564_v6 }
0x2044   : > { %15944 = vmatmul.mubr.msk.f32.vlgmr.msra.gmra.mrb[44].mxu1 %vm1424_vm4, %v4908_v32  ;;  %v5677_v32 = vld [vmem:[%s19249_s2 + $0x8] sm:$0xff] }
0x2045   : > { %15947 = vmatpush3.msra.mxu1 %v5074_v33  ;;  %15948 = vmatprep.mubr.msk.f32.mxu1 %vm17563_vm0, %v17564_v6  ;;  %v17019_v33 = vpack.c.bf16 %v5677_v32, %v5676_v31 }
0x2046   : > { %16997 = vmatprep.subr.bf16.mxu1 %v17562_v3 }
0x2117   : > { %v5149_v34 = vpop.f32.mrb[44].mxu1 }
0x2118   : > { %v5153_v35 = vmul.f32 0.35355338, %v5149_v34  ;;  %v15945_v36 = vpop.f32.mrb[45].mxu1 }
0x211a   : > { %v5154_v37 = vadd.f32 %v5153_v35, %v17844_v63  ;;  %v14492_v35 = vld [vmem:[%s17629_s24 + $0x78] sm:$0xff] }
0x211c   : > { %v5155_v38 = vsel %vm1424_vm4, %v5154_v37, -inf }
0x211d   : > { %5156 = vmax.xlane.f32.xlu0 %v5155_v38  ;;  %v5679_v38 = vld [vmem:[%s19249_s2 + $0x18] sm:$0xff] }
0x21aa   : > { %v5157_v39 = vpop.xlane.xlu0 %5156 }
0x21ab   : > { %v5158_v40 = vsub.f32 %v5154_v37, %v5157_v39  ;;  %v5678_v37 = vld [vmem:[%s19249_s2 + $0x10] sm:$0xff] }
0x21ac   : > { %v17022_v39 = vpack.c.bf16 %v5679_v38, %v5678_v37 }
0x21ad   : > { %v5159_v41 = vmul.f32 1.442695, %v5158_v40  ;;  %v14483_v40 = vld [vmem:[%s17624_s19 + $0x1] ss:$0 sm:$0xff] }
0x21af   : > { %17429 = vpow2.f32 %v5159_v41  ;;  %v14506_v41 = vld [vmem:[%s19249_s2 + $0x80] sm:$0xff] }
0x21b9   : > { %v17430_v42 = vpop.eup %17429 }
0x21ba   : > { %v5161_v43 = vsel %vm1424_vm4, %v17430_v42, 0.0 }
0x21bb   : > { %5162 = vadd.xlane.f32.xlu1 %v5161_v43 }
0x2248   : > { %v5163_v45 = vpop.xlane.xlu1 %5162 }
0x2249   : > { %17431 = vrcp.f32 %v5163_v45 }
0x2253   : > { %v17432_v46 = vpop.eup %17431 }
0x2254   : > { %v5165_v28 = vmul.f32 %v17432_v46, %v17430_v42  ;;  %v14507_v42 = vld [vmem:[%s19249_s2 + $0x88] sm:$0xff]  ;;  %v14513_v46 = vld [vmem:[%s19249_s2 + $0x100] sm:$0xff] }
0x2256   : > { %15949 = vmatmul.mubr.msk.f32.vlgmr.msra.gmra.mrb[46].mxu1 %vm1424_vm4, %v5165_v28  ;;  %v14514_v28 = vld [vmem:[%s19249_s2 + $0x108] sm:$0xff] }
0x2257   : > { %15964 = vmatprep.mubr.msk.f32.mxu1 %vm17563_vm0, %v17564_v6 }
0x2329   : > { %v5235_v47 = vpop.f32.mrb[46].mxu1 }
0x232a   : > { %v15950_v48 = vpop.f32.mrb[47].mxu1  ;;  %15954 = vmatmul.mubr.msk.f32.vlgmr.msra.gmra.mrb[52].mxu0 %vm1424_vm4, %v5235_v47  ;;  %v17025_v47 = vpack.c.bf16 %v14507_v42, %v14506_v41  ;;  %v14530_v42 = vld [vmem:[%s19249_s2 + $0xa0] sm:$0xff] }
0x232b   : > { %15983 = vmatprep.mubr.msk.f32.mxu0 %vm17563_vm0, %v17564_v6  ;;  %17005 = vmatpush3.bf16.msra.mxu0 %v17004_v10 }
0x232c   : > { %17006 = vmatprep.subr.bf16.mxu0 %v17562_v3 }
0x232f   : > { %17008 = vmatpush3.bf16.msra.mxu0 %v17007_v12 }
0x2330   : > { %17009 = vmatprep.subr.bf16.mxu0 %v17562_v3 }
0x2333   : > { %17011 = vmatpush3.bf16.msra.mxu0 %v17010_v16 }
0x2334   : > { %17012 = vmatprep.subr.bf16.mxu0 %v17562_v3 }
0x23fd   : > { %v5310_v50 = vpop.f32.mrb[52].mxu0 }
0x23fe   : > { %v5314_v52 = vadd.f32 %v5310_v50, %v4827_v23  ;;  %v15955_v53 = vpop.f32.mrb[53].mxu0  ;;  %v5601_v23 = vld [vmem:[%s19248_s1] sm:$0xff]  ;;  %v14508_v50 = vld [vmem:[%s19249_s2 + $0x90] sm:$0xff]  ;;  %s19261_s1 = sld [smem:[#allocation16_spill]] }
0x23ff   : > { %v17016_v29 = vpack.c.bf16 %v5602_v24, %v5601_v23  ;;  %v17031_v53 = vpack.c.bf16 %v14514_v28, %v14513_v46  ;;  %v14539_v23 = vld [vmem:[%s19249_s2 + $0x130] sm:$0xff]  ;;  %v14540_v24 = vld [vmem:[%s19249_s2 + $0x138] sm:$0xff] }
0x2400   : > { %v5323_v54 = vadd.f32 %v14473_v51, %v5314_v52  ;;  %v14509_v51 = vld [vmem:[%s19249_s2 + $0x98] sm:$0xff]  ;;  %v14532_v28 = vld [vmem:[%s19249_s2 + $0xb0] sm:$0xff] }
0x2402   : > { %v5324_v55 = vadd.f32 %v5323_v54, %v18040_v49  ;;  %v14478_v49 = vld [vmem:[%s17619_s14 + $0x20] sm:$0xff] }
0x2403   : > { %v16998_v1 = vpack.c.bf16 %v14479_v0, %v14478_v49  ;;  %v17517_v54 = vld [vmem:[%s17584_s13] sm:$0xff] }
0x2404   : > { %v5329_v56 = vsel %vm1184_vm3, %v5324_v55, 0.0 }
0x2405   : > { %5330 = vadd.xlane.f32.xlu0 %v5329_v56  ;;  %16999 = vmatpush3.bf16.msra.mxu1 %v16998_v1  ;;  %v14511_v1 = vld [vmem:[%s19250_s7 + $0x4] ss:$0 sm:$0xff] }
0x2406   : > { %17000 = vmatprep.subr.bf16.mxu1 %v17562_v3 }
0x2409   : > { %17002 = vmatpush3.bf16.msra.mxu1 %v17001_v5  ;;  %v14523_v5 = vld [vmem:[%s19249_s2 + $0x20] sm:$0xff] }
0x240a   : > { %17015 = vmatprep.subr.bf16.mxu1 %v17562_v3  ;;  %v17037_v15 = vpack.c.bf16 %v14524_v7, %v14523_v5 }
0x241b   : > { %5596 = vperm.xlu0 %17396, %v5594_v57   ;;  %v14515_v57 = vld [vmem:[%s19249_s2 + $0x110] sm:$0xff] }
0x2492   : > { %v5331_v58 = vpop.xlane.xlu0 %5330 }
0x2493   : > { %v5332_v59 = vmul.f32 0.03125, %v5331_v58  ;;  %v14516_v58 = vld [vmem:[%s19249_s2 + $0x118] sm:$0xff] }
0x2495   : > { %v5333_v60 = vsub.f32 %v5324_v55, %v5332_v59  ;;  %v17028_v59 = vpack.c.bf16 %v14509_v51, %v14508_v50 }
0x2497   : > { %v5334_v61 = vmul.f32 %v5333_v60, %v5333_v60 }
0x2499   : > { %v5335_v62 = vsel %vm1184_vm3, %v5334_v61, 0.0 }
0x249a   : > { %5336 = vadd.xlane.f32.xlu1 %v5335_v62  ;;  %v5597_v27 = vpop.permute.xlu0 %5596 }
0x249b   : > { %vm5598_vm7 = vcmp.eq.s32.totalorder %v17779_v14, %v5597_v27  ;;  %v14491_v14 = vld [vmem:[%s17629_s24 + $0x70] sm:$0xff] }
0x249c   : > { %v14502_v34 = vsel %vm5598_vm7, 1.0, %v17564_v6  ;;  %v17013_v36 = vpack.c.bf16 %v14492_v35, %v14491_v14 }
0x249e   : > { %17014 = vmatpush3.bf16.msra.mxu0 %v17013_v36 }
0x249f   : > { %17024 = vmatprep.subr.bf16.mxu0 %v17562_v3 }
0x2527   : > { %v5337_v17 = vpop.xlane.xlu1 %5336 }
0x2528   : > { %v5338_v18 = vmul.f32 0.03125, %v5337_v17  ;;  %v14525_v17 = vld [vmem:[%s19249_s2 + $0x30] sm:$0xff] }
0x252a   : > { %v5339_v19 = vadd.f32 1e-05, %v5338_v18  ;;  %v14526_v18 = vld [vmem:[%s19249_s2 + $0x38] sm:$0xff] }
0x252c   : > { %17433 = vrsqrt.f32 %v5339_v19  ;;  %v17040_v19 = vpack.c.bf16 %v14526_v18, %v14525_v17  ;;  %v14558_v17 = vld [vmem:[%s19249_s2 + $0xc8] sm:$0xff] }
0x2536   : > { %v17434_v20 = vpop.eup %17433 }
0x2537   : > { %v5341_v22 = vmul.f32 %v17434_v20, %v5333_v60  ;;  %v17034_v60 = vpack.c.bf16 %v14516_v58, %v14515_v57  ;;  %v14537_v20 = vld [vmem:[%s19249_s2 + $0x120] sm:$0xff]  ;;  %v14542_v58 = vld [vmem:[%s19250_s7 + $0x9] ss:$0 sm:$0xff] }
0x2539   : > { %v5348_v26 = vmul.f32 %v14476_v21, %v5341_v22  ;;  %v14538_v21 = vld [vmem:[%s19249_s2 + $0x128] sm:$0xff] }
0x253a   : > { %v17049_v22 = vpack.c.bf16 %v14538_v21, %v14537_v20  ;;  %v14560_v20 = vld [vmem:[%s19249_s2 + $0xd8] sm:$0xff] }
0x253b   : > { %v18256_v30 = vadd.f32 %v14477_v25, %v5348_v26  ;;  %v17052_v25 = vpack.c.bf16 %v14540_v24, %v14539_v23  ;;  %v14551_v23 = vld [vmem:[%s19249_s2 + $0x48] sm:$0xff] }
0x253d   : > { %15965 = vmatmul.mubr.msk.f32.vlgmr.msra.gmra.mrb[48].mxu1 %vm1184_vm3, %v18256_v30 }
0x253e   : > { %17017 = vmatpush3.bf16.msra.mxu1 %v17016_v29  ;;  %15990 = vmatprep.mubr.msk.f32.mxu1 %vm17563_vm0, %v17564_v6 }
0x253f   : > { %17018 = vmatprep.subr.bf16.mxu1 %v17562_v3 }
0x2541   : > { %15991 = vmatmul.mubr.msk.f32.vlgmr.msra.gmra.mrb[50].mxu1 %vm1099_vm1, %v14502_v34 }
0x2542   : > { %17020 = vmatpush3.bf16.msra.mxu1 %v17019_v33  ;;  %16001 = vmatprep.mubr.msk.f32.mxu1 %vm17563_vm0, %v17564_v6 }
0x2543   : > { %17021 = vmatprep.subr.bf16.mxu1 %v17562_v3 }
0x2546   : > { %17023 = vmatpush3.bf16.msra.mxu1 %v17022_v39 }
0x2547   : > { %17030 = vmatprep.subr.bf16.mxu1 %v17562_v3 }
0x2610   : > { %v5438_v43 = vpop.f32.mrb[48].mxu1 }
0x2611   : > { %v5439_v44 = vadd.f32 %v14483_v40, %v5438_v43  ;;  %v15966_v45 = vpop.f32.mrb[49].mxu1  ;;  %v14531_v43 = vld [vmem:[%s19249_s2 + $0xa8] sm:$0xff] }
0x2612   : > { %v17043_v45 = vpack.c.bf16 %v14531_v43, %v14530_v42 }
0x2613   : > { %v5442_v48 = vmax.f32 %v5439_v44, 0.0 }
0x2614   : > { %v5672_v52 = vpop.f32.mrb[50].mxu1 }
0x2615   : > { %v18285_v55 = vadd.f32 %v17517_v54, %v5672_v52  ;;  %15984 = vmatmul.mubr.msk.f32.vlgmr.msra.gmra.mrb[54].mxu0 %vm3260_vm6, %v5442_v48  ;;  %v15992_v56 = vpop.f32.mrb[51].mxu1  ;;  %v14535_v52 = vld [vmem:[%s19250_s7 + $0x5] ss:$0 sm:$0xff]  ;;  %v14528_v54 = vld [vmem:[%s19250_s7 + $0x1] ss:$0 sm:$0xff] }
0x2616   : > { %17026 = vmatpush3.bf16.msra.mxu0 %v17025_v47  ;;  %16012 = vmatprep.mubr.msk.f32.mxu0 %vm17563_vm0, %v17564_v6  ;;  %v14533_v47 = vld [vmem:[%s19249_s2 + $0xb8] sm:$0xff] }
0x2617   : > { %16002 = vmatmul.mubr.msk.f32.vlgmr.msra.gmra.mrb[52].mxu1 %vm1184_vm3, %v18285_v55  ;;  %17027 = vmatprep.subr.bf16.mxu0 %v17562_v3  ;;  %v17046_v48 = vpack.c.bf16 %v14533_v47, %v14532_v28 }
0x2618   : > { %17032 = vmatpush3.bf16.msra.mxu1 %v17031_v53  ;;  %16023 = vmatprep.mubr.msk.f32.mxu1 %vm17563_vm0, %v17564_v6 }
0x2619   : > { %17033 = vmatprep.subr.bf16.mxu1 %v17562_v3 }
0x261a   : > { %17029 = vmatpush3.bf16.msra.mxu0 %v17028_v59 }
0x261b   : > { %16026 = vmatprep.subr.mxu0 %v17564_v6 }
0x261c   : > { %17035 = vmatpush3.bf16.msra.mxu1 %v17034_v60 }
0x261d   : > { %16013 = vmatmul.mubr.msk.f32.vlgmr.msra.gmra.mrb[56].mxu0 %vm1184_vm3, %v18285_v55  ;;  %16031 = vmatprep.subr.mxu1 %v17564_v6 }
0x261e   : > { %16028 = vmatprep.mubr.msk.f32.mxu0 %vm17563_vm0, %v17564_v6 }
0x261f   : > { %16024 = vmatmul.mubr.msk.f32.vlgmr.msra.gmra.mrb[54].mxu1 %vm1184_vm3, %v18285_v55 }
0x2620   : > { %16033 = vmatprep.mubr.msk.f32.mxu1 %vm17563_vm0, %v17564_v6 }
0x26e8   : > { %v18308_v61 = vpop.f32.mrb[54].mxu0 }
0x26e9   : > { %v15985_v62 = vpop.f32.mrb[55].mxu0 }
0x26ea   : > { %v5756_v49 = vpop.f32.mrb[52].mxu1 }
0x26eb   : > { %v16003_v0 = vpop.f32.mrb[53].mxu1  ;;  %v5757_v16 = vadd.f32 %v14504_v8, %v5756_v49 }
0x26f0   : > { %v5839_v2 = vpop.f32.mrb[56].mxu0 }
0x26f1   : > { %v5840_v9 = vadd.f32 %v14511_v1, %v5839_v2  ;;  %v16014_v10 = vpop.f32.mrb[57].mxu0 }
0x26f2   : > { %v5922_v11 = vpop.f32.mrb[54].mxu1  ;;  %v14547_v10 = vld [vmem:[%s19251_s10 + $0x8] sm:$0xff] }
0x26f3   : > { %v5923_v12 = vadd.f32 %v14518_v4, %v5922_v11  ;;  %v16025_v13 = vpop.f32.mrb[55].mxu1  ;;  %16027 = vmatpush3.xpose.msk.msra.mxu0 %vm1424_vm4, %v5840_v9 }
0x26f4   : > { %17036 = vmatprep.subr.bf16.mxu0 %v17562_v3 }
0x26f5   : > { %16032 = vmatpush3.msra.mxu1 %v5923_v12 }
0x26f6   : > { %16029 = vmatmul.mubr.msk.f32.vlgmr.msra.gmra.mrb[58].mxu0 %vm1424_vm4, %v5757_v16  ;;  %17042 = vmatprep.subr.bf16.mxu1 %v17562_v3  ;;  %v14557_v16 = vld [vmem:[%s19249_s2 + $0xc0] sm:$0xff] }
0x26f7   : > { %17038 = vmatpush3.bf16.msra.mxu0 %v17037_v15  ;;  %16044 = vmatprep.mubr.msk.f32.mxu0 %vm17563_vm0, %v17564_v6  ;;  %v6088_v15 = vld [vmem:[%s19251_s10] sm:$0xff]  ;;  %v17061_v18 = vpack.c.bf16 %v14558_v17, %v14557_v16  ;;  %v14591_v16 = vld [vmem:[%s19249_s2 + $0x168] sm:$0xff] }
0x26f8   : > { %17039 = vmatprep.subr.bf16.mxu0 %v17562_v3 }
0x26fb   : > { %17041 = vmatpush3.bf16.msra.mxu0 %v17040_v19  ;;  %v14559_v19 = vld [vmem:[%s19249_s2 + $0xd0] sm:$0xff] }
0x26fc   : > { %17048 = vmatprep.subr.bf16.mxu0 %v17562_v3  ;;  %v17064_v21 = vpack.c.bf16 %v14560_v20, %v14559_v19  ;;  %v14593_v19 = vld [vmem:[%s19249_s2 + $0x178] sm:$0xff] }
0x26fe   : > { %16045 = vmatmul.mubr.msk.f32.vlgmr.msra.gmra.mrb[60].mxu0 %vm1184_vm3, %v18285_v55 }
0x26ff   : > { %17050 = vmatpush3.bf16.msra.mxu0 %v17049_v22  ;;  %16066 = vmatprep.mubr.msk.f32.mxu0 %vm17563_vm0, %v17564_v6  ;;  %v14550_v22 = vld [vmem:[%s19249_s2 + $0x40] sm:$0xff] }
0x2700   : > { %17051 = vmatprep.subr.bf16.mxu0 %v17562_v3  ;;  %v17055_v24 = vpack.c.bf16 %v14551_v23, %v14550_v22  ;;  %v14584_v22 = vld [vmem:[%s19249_s2 + $0xe8] sm:$0xff] }
0x2703   : > { %17053 = vmatpush3.bf16.msra.mxu0 %v17052_v25  ;;  %v14552_v25 = vld [vmem:[%s19249_s2 + $0x50] sm:$0xff] }
0x2704   : > { %16079 = vmatprep.subr.mxu0 %v17564_v6 }
0x2706   : > { %16067 = vmatmul.mubr.msk.f32.vlgmr.msra.gmra.mrb[62].mxu0 %vm1184_vm3, %v18285_v55 }
0x2707   : > { %16081 = vmatprep.mubr.msk.f32.mxu0 %vm17563_vm0, %v17564_v6  ;;  %16080 = vmatpush3.msra.mxu0 %v14547_v10 }
0x2708   : > { %17054 = vmatprep.subr.bf16.mxu0 %v17562_v3 }
0x27c9   : > { %v5998_v26 = vpop.f32.mrb[58].mxu0 }
0x27ca   : > { %v6002_v27 = vmul.f32 0.35355338, %v5998_v26  ;;  %v16030_v29 = vpop.f32.mrb[59].mxu0  ;;  %v14553_v26 = vld [vmem:[%s19249_s2 + $0x58] sm:$0xff] }
0x27cc   : > { %v6003_v31 = vadd.f32 %v6002_v27, %v17844_v63 }
0x27ce   : > { %v6004_v32 = vsel %vm1424_vm4, %v6003_v31, -inf }
0x27cf   : > { %6005 = vmax.xlane.f32.xlu1 %v6004_v32  ;;  %v14564_v32 = vld [vmem:[%s19249_s2 + $0x140] sm:$0xff] }
0x27d1   : > { %v6168_v33 = vpop.f32.mrb[60].mxu0 }
0x27d2   : > { %v16046_v34 = vpop.f32.mrb[61].mxu0  ;;  %v6169_v59 = vadd.f32 %v14528_v54, %v6168_v33  ;;  %v14565_v33 = vld [vmem:[%s19249_s2 + $0x148] sm:$0xff] }
0x27d9   : > { %v6334_v14 = vpop.f32.mrb[62].mxu0 }
0x27da   : > { %v16068_v35 = vpop.f32.mrb[63].mxu0  ;;  %v6335_v60 = vadd.f32 %v14542_v58, %v6334_v14 }
0x27db   : > { %v17067_v35 = vpack.c.bf16 %v14565_v33, %v14564_v32 }
0x285c   : > { %v6006_v36 = vpop.xlane.xlu1 %6005 }
0x285d   : > { %v6007_v37 = vsub.f32 %v6003_v31, %v6006_v36  ;;  %v17058_v31 = vpack.c.bf16 %v14553_v26, %v14552_v25  ;;  %v14566_v36 = vld [vmem:[%s19249_s2 + $0x150] sm:$0xff]  ;;  %v14586_v25 = vld [vmem:[%s19249_s2 + $0xf8] sm:$0xff] }
0x285f   : > { %v6008_v38 = vmul.f32 1.442695, %v6007_v37  ;;  %v14567_v37 = vld [vmem:[%s19249_s2 + $0x158] sm:$0xff] }
0x2861   : > { %17435 = vpow2.f32 %v6008_v38  ;;  %v14562_v38 = vld [vmem:[%s19250_s7 + $0x6] ss:$0 sm:$0xff] }
0x286b   : > { %v17436_v39 = vpop.eup %17435 }
0x286c   : > { %v6010_v40 = vsel %vm1424_vm4, %v17436_v39, 0.0 }
0x286d   : > { %6011 = vadd.xlane.f32.xlu1 %v6010_v40 }
0x28fa   : > { %v6012_v41 = vpop.xlane.xlu1 %6011 }
0x28fb   : > { %17437 = vrcp.f32 %v6012_v41 }
0x2905   : > { %v17438_v44 = vpop.eup %17437 }
0x2906   : > { %v6014_v46 = vmul.f32 %v17438_v44, %v17436_v39  ;;  %v17070_v39 = vpack.c.bf16 %v14567_v37, %v14566_v36  ;;  %v14588_v37 = vld [vmem:[%s19250_s7 + $0x7] ss:$0 sm:$0xff] }
0x2908   : > { %16034 = vmatmul.mubr.msk.f32.vlgmr.msra.gmra.mrb[56].mxu1 %vm1424_vm4, %v6014_v46  ;;  %v14555_v46 = vld [vmem:[%s19250_s7 + $0x2] ss:$0 sm:$0xff] }
0x2909   : > { %17044 = vmatpush3.bf16.msra.mxu1 %v17043_v45  ;;  %16055 = vmatprep.mubr.msk.f32.mxu1 %vm17563_vm0, %v17564_v6 }
0x290a   : > { %17045 = vmatprep.subr.bf16.mxu1 %v17562_v3 }
0x290d   : > { %17047 = vmatpush3.bf16.msra.mxu1 %v17046_v48 }
0x290e   : > { %16069 = vmatprep.subr.mxu1 %v17564_v6 }
0x2910   : > { %16056 = vmatmul.mubr.msk.f32.vlgmr.msra.gmra.mrb[58].mxu1 %vm1184_vm3, %v18285_v55 }
0x2911   : > { %16071 = vmatprep.mubr.msk.f32.mxu1 %vm17563_vm0, %v17564_v6 }
0x29db   : > { %v6084_v50 = vpop.f32.mrb[56].mxu1 }
0x29dc   : > { %v16035_v51 = vpop.f32.mrb[57].mxu1 }
0x29e3   : > { %v6251_v53 = vpop.f32.mrb[58].mxu1 }
0x29e4   : > { %v6252_v56 = vadd.f32 %v14535_v52, %v6251_v53  ;;  %v16057_v57 = vpop.f32.mrb[59].mxu1 }
0x29e6   : > { %16070 = vmatpush3.xpose.msk.msra.mxu1 %vm1424_vm4, %v6252_v56 }
0x29e7   : > { %16074 = vmatprep.subr.mxu1 %v17564_v6 }
0x29e9   : > { %16072 = vmatmul.mubr.msk.f32.vlgmr.msra.gmra.mrb[60].mxu1 %vm1424_vm4, %v6169_v59 }
0x29ea   : > { %16075 = vmatpush3.msra.mxu1 %v6335_v60  ;;  %16076 = vmatprep.mubr.msk.f32.mxu1 %vm17563_vm0, %v17564_v6 }
0x29eb   : > { %16084 = vmatprep.subr.mxu1 %v17564_v6 }
0x2abc   : > { %v6410_v62 = vpop.f32.mrb[60].mxu1 }
0x2abd   : > { %v6414_v49 = vmul.f32 0.35355338, %v6410_v62  ;;  %v16073_v0 = vpop.f32.mrb[61].mxu1 }
0x2abf   : > { %v6415_v1 = vadd.f32 %v6414_v49, %v17844_v63 }
0x2ac1   : > { %v6416_v2 = vsel %vm1424_vm4, %v6415_v1, -inf }
0x2ac2   : > { %6417 = vmax.xlane.f32.xlu1 %v6416_v2  ;;  %v14574_v2 = vld [vmem:[%s19251_s10 + $0x10] sm:$0xff] }
0x2b4f   : > { %v6418_v4 = vpop.xlane.xlu1 %6417 }
0x2b50   : > { %v6419_v5 = vsub.f32 %v6415_v1, %v6418_v4 }
0x2b52   : > { %v6420_v7 = vmul.f32 1.442695, %v6419_v5  ;;  %v14576_v5 = vld [vmem:[%s19249_s2 + $0x60] sm:$0xff] }
0x2b54   : > { %17439 = vpow2.f32 %v6420_v7  ;;  %v14577_v7 = vld [vmem:[%s19249_s2 + $0x68] sm:$0xff] }
0x2b5e   : > { %v17440_v8 = vpop.eup %17439 }
0x2b5f   : > { %v6422_v9 = vsel %vm1424_vm4, %v17440_v8, 0.0 }
0x2b60   : > { %6423 = vadd.xlane.f32.xlu1 %v6422_v9  ;;  %v17073_v9 = vpack.c.bf16 %v14577_v7, %v14576_v5 }
0x2bed   : > { %v6424_v11 = vpop.xlane.xlu1 %6423 }
0x2bee   : > { %17441 = vrcp.f32 %v6424_v11  ;;  %v14578_v11 = vld [vmem:[%s19249_s2 + $0x70] sm:$0xff] }
0x2bf8   : > { %v17442_v12 = vpop.eup %17441 }
0x2bf9   : > { %v6426_v13 = vmul.f32 %v17442_v12, %v17440_v8  ;;  %v14579_v12 = vld [vmem:[%s19249_s2 + $0x78] sm:$0xff] }
0x2bfb   : > { %16077 = vmatmul.mubr.msk.f32.vlgmr.msra.gmra.mrb[62].mxu1 %vm1424_vm4, %v6426_v13  ;;  %v17076_v13 = vpack.c.bf16 %v14579_v12, %v14578_v11  ;;  %v14499_v12 = vld [vmem:[%s17644_s12 + $0x3] ss:$0 sm:$0xff] }
0x2bfc   : > { %16085 = vmatpush3.msra.mxu1 %v6088_v15  ;;  %16086 = vmatprep.mubr.msk.f32.mxu1 %vm17563_vm0, %v17564_v6  ;;  %v14590_v15 = vld [vmem:[%s19249_s2 + $0x160] sm:$0xff] }
0x2bfd   : > { %17060 = vmatprep.subr.bf16.mxu1 %v17562_v3  ;;  %v17085_v17 = vpack.c.bf16 %v14591_v16, %v14590_v15 }
0x2bff   : > { %16087 = vmatmul.mubr.msk.f32.vlgmr.msra.gmra.mrb[64].mxu1 %vm1424_vm4, %v6084_v50  ;;  %v14569_v50 = vld [vmem:[%s19250_s7 + $0xa] ss:$0 sm:$0xff] }
0x2c00   : > { %17062 = vmatpush3.bf16.msra.mxu1 %v17061_v18  ;;  %16108 = vmatprep.mubr.msk.f32.mxu1 %vm17563_vm0, %v17564_v6  ;;  %v14592_v18 = vld [vmem:[%s19249_s2 + $0x170] sm:$0xff] }
0x2c01   : > { %17063 = vmatprep.subr.bf16.mxu1 %v17562_v3  ;;  %v17088_v20 = vpack.c.bf16 %v14593_v19, %v14592_v18 }
0x2c04   : > { %17065 = vmatpush3.bf16.msra.mxu1 %v17064_v21  ;;  %v14583_v21 = vld [vmem:[%s19249_s2 + $0xe0] sm:$0xff] }
0x2c05   : > { %16122 = vmatprep.subr.mxu1 %v17564_v6  ;;  %v17079_v23 = vpack.c.bf16 %v14584_v22, %v14583_v21  ;;  %v14602_v22 = vld [vmem:[%s19252_s11] ss:$0 sm:$0xff] }
0x2c07   : > { %16109 = vmatmul.mubr.msk.f32.vlgmr.msra.gmra.mrb[66].mxu1 %vm1184_vm3, %v18285_v55 }
0x2c08   : > { %16124 = vmatprep.mubr.msk.f32.mxu1 %vm17563_vm0, %v17564_v6 }
0x2cce   : > { %v6496_v27 = vpop.f32.mrb[62].mxu1 }
0x2ccf   : > { %v16078_v29 = vpop.f32.mrb[63].mxu1  ;;  %16082 = vmatmul.mubr.msk.f32.vlgmr.msra.gmra.mrb[64].mxu0 %vm1424_vm4, %v6496_v27 }
0x2cd0   : > { %17056 = vmatpush3.bf16.msra.mxu0 %v17055_v24  ;;  %16097 = vmatprep.mubr.msk.f32.mxu0 %vm17563_vm0, %v17564_v6  ;;  %v14585_v24 = vld [vmem:[%s19249_s2 + $0xf0] sm:$0xff] }
0x2cd1   : > { %17057 = vmatprep.subr.bf16.mxu0 %v17562_v3  ;;  %v17082_v29 = vpack.c.bf16 %v14586_v25, %v14585_v24 }
0x2cd2   : > { %v6644_v34 = vpop.f32.mrb[64].mxu1 }
0x2cd3   : > { %v16088_v14 = vpop.f32.mrb[65].mxu1 }
0x2cd4   : > { %17059 = vmatpush3.bf16.msra.mxu0 %v17058_v31 }
0x2cd5   : > { %17066 = vmatprep.subr.bf16.mxu0 %v17562_v3 }
0x2cd7   : > { %16098 = vmatmul.mubr.msk.f32.vlgmr.msra.gmra.mrb[66].mxu0 %vm1184_vm3, %v18285_v55 }
0x2cd8   : > { %17068 = vmatpush3.bf16.msra.mxu0 %v17067_v35  ;;  %16119 = vmatprep.mubr.msk.f32.mxu0 %vm17563_vm0, %v17564_v6 }
0x2cd9   : > { %17069 = vmatprep.subr.bf16.mxu0 %v17562_v3 }
0x2cda   : > { %v6810_v40 = vpop.f32.mrb[66].mxu1 }
0x2cdb   : > { %v6811_v41 = vadd.f32 %v14562_v38, %v6810_v40  ;;  %v16110_v42 = vpop.f32.mrb[67].mxu1 }
0x2cdc   : > { %17071 = vmatpush3.bf16.msra.mxu0 %v17070_v39  ;;  %v14581_v39 = vld [vmem:[%s19250_s7 + $0x3] ss:$0 sm:$0xff]  ;;  %v14595_v42 = vld [vmem:[%s19250_s7 + $0xb] ss:$0 sm:$0xff] }
0x2cdd   : > { %16123 = vmatpush3.xpose.msk.msra.mxu1 %vm1424_vm4, %v6811_v41  ;;  %16132 = vmatprep.subr.mxu0 %v17564_v6 }
0x2cde   : > { %16127 = vmatprep.subr.mxu1 %v17564_v6 }
0x2cdf   : > { %16120 = vmatmul.mubr.msk.f32.vlgmr.msra.gmra.mrb[68].mxu0 %vm1184_vm3, %v18285_v55 }
0x2ce0   : > { %16134 = vmatprep.mubr.msk.f32.mxu0 %vm17563_vm0, %v17564_v6  ;;  %16133 = vmatpush3.msra.mxu0 %v14574_v2 }
0x2ce1   : > { %17078 = vmatprep.subr.bf16.mxu0 %v17562_v3 }
0x2da2   : > { %v6571_v43 = vpop.f32.mrb[64].mxu0 }
0x2da3   : > { %v18413_v44 = vadd.f32 %v6644_v34, %v6571_v43  ;;  %v16083_v45 = vpop.f32.mrb[65].mxu0 }
0x2daa   : > { %v6727_v28 = vpop.f32.mrb[66].mxu0 }
0x2dab   : > { %v6728_v47 = vadd.f32 %v14555_v46, %v6727_v28  ;;  %v16099_v48 = vpop.f32.mrb[67].mxu0 }
0x2dad   : > { %16125 = vmatmul.mubr.msk.f32.vlgmr.msra.gmra.mrb[68].mxu1 %vm1424_vm4, %v6728_v47 }
0x2dae   : > { %16129 = vmatprep.mubr.msk.f32.mxu1 %vm17563_vm0, %v17564_v6 }
0x2db2   : > { %v6893_v51 = vpop.f32.mrb[68].mxu0 }
0x2db3   : > { %v6894_v52 = vadd.f32 %v14569_v50, %v6893_v51  ;;  %v16121_v53 = vpop.f32.mrb[69].mxu0 }
0x2db4   : > { %v14494_v53 = vld [vmem:[%s17634_s30 + $0x1] ss:$0 sm:$0xff] }
0x2db5   : > { %16128 = vmatpush3.msra.mxu1 %v6894_v52 }
0x2db6   : > { %17072 = vmatprep.subr.bf16.mxu1 %v17562_v3 }
0x2e80   : > { %v6969_v54 = vpop.f32.mrb[68].mxu1 }
0x2e81   : > { %v6973_v56 = vmul.f32 0.35355338, %v6969_v54  ;;  %v16126_v57 = vpop.f32.mrb[69].mxu1  ;;  %v5530_v54 = vadd.f32 %v14494_v53, %v18308_v61 }
0x2e83   : > { %v6974_v58 = vadd.f32 %v6973_v56, %v17844_v63 }
0x2e85   : > { %v6975_v59 = vsel %vm1424_vm4, %v6974_v58, -inf }
0x2e86   : > { %6976 = vmax.xlane.f32.xlu1 %v6975_v59 }
0x2f13   : > { %v6977_v60 = vpop.xlane.xlu1 %6976 }
0x2f14   : > { %v6978_v62 = vsub.f32 %v6974_v58, %v6977_v60  ;;  %v5533_v58 = vadd.f32 %v5530_v54, %v18256_v30  ;;  %v14600_v30 = vld [vmem:[%s19251_s10 + $0x18] sm:$0xff]  ;;  %v7662_v54 = vld [vmem:[%s19253_s15 + $0x10] sm:$0xff] }
0x2f16   : > { %v6979_v49 = vmul.f32 1.442695, %v6978_v62  ;;  %v5538_v59 = vsel %vm1184_vm3, %v5533_v58, 0.0 }
0x2f18   : > { %17443 = vpow2.f32 %v6979_v49 }
0x2f22   : > { %v17444_v0 = vpop.eup %17443 }
0x2f23   : > { %v6981_v1 = vsel %vm1424_vm4, %v17444_v0, 0.0 }
0x2f24   : > { %6982 = vadd.xlane.f32.xlu1 %v6981_v1 }
0x2fb1   : > { %v6983_v4 = vpop.xlane.xlu1 %6982 }
0x2fb2   : > { %17445 = vrcp.f32 %v6983_v4 }
0x2fbc   : > { %v17446_v8 = vpop.eup %17445 }
0x2fbd   : > { %v6985_v10 = vmul.f32 %v17446_v8, %v17444_v0 }
0x2fbf   : > { %16130 = vmatmul.mubr.msk.f32.vlgmr.msra.gmra.mrb[70].mxu1 %vm1424_vm4, %v6985_v10  ;;  %v14498_v10 = vld [vmem:[%s19245_s6 + $0x3] ss:$0 sm:$0xff]  ;;  %s19264_s6 = sld [smem:[#allocation19_spill]] }
0x2fc0   : > { %17074 = vmatpush3.bf16.msra.mxu1 %v17073_v9  ;;  %16145 = vmatprep.mubr.msk.f32.mxu1 %vm17563_vm0, %v17564_v6 }
0x2fc1   : > { %17075 = vmatprep.subr.bf16.mxu1 %v17562_v3 }
0x2fc4   : > { %17077 = vmatpush3.bf16.msra.mxu1 %v17076_v13 }
0x2fc5   : > { %17084 = vmatprep.subr.bf16.mxu1 %v17562_v3 }
0x2fc7   : > { %16146 = vmatmul.mubr.msk.f32.vlgmr.msra.gmra.mrb[72].mxu1 %vm1184_vm3, %v18285_v55 }
0x2fc8   : > { %17086 = vmatpush3.bf16.msra.mxu1 %v17085_v17  ;;  %16167 = vmatprep.mubr.msk.f32.mxu1 %vm17563_vm0, %v17564_v6 }
0x2fc9   : > { %17087 = vmatprep.subr.bf16.mxu1 %v17562_v3 }
0x2fcc   : > { %17089 = vmatpush3.bf16.msra.mxu1 %v17088_v20 }
0x2fcd   : > { %16180 = vmatprep.subr.mxu1 %v17564_v6 }
0x2fcf   : > { %16168 = vmatmul.mubr.msk.f32.vlgmr.msra.gmra.mrb[74].mxu1 %vm1184_vm3, %v18285_v55 }
0x2fd0   : > { %16182 = vmatprep.mubr.msk.f32.mxu1 %vm17563_vm0, %v17564_v6  ;;  %16181 = vmatpush3.msra.mxu1 %v14600_v30 }
0x2fd1   : > { %17096 = vmatprep.subr.bf16.mxu1 %v17562_v3 }
0x3092   : > { %v7055_v26 = vpop.f32.mrb[70].mxu1 }
0x3093   : > { %v16131_v27 = vpop.f32.mrb[71].mxu1  ;;  %16135 = vmatmul.mubr.msk.f32.vlgmr.msra.gmra.mrb[70].mxu0 %vm1424_vm4, %v7055_v26 }
0x3094   : > { %17080 = vmatpush3.bf16.msra.mxu0 %v17079_v23  ;;  %16156 = vmatprep.mubr.msk.f32.mxu0 %vm17563_vm0, %v17564_v6 }
0x3095   : > { %17081 = vmatprep.subr.bf16.mxu0 %v17562_v3 }
0x3098   : > { %17083 = vmatpush3.bf16.msra.mxu0 %v17082_v29 }
0x3099   : > { %16170 = vmatprep.subr.mxu0 %v17564_v6 }
0x309a   : > { %v7214_v31 = vpop.f32.mrb[72].mxu1 }
0x309b   : > { %v16147_v32 = vpop.f32.mrb[73].mxu1  ;;  %16157 = vmatmul.mubr.msk.f32.vlgmr.msra.gmra.mrb[72].mxu0 %vm1184_vm3, %v18285_v55  ;;  %v7215_v43 = vadd.f32 %v14581_v39, %v7214_v31 }
0x309c   : > { %16172 = vmatprep.mubr.msk.f32.mxu0 %vm17563_vm0, %v17564_v6 }
0x30a2   : > { %v7380_v33 = vpop.f32.mrb[74].mxu1 }
0x30a3   : > { %v16169_v34 = vpop.f32.mrb[75].mxu1  ;;  %v7381_v45 = vadd.f32 %v14595_v42, %v7380_v33  ;;  %v14607_v33 = vld [vmem:[%s19253_s15 + $0x80] sm:$0xff] }
0x30a4   : > { %v14608_v34 = vld [vmem:[%s19253_s15 + $0x88] sm:$0xff] }
0x3166   : > { %v7130_v14 = vpop.f32.mrb[70].mxu0 }
0x3167   : > { %v18463_v35 = vadd.f32 %v7130_v14, %v18413_v44  ;;  %v16136_v36 = vpop.f32.mrb[71].mxu0  ;;  %v17097_v14 = vpack.c.bf16 %v14608_v34, %v14607_v33  ;;  %v14619_v33 = vld [vmem:[%s19258_s28 + $0x8] ss:$0 sm:$0xff] }
0x3168   : > { %v14610_v36 = vld [vmem:[%s19253_s15 + $0x98] sm:$0xff] }
0x316e   : > { %v7297_v38 = vpop.f32.mrb[72].mxu0 }
0x316f   : > { %v7298_v40 = vadd.f32 %v14588_v37, %v7297_v38  ;;  %v16158_v41 = vpop.f32.mrb[73].mxu0 }
0x3171   : > { %16171 = vmatpush3.xpose.msk.msra.mxu0 %vm1424_vm4, %v7298_v40 }
0x3172   : > { %16175 = vmatprep.subr.mxu0 %v17564_v6 }
0x3174   : > { %16173 = vmatmul.mubr.msk.f32.vlgmr.msra.gmra.mrb[74].mxu0 %vm1424_vm4, %v7215_v43 }
0x3175   : > { %16176 = vmatpush3.msra.mxu0 %v7381_v45  ;;  %16177 = vmatprep.mubr.msk.f32.mxu0 %vm17563_vm0, %v17564_v6 }
0x3176   : > { %17090 = vmatprep.subr.bf16.mxu0 %v17562_v3 }
0x3247   : > { %v7456_v44 = vpop.f32.mrb[74].mxu0 }
0x3248   : > { %v7460_v46 = vmul.f32 0.35355338, %v7456_v44  ;;  %v16174_v28 = vpop.f32.mrb[75].mxu0 }
0x324a   : > { %v7461_v47 = vadd.f32 %v7460_v46, %v17844_v63  ;;  %v14500_v46 = vld [vmem:[%s19254_s16] ss:$0 sm:$0xff]  ;;  %s19259_s16 = sld [smem:[#allocation14_spill]] }
0x324c   : > { %v7462_v48 = vsel %vm1424_vm4, %v7461_v47, -inf }
0x324d   : > { %7463 = vmax.xlane.f32.xlu0 %v7462_v48 }
0x32da   : > { %v7464_v50 = vpop.xlane.xlu0 %7463 }
0x32db   : > { %v7465_v51 = vsub.f32 %v7461_v47, %v7464_v50  ;;  %v14501_v47 = vld [vmem:[%s19255_s18] ss:$0 sm:$0xff]  ;;  %s19260_s18 = sld [smem:[#allocation15_spill]] }
0x32dd   : > { %v7466_v52 = vmul.f32 1.442695, %v7465_v51  ;;  %v7660_v51 = vld [vmem:[%s19253_s15] sm:$0xff] }
0x32df   : > { %17447 = vpow2.f32 %v7466_v52  ;;  %v7661_v52 = vld [vmem:[%s19253_s15 + $0x8] sm:$0xff] }
0x32e0   : > { %v17091_v53 = vpack.c.bf16 %v7661_v52, %v7660_v51  ;;  %v14632_v51 = vld [vmem:[%s19253_s15 + $0xa8] sm:$0xff] }
0x32e9   : > { %v17448_v56 = vpop.eup %17447 }
0x32ea   : > { %v7468_v57 = vsel %vm1424_vm4, %v17448_v56, 0.0 }
0x32eb   : > { %7469 = vadd.xlane.f32.xlu1 %v7468_v57 }
0x32ef   : > { %5539 = vadd.xlane.f32.xlu1 %v5538_v59 }
0x3378   : > { %v7470_v60 = vpop.xlane.xlu1 %7469 }
0x3379   : > { %17449 = vrcp.f32 %v7470_v60 }
0x337c   : > { %v5540_v62 = vpop.xlane.xlu1 %5539 }
0x337d   : > { %v5541_v49 = vmul.f32 0.03125, %v5540_v62 }
0x337f   : > { %v5542_v0 = vsub.f32 %v5533_v58, %v5541_v49  ;;  %v14603_v49 = vld [vmem:[%s19256_s23] ss:$0 sm:$0xff] }
0x3381   : > { %v5543_v1 = vmul.f32 %v5542_v0, %v5542_v0 }
0x3383   : > { %v17450_v2 = vpop.eup %17449  ;;  %v5544_v61 = vsel %vm1184_vm3, %v5543_v1, 0.0  ;;  %v14614_v1 = vld [vmem:[%s19253_s15 + $0x100] sm:$0xff] }
0x3384   : > { %v7472_v4 = vmul.f32 %v17450_v2, %v17448_v56  ;;  %5545 = vadd.xlane.f32.xlu1 %v5544_v61  ;;  %v7663_v56 = vld [vmem:[%s19253_s15 + $0x18] sm:$0xff]  ;;  %v14615_v2 = vld [vmem:[%s19253_s15 + $0x108] sm:$0xff]  ;;  %v14604_v61 = vld [vmem:[%s19257_s26] ss:$0 sm:$0xff] }
0x3385   : > { %v17094_v57 = vpack.c.bf16 %v7663_v56, %v7662_v54  ;;  %v17103_v30 = vpack.c.bf16 %v14615_v2, %v14614_v1  ;;  %v14633_v56 = vld [vmem:[%s19253_s15 + $0xb0] sm:$0xff] }
0x3386   : > { %16178 = vmatmul.mubr.msk.f32.vlgmr.msra.gmra.mrb[76].mxu0 %vm1424_vm4, %v7472_v4 }
0x3387   : > { %16193 = vmatprep.mubr.msk.f32.mxu0 %vm17563_vm0, %v17564_v6  ;;  %17092 = vmatpush3.bf16.msra.mxu0 %v17091_v53 }
0x3388   : > { %17093 = vmatprep.subr.bf16.mxu0 %v17562_v3 }
0x338b   : > { %17095 = vmatpush3.bf16.msra.mxu0 %v17094_v57  ;;  %v14634_v57 = vld [vmem:[%s19253_s15 + $0xb8] sm:$0xff] }
0x338c   : > { %17102 = vmatprep.subr.bf16.mxu0 %v17562_v3 }
0x3411   : > { %v5546_v5 = vpop.xlane.xlu1 %5545 }
0x3412   : > { %v5547_v7 = vmul.f32 0.03125, %v5546_v5 }
0x3414   : > { %v5548_v8 = vadd.f32 1e-05, %v5547_v7  ;;  %v14616_v7 = vld [vmem:[%s19253_s15 + $0x110] sm:$0xff] }
0x3416   : > { %17451 = vrsqrt.f32 %v5548_v8  ;;  %v14617_v8 = vld [vmem:[%s19253_s15 + $0x118] sm:$0xff] }
0x3420   : > { %v17452_v9 = vpop.eup %17451 }
0x3421   : > { %v5550_v11 = vmul.f32 %v17452_v9, %v5542_v0  ;;  %v17106_v9 = vpack.c.bf16 %v14617_v8, %v14616_v7 }
0x3423   : > { %v5557_v13 = vmul.f32 %v14498_v10, %v5550_v11  ;;  %v14624_v10 = vld [vmem:[%s19253_s15 + $0x20] sm:$0xff]  ;;  %v14625_v11 = vld [vmem:[%s19253_s15 + $0x28] sm:$0xff] }
0x3425   : > { %v5564_v15 = vadd.f32 %v14499_v12, %v5557_v13  ;;  %v17109_v12 = vpack.c.bf16 %v14625_v11, %v14624_v10  ;;  %v14626_v13 = vld [vmem:[%s19253_s15 + $0x30] sm:$0xff] }
0x3427   : > { %v5567_v16 = vsel %vm1184_vm3, %v5564_v15, 0.0 }
0x3428   : > { %5568 = vadd.xlane.f32.xlu1 %v5567_v16 }
0x3459   : > { %v7542_v17 = vpop.f32.mrb[76].mxu0 }
0x345a   : > { %v16179_v18 = vpop.f32.mrb[77].mxu0  ;;  %16183 = vmatmul.mubr.msk.f32.vlgmr.msra.gmra.mrb[76].mxu1 %vm1424_vm4, %v7542_v17  ;;  %v14638_v17 = vld [vmem:[%s19253_s15 + $0x120] sm:$0xff] }
0x345b   : > { %16204 = vmatprep.mubr.msk.f32.mxu1 %vm17563_vm0, %v17564_v6  ;;  %17098 = vmatpush3.bf16.msra.mxu1 %v17097_v14  ;;  %v14639_v18 = vld [vmem:[%s19253_s15 + $0x128] sm:$0xff] }
0x345c   : > { %17099 = vmatprep.subr.bf16.mxu1 %v17562_v3 }
0x34b5   : > { %v5569_v19 = vpop.xlane.xlu1 %5568 }
0x34b6   : > { %v5570_v20 = vmul.f32 0.03125, %v5569_v19  ;;  %v17121_v19 = vpack.c.bf16 %v14639_v18, %v14638_v17  ;;  %v14648_v17 = vld [vmem:[%s19259_s16 + $0x8] sm:$0xff] }
0x34b8   : > { %v5571_v25 = vsub.f32 %v5564_v15, %v5570_v20  ;;  %v14627_v15 = vld [vmem:[%s19253_s15 + $0x38] sm:$0xff]  ;;  %v14640_v20 = vld [vmem:[%s19253_s15 + $0x130] sm:$0xff] }
0x34b9   : > { %v17112_v16 = vpack.c.bf16 %v14627_v15, %v14626_v13 }
0x34ba   : > { %v5572_v31 = vmul.f32 %v5571_v25, %v5571_v25 }
0x34bc   : > { %v5573_v32 = vsel %vm1184_vm3, %v5572_v31, 0.0 }
0x352d   : > { %v7617_v21 = vpop.f32.mrb[76].mxu1 }
0x352e   : > { %v7621_v23 = vadd.f32 %v7617_v21, %v18463_v35  ;;  %v16184_v24 = vpop.f32.mrb[77].mxu1  ;;  %v14609_v35 = vld [vmem:[%s19253_s15 + $0x90] sm:$0xff]  ;;  %v14641_v21 = vld [vmem:[%s19253_s15 + $0x138] sm:$0xff] }
0x352f   : > { %v17100_v37 = vpack.c.bf16 %v14610_v36, %v14609_v35 }
0x3530   : > { %v7629_v26 = vadd.f32 %v14602_v22, %v7621_v23  ;;  %v17124_v22 = vpack.c.bf16 %v14641_v21, %v14640_v20  ;;  %v14612_v23 = vld [vmem:[%s19258_s28 + $0x4] ss:$0 sm:$0xff] }
0x3531   : > { %17101 = vmatpush3.bf16.msra.mxu1 %v17100_v37  ;;  %v8074_v21 = vld [vmem:[%s19259_s16] sm:$0xff] }
0x3532   : > { %v7630_v27 = vadd.f32 %v7629_v26, %v18285_v55  ;;  %16218 = vmatprep.subr.mxu1 %v17564_v6 }
0x3534   : > { %v7633_v29 = vsel %vm1184_vm3, %v7630_v27, 0.0 }
0x3535   : > { %7634 = vadd.xlane.f32.xlu1 %v7633_v29 }
0x3539   : > { %5574 = vadd.xlane.f32.xlu1 %v5573_v32 }
0x35c2   : > { %v7635_v55 = vpop.xlane.xlu1 %7634 }
0x35c3   : > { %v7636_v38 = vmul.f32 0.03125, %v7635_v55 }
0x35c5   : > { %v7637_v39 = vsub.f32 %v7630_v27, %v7636_v38  ;;  %v14605_v27 = vld [vmem:[%s19258_s28] ss:$0 sm:$0xff] }
0x35c6   : > { %v5575_v40 = vpop.xlane.xlu1 %5574 }
0x35c7   : > { %v5576_v41 = vmul.f32 0.03125, %v5575_v40  ;;  %v7638_v42 = vmul.f32 %v7637_v39, %v7637_v39 }
0x35c9   : > { %v5577_v43 = vadd.f32 1e-05, %v5576_v41  ;;  %v7639_v45 = vsel %vm1184_vm3, %v7638_v42, 0.0 }
0x35ca   : > { %7640 = vadd.xlane.f32.xlu1 %v7639_v45 }
0x35cb   : > { %17453 = vrsqrt.f32 %v5577_v43 }
0x35d5   : > { %v17454_v44 = vpop.eup %17453 }
0x35d6   : > { %v5579_v28 = vmul.f32 %v17454_v44, %v5571_v25 }
0x35d8   : > { %v5586_v48 = vmul.f32 %v14500_v46, %v5579_v28 }
0x35da   : > { %v18507_v50 = vadd.f32 %v14501_v47, %v5586_v48  ;;  %v14631_v48 = vld [vmem:[%s19253_s15 + $0xa0] sm:$0xff] }
0x35db   : > { %v17115_v53 = vpack.c.bf16 %v14632_v51, %v14631_v48 }
0x35dc   : > { %16205 = vmatmul.mubr.msk.f32.vlgmr.msra.gmra.mrb[78].mxu1 %vm1184_vm3, %v18507_v50 }
0x35dd   : > { %16220 = vmatprep.mubr.msk.f32.mxu1 %vm17563_vm0, %v17564_v6 }
0x3657   : > { %v7641_v58 = vpop.xlane.xlu1 %7640 }
0x3658   : > { %v7642_v59 = vmul.f32 0.03125, %v7641_v58  ;;  %v17118_v58 = vpack.c.bf16 %v14634_v57, %v14633_v56  ;;  %v14670_v57 = vld [vmem:[%s19258_s28 + $0xa] ss:$0 sm:$0xff] }
0x365a   : > { %v7643_v60 = vadd.f32 1e-05, %v7642_v59 }
0x365c   : > { %17455 = vrsqrt.f32 %v7643_v60 }
0x3666   : > { %v17456_v62 = vpop.eup %17455 }
0x3667   : > { %v7645_v0 = vmul.f32 %v17456_v62, %v7637_v39  ;;  %v14636_v62 = vld [vmem:[%s19258_s28 + $0x5] ss:$0 sm:$0xff] }
0x3669   : > { %v7652_v4 = vmul.f32 %v14603_v49, %v7645_v0  ;;  %v14629_v0 = vld [vmem:[%s19258_s28 + $0x1] ss:$0 sm:$0xff] }
0x366b   : > { %v18523_v5 = vadd.f32 %v14604_v61, %v7652_v4  ;;  %v14643_v61 = vld [vmem:[%s19258_s28 + $0x9] ss:$0 sm:$0xff] }
0x366d   : > { %16194 = vmatmul.mubr.msk.f32.vlgmr.msra.gmra.mrb[78].mxu0 %vm1184_vm3, %v18523_v5 }
0x366e   : > { %17104 = vmatpush3.bf16.msra.mxu0 %v17103_v30  ;;  %16215 = vmatprep.mubr.msk.f32.mxu0 %vm17563_vm0, %v17564_v6 }
0x366f   : > { %17105 = vmatprep.subr.bf16.mxu0 %v17562_v3 }
0x3672   : > { %17107 = vmatpush3.bf16.msra.mxu0 %v17106_v9 }
0x3673   : > { %17108 = vmatprep.subr.bf16.mxu0 %v17562_v3 }
0x3675   : > { %16216 = vmatmul.mubr.msk.f32.vlgmr.msra.gmra.mrb[80].mxu0 %vm1184_vm3, %v18507_v50 }
0x3676   : > { %17110 = vmatpush3.bf16.msra.mxu0 %v17109_v12  ;;  %16236 = vmatprep.mubr.msk.f32.mxu0 %vm17563_vm0, %v17564_v6 }
0x3677   : > { %17111 = vmatprep.subr.bf16.mxu0 %v17562_v3 }
0x367a   : > { %17113 = vmatpush3.bf16.msra.mxu0 %v17112_v16 }
0x367b   : > { %17120 = vmatprep.subr.bf16.mxu0 %v17562_v3 }
0x367d   : > { %16237 = vmatmul.mubr.msk.f32.vlgmr.msra.gmra.mrb[82].mxu0 %vm1184_vm3, %v18523_v5 }
0x367e   : > { %17122 = vmatpush3.bf16.msra.mxu0 %v17121_v19  ;;  %16258 = vmatprep.mubr.msk.f32.mxu0 %vm17563_vm0, %v17564_v6 }
0x367f   : > { %17123 = vmatprep.subr.bf16.mxu0 %v17562_v3 }
0x3682   : > { %17125 = vmatpush3.bf16.msra.mxu0 %v17124_v22  ;;  %v14658_v22 = vld [vmem:[%s19253_s15 + $0xc0] sm:$0xff] }
0x3683   : > { %16271 = vmatprep.subr.mxu0 %v17564_v6 }
0x3685   : > { %16259 = vmatmul.mubr.msk.f32.vlgmr.msra.gmra.mrb[84].mxu0 %vm1184_vm3, %v18507_v50 }
0x3686   : > { %16273 = vmatprep.mubr.msk.f32.mxu0 %vm17563_vm0, %v17564_v6  ;;  %16272 = vmatpush3.msra.mxu0 %v14648_v17  ;;  %v14680_v17 = vld [vmem:[%s19253_s15 + $0x78] sm:$0xff] }
0x3687   : > { %17126 = vmatprep.subr.bf16.mxu0 %v17562_v3 }
0x36af   : > { %v7826_v24 = vpop.f32.mrb[78].mxu1 }
0x36b0   : > { %v7827_v25 = vadd.f32 %v14612_v23, %v7826_v24  ;;  %v16206_v26 = vpop.f32.mrb[79].mxu1  ;;  %v14659_v23 = vld [vmem:[%s19253_s15 + $0xc8] sm:$0xff] }
0x36b1   : > { %v17133_v24 = vpack.c.bf16 %v14659_v23, %v14658_v22  ;;  %v14661_v26 = vld [vmem:[%s19253_s15 + $0xd8] sm:$0xff]  ;;  %v14693_v22 = vld [vmem:[%s19253_s15 + $0x170] sm:$0xff] }
0x36b2   : > { %16219 = vmatpush3.xpose.msk.msra.mxu1 %vm1424_vm4, %v7827_v25  ;;  %v14660_v25 = vld [vmem:[%s19253_s15 + $0xd0] sm:$0xff]  ;;  %v14694_v23 = vld [vmem:[%s19253_s15 + $0x178] sm:$0xff] }
0x36b3   : > { %16223 = vmatprep.subr.mxu1 %v17564_v6 }
0x3740   : > { %v7740_v29 = vpop.f32.mrb[78].mxu0 }
0x3741   : > { %v7741_v31 = vadd.f32 %v14605_v27, %v7740_v29  ;;  %v16195_v32 = vpop.f32.mrb[79].mxu0  ;;  %v17136_v27 = vpack.c.bf16 %v14661_v26, %v14660_v25  ;;  %v14651_v29 = vld [vmem:[%s19253_s15 + $0x40] sm:$0xff]  ;;  %v14685_v26 = vld [vmem:[%s19253_s15 + $0xe8] sm:$0xff] }
0x3742   : > { %v14684_v25 = vld [vmem:[%s19253_s15 + $0xe0] sm:$0xff] }
0x3743   : > { %16221 = vmatmul.mubr.msk.f32.vlgmr.msra.gmra.mrb[80].mxu1 %vm1424_vm4, %v7741_v31  ;;  %v14652_v31 = vld [vmem:[%s19253_s15 + $0x48] sm:$0xff] }
0x3744   : > { %16225 = vmatprep.mubr.msk.f32.mxu1 %vm17563_vm0, %v17564_v6  ;;  %v17127_v32 = vpack.c.bf16 %v14652_v31, %v14651_v29  ;;  %v14686_v29 = vld [vmem:[%s19253_s15 + $0xf0] sm:$0xff]  ;;  %v14687_v31 = vld [vmem:[%s19253_s15 + $0xf8] sm:$0xff] }
0x3748   : > { %v7909_v34 = vpop.f32.mrb[80].mxu0 }
0x3749   : > { %v7910_v14 = vadd.f32 %v14619_v33, %v7909_v34  ;;  %v16217_v35 = vpop.f32.mrb[81].mxu0  ;;  %v14653_v33 = vld [vmem:[%s19253_s15 + $0x50] sm:$0xff]  ;;  %v14654_v34 = vld [vmem:[%s19253_s15 + $0x58] sm:$0xff] }
0x374b   : > { %16224 = vmatpush3.msra.mxu1 %v7910_v14 }
0x374c   : > { %17114 = vmatprep.subr.bf16.mxu1 %v17562_v3 }
0x3750   : > { %v8154_v36 = vpop.f32.mrb[82].mxu0 }
0x3751   : > { %v16238_v37 = vpop.f32.mrb[83].mxu0  ;;  %v8155_v4 = vadd.f32 %v14629_v0, %v8154_v36  ;;  %v17130_v36 = vpack.c.bf16 %v14654_v34, %v14653_v33  ;;  %v17154_v34 = vpack.c.bf16 %v14687_v31, %v14686_v29  ;;  %v9735_v29 = vld [vmem:[%s19262_s3 + $0x28] sm:$0xff] }
0x3752   : > { %v14665_v37 = vld [vmem:[%s19253_s15 + $0x140] sm:$0xff] }
0x3758   : > { %v8320_v55 = vpop.f32.mrb[84].mxu0 }
0x3759   : > { %v16260_v38 = vpop.f32.mrb[85].mxu0  ;;  %v8321_v30 = vadd.f32 %v14643_v61, %v8320_v55  ;;  %v14666_v55 = vld [vmem:[%s19253_s15 + $0x148] sm:$0xff] }
0x3816   : > { %v7985_v39 = vpop.f32.mrb[80].mxu1 }
0x3817   : > { %v7989_v40 = vmul.f32 0.35355338, %v7985_v39  ;;  %v16222_v41 = vpop.f32.mrb[81].mxu1 }
0x3818   : > { %v14667_v41 = vld [vmem:[%s19253_s15 + $0x150] sm:$0xff] }
0x3819   : > { %v7990_v42 = vsel %vm1424_vm4, %v7989_v40, -inf }
0x381a   : > { %7991 = vmax.xlane.f32.xlu0 %v7990_v42  ;;  %v14668_v42 = vld [vmem:[%s19253_s15 + $0x158] sm:$0xff] }
0x38a7   : > { %v7992_v43 = vpop.xlane.xlu0 %7991 }
0x38a8   : > { %v7993_v45 = vsub.f32 %v7989_v40, %v7992_v43  ;;  %v17139_v40 = vpack.c.bf16 %v14666_v55, %v14665_v37  ;;  %v14663_v43 = vld [vmem:[%s19258_s28 + $0x6] ss:$0 sm:$0xff] }
0x38aa   : > { %v7994_v44 = vmul.f32 1.442695, %v7993_v45  ;;  %v17142_v45 = vpack.c.bf16 %v14668_v42, %v14667_v41  ;;  %v14682_v42 = vld [vmem:[%s19258_s28 + $0x3] ss:$0 sm:$0xff] }
0x38ac   : > { %17457 = vpow2.f32 %v7994_v44 }
0x38b6   : > { %v17458_v46 = vpop.eup %17457 }
0x38b7   : > { %v7996_v28 = vsel %vm1424_vm4, %v17458_v46, 0.0 }
0x38b8   : > { %7997 = vadd.xlane.f32.xlu1 %v7996_v28 }
0x3945   : > { %v7998_v47 = vpop.xlane.xlu1 %7997 }
0x3946   : > { %17459 = vrcp.f32 %v7998_v47 }
0x3950   : > { %v17460_v52 = vpop.eup %17459 }
0x3951   : > { %v8000_v54 = vmul.f32 %v17460_v52, %v17458_v46  ;;  %v14656_v52 = vld [vmem:[%s19258_s28 + $0x2] ss:$0 sm:$0xff] }
0x3953   : > { %16226 = vmatmul.mubr.msk.f32.vlgmr.msra.gmra.mrb[82].mxu1 %vm1424_vm4, %v8000_v54 }
0x3954   : > { %17116 = vmatpush3.bf16.msra.mxu1 %v17115_v53  ;;  %16247 = vmatprep.mubr.msk.f32.mxu1 %vm17563_vm0, %v17564_v6 }
0x3955   : > { %17117 = vmatprep.subr.bf16.mxu1 %v17562_v3 }
0x3958   : > { %17119 = vmatpush3.bf16.msra.mxu1 %v17118_v58 }
0x3959   : > { %16261 = vmatprep.subr.mxu1 %v17564_v6 }
0x395b   : > { %16248 = vmatmul.mubr.msk.f32.vlgmr.msra.gmra.mrb[84].mxu1 %vm1184_vm3, %v18507_v50 }
0x395c   : > { %16263 = vmatprep.mubr.msk.f32.mxu1 %vm17563_vm0, %v17564_v6 }
0x3a26   : > { %v8070_v59 = vpop.f32.mrb[82].mxu1 }
0x3a27   : > { %v16227_v60 = vpop.f32.mrb[83].mxu1 }
0x3a2e   : > { %v8237_v49 = vpop.f32.mrb[84].mxu1 }
0x3a2f   : > { %v8238_v1 = vadd.f32 %v14636_v62, %v8237_v49  ;;  %v16249_v2 = vpop.f32.mrb[85].mxu1 }
0x3a31   : > { %16262 = vmatpush3.xpose.msk.msra.mxu1 %vm1424_vm4, %v8238_v1 }
0x3a32   : > { %16266 = vmatprep.subr.mxu1 %v17564_v6 }
0x3a34   : > { %16264 = vmatmul.mubr.msk.f32.vlgmr.msra.gmra.mrb[86].mxu1 %vm1424_vm4, %v8155_v4 }
0x3a35   : > { %16267 = vmatpush3.msra.mxu1 %v8321_v30  ;;  %16268 = vmatprep.mubr.msk.f32.mxu1 %vm17563_vm0, %v17564_v6 }
0x3a36   : > { %16276 = vmatprep.subr.mxu1 %v17564_v6 }
0x3b07   : > { %v8396_v7 = vpop.f32.mrb[86].mxu1 }
0x3b08   : > { %v8400_v8 = vmul.f32 0.35355338, %v8396_v7  ;;  %v16265_v9 = vpop.f32.mrb[87].mxu1 }
0x3b0a   : > { %v8401_v10 = vsel %vm1424_vm4, %v8400_v8, -inf }
0x3b0b   : > { %8402 = vmax.xlane.f32.xlu0 %v8401_v10  ;;  %v14677_v10 = vld [vmem:[%s19253_s15 + $0x60] sm:$0xff] }
0x3b98   : > { %v8403_v11 = vpop.xlane.xlu0 %8402 }
0x3b99   : > { %v8404_v12 = vsub.f32 %v8400_v8, %v8403_v11  ;;  %v14675_v8 = vld [vmem:[%s19259_s16 + $0x10] sm:$0xff]  ;;  %v14678_v11 = vld [vmem:[%s19253_s15 + $0x68] sm:$0xff] }
0x3b9b   : > { %v8405_v13 = vmul.f32 1.442695, %v8404_v12 }
0x3b9d   : > { %17461 = vpow2.f32 %v8405_v13  ;;  %v17145_v13 = vpack.c.bf16 %v14678_v11, %v14677_v10 }
0x3ba7   : > { %v17462_v15 = vpop.eup %17461 }
0x3ba8   : > { %v8407_v16 = vsel %vm1424_vm4, %v17462_v15, 0.0 }
0x3ba9   : > { %8408 = vadd.xlane.f32.xlu1 %v8407_v16  ;;  %v14679_v16 = vld [vmem:[%s19253_s15 + $0x70] sm:$0xff] }
0x3c36   : > { %v8409_v18 = vpop.xlane.xlu1 %8408 }
0x3c37   : > { %17463 = vrcp.f32 %v8409_v18  ;;  %v17148_v18 = vpack.c.bf16 %v14680_v17, %v14679_v16  ;;  %v9645_v16 = vld [vmem:[%s19261_s1] sm:$0xff]  ;;  %v9646_v17 = vld [vmem:[%s19261_s1 + $0x8] sm:$0xff] }
0x3c41   : > { %v17464_v19 = vpop.eup %17463 }
0x3c42   : > { %v8411_v20 = vmul.f32 %v17464_v19, %v17462_v15  ;;  %v14691_v19 = vld [vmem:[%s19253_s15 + $0x160] sm:$0xff] }
0x3c44   : > { %16269 = vmatmul.mubr.msk.f32.vlgmr.msra.gmra.mrb[88].mxu1 %vm1424_vm4, %v8411_v20  ;;  %v14692_v20 = vld [vmem:[%s19253_s15 + $0x168] sm:$0xff] }
0x3c45   : > { %16277 = vmatpush3.msra.mxu1 %v8074_v21  ;;  %16278 = vmatprep.mubr.msk.f32.mxu1 %vm17563_vm0, %v17564_v6  ;;  %v17157_v21 = vpack.c.bf16 %v14692_v20, %v14691_v19  ;;  %v9648_v19 = vld [vmem:[%s19261_s1 + $0x18] sm:$0xff] }
0x3c46   : > { %17132 = vmatprep.subr.bf16.mxu1 %v17562_v3 }
0x3c48   : > { %16279 = vmatmul.mubr.msk.f32.vlgmr.msra.gmra.mrb[90].mxu1 %vm1424_vm4, %v8070_v59 }
0x3c49   : > { %17134 = vmatpush3.bf16.msra.mxu1 %v17133_v24  ;;  %16300 = vmatprep.mubr.msk.f32.mxu1 %vm17563_vm0, %v17564_v6  ;;  %v17160_v24 = vpack.c.bf16 %v14694_v23, %v14693_v22  ;;  %v9731_v22 = vld [vmem:[%s19262_s3 + $0x8] sm:$0xff]  ;;  %v9732_v23 = vld [vmem:[%s19262_s3 + $0x10] sm:$0xff] }
0x3c4a   : > { %17135 = vmatprep.subr.bf16.mxu1 %v17562_v3 }
0x3c4d   : > { %17137 = vmatpush3.bf16.msra.mxu1 %v17136_v27  ;;  %v17151_v27 = vpack.c.bf16 %v14685_v26, %v14684_v25  ;;  %v9733_v25 = vld [vmem:[%s19262_s3 + $0x18] sm:$0xff] }
0x3c4e   : > { %16314 = vmatprep.subr.mxu1 %v17564_v6  ;;  %v17172_v26 = vpack.c.bf16 %v9733_v25, %v9732_v23  ;;  %v14726_v23 = vld [vmem:[%s19249_s2 + $0x218] sm:$0xff]  ;;  %v14735_v25 = vld [vmem:[%s19250_s7 + $0x14] ss:$0 sm:$0xff] }
0x3c50   : > { %16301 = vmatmul.mubr.msk.f32.vlgmr.msra.gmra.mrb[92].mxu1 %vm1184_vm3, %v18507_v50 }
0x3c51   : > { %16316 = vmatprep.mubr.msk.f32.mxu1 %vm17563_vm0, %v17564_v6 }
0x3d17   : > { %v8481_v14 = vpop.f32.mrb[88].mxu1 }
0x3d18   : > { %v16270_v35 = vpop.f32.mrb[89].mxu1  ;;  %16274 = vmatmul.mubr.msk.f32.vlgmr.msra.gmra.mrb[86].mxu0 %vm1424_vm4, %v8481_v14 }
0x3d19   : > { %17128 = vmatpush3.bf16.msra.mxu0 %v17127_v32  ;;  %16289 = vmatprep.mubr.msk.f32.mxu0 %vm17563_vm0, %v17564_v6 }
0x3d1a   : > { %17129 = vmatprep.subr.bf16.mxu0 %v17562_v3 }
0x3d1b   : > { %v8629_v38 = vpop.f32.mrb[90].mxu1 }
0x3d1c   : > { %v16280_v39 = vpop.f32.mrb[91].mxu1 }
0x3d1d   : > { %17131 = vmatpush3.bf16.msra.mxu0 %v17130_v36 }
0x3d1e   : > { %17138 = vmatprep.subr.bf16.mxu0 %v17562_v3 }
0x3d20   : > { %16290 = vmatmul.mubr.msk.f32.vlgmr.msra.gmra.mrb[88].mxu0 %vm1184_vm3, %v18523_v5 }
0x3d21   : > { %17140 = vmatpush3.bf16.msra.mxu0 %v17139_v40  ;;  %16311 = vmatprep.mubr.msk.f32.mxu0 %vm17563_vm0, %v17564_v6  ;;  %v14689_v40 = vld [vmem:[%s19258_s28 + $0x7] ss:$0 sm:$0xff] }
0x3d22   : > { %17141 = vmatprep.subr.bf16.mxu0 %v17562_v3 }
0x3d23   : > { %v8795_v44 = vpop.f32.mrb[92].mxu1 }
0x3d24   : > { %v8796_v46 = vadd.f32 %v14663_v43, %v8795_v44  ;;  %v16302_v28 = vpop.f32.mrb[93].mxu1  ;;  %v14696_v44 = vld [vmem:[%s19258_s28 + $0xb] ss:$0 sm:$0xff] }
0x3d25   : > { %17143 = vmatpush3.bf16.msra.mxu0 %v17142_v45 }
0x3d26   : > { %16315 = vmatpush3.xpose.msk.msra.mxu1 %vm1424_vm4, %v8796_v46  ;;  %16324 = vmatprep.subr.mxu0 %v17564_v6 }
0x3d27   : > { %16319 = vmatprep.subr.mxu1 %v17564_v6 }
0x3d28   : > { %16312 = vmatmul.mubr.msk.f32.vlgmr.msra.gmra.mrb[90].mxu0 %vm1184_vm3, %v18507_v50 }
0x3d29   : > { %16326 = vmatprep.mubr.msk.f32.mxu0 %vm17563_vm0, %v17564_v6  ;;  %16325 = vmatpush3.msra.mxu0 %v14675_v8 }
0x3d2a   : > { %17150 = vmatprep.subr.bf16.mxu0 %v17562_v3 }
0x3deb   : > { %v8556_v47 = vpop.f32.mrb[86].mxu0 }
0x3dec   : > { %v18638_v48 = vadd.f32 %v8629_v38, %v8556_v47  ;;  %v16275_v51 = vpop.f32.mrb[87].mxu0 }
0x3df3   : > { %v8712_v53 = vpop.f32.mrb[88].mxu0 }
0x3df4   : > { %v8713_v54 = vadd.f32 %v14656_v52, %v8712_v53  ;;  %v16291_v56 = vpop.f32.mrb[89].mxu0 }
0x3df6   : > { %16317 = vmatmul.mubr.msk.f32.vlgmr.msra.gmra.mrb[94].mxu1 %vm1424_vm4, %v8713_v54 }
0x3df7   : > { %16321 = vmatprep.mubr.msk.f32.mxu1 %vm17563_vm0, %v17564_v6 }
0x3dfb   : > { %v8878_v58 = vpop.f32.mrb[90].mxu0 }
0x3dfc   : > { %v8879_v59 = vadd.f32 %v14670_v57, %v8878_v58  ;;  %v16313_v60 = vpop.f32.mrb[91].mxu0 }
0x3dfe   : > { %16320 = vmatpush3.msra.mxu1 %v8879_v59  ;;  %v14701_v59 = vld [vmem:[%s19259_s16 + $0x18] sm:$0xff] }
0x3dff   : > { %17144 = vmatprep.subr.bf16.mxu1 %v17562_v3 }
0x3ec9   : > { %v8954_v62 = vpop.f32.mrb[94].mxu1 }
0x3eca   : > { %v8958_v49 = vmul.f32 0.35355338, %v8954_v62  ;;  %v16318_v0 = vpop.f32.mrb[95].mxu1 }
0x3ecc   : > { %v8959_v1 = vsel %vm1424_vm4, %v8958_v49, -inf }
0x3ecd   : > { %8960 = vmax.xlane.f32.xlu0 %v8959_v1 }
0x3f5a   : > { %v8961_v2 = vpop.xlane.xlu0 %8960 }
0x3f5b   : > { %v8962_v61 = vsub.f32 %v8958_v49, %v8961_v2 }
0x3f5d   : > { %v8963_v4 = vmul.f32 1.442695, %v8962_v61  ;;  %v14703_v61 = vld [vmem:[%s19260_s18] ss:$0 sm:$0xff] }
0x3f5f   : > { %17465 = vpow2.f32 %v8963_v4 }
0x3f69   : > { %v17466_v30 = vpop.eup %17465 }
0x3f6a   : > { %v8965_v7 = vsel %vm1424_vm4, %v17466_v30, 0.0 }
0x3f6b   : > { %8966 = vadd.xlane.f32.xlu1 %v8965_v7 }
0x3ff8   : > { %v8967_v9 = vpop.xlane.xlu1 %8966 }
0x3ff9   : > { %17467 = vrcp.f32 %v8967_v9 }
0x4003   : > { %v17468_v12 = vpop.eup %17467 }
0x4004   : > { %v8969_v15 = vmul.f32 %v17468_v12, %v17466_v30 }
0x4006   : > { %16322 = vmatmul.mubr.msk.f32.vlgmr.msra.gmra.mrb[96].mxu1 %vm1424_vm4, %v8969_v15 }
0x4007   : > { %17146 = vmatpush3.bf16.msra.mxu1 %v17145_v13  ;;  %16337 = vmatprep.mubr.msk.f32.mxu1 %vm17563_vm0, %v17564_v6 }
0x4008   : > { %17147 = vmatprep.subr.bf16.mxu1 %v17562_v3 }
0x400b   : > { %17149 = vmatpush3.bf16.msra.mxu1 %v17148_v18  ;;  %v17163_v18 = vpack.c.bf16 %v9646_v17, %v9645_v16  ;;  %v14723_v17 = vld [vmem:[%s19249_s2 + $0x200] sm:$0xff] }
0x400c   : > { %17156 = vmatprep.subr.bf16.mxu1 %v17562_v3 }
0x400e   : > { %16338 = vmatmul.mubr.msk.f32.vlgmr.msra.gmra.mrb[98].mxu1 %vm1184_vm3, %v18523_v5 }
0x400f   : > { %17158 = vmatpush3.bf16.msra.mxu1 %v17157_v21  ;;  %16359 = vmatprep.mubr.msk.f32.mxu1 %vm17563_vm0, %v17564_v6  ;;  %v9730_v21 = vld [vmem:[%s19262_s3] sm:$0xff] }
0x4010   : > { %17159 = vmatprep.subr.bf16.mxu1 %v17562_v3 }
0x4013   : > { %17161 = vmatpush3.bf16.msra.mxu1 %v17160_v24  ;;  %v17169_v24 = vpack.c.bf16 %v9731_v22, %v9730_v21  ;;  %v14725_v22 = vld [vmem:[%s19249_s2 + $0x210] sm:$0xff] }
0x4014   : > { %16372 = vmatprep.subr.mxu1 %v17564_v6 }
0x4016   : > { %16360 = vmatmul.mubr.msk.f32.vlgmr.msra.gmra.mrb[100].mxu1 %vm1184_vm3, %v18507_v50 }
0x4017   : > { %16374 = vmatprep.mubr.msk.f32.mxu1 %vm17563_vm0, %v17564_v6  ;;  %16373 = vmatpush3.msra.mxu1 %v14701_v59 }
0x4018   : > { %17168 = vmatprep.subr.bf16.mxu1 %v17562_v3 }
0x40d9   : > { %v9039_v32 = vpop.f32.mrb[96].mxu1 }
0x40da   : > { %v16323_v33 = vpop.f32.mrb[97].mxu1  ;;  %16327 = vmatmul.mubr.msk.f32.vlgmr.msra.gmra.mrb[92].mxu0 %vm1424_vm4, %v9039_v32 }
0x40db   : > { %17152 = vmatpush3.bf16.msra.mxu0 %v17151_v27  ;;  %16348 = vmatprep.mubr.msk.f32.mxu0 %vm17563_vm0, %v17564_v6  ;;  %v9734_v27 = vld [vmem:[%s19262_s3 + $0x20] sm:$0xff] }
0x40dc   : > { %17153 = vmatprep.subr.bf16.mxu0 %v17562_v3  ;;  %v17175_v31 = vpack.c.bf16 %v9735_v29, %v9734_v27 }
0x40df   : > { %17155 = vmatpush3.bf16.msra.mxu0 %v17154_v34 }
0x40e0   : > { %16362 = vmatprep.subr.mxu0 %v17564_v6 }
0x40e1   : > { %v9198_v14 = vpop.f32.mrb[98].mxu1 }
0x40e2   : > { %v16339_v35 = vpop.f32.mrb[99].mxu1  ;;  %16349 = vmatmul.mubr.msk.f32.vlgmr.msra.gmra.mrb[94].mxu0 %vm1184_vm3, %v18507_v50  ;;  %v9199_v46 = vadd.f32 %v14682_v42, %v9198_v14  ;;  %v14708_v42 = vld [vmem:[%s19263_s5] ss:$0 sm:$0xff] }
0x40e3   : > { %16364 = vmatprep.mubr.msk.f32.mxu0 %vm17563_vm0, %v17564_v6  ;;  %v14706_v35 = vld [vmem:[%s19256_s23 + $0x1] ss:$0 sm:$0xff] }
0x40e9   : > { %v9364_v36 = vpop.f32.mrb[100].mxu1 }
0x40ea   : > { %v16361_v37 = vpop.f32.mrb[101].mxu1  ;;  %v9365_v28 = vadd.f32 %v14696_v44, %v9364_v36 }
0x40eb   : > { %v14707_v37 = vld [vmem:[%s19257_s26 + $0x1] ss:$0 sm:$0xff] }
0x41ad   : > { %v9114_v55 = vpop.f32.mrb[92].mxu0 }
0x41ae   : > { %v9118_v38 = vadd.f32 %v9114_v55, %v18638_v48  ;;  %v16328_v39 = vpop.f32.mrb[93].mxu0 }
0x41af   : > { %v9736_v39 = vld [vmem:[%s19262_s3 + $0x30] sm:$0xff] }
0x41b5   : > { %v9281_v41 = vpop.f32.mrb[94].mxu0 }
0x41b6   : > { %v9282_v43 = vadd.f32 %v14689_v40, %v9281_v41  ;;  %v16350_v45 = vpop.f32.mrb[95].mxu0  ;;  %v9737_v40 = vld [vmem:[%s19262_s3 + $0x38] sm:$0xff] }
0x41b7   : > { %v17178_v41 = vpack.c.bf16 %v9737_v40, %v9736_v39  ;;  %v14743_v40 = vld [vmem:[%s19249_s2 + $0x1b0] sm:$0xff] }
0x41b8   : > { %16363 = vmatpush3.xpose.msk.msra.mxu0 %vm1424_vm4, %v9282_v43 }
0x41b9   : > { %16367 = vmatprep.subr.mxu0 %v17564_v6 }
0x41bb   : > { %16365 = vmatmul.mubr.msk.f32.vlgmr.msra.gmra.mrb[96].mxu0 %vm1424_vm4, %v9199_v46 }
0x41bc   : > { %16368 = vmatpush3.msra.mxu0 %v9365_v28  ;;  %16369 = vmatprep.mubr.msk.f32.mxu0 %vm17563_vm0, %v17564_v6  ;;  %v14710_v28 = vld [vmem:[%s19264_s6] ss:$0 sm:$0xff] }
0x41bd   : > { %17162 = vmatprep.subr.bf16.mxu0 %v17562_v3 }
0x428e   : > { %v9440_v47 = vpop.f32.mrb[96].mxu0 }
0x428f   : > { %v9444_v48 = vmul.f32 0.35355338, %v9440_v47  ;;  %v16366_v51 = vpop.f32.mrb[97].mxu0 }
0x4291   : > { %v9445_v52 = vsel %vm1424_vm4, %v9444_v48, -inf }
0x4292   : > { %9446 = vmax.xlane.f32.xlu0 %v9445_v52 }
0x431f   : > { %v9447_v53 = vpop.xlane.xlu0 %9446 }
0x4320   : > { %v9448_v54 = vsub.f32 %v9444_v48, %v9447_v53 }
0x4322   : > { %v9449_v56 = vmul.f32 1.442695, %v9448_v54 }
0x4324   : > { %17469 = vpow2.f32 %v9449_v56 }
0x432e   : > { %v17470_v57 = vpop.eup %17469 }
0x432f   : > { %v9451_v58 = vsel %vm1424_vm4, %v17470_v57, 0.0 }
0x4330   : > { %9452 = vadd.xlane.f32.xlu1 %v9451_v58 }
0x43bd   : > { %v9453_v60 = vpop.xlane.xlu1 %9452 }
0x43be   : > { %17471 = vrcp.f32 %v9453_v60  ;;  %v14716_v60 = vld [vmem:[%s19249_s2 + $0x180] sm:$0xff] }
0x43c8   : > { %v17472_v62 = vpop.eup %17471 }
0x43c9   : > { %v9455_v49 = vmul.f32 %v17472_v62, %v17470_v57  ;;  %v14717_v62 = vld [vmem:[%s19249_s2 + $0x188] sm:$0xff] }
0x43cb   : > { %16370 = vmatmul.mubr.msk.f32.vlgmr.msra.gmra.mrb[98].mxu0 %vm1424_vm4, %v9455_v49  ;;  %v17181_v49 = vpack.c.bf16 %v14717_v62, %v14716_v60 }
0x43cc   : > { %16385 = vmatprep.mubr.msk.f32.mxu0 %vm17563_vm0, %v17564_v6  ;;  %17164 = vmatpush3.bf16.msra.mxu0 %v17163_v18  ;;  %v14724_v18 = vld [vmem:[%s19249_s2 + $0x208] sm:$0xff] }
0x43cd   : > { %17165 = vmatprep.subr.bf16.mxu0 %v17562_v3 }
0x449e   : > { %v9525_v0 = vpop.f32.mrb[98].mxu0 }
0x449f   : > { %v16371_v1 = vpop.f32.mrb[99].mxu0  ;;  %16375 = vmatmul.mubr.msk.f32.vlgmr.msra.gmra.mrb[102].mxu1 %vm1424_vm4, %v9525_v0  ;;  %v14730_v0 = vld [vmem:[%s19249_s2 + $0x280] sm:$0xff] }
0x44a0   : > { %16404 = vmatprep.mubr.msk.f32.mxu1 %vm17563_vm0, %v17564_v6  ;;  %17170 = vmatpush3.bf16.msra.mxu1 %v17169_v24  ;;  %v14731_v1 = vld [vmem:[%s19249_s2 + $0x288] sm:$0xff]  ;;  %v17190_v24 = vpack.c.bf16 %v14726_v23, %v14725_v22 }
0x44a1   : > { %17171 = vmatprep.subr.bf16.mxu1 %v17562_v3 }
0x44a4   : > { %17173 = vmatpush3.bf16.msra.mxu1 %v17172_v26 }
0x44a5   : > { %17174 = vmatprep.subr.bf16.mxu1 %v17562_v3 }
0x44a8   : > { %17176 = vmatpush3.bf16.msra.mxu1 %v17175_v31 }
0x44a9   : > { %17177 = vmatprep.subr.bf16.mxu1 %v17562_v3 }
0x44ac   : > { %17179 = vmatpush3.bf16.msra.mxu1 %v17178_v41  ;;  %v14744_v41 = vld [vmem:[%s19249_s2 + $0x1b8] sm:$0xff] }
0x44ad   : > { %17192 = vmatprep.subr.bf16.mxu1 %v17562_v3 }
0x4572   : > { %v9600_v2 = vpop.f32.mrb[102].mxu1 }
0x4573   : > { %v9604_v4 = vadd.f32 %v9600_v2, %v9118_v38  ;;  %v16376_v30 = vpop.f32.mrb[103].mxu1  ;;  %v17193_v2 = vpack.c.bf16 %v14731_v1, %v14730_v0 }
0x4575   : > { %v9612_v7 = vadd.f32 %v14703_v61, %v9604_v4  ;;  %v14718_v61 = vld [vmem:[%s19249_s2 + $0x190] sm:$0xff]  ;;  %v14719_v4 = vld [vmem:[%s19249_s2 + $0x198] sm:$0xff] }
0x4576   : > { %v17184_v30 = vpack.c.bf16 %v14719_v4, %v14718_v61  ;;  %v14748_v61 = vld [vmem:[%s19249_s2 + $0x220] sm:$0xff]  ;;  %v14749_v4 = vld [vmem:[%s19249_s2 + $0x228] sm:$0xff] }
0x4577   : > { %v9613_v8 = vadd.f32 %v9612_v7, %v18523_v5  ;;  %v9647_v5 = vld [vmem:[%s19261_s1 + $0x10] sm:$0xff] }
0x4578   : > { %v17166_v20 = vpack.c.bf16 %v9648_v19, %v9647_v5  ;;  %v14732_v7 = vld [vmem:[%s19249_s2 + $0x290] sm:$0xff]  ;;  %v14715_v5 = vld [vmem:[%s19257_s26 + $0x2] ss:$0 sm:$0xff] }
0x4579   : > { %v9618_v9 = vsel %vm1184_vm3, %v9613_v8, 0.0 }
0x457a   : > { %9619 = vadd.xlane.f32.xlu0 %v9618_v9  ;;  %17167 = vmatpush3.bf16.msra.mxu0 %v17166_v20  ;;  %v17187_v20 = vpack.c.bf16 %v14724_v18, %v14723_v17  ;;  %v14746_v17 = vld [vmem:[%s19250_s7 + $0xd] ss:$0 sm:$0xff] }
0x457b   : > { %17180 = vmatprep.subr.bf16.mxu0 %v17562_v3 }
0x4607   : > { %v9620_v10 = vpop.xlane.xlu0 %9619 }
0x4608   : > { %v9621_v11 = vmul.f32 0.03125, %v9620_v10 }
0x460a   : > { %v9622_v12 = vsub.f32 %v9613_v8, %v9621_v11  ;;  %v14733_v8 = vld [vmem:[%s19249_s2 + $0x298] sm:$0xff] }
0x460b   : > { %v17196_v9 = vpack.c.bf16 %v14733_v8, %v14732_v7  ;;  %v17205_v7 = vpack.c.bf16 %v14749_v4, %v14748_v61 }
0x460c   : > { %v9623_v13 = vmul.f32 %v9622_v12, %v9622_v12 }
0x460e   : > { %v9624_v15 = vsel %vm1184_vm3, %v9623_v13, 0.0 }
0x460f   : > { %9625 = vadd.xlane.f32.xlu1 %v9624_v15  ;;  %v14714_v15 = vld [vmem:[%s19256_s23 + $0x2] ss:$0 sm:$0xff] }
0x469c   : > { %v9626_v32 = vpop.xlane.xlu1 %9625 }
0x469d   : > { %v9627_v33 = vmul.f32 0.03125, %v9626_v32 }
0x469f   : > { %v9628_v34 = vadd.f32 1e-05, %v9627_v33  ;;  %v14728_v33 = vld [vmem:[%s19250_s7 + $0x10] ss:$0 sm:$0xff] }
0x46a1   : > { %17473 = vrsqrt.f32 %v9628_v34 }
0x46ab   : > { %v17474_v14 = vpop.eup %17473 }
0x46ac   : > { %v9630_v36 = vmul.f32 %v17474_v14, %v9622_v12  ;;  %v14741_v14 = vld [vmem:[%s19249_s2 + $0x1a0] sm:$0xff] }
0x46ae   : > { %v9637_v55 = vmul.f32 %v14706_v35, %v9630_v36  ;;  %v14742_v35 = vld [vmem:[%s19249_s2 + $0x1a8] sm:$0xff] }
0x46af   : > { %v14721_v36 = vld [vmem:[%s19250_s7 + $0xc] ss:$0 sm:$0xff] }
0x46b0   : > { %v9644_v38 = vadd.f32 %v14707_v37, %v9637_v55 }
0x46b2   : > { %16386 = vmatmul.mubr.msk.f32.vlgmr.msra.gmra.mrb[100].mxu0 %vm1184_vm3, %v9644_v38 }
0x46b3   : > { %16415 = vmatprep.mubr.msk.f32.mxu0 %vm17563_vm0, %v17564_v6  ;;  %17182 = vmatpush3.bf16.msra.mxu0 %v17181_v49 }
0x46b4   : > { %17183 = vmatprep.subr.bf16.mxu0 %v17562_v3 }
0x46b7   : > { %17185 = vmatpush3.bf16.msra.mxu0 %v17184_v30 }
0x46b8   : > { %17186 = vmatprep.subr.bf16.mxu0 %v17562_v3 }
0x4785   : > { %v9725_v43 = vpop.f32.mrb[100].mxu0 }
0x4786   : > { %v9726_v45 = vadd.f32 %v14708_v42, %v9725_v43  ;;  %v16387_v44 = vpop.f32.mrb[101].mxu0  ;;  %v17202_v42 = vpack.c.bf16 %v14744_v41, %v14743_v40  ;;  %v14755_v43 = vld [vmem:[%s19249_s2 + $0x2a0] sm:$0xff]  ;;  %v14777_v41 = vld [vmem:[%s19249_s2 + $0x250] sm:$0xff] }
0x4788   : > { %v9729_v46 = vmax.f32 %v9726_v45, 0.0  ;;  %v14756_v45 = vld [vmem:[%s19249_s2 + $0x2a8] sm:$0xff] }
0x4789   : > { %v17211_v44 = vpack.c.bf16 %v14756_v45, %v14755_v43  ;;  %v14768_v45 = vld [vmem:[%s19249_s2 + $0x1c0] sm:$0xff] }
0x478a   : > { %16405 = vmatmul.mubr.msk.f32.vlgmr.msra.gmra.mrb[104].mxu1 %vm3260_vm6, %v9729_v46  ;;  %v14757_v46 = vld [vmem:[%s19249_s2 + $0x2b0] sm:$0xff] }
0x478b   : > { %16437 = vmatprep.mubr.msk.f32.mxu1 %vm17563_vm0, %v17564_v6  ;;  %17194 = vmatpush3.bf16.msra.mxu1 %v17193_v2 }
0x478c   : > { %17195 = vmatprep.subr.bf16.mxu1 %v17562_v3 }
0x478f   : > { %17197 = vmatpush3.bf16.msra.mxu1 %v17196_v9  ;;  %v14750_v9 = vld [vmem:[%s19249_s2 + $0x230] sm:$0xff] }
0x4790   : > { %16445 = vmatprep.subr.mxu1 %v17564_v6 }
0x485d   : > { %v9814_v47 = vpop.f32.mrb[104].mxu1 }
0x485e   : > { %v9815_v48 = vadd.f32 %v14710_v28, %v9814_v47  ;;  %v16406_v51 = vpop.f32.mrb[105].mxu1  ;;  %v14758_v28 = vld [vmem:[%s19249_s2 + $0x2b8] sm:$0xff] }
0x485f   : > { %v17214_v47 = vpack.c.bf16 %v14758_v28, %v14757_v46  ;;  %v14770_v28 = vld [vmem:[%s19249_s2 + $0x1d0] sm:$0xff] }
0x4860   : > { %v9818_v52 = vadd.f32 %v9815_v48, %v9644_v38  ;;  %v17199_v38 = vpack.c.bf16 %v14742_v35, %v14741_v14  ;;  %v14765_v14 = vld [vmem:[%s19251_s10 + $0x28] sm:$0xff] }
0x4862   : > { %v9823_v53 = vsel %vm1184_vm3, %v9818_v52, 0.0 }
0x4863   : > { %9824 = vadd.xlane.f32.xlu0 %v9823_v53 }
0x48f0   : > { %v9825_v54 = vpop.xlane.xlu0 %9824 }
0x48f1   : > { %v9826_v56 = vmul.f32 0.03125, %v9825_v54 }
0x48f3   : > { %v9827_v57 = vsub.f32 %v9818_v52, %v9826_v56 }
0x48f5   : > { %v9828_v58 = vmul.f32 %v9827_v57, %v9827_v57 }
0x48f7   : > { %v9829_v59 = vsel %vm1184_vm3, %v9828_v58, 0.0 }
0x48f8   : > { %9830 = vadd.xlane.f32.xlu1 %v9829_v59 }
0x4985   : > { %v9831_v10 = vpop.xlane.xlu1 %9830 }
0x4986   : > { %v9832_v11 = vmul.f32 0.03125, %v9831_v10  ;;  %v14751_v10 = vld [vmem:[%s19249_s2 + $0x238] sm:$0xff] }
0x4988   : > { %v9833_v12 = vadd.f32 1e-05, %v9832_v11  ;;  %v17208_v11 = vpack.c.bf16 %v14751_v10, %v14750_v9 }
0x498a   : > { %17475 = vrsqrt.f32 %v9833_v12 }
0x4994   : > { %v17476_v13 = vpop.eup %17475 }
0x4995   : > { %v9835_v16 = vmul.f32 %v17476_v13, %v9827_v57 }
0x4997   : > { %v9842_v19 = vmul.f32 %v14714_v15, %v9835_v16  ;;  %v14753_v15 = vld [vmem:[%s19250_s7 + $0x11] ss:$0 sm:$0xff] }
0x4999   : > { %v18756_v21 = vadd.f32 %v14715_v5, %v9842_v19  ;;  %v14760_v19 = vld [vmem:[%s19250_s7 + $0x15] ss:$0 sm:$0xff] }
0x499b   : > { %16416 = vmatmul.mubr.msk.f32.vlgmr.msra.gmra.mrb[102].mxu0 %vm1184_vm3, %v18756_v21  ;;  %16438 = vmatmul.mubr.msk.f32.vlgmr.msra.gmra.mrb[106].mxu1 %vm1184_vm3, %v18756_v21 }
0x499c   : > { %17188 = vmatpush3.bf16.msra.mxu0 %v17187_v20  ;;  %16426 = vmatprep.mubr.msk.f32.mxu0 %vm17563_vm0, %v17564_v6 }
0x499d   : > { %17189 = vmatprep.subr.bf16.mxu0 %v17562_v3  ;;  %16447 = vmatprep.mubr.msk.f32.mxu1 %vm17563_vm0, %v17564_v6 }
0x49a0   : > { %17191 = vmatpush3.bf16.msra.mxu0 %v17190_v24 }
0x49a1   : > { %16440 = vmatprep.subr.mxu0 %v17564_v6 }
0x49a3   : > { %16427 = vmatmul.mubr.msk.f32.vlgmr.msra.gmra.mrb[104].mxu0 %vm1184_vm3, %v18756_v21 }
0x49a4   : > { %16442 = vmatprep.mubr.msk.f32.mxu0 %vm17563_vm0, %v17564_v6 }
0x4a6e   : > { %v9932_v26 = vpop.f32.mrb[102].mxu0  ;;  %v10098_v27 = vpop.f32.mrb[106].mxu1 }
0x4a6f   : > { %v10099_v29 = vadd.f32 %v14735_v25, %v10098_v27  ;;  %v16417_v31 = vpop.f32.mrb[103].mxu0  ;;  %v16439_v32 = vpop.f32.mrb[107].mxu1  ;;  %v9933_v39 = vadd.f32 %v14721_v36, %v9932_v26 }
0x4a71   : > { %16446 = vmatpush3.msra.mxu1 %v10099_v29 }
0x4a72   : > { %17204 = vmatprep.subr.bf16.mxu1 %v17562_v3 }
0x4a76   : > { %v10015_v34 = vpop.f32.mrb[104].mxu0 }
0x4a77   : > { %v10016_v37 = vadd.f32 %v14728_v33, %v10015_v34  ;;  %v16428_v55 = vpop.f32.mrb[105].mxu0 }
0x4a78   : > { %v14740_v55 = vld [vmem:[%s19251_s10 + $0x20] sm:$0xff] }
0x4a79   : > { %16441 = vmatpush3.xpose.msk.msra.mxu0 %vm1424_vm4, %v10016_v37 }
0x4a7a   : > { %17198 = vmatprep.subr.bf16.mxu0 %v17562_v3 }
0x4a7c   : > { %16443 = vmatmul.mubr.msk.f32.vlgmr.msra.gmra.mrb[106].mxu0 %vm1424_vm4, %v9933_v39  ;;  %v14776_v39 = vld [vmem:[%s19249_s2 + $0x248] sm:$0xff] }
0x4a7d   : > { %17200 = vmatpush3.bf16.msra.mxu0 %v17199_v38  ;;  %16458 = vmatprep.mubr.msk.f32.mxu0 %vm17563_vm0, %v17564_v6  ;;  %v14775_v38 = vld [vmem:[%s19249_s2 + $0x240] sm:$0xff] }
0x4a7e   : > { %17201 = vmatprep.subr.bf16.mxu0 %v17562_v3  ;;  %v17223_v40 = vpack.c.bf16 %v14776_v39, %v14775_v38  ;;  %v14810_v39 = vld [vmem:[%s19249_s2 + $0x2f0] sm:$0xff] }
0x4a81   : > { %17203 = vmatpush3.bf16.msra.mxu0 %v17202_v42  ;;  %v14778_v42 = vld [vmem:[%s19249_s2 + $0x258] sm:$0xff] }
0x4a82   : > { %17210 = vmatprep.subr.bf16.mxu0 %v17562_v3  ;;  %v17226_v43 = vpack.c.bf16 %v14778_v42, %v14777_v41  ;;  %v14801_v42 = vld [vmem:[%s19249_s2 + $0x260] sm:$0xff] }
0x4a84   : > { %16459 = vmatmul.mubr.msk.f32.vlgmr.msra.gmra.mrb[108].mxu0 %vm1184_vm3, %v18756_v21 }
0x4a85   : > { %17212 = vmatpush3.bf16.msra.mxu0 %v17211_v44  ;;  %16480 = vmatprep.mubr.msk.f32.mxu0 %vm17563_vm0, %v17564_v6  ;;  %v14769_v44 = vld [vmem:[%s19249_s2 + $0x1c8] sm:$0xff] }
0x4a86   : > { %17213 = vmatprep.subr.bf16.mxu0 %v17562_v3  ;;  %v17217_v46 = vpack.c.bf16 %v14769_v44, %v14768_v45  ;;  %v14803_v44 = vld [vmem:[%s19249_s2 + $0x270] sm:$0xff] }
0x4a89   : > { %17215 = vmatpush3.bf16.msra.mxu0 %v17214_v47  ;;  %v14771_v47 = vld [vmem:[%s19249_s2 + $0x1d8] sm:$0xff] }
0x4a8a   : > { %16493 = vmatprep.subr.mxu0 %v17564_v6 }
0x4a8c   : > { %16481 = vmatmul.mubr.msk.f32.vlgmr.msra.gmra.mrb[110].mxu0 %vm1184_vm3, %v18756_v21 }
0x4a8d   : > { %16495 = vmatprep.mubr.msk.f32.mxu0 %vm17563_vm0, %v17564_v6  ;;  %16494 = vmatpush3.msra.mxu0 %v14765_v14  ;;  %v14796_v14 = vld [vmem:[%s19249_s2 + $0x1f0] sm:$0xff] }
0x4a8e   : > { %17216 = vmatprep.subr.bf16.mxu0 %v17562_v3 }
0x4b4f   : > { %v10174_v48 = vpop.f32.mrb[106].mxu0 }
0x4b50   : > { %v10178_v51 = vmul.f32 0.35355338, %v10174_v48  ;;  %v16444_v52 = vpop.f32.mrb[107].mxu0 }
0x4b51   : > { %v17220_v52 = vpack.c.bf16 %v14771_v47, %v14770_v28 }
0x4b52   : > { %v10179_v53 = vadd.f32 %v10178_v51, %v17844_v63 }
0x4b54   : > { %v10180_v54 = vsel %vm1424_vm4, %v10179_v53, -inf }
0x4b55   : > { %10181 = vmax.xlane.f32.xlu0 %v10180_v54  ;;  %v14783_v54 = vld [vmem:[%s19249_s2 + $0x2c8] sm:$0xff] }
0x4b57   : > { %v10345_v56 = vpop.f32.mrb[108].mxu0 }
0x4b58   : > { %v16460_v57 = vpop.f32.mrb[109].mxu0  ;;  %v10346_v20 = vadd.f32 %v14746_v17, %v10345_v56 }
0x4b5f   : > { %v10511_v58 = vpop.f32.mrb[110].mxu0 }
0x4b60   : > { %v16482_v59 = vpop.f32.mrb[111].mxu0  ;;  %v10512_v22 = vadd.f32 %v14760_v19, %v10511_v58 }
0x4b61   : > { %v14784_v59 = vld [vmem:[%s19249_s2 + $0x2d0] sm:$0xff] }
0x4be2   : > { %v10182_v60 = vpop.xlane.xlu0 %10181 }
0x4be3   : > { %v10183_v62 = vsub.f32 %v10179_v53, %v10182_v60  ;;  %v14782_v53 = vld [vmem:[%s19249_s2 + $0x2c0] sm:$0xff]  ;;  %v14785_v60 = vld [vmem:[%s19249_s2 + $0x2d8] sm:$0xff] }
0x4be4   : > { %v17229_v58 = vpack.c.bf16 %v14783_v54, %v14782_v53 }
0x4be5   : > { %v10184_v49 = vmul.f32 1.442695, %v10183_v62  ;;  %v14780_v62 = vld [vmem:[%s19250_s7 + $0x12] ss:$0 sm:$0xff] }
0x4be7   : > { %17477 = vpow2.f32 %v10184_v49  ;;  %v17232_v49 = vpack.c.bf16 %v14785_v60, %v14784_v59  ;;  %v14806_v59 = vld [vmem:[%s19250_s7 + $0x13] ss:$0 sm:$0xff] }
0x4bf1   : > { %v17478_v0 = vpop.eup %17477 }
0x4bf2   : > { %v10186_v1 = vsel %vm1424_vm4, %v17478_v0, 0.0 }
0x4bf3   : > { %10187 = vadd.xlane.f32.xlu1 %v10186_v1 }
0x4c80   : > { %v10188_v2 = vpop.xlane.xlu1 %10187 }
0x4c81   : > { %17479 = vrcp.f32 %v10188_v2 }
0x4c8b   : > { %v17480_v30 = vpop.eup %17479 }
0x4c8c   : > { %v10190_v8 = vmul.f32 %v17480_v30, %v17478_v0 }
0x4c8e   : > { %16448 = vmatmul.mubr.msk.f32.vlgmr.msra.gmra.mrb[108].mxu1 %vm1424_vm4, %v10190_v8 }
0x4c8f   : > { %17206 = vmatpush3.bf16.msra.mxu1 %v17205_v7  ;;  %16469 = vmatprep.mubr.msk.f32.mxu1 %vm17563_vm0, %v17564_v6  ;;  %v14773_v7 = vld [vmem:[%s19250_s7 + $0xe] ss:$0 sm:$0xff] }
0x4c90   : > { %17207 = vmatprep.subr.bf16.mxu1 %v17562_v3 }
0x4c93   : > { %17209 = vmatpush3.bf16.msra.mxu1 %v17208_v11  ;;  %v14787_v11 = vld [vmem:[%s19250_s7 + $0x16] ss:$0 sm:$0xff] }
0x4c94   : > { %16483 = vmatprep.subr.mxu1 %v17564_v6 }
0x4c96   : > { %16470 = vmatmul.mubr.msk.f32.vlgmr.msra.gmra.mrb[110].mxu1 %vm1184_vm3, %v18756_v21 }
0x4c97   : > { %16485 = vmatprep.mubr.msk.f32.mxu1 %vm17563_vm0, %v17564_v6 }
0x4d61   : > { %v10260_v12 = vpop.f32.mrb[108].mxu1 }
0x4d62   : > { %v16449_v13 = vpop.f32.mrb[109].mxu1 }
0x4d69   : > { %v10428_v16 = vpop.f32.mrb[110].mxu1 }
0x4d6a   : > { %v10429_v18 = vadd.f32 %v14753_v15, %v10428_v16  ;;  %v16471_v5 = vpop.f32.mrb[111].mxu1 }
0x4d6c   : > { %16484 = vmatpush3.xpose.msk.msra.mxu1 %vm1424_vm4, %v10429_v18 }
0x4d6d   : > { %16488 = vmatprep.subr.mxu1 %v17564_v6 }
0x4d6f   : > { %16486 = vmatmul.mubr.msk.f32.vlgmr.msra.gmra.mrb[112].mxu1 %vm1424_vm4, %v10346_v20 }
0x4d70   : > { %16489 = vmatpush3.msra.mxu1 %v10512_v22  ;;  %16490 = vmatprep.mubr.msk.f32.mxu1 %vm17563_vm0, %v17564_v6 }
0x4d71   : > { %16498 = vmatprep.subr.mxu1 %v17564_v6 }
0x4e42   : > { %v10587_v23 = vpop.f32.mrb[112].mxu1 }
0x4e43   : > { %v10591_v24 = vmul.f32 0.35355338, %v10587_v23  ;;  %v16487_v25 = vpop.f32.mrb[113].mxu1 }
0x4e45   : > { %v10592_v26 = vadd.f32 %v10591_v24, %v17844_v63 }
0x4e47   : > { %v10593_v27 = vsel %vm1424_vm4, %v10592_v26, -inf }
0x4e48   : > { %10594 = vmax.xlane.f32.xlu0 %v10593_v27 }
0x4ed5   : > { %v10595_v29 = vpop.xlane.xlu0 %10594 }
0x4ed6   : > { %v10596_v31 = vsub.f32 %v10592_v26, %v10595_v29  ;;  %v14792_v26 = vld [vmem:[%s19251_s10 + $0x30] sm:$0xff]  ;;  %v14794_v29 = vld [vmem:[%s19249_s2 + $0x1e0] sm:$0xff] }
0x4ed8   : > { %v10597_v32 = vmul.f32 1.442695, %v10596_v31  ;;  %v14795_v31 = vld [vmem:[%s19249_s2 + $0x1e8] sm:$0xff] }
0x4eda   : > { %17481 = vpow2.f32 %v10597_v32 }
0x4ee4   : > { %v17482_v33 = vpop.eup %17481 }
0x4ee5   : > { %v10599_v34 = vsel %vm1424_vm4, %v17482_v33, 0.0 }
0x4ee6   : > { %10600 = vadd.xlane.f32.xlu1 %v10599_v34 }
0x4f73   : > { %v10601_v35 = vpop.xlane.xlu1 %10600 }
0x4f74   : > { %17483 = vrcp.f32 %v10601_v35  ;;  %v14797_v35 = vld [vmem:[%s19249_s2 + $0x1f8] sm:$0xff] }
0x4f7e   : > { %v17484_v36 = vpop.eup %17483 }
0x4f7f   : > { %v10603_v37 = vmul.f32 %v17484_v36, %v17482_v33  ;;  %v17235_v33 = vpack.c.bf16 %v14795_v31, %v14794_v29  ;;  %v17238_v36 = vpack.c.bf16 %v14797_v35, %v14796_v14  ;;  %v14821_v29 = vld [vmem:[%s19252_s11 + $0x1] ss:$0 sm:$0xff]  ;;  %v14838_v14 = vld [vmem:[%s19258_s28 + $0x10] ss:$0 sm:$0xff] }
0x4f81   : > { %16491 = vmatmul.mubr.msk.f32.vlgmr.msra.gmra.mrb[114].mxu1 %vm1424_vm4, %v10603_v37  ;;  %v14808_v37 = vld [vmem:[%s19249_s2 + $0x2e0] sm:$0xff] }
0x4f82   : > { %16499 = vmatpush3.msra.mxu1 %v14740_v55  ;;  %16500 = vmatprep.mubr.msk.f32.mxu1 %vm17563_vm0, %v17564_v6  ;;  %v14809_v55 = vld [vmem:[%s19249_s2 + $0x2e8] sm:$0xff] }
0x4f83   : > { %17222 = vmatprep.subr.bf16.mxu1 %v17562_v3  ;;  %v17247_v38 = vpack.c.bf16 %v14809_v55, %v14808_v37 }
0x4f85   : > { %16501 = vmatmul.mubr.msk.f32.vlgmr.msra.gmra.mrb[116].mxu1 %vm1424_vm4, %v10260_v12 }
0x4f86   : > { %17224 = vmatpush3.bf16.msra.mxu1 %v17223_v40  ;;  %16522 = vmatprep.mubr.msk.f32.mxu1 %vm17563_vm0, %v17564_v6  ;;  %v14811_v40 = vld [vmem:[%s19249_s2 + $0x2f8] sm:$0xff] }
0x4f87   : > { %17225 = vmatprep.subr.bf16.mxu1 %v17562_v3  ;;  %v17250_v41 = vpack.c.bf16 %v14811_v40, %v14810_v39 }
0x4f8a   : > { %17227 = vmatpush3.bf16.msra.mxu1 %v17226_v43  ;;  %v14802_v43 = vld [vmem:[%s19249_s2 + $0x268] sm:$0xff] }
0x4f8b   : > { %16536 = vmatprep.subr.mxu1 %v17564_v6  ;;  %v17241_v45 = vpack.c.bf16 %v14802_v43, %v14801_v42  ;;  %v14826_v42 = vld [vmem:[%s19253_s15 + $0x180] sm:$0xff]  ;;  %v14827_v43 = vld [vmem:[%s19253_s15 + $0x188] sm:$0xff] }
0x4f8d   : > { %16523 = vmatmul.mubr.msk.f32.vlgmr.msra.gmra.mrb[118].mxu1 %vm1184_vm3, %v18756_v21 }
0x4f8e   : > { %16538 = vmatprep.mubr.msk.f32.mxu1 %vm17563_vm0, %v17564_v6 }
0x5054   : > { %v10673_v48 = vpop.f32.mrb[114].mxu1 }
0x5055   : > { %v16492_v51 = vpop.f32.mrb[115].mxu1  ;;  %16496 = vmatmul.mubr.msk.f32.vlgmr.msra.gmra.mrb[112].mxu0 %vm1424_vm4, %v10673_v48 }
0x5056   : > { %17218 = vmatpush3.bf16.msra.mxu0 %v17217_v46  ;;  %16511 = vmatprep.mubr.msk.f32.mxu0 %vm17563_vm0, %v17564_v6  ;;  %v14804_v46 = vld [vmem:[%s19249_s2 + $0x278] sm:$0xff]  ;;  %s1082_s2 = scalar_lea.vmem %s17749_s20, %s17763_s0 }
0x5057   : > { %17219 = vmatprep.subr.bf16.mxu0 %v17562_v3  ;;  %v17244_v48 = vpack.c.bf16 %v14804_v46, %v14803_v44  ;;  %v14828_v44 = vld [vmem:[%s19253_s15 + $0x190] sm:$0xff]  ;;  %v14829_v46 = vld [vmem:[%s19253_s15 + $0x198] sm:$0xff] }
0x5058   : > { %v10821_v56 = vpop.f32.mrb[116].mxu1 }
0x5059   : > { %v16502_v57 = vpop.f32.mrb[117].mxu1 }
0x505a   : > { %17221 = vmatpush3.bf16.msra.mxu0 %v17220_v52 }
0x505b   : > { %17228 = vmatprep.subr.bf16.mxu0 %v17562_v3 }
0x505d   : > { %16512 = vmatmul.mubr.msk.f32.vlgmr.msra.gmra.mrb[114].mxu0 %vm1184_vm3, %v18756_v21 }
0x505e   : > { %17230 = vmatpush3.bf16.msra.mxu0 %v17229_v58  ;;  %16533 = vmatprep.mubr.msk.f32.mxu0 %vm17563_vm0, %v17564_v6 }
0x505f   : > { %17231 = vmatprep.subr.bf16.mxu0 %v17562_v3 }
0x5060   : > { %v10987_v0 = vpop.f32.mrb[118].mxu1 }
0x5061   : > { %v10988_v1 = vadd.f32 %v14780_v62, %v10987_v0  ;;  %v16524_v2 = vpop.f32.mrb[119].mxu1  ;;  %v14799_v62 = vld [vmem:[%s19250_s7 + $0xf] ss:$0 sm:$0xff] }
0x5062   : > { %17233 = vmatpush3.bf16.msra.mxu0 %v17232_v49 }
0x5063   : > { %16537 = vmatpush3.xpose.msk.msra.mxu1 %vm1424_vm4, %v10988_v1  ;;  %16546 = vmatprep.subr.mxu0 %v17564_v6  ;;  %v14813_v1 = vld [vmem:[%s19250_s7 + $0x17] ss:$0 sm:$0xff] }
0x5064   : > { %16541 = vmatprep.subr.mxu1 %v17564_v6 }
0x5065   : > { %16534 = vmatmul.mubr.msk.f32.vlgmr.msra.gmra.mrb[116].mxu0 %vm1184_vm3, %v18756_v21 }
0x5066   : > { %16548 = vmatprep.mubr.msk.f32.mxu0 %vm17563_vm0, %v17564_v6  ;;  %16547 = vmatpush3.msra.mxu0 %v14792_v26 }
0x5067   : > { %17240 = vmatprep.subr.bf16.mxu0 %v17562_v3 }
0x5128   : > { %v10748_v61 = vpop.f32.mrb[112].mxu0 }
0x5129   : > { %v18877_v4 = vadd.f32 %v10821_v56, %v10748_v61  ;;  %v16497_v30 = vpop.f32.mrb[113].mxu0 }
0x5130   : > { %v10904_v8 = vpop.f32.mrb[114].mxu0 }
0x5131   : > { %v10905_v9 = vadd.f32 %v14773_v7, %v10904_v8  ;;  %v16513_v10 = vpop.f32.mrb[115].mxu0 }
0x5133   : > { %16539 = vmatmul.mubr.msk.f32.vlgmr.msra.gmra.mrb[120].mxu1 %vm1424_vm4, %v10905_v9 }
0x5134   : > { %16543 = vmatprep.mubr.msk.f32.mxu1 %vm17563_vm0, %v17564_v6 }
0x5138   : > { %v11070_v12 = vpop.f32.mrb[116].mxu0 }
0x5139   : > { %v11071_v13 = vadd.f32 %v14787_v11, %v11070_v12  ;;  %v16535_v15 = vpop.f32.mrb[117].mxu0 }
0x513b   : > { %16542 = vmatpush3.msra.mxu1 %v11071_v13 }
0x513c   : > { %17234 = vmatprep.subr.bf16.mxu1 %v17562_v3 }
0x5206   : > { %v11146_v16 = vpop.f32.mrb[120].mxu1 }
0x5207   : > { %v11150_v17 = vmul.f32 0.35355338, %v11146_v16  ;;  %v16540_v18 = vpop.f32.mrb[121].mxu1  ;;  %v14818_v16 = vld [vmem:[%s19251_s10 + $0x38] sm:$0xff] }
0x5209   : > { %v11151_v5 = vadd.f32 %v11150_v17, %v17844_v63 }
0x520b   : > { %v11152_v19 = vsel %vm1424_vm4, %v11151_v5, -inf }
0x520c   : > { %11153 = vmax.xlane.f32.xlu0 %v11152_v19  ;;  %v14834_v19 = vld [vmem:[%s19253_s15 + $0x208] sm:$0xff] }
0x5299   : > { %v11154_v20 = vpop.xlane.xlu0 %11153 }
0x529a   : > { %v11155_v22 = vsub.f32 %v11151_v5, %v11154_v20  ;;  %v14833_v5 = vld [vmem:[%s19253_s15 + $0x200] sm:$0xff] }
0x529b   : > { %v17259_v20 = vpack.c.bf16 %v14834_v19, %v14833_v5  ;;  %v14845_v5 = vld [vmem:[%s19258_s28 + $0x14] ss:$0 sm:$0xff] }
0x529c   : > { %v11156_v23 = vmul.f32 1.442695, %v11155_v22  ;;  %v14835_v22 = vld [vmem:[%s19253_s15 + $0x210] sm:$0xff] }
0x529e   : > { %17485 = vpow2.f32 %v11156_v23  ;;  %v14836_v23 = vld [vmem:[%s19253_s15 + $0x218] sm:$0xff] }
0x529f   : > { %v17262_v26 = vpack.c.bf16 %v14836_v23, %v14835_v22 }
0x52a8   : > { %v17486_v24 = vpop.eup %17485 }
0x52a9   : > { %v11158_v25 = vsel %vm1424_vm4, %v17486_v24, 0.0 }
0x52aa   : > { %11159 = vadd.xlane.f32.xlu1 %v11158_v25 }
0x5337   : > { %v11160_v27 = vpop.xlane.xlu1 %11159 }
0x5338   : > { %17487 = vrcp.f32 %v11160_v27 }
0x5342   : > { %v17488_v32 = vpop.eup %17487 }
0x5343   : > { %v11162_v34 = vmul.f32 %v17488_v32, %v17486_v24 }
0x5345   : > { %16544 = vmatmul.mubr.msk.f32.vlgmr.msra.gmra.mrb[122].mxu1 %vm1424_vm4, %v11162_v34 }
0x5346   : > { %17236 = vmatpush3.bf16.msra.mxu1 %v17235_v33  ;;  %16559 = vmatprep.mubr.msk.f32.mxu1 %vm17563_vm0, %v17564_v6 }
0x5347   : > { %17237 = vmatprep.subr.bf16.mxu1 %v17562_v3 }
0x534a   : > { %17239 = vmatpush3.bf16.msra.mxu1 %v17238_v36 }
0x534b   : > { %17246 = vmatprep.subr.bf16.mxu1 %v17562_v3 }
0x534d   : > { %16560 = vmatmul.mubr.msk.f32.vlgmr.msra.gmra.mrb[124].mxu1 %vm1184_vm3, %v18756_v21 }
0x534e   : > { %17248 = vmatpush3.bf16.msra.mxu1 %v17247_v38  ;;  %16581 = vmatprep.mubr.msk.f32.mxu1 %vm17563_vm0, %v17564_v6 }
0x534f   : > { %17249 = vmatprep.subr.bf16.mxu1 %v17562_v3 }
0x5352   : > { %17251 = vmatpush3.bf16.msra.mxu1 %v17250_v41 }
0x5353   : > { %16594 = vmatprep.subr.mxu1 %v17564_v6 }
0x5355   : > { %16582 = vmatmul.mubr.msk.f32.vlgmr.msra.gmra.mrb[126].mxu1 %vm1184_vm3, %v18756_v21 }
0x5356   : > { %16596 = vmatprep.mubr.msk.f32.mxu1 %vm17563_vm0, %v17564_v6  ;;  %16595 = vmatpush3.msra.mxu1 %v14818_v16  ;;  %v14831_v16 = vld [vmem:[%s19258_s28 + $0xc] ss:$0 sm:$0xff] }
0x5357   : > { %17258 = vmatprep.subr.bf16.mxu1 %v17562_v3 }
0x5418   : > { %v11232_v28 = vpop.f32.mrb[122].mxu1 }
0x5419   : > { %v16545_v47 = vpop.f32.mrb[123].mxu1  ;;  %16549 = vmatmul.mubr.msk.f32.vlgmr.msra.gmra.mrb[118].mxu0 %vm1424_vm4, %v11232_v28  ;;  %v17256_v28 = vpack.c.bf16 %v14829_v46, %v14828_v44  ;;  %v14863_v46 = vld [vmem:[%s19258_s28 + $0x11] ss:$0 sm:$0xff] }
0x541a   : > { %17242 = vmatpush3.bf16.msra.mxu0 %v17241_v45  ;;  %16570 = vmatprep.mubr.msk.f32.mxu0 %vm17563_vm0, %v17564_v6  ;;  %v17253_v45 = vpack.c.bf16 %v14827_v43, %v14826_v42  ;;  %v14861_v42 = vld [vmem:[%s19253_s15 + $0x238] sm:$0xff] }
0x541b   : > { %17243 = vmatprep.subr.bf16.mxu0 %v17562_v3 }
0x541e   : > { %17245 = vmatpush3.bf16.msra.mxu0 %v17244_v48 }
0x541f   : > { %16584 = vmatprep.subr.mxu0 %v17564_v6 }
0x5420   : > { %v11391_v51 = vpop.f32.mrb[124].mxu1 }
0x5421   : > { %v16561_v52 = vpop.f32.mrb[125].mxu1  ;;  %16571 = vmatmul.mubr.msk.f32.vlgmr.msra.gmra.mrb[120].mxu0 %vm1184_vm3, %v18756_v21  ;;  %v11392_v2 = vadd.f32 %v14799_v62, %v11391_v51 }
0x5422   : > { %16586 = vmatprep.mubr.msk.f32.mxu0 %vm17563_vm0, %v17564_v6 }
0x5428   : > { %v11557_v53 = vpop.f32.mrb[126].mxu1 }
0x5429   : > { %v16583_v54 = vpop.f32.mrb[127].mxu1  ;;  %v11558_v61 = vadd.f32 %v14813_v1, %v11557_v53  ;;  %v14824_v53 = vld [vmem:[%s19256_s23 + $0x3] ss:$0 sm:$0xff] }
0x54ec   : > { %v11307_v56 = vpop.f32.mrb[118].mxu0 }
0x54ed   : > { %v11311_v57 = vadd.f32 %v11307_v56, %v18877_v4  ;;  %v16550_v58 = vpop.f32.mrb[119].mxu0  ;;  %v14840_v56 = vld [vmem:[%s19253_s15 + $0x280] sm:$0xff] }
0x54ee   : > { %v14825_v58 = vld [vmem:[%s19257_s26 + $0x3] ss:$0 sm:$0xff] }
0x54f4   : > { %v11474_v60 = vpop.f32.mrb[120].mxu0 }
0x54f5   : > { %v11475_v49 = vadd.f32 %v14806_v59, %v11474_v60  ;;  %v16572_v0 = vpop.f32.mrb[121].mxu0 }
0x54f6   : > { %v14843_v0 = vld [vmem:[%s19253_s15 + $0x298] sm:$0xff] }
0x54f7   : > { %16585 = vmatpush3.xpose.msk.msra.mxu0 %vm1424_vm4, %v11475_v49  ;;  %v14842_v49 = vld [vmem:[%s19253_s15 + $0x290] sm:$0xff] }
0x54f8   : > { %16589 = vmatprep.subr.mxu0 %v17564_v6  ;;  %v17268_v1 = vpack.c.bf16 %v14843_v0, %v14842_v49 }
0x54fa   : > { %16587 = vmatmul.mubr.msk.f32.vlgmr.msra.gmra.mrb[122].mxu0 %vm1424_vm4, %v11392_v2  ;;  %v14851_v2 = vld [vmem:[%s19253_s15 + $0x1a0] sm:$0xff] }
0x54fb   : > { %16590 = vmatpush3.msra.mxu0 %v11558_v61  ;;  %16591 = vmatprep.mubr.msk.f32.mxu0 %vm17563_vm0, %v17564_v6  ;;  %v14852_v61 = vld [vmem:[%s19253_s15 + $0x1a8] sm:$0xff] }
0x54fc   : > { %17252 = vmatprep.subr.bf16.mxu0 %v17562_v3 }
0x55cd   : > { %v11633_v4 = vpop.f32.mrb[122].mxu0 }
0x55ce   : > { %v11637_v30 = vmul.f32 0.35355338, %v11633_v4  ;;  %v16588_v7 = vpop.f32.mrb[123].mxu0  ;;  %v17271_v4 = vpack.c.bf16 %v14852_v61, %v14851_v2  ;;  %v14875_v61 = vld [vmem:[%s19259_s16 + $0x28] sm:$0xff] }
0x55cf   : > { %v14854_v7 = vld [vmem:[%s19253_s15 + $0x1b8] sm:$0xff] }
0x55d0   : > { %v11638_v8 = vadd.f32 %v11637_v30, %v17844_v63  ;;  %v14853_v30 = vld [vmem:[%s19253_s15 + $0x1b0] sm:$0xff] }
0x55d2   : > { %v11639_v9 = vsel %vm1424_vm4, %v11638_v8, -inf }
0x55d3   : > { %11640 = vmax.xlane.f32.xlu0 %v11639_v9  ;;  %v14865_v9 = vld [vmem:[%s19253_s15 + $0x2a0] sm:$0xff] }
0x5660   : > { %v11641_v10 = vpop.xlane.xlu0 %11640 }
0x5661   : > { %v11642_v11 = vsub.f32 %v11638_v8, %v11641_v10  ;;  %v17274_v8 = vpack.c.bf16 %v14854_v7, %v14853_v30  ;;  %v14866_v10 = vld [vmem:[%s19253_s15 + $0x2a8] sm:$0xff] }
0x5663   : > { %v11643_v12 = vmul.f32 1.442695, %v11642_v11  ;;  %v17283_v11 = vpack.c.bf16 %v14866_v10, %v14865_v9  ;;  %v14885_v9 = vld [vmem:[%s19253_s15 + $0x240] sm:$0xff]  ;;  %v14886_v10 = vld [vmem:[%s19253_s15 + $0x248] sm:$0xff] }
0x5665   : > { %17489 = vpow2.f32 %v11643_v12  ;;  %v14867_v12 = vld [vmem:[%s19253_s15 + $0x2b0] sm:$0xff] }
0x566f   : > { %v17490_v13 = vpop.eup %17489 }
0x5670   : > { %v11645_v15 = vsel %vm1424_vm4, %v17490_v13, 0.0 }
0x5671   : > { %11646 = vadd.xlane.f32.xlu1 %v11645_v15 }
0x56fe   : > { %v11647_v63 = vpop.xlane.xlu1 %11646 }
0x56ff   : > { %17491 = vrcp.f32 %v11647_v63 }
0x5709   : > { %v17492_v17 = vpop.eup %17491 }
0x570a   : > { %v11649_v18 = vmul.f32 %v17492_v17, %v17490_v13  ;;  %v14868_v13 = vld [vmem:[%s19253_s15 + $0x2b8] sm:$0xff] }
0x570b   : > { %v17286_v15 = vpack.c.bf16 %v14868_v13, %v14867_v12  ;;  %v14887_v12 = vld [vmem:[%s19253_s15 + $0x250] sm:$0xff]  ;;  %v14888_v13 = vld [vmem:[%s19253_s15 + $0x258] sm:$0xff] }
0x570c   : > { %16592 = vmatmul.mubr.msk.f32.vlgmr.msra.gmra.mrb[124].mxu0 %vm1424_vm4, %v11649_v18 }
0x570d   : > { %16607 = vmatprep.mubr.msk.f32.mxu0 %vm17563_vm0, %v17564_v6  ;;  %17254 = vmatpush3.bf16.msra.mxu0 %v17253_v45 }
0x570e   : > { %17255 = vmatprep.subr.bf16.mxu0 %v17562_v3 }
0x5711   : > { %17257 = vmatpush3.bf16.msra.mxu0 %v17256_v28 }
0x5712   : > { %17264 = vmatprep.subr.bf16.mxu0 %v17562_v3 }
0x57df   : > { %v11719_v24 = vpop.f32.mrb[124].mxu0 }
0x57e0   : > { %v16593_v25 = vpop.f32.mrb[125].mxu0  ;;  %16597 = vmatmul.mubr.msk.f32.vlgmr.msra.gmra.mrb[128].mxu1 %vm1424_vm4, %v11719_v24 }
0x57e1   : > { %17260 = vmatpush3.bf16.msra.mxu1 %v17259_v20  ;;  %16618 = vmatprep.mubr.msk.f32.mxu1 %vm17563_vm0, %v17564_v6 }
0x57e2   : > { %17261 = vmatprep.subr.bf16.mxu1 %v17562_v3 }
0x57e5   : > { %17263 = vmatpush3.bf16.msra.mxu1 %v17262_v26 }
0x57e6   : > { %16632 = vmatprep.subr.mxu1 %v17564_v6 }
0x57e8   : > { %16619 = vmatmul.mubr.msk.f32.vlgmr.msra.gmra.mrb[130].mxu1 %vm1184_vm3, %v18507_v50 }
0x57e9   : > { %16634 = vmatprep.mubr.msk.f32.mxu1 %vm17563_vm0, %v17564_v6 }
0x58b3   : > { %v11794_v27 = vpop.f32.mrb[128].mxu1 }
0x58b4   : > { %v11798_v31 = vadd.f32 %v11794_v27, %v11311_v57  ;;  %v16598_v32 = vpop.f32.mrb[129].mxu1  ;;  %v14841_v57 = vld [vmem:[%s19253_s15 + $0x288] sm:$0xff] }
0x58b5   : > { %v17265_v60 = vpack.c.bf16 %v14841_v57, %v14840_v56 }
0x58b6   : > { %v11807_v33 = vadd.f32 %v14821_v29, %v11798_v31 }
0x58b8   : > { %v11808_v34 = vadd.f32 %v11807_v33, %v18756_v21 }
0x58ba   : > { %v11813_v35 = vsel %vm1184_vm3, %v11808_v34, 0.0 }
0x58bb   : > { %v12005_v36 = vpop.f32.mrb[130].mxu1  ;;  %11814 = vadd.xlane.f32.xlu0 %v11813_v35 }
0x58bc   : > { %v12006_v37 = vadd.f32 %v14838_v14, %v12005_v36  ;;  %v16620_v55 = vpop.f32.mrb[131].mxu1 }
0x58bd   : > { %v14858_v55 = vld [vmem:[%s19253_s15 + $0x220] sm:$0xff] }
0x58be   : > { %16633 = vmatpush3.xpose.msk.msra.mxu1 %vm1424_vm4, %v12006_v37 }
0x58bf   : > { %16637 = vmatprep.subr.mxu1 %v17564_v6 }
0x5948   : > { %v11815_v38 = vpop.xlane.xlu0 %11814 }
0x5949   : > { %v11816_v39 = vmul.f32 0.03125, %v11815_v38  ;;  %v14859_v38 = vld [vmem:[%s19253_s15 + $0x228] sm:$0xff] }
0x594b   : > { %v11817_v40 = vsub.f32 %v11808_v34, %v11816_v39 }
0x594d   : > { %v11818_v41 = vmul.f32 %v11817_v40, %v11817_v40 }
0x594f   : > { %v11819_v21 = vsel %vm1184_vm3, %v11818_v41, 0.0 }
0x5950   : > { %11820 = vadd.xlane.f32.xlu1 %v11819_v21  ;;  %v14860_v21 = vld [vmem:[%s19253_s15 + $0x230] sm:$0xff] }
0x5951   : > { %v17280_v43 = vpack.c.bf16 %v14861_v42, %v14860_v21  ;;  %v14897_v21 = vld [vmem:[%s19258_s28 + $0x16] ss:$0 sm:$0xff] }
0x59dd   : > { %v11821_v47 = vpop.xlane.xlu1 %11820 }
0x59de   : > { %v11822_v48 = vmul.f32 0.03125, %v11821_v47  ;;  %v14856_v47 = vld [vmem:[%s19258_s28 + $0xd] ss:$0 sm:$0xff] }
0x59e0   : > { %v11823_v51 = vadd.f32 1e-05, %v11822_v48 }
0x59e2   : > { %17493 = vrsqrt.f32 %v11823_v51 }
0x59ec   : > { %v17494_v52 = vpop.eup %17493 }
0x59ed   : > { %v11825_v54 = vmul.f32 %v17494_v52, %v11817_v40  ;;  %v17277_v40 = vpack.c.bf16 %v14859_v38, %v14858_v55  ;;  %v14870_v52 = vld [vmem:[%s19258_s28 + $0x15] ss:$0 sm:$0xff]  ;;  %v14883_v38 = vld [vmem:[%s19258_s28 + $0xe] ss:$0 sm:$0xff] }
0x59ef   : > { %v11832_v59 = vmul.f32 %v14824_v53, %v11825_v54 }
0x59f1   : > { %v18974_v62 = vadd.f32 %v14825_v58, %v11832_v59 }
0x59f3   : > { %16608 = vmatmul.mubr.msk.f32.vlgmr.msra.gmra.mrb[126].mxu0 %vm1184_vm3, %v18974_v62 }
0x59f4   : > { %17266 = vmatpush3.bf16.msra.mxu0 %v17265_v60  ;;  %16629 = vmatprep.mubr.msk.f32.mxu0 %vm17563_vm0, %v17564_v6 }
0x59f5   : > { %17267 = vmatprep.subr.bf16.mxu0 %v17562_v3 }
0x59f8   : > { %17269 = vmatpush3.bf16.msra.mxu0 %v17268_v1 }
0x59f9   : > { %17270 = vmatprep.subr.bf16.mxu0 %v17562_v3 }
0x59fb   : > { %16630 = vmatmul.mubr.msk.f32.vlgmr.msra.gmra.mrb[128].mxu0 %vm1184_vm3, %v18507_v50 }
0x59fc   : > { %17272 = vmatpush3.bf16.msra.mxu0 %v17271_v4  ;;  %16650 = vmatprep.mubr.msk.f32.mxu0 %vm17563_vm0, %v17564_v6 }
0x59fd   : > { %17273 = vmatprep.subr.bf16.mxu0 %v17562_v3 }
0x5a00   : > { %17275 = vmatpush3.bf16.msra.mxu0 %v17274_v8  ;;  %v14850_v8 = vld [vmem:[%s19259_s16 + $0x20] sm:$0xff] }
0x5a01   : > { %17282 = vmatprep.subr.bf16.mxu0 %v17562_v3 }
0x5a03   : > { %16651 = vmatmul.mubr.msk.f32.vlgmr.msra.gmra.mrb[130].mxu0 %vm1184_vm3, %v18974_v62 }
0x5a04   : > { %17284 = vmatpush3.bf16.msra.mxu0 %v17283_v11  ;;  %16672 = vmatprep.mubr.msk.f32.mxu0 %vm17563_vm0, %v17564_v6  ;;  %v17295_v11 = vpack.c.bf16 %v14886_v10, %v14885_v9  ;;  %v14921_v9 = vld [vmem:[%s19253_s15 + $0x2f8] sm:$0xff] }
0x5a05   : > { %17285 = vmatprep.subr.bf16.mxu0 %v17562_v3 }
0x5a08   : > { %17287 = vmatpush3.bf16.msra.mxu0 %v17286_v15  ;;  %v17298_v15 = vpack.c.bf16 %v14888_v13, %v14887_v12  ;;  %v14912_v12 = vld [vmem:[%s19253_s15 + $0x268] sm:$0xff] }
0x5a09   : > { %16685 = vmatprep.subr.mxu0 %v17564_v6 }
0x5a0b   : > { %16673 = vmatmul.mubr.msk.f32.vlgmr.msra.gmra.mrb[132].mxu0 %vm1184_vm3, %v18507_v50 }
0x5a0c   : > { %16687 = vmatprep.mubr.msk.f32.mxu0 %vm17563_vm0, %v17564_v6  ;;  %16686 = vmatpush3.msra.mxu0 %v14875_v61 }
0x5a0d   : > { %17288 = vmatprep.subr.bf16.mxu0 %v17562_v3 }
0x5ac6   : > { %v11922_v63 = vpop.f32.mrb[126].mxu0 }
0x5ac7   : > { %v11923_v17 = vadd.f32 %v14831_v16, %v11922_v63  ;;  %v16609_v18 = vpop.f32.mrb[127].mxu0  ;;  %v14878_v16 = vld [vmem:[%s19253_s15 + $0x1c0] sm:$0xff]  ;;  %v14879_v63 = vld [vmem:[%s19253_s15 + $0x1c8] sm:$0xff] }
0x5ac8   : > { %v14880_v18 = vld [vmem:[%s19253_s15 + $0x1d0] sm:$0xff] }
0x5ac9   : > { %16635 = vmatmul.mubr.msk.f32.vlgmr.msra.gmra.mrb[132].mxu1 %vm1424_vm4, %v11923_v17  ;;  %v17289_v17 = vpack.c.bf16 %v14879_v63, %v14878_v16  ;;  %v14914_v16 = vld [vmem:[%s19253_s15 + $0x278] sm:$0xff] }
0x5aca   : > { %16639 = vmatprep.mubr.msk.f32.mxu1 %vm17563_vm0, %v17564_v6 }
0x5ace   : > { %v12088_v19 = vpop.f32.mrb[128].mxu0 }
0x5acf   : > { %v12089_v20 = vadd.f32 %v14845_v5, %v12088_v19  ;;  %v16631_v22 = vpop.f32.mrb[129].mxu0  ;;  %v14881_v5 = vld [vmem:[%s19253_s15 + $0x1d8] sm:$0xff] }
0x5ad0   : > { %v17292_v22 = vpack.c.bf16 %v14881_v5, %v14880_v18 }
0x5ad1   : > { %16638 = vmatpush3.msra.mxu1 %v12089_v20 }
0x5ad2   : > { %17276 = vmatprep.subr.bf16.mxu1 %v17562_v3 }
0x5ad6   : > { %v12334_v23 = vpop.f32.mrb[130].mxu0 }
0x5ad7   : > { %v16652_v24 = vpop.f32.mrb[131].mxu0  ;;  %v12335_v53 = vadd.f32 %v14856_v47, %v12334_v23  ;;  %v14892_v23 = vld [vmem:[%s19253_s15 + $0x2c0] sm:$0xff] }
0x5ad8   : > { %v14893_v24 = vld [vmem:[%s19253_s15 + $0x2c8] sm:$0xff] }
0x5ade   : > { %v12500_v25 = vpop.f32.mrb[132].mxu0 }
0x5adf   : > { %v16674_v26 = vpop.f32.mrb[133].mxu0  ;;  %v12501_v54 = vadd.f32 %v14870_v52, %v12500_v25 }
0x5b9c   : > { %v12164_v27 = vpop.f32.mrb[132].mxu1 }
0x5b9d   : > { %v12168_v29 = vmul.f32 0.35355338, %v12164_v27  ;;  %v16636_v31 = vpop.f32.mrb[133].mxu1  ;;  %v17301_v27 = vpack.c.bf16 %v14893_v24, %v14892_v23 }
0x5b9e   : > { %v14895_v31 = vld [vmem:[%s19253_s15 + $0x2d8] sm:$0xff] }
0x5b9f   : > { %v12169_v32 = vsel %vm1424_vm4, %v12168_v29, -inf }
0x5ba0   : > { %12170 = vmax.xlane.f32.xlu0 %v12169_v32  ;;  %v14890_v32 = vld [vmem:[%s19258_s28 + $0x12] ss:$0 sm:$0xff] }
0x5c2d   : > { %v12171_v33 = vpop.xlane.xlu0 %12170 }
0x5c2e   : > { %v12172_v34 = vsub.f32 %v12168_v29, %v12171_v33  ;;  %v14894_v29 = vld [vmem:[%s19253_s15 + $0x2d0] sm:$0xff] }
0x5c2f   : > { %v17304_v33 = vpack.c.bf16 %v14895_v31, %v14894_v29  ;;  %v14909_v29 = vld [vmem:[%s19258_s28 + $0xf] ss:$0 sm:$0xff] }
0x5c30   : > { %v12173_v14 = vmul.f32 1.442695, %v12172_v34 }
0x5c32   : > { %17495 = vpow2.f32 %v12173_v14 }
0x5c3c   : > { %v17496_v35 = vpop.eup %17495 }
0x5c3d   : > { %v12175_v36 = vsel %vm1424_vm4, %v17496_v35, 0.0 }
0x5c3e   : > { %12176 = vadd.xlane.f32.xlu1 %v12175_v36 }
0x5ccb   : > { %v12177_v37 = vpop.xlane.xlu1 %12176 }
0x5ccc   : > { %17497 = vrcp.f32 %v12177_v37 }
0x5cd6   : > { %v17498_v39 = vpop.eup %17497 }
0x5cd7   : > { %v12179_v41 = vmul.f32 %v17498_v39, %v17496_v35 }
0x5cd9   : > { %16640 = vmatmul.mubr.msk.f32.vlgmr.msra.gmra.mrb[134].mxu1 %vm1424_vm4, %v12179_v41 }
0x5cda   : > { %17278 = vmatpush3.bf16.msra.mxu1 %v17277_v40  ;;  %16661 = vmatprep.mubr.msk.f32.mxu1 %vm17563_vm0, %v17564_v6 }
0x5cdb   : > { %17279 = vmatprep.subr.bf16.mxu1 %v17562_v3 }
0x5cde   : > { %17281 = vmatpush3.bf16.msra.mxu1 %v17280_v43 }
0x5cdf   : > { %16675 = vmatprep.subr.mxu1 %v17564_v6 }
0x5ce1   : > { %16662 = vmatmul.mubr.msk.f32.vlgmr.msra.gmra.mrb[136].mxu1 %vm1184_vm3, %v18507_v50 }
0x5ce2   : > { %16677 = vmatprep.mubr.msk.f32.mxu1 %vm17563_vm0, %v17564_v6 }
0x5dac   : > { %v12249_v45 = vpop.f32.mrb[134].mxu1 }
0x5dad   : > { %v16641_v44 = vpop.f32.mrb[135].mxu1 }
0x5db4   : > { %v12417_v28 = vpop.f32.mrb[136].mxu1 }
0x5db5   : > { %v12418_v48 = vadd.f32 %v14863_v46, %v12417_v28  ;;  %v16663_v51 = vpop.f32.mrb[137].mxu1 }
0x5db7   : > { %16676 = vmatpush3.xpose.msk.msra.mxu1 %vm1424_vm4, %v12418_v48 }
0x5db8   : > { %16680 = vmatprep.subr.mxu1 %v17564_v6 }
0x5dba   : > { %16678 = vmatmul.mubr.msk.f32.vlgmr.msra.gmra.mrb[138].mxu1 %vm1424_vm4, %v12335_v53 }
0x5dbb   : > { %16681 = vmatpush3.msra.mxu1 %v12501_v54  ;;  %16682 = vmatprep.mubr.msk.f32.mxu1 %vm17563_vm0, %v17564_v6 }
0x5dbc   : > { %16690 = vmatprep.subr.mxu1 %v17564_v6 }
0x5e8d   : > { %v12576_v56 = vpop.f32.mrb[138].mxu1 }
0x5e8e   : > { %v12580_v57 = vmul.f32 0.35355338, %v12576_v56  ;;  %v16679_v58 = vpop.f32.mrb[139].mxu1  ;;  %v14902_v56 = vld [vmem:[%s19259_s16 + $0x30] sm:$0xff] }
0x5e8f   : > { %v14904_v58 = vld [vmem:[%s19253_s15 + $0x1e0] sm:$0xff] }
0x5e90   : > { %v12581_v59 = vsel %vm1424_vm4, %v12580_v57, -inf }
0x5e91   : > { %12582 = vmax.xlane.f32.xlu0 %v12581_v59  ;;  %v14905_v59 = vld [vmem:[%s19253_s15 + $0x1e8] sm:$0xff] }
0x5f1e   : > { %v12583_v60 = vpop.xlane.xlu0 %12582 }
0x5f1f   : > { %v12584_v49 = vsub.f32 %v12580_v57, %v12583_v60 }
0x5f21   : > { %v12585_v0 = vmul.f32 1.442695, %v12584_v49  ;;  %v17307_v49 = vpack.c.bf16 %v14905_v59, %v14904_v58 }
0x5f23   : > { %17499 = vpow2.f32 %v12585_v0 }
0x5f2d   : > { %v17500_v1 = vpop.eup %17499 }
0x5f2e   : > { %v12587_v2 = vsel %vm1424_vm4, %v17500_v1, 0.0 }
0x5f2f   : > { %12588 = vadd.xlane.f32.xlu1 %v12587_v2  ;;  %v14907_v2 = vld [vmem:[%s19253_s15 + $0x1f8] sm:$0xff] }
0x5fbc   : > { %v12589_v4 = vpop.xlane.xlu1 %12588 }
0x5fbd   : > { %17501 = vrcp.f32 %v12589_v4  ;;  %v14918_v4 = vld [vmem:[%s19253_s15 + $0x2e0] sm:$0xff] }
0x5fc7   : > { %v17502_v30 = vpop.eup %17501 }
0x5fc8   : > { %v12591_v7 = vmul.f32 %v17502_v30, %v17500_v1  ;;  %v14906_v1 = vld [vmem:[%s19253_s15 + $0x1f0] sm:$0xff]  ;;  %v14919_v30 = vld [vmem:[%s19253_s15 + $0x2e8] sm:$0xff] }
0x5fc9   : > { %v17310_v61 = vpack.c.bf16 %v14907_v2, %v14906_v1  ;;  %v14939_v2 = vld [vmem:[%s19261_s1 + $0x38] sm:$0xff] }
0x5fca   : > { %16683 = vmatmul.mubr.msk.f32.vlgmr.msra.gmra.mrb[140].mxu1 %vm1424_vm4, %v12591_v7  ;;  %v17319_v7 = vpack.c.bf16 %v14919_v30, %v14918_v4  ;;  %v14943_v4 = vld [vmem:[%s19262_s3 + $0x40] sm:$0xff]  ;;  %v14944_v30 = vld [vmem:[%s19262_s3 + $0x48] sm:$0xff] }
0x5fcb   : > { %16691 = vmatpush3.msra.mxu1 %v14850_v8  ;;  %16692 = vmatprep.mubr.msk.f32.mxu1 %vm17563_vm0, %v17564_v6  ;;  %v14920_v8 = vld [vmem:[%s19253_s15 + $0x2f0] sm:$0xff] }
0x5fcc   : > { %17294 = vmatprep.subr.bf16.mxu1 %v17562_v3  ;;  %v17322_v10 = vpack.c.bf16 %v14921_v9, %v14920_v8  ;;  %v17331_v8 = vpack.c.bf16 %v14944_v30, %v14943_v4  ;;  %v14946_v9 = vld [vmem:[%s19262_s3 + $0x58] sm:$0xff]  ;;  %v14959_v30 = vld [vmem:[%s17734_s27] ss:$0 sm:$0xff] }
0x5fce   : > { %16693 = vmatmul.mubr.msk.f32.vlgmr.msra.gmra.mrb[142].mxu1 %vm1424_vm4, %v12249_v45 }
0x5fcf   : > { %17296 = vmatpush3.bf16.msra.mxu1 %v17295_v11  ;;  %16714 = vmatprep.mubr.msk.f32.mxu1 %vm17563_vm0, %v17564_v6  ;;  %v14911_v11 = vld [vmem:[%s19253_s15 + $0x260] sm:$0xff] }
0x5fd0   : > { %17297 = vmatprep.subr.bf16.mxu1 %v17562_v3  ;;  %v17313_v13 = vpack.c.bf16 %v14912_v12, %v14911_v11  ;;  %v14947_v11 = vld [vmem:[%s19262_s3 + $0x60] sm:$0xff]  ;;  %v14948_v12 = vld [vmem:[%s19262_s3 + $0x68] sm:$0xff] }
0x5fd3   : > { %17299 = vmatpush3.bf16.msra.mxu1 %v17298_v15  ;;  %v14913_v15 = vld [vmem:[%s19253_s15 + $0x270] sm:$0xff] }
0x5fd4   : > { %16728 = vmatprep.subr.mxu1 %v17564_v6  ;;  %v17316_v18 = vpack.c.bf16 %v14914_v16, %v14913_v15 }
0x5fd6   : > { %16715 = vmatmul.mubr.msk.f32.vlgmr.msra.gmra.mrb[144].mxu1 %vm1184_vm3, %v18507_v50 }
0x5fd7   : > { %16730 = vmatprep.mubr.msk.f32.mxu1 %vm17563_vm0, %v17564_v6 }
0x609d   : > { %v12661_v19 = vpop.f32.mrb[140].mxu1 }
0x609e   : > { %v16684_v20 = vpop.f32.mrb[141].mxu1  ;;  %16688 = vmatmul.mubr.msk.f32.vlgmr.msra.gmra.mrb[134].mxu0 %vm1424_vm4, %v12661_v19 }
0x609f   : > { %17290 = vmatpush3.bf16.msra.mxu0 %v17289_v17  ;;  %16703 = vmatprep.mubr.msk.f32.mxu0 %vm17563_vm0, %v17564_v6 }
0x60a0   : > { %17291 = vmatprep.subr.bf16.mxu0 %v17562_v3 }
0x60a1   : > { %v12809_v25 = vpop.f32.mrb[142].mxu1 }
0x60a2   : > { %v16694_v26 = vpop.f32.mrb[143].mxu1 }
0x60a3   : > { %17293 = vmatpush3.bf16.msra.mxu0 %v17292_v22  ;;  %v14916_v26 = vld [vmem:[%s19258_s28 + $0x13] ss:$0 sm:$0xff] }
0x60a4   : > { %17300 = vmatprep.subr.bf16.mxu0 %v17562_v3 }
0x60a6   : > { %16704 = vmatmul.mubr.msk.f32.vlgmr.msra.gmra.mrb[136].mxu0 %vm1184_vm3, %v18974_v62 }
0x60a7   : > { %17302 = vmatpush3.bf16.msra.mxu0 %v17301_v27  ;;  %16725 = vmatprep.mubr.msk.f32.mxu0 %vm17563_vm0, %v17564_v6 }
0x60a8   : > { %17303 = vmatprep.subr.bf16.mxu0 %v17562_v3 }
0x60a9   : > { %v12975_v34 = vpop.f32.mrb[144].mxu1 }
0x60aa   : > { %v12976_v14 = vadd.f32 %v14890_v32, %v12975_v34  ;;  %v16716_v35 = vpop.f32.mrb[145].mxu1 }
0x60ab   : > { %17305 = vmatpush3.bf16.msra.mxu0 %v17304_v33  ;;  %v14923_v33 = vld [vmem:[%s19258_s28 + $0x17] ss:$0 sm:$0xff] }
0x60ac   : > { %16729 = vmatpush3.xpose.msk.msra.mxu1 %vm1424_vm4, %v12976_v14  ;;  %16738 = vmatprep.subr.mxu0 %v17564_v6 }
0x60ad   : > { %16733 = vmatprep.subr.mxu1 %v17564_v6 }
0x60ae   : > { %16726 = vmatmul.mubr.msk.f32.vlgmr.msra.gmra.mrb[138].mxu0 %vm1184_vm3, %v18507_v50 }
0x60af   : > { %16740 = vmatprep.mubr.msk.f32.mxu0 %vm17563_vm0, %v17564_v6  ;;  %16739 = vmatpush3.msra.mxu0 %v14902_v56 }
0x60b0   : > { %17312 = vmatprep.subr.bf16.mxu0 %v17562_v3 }
0x6171   : > { %v12736_v36 = vpop.f32.mrb[134].mxu0 }
0x6172   : > { %v19086_v37 = vadd.f32 %v12809_v25, %v12736_v36  ;;  %v16689_v55 = vpop.f32.mrb[135].mxu0 }
0x6179   : > { %v12892_v39 = vpop.f32.mrb[136].mxu0 }
0x617a   : > { %v12893_v40 = vadd.f32 %v14883_v38, %v12892_v39  ;;  %v16705_v41 = vpop.f32.mrb[137].mxu0 }
0x617c   : > { %16731 = vmatmul.mubr.msk.f32.vlgmr.msra.gmra.mrb[146].mxu1 %vm1424_vm4, %v12893_v40 }
0x617d   : > { %16735 = vmatprep.mubr.msk.f32.mxu1 %vm17563_vm0, %v17564_v6 }
0x6181   : > { %v13058_v42 = vpop.f32.mrb[138].mxu0 }
0x6182   : > { %v13059_v43 = vadd.f32 %v14897_v21, %v13058_v42  ;;  %v16727_v45 = vpop.f32.mrb[139].mxu0  ;;  %v14928_v21 = vld [vmem:[%s19259_s16 + $0x38] sm:$0xff] }
0x6184   : > { %16734 = vmatpush3.msra.mxu1 %v13059_v43 }
0x6185   : > { %17306 = vmatprep.subr.bf16.mxu1 %v17562_v3 }
0x624f   : > { %v13134_v44 = vpop.f32.mrb[146].mxu1 }
0x6250   : > { %v13138_v46 = vmul.f32 0.35355338, %v13134_v44  ;;  %v16732_v28 = vpop.f32.mrb[147].mxu1 }
0x6252   : > { %v13139_v47 = vsel %vm1424_vm4, %v13138_v46, -inf }
0x6253   : > { %13140 = vmax.xlane.f32.xlu0 %v13139_v47  ;;  %v14931_v47 = vld [vmem:[%s19260_s18 + $0x1] ss:$0 sm:$0xff] }
0x62e0   : > { %v13141_v48 = vpop.xlane.xlu0 %13140 }
0x62e1   : > { %v13142_v51 = vsub.f32 %v13138_v46, %v13141_v48 }
0x62e3   : > { %v13143_v52 = vmul.f32 1.442695, %v13142_v51 }
0x62e5   : > { %17503 = vpow2.f32 %v13143_v52 }
0x62ef   : > { %v17504_v53 = vpop.eup %17503 }
0x62f0   : > { %v13145_v54 = vsel %vm1424_vm4, %v17504_v53, 0.0 }
0x62f1   : > { %13146 = vadd.xlane.f32.xlu1 %v13145_v54 }
0x637e   : > { %v13147_v57 = vpop.xlane.xlu1 %13146 }
0x637f   : > { %17505 = vrcp.f32 %v13147_v57 }
0x6389   : > { %v17506_v60 = vpop.eup %17505 }
0x638a   : > { %v13149_v0 = vmul.f32 %v17506_v60, %v17504_v53 }
0x638c   : > { %16736 = vmatmul.mubr.msk.f32.vlgmr.msra.gmra.mrb[148].mxu1 %vm1424_vm4, %v13149_v0  ;;  %v14937_v0 = vld [vmem:[%s19261_s1 + $0x28] sm:$0xff] }
0x638d   : > { %17308 = vmatpush3.bf16.msra.mxu1 %v17307_v49  ;;  %16751 = vmatprep.mubr.msk.f32.mxu1 %vm17563_vm0, %v17564_v6  ;;  %v14936_v49 = vld [vmem:[%s19261_s1 + $0x20] sm:$0xff] }
0x638e   : > { %17309 = vmatprep.subr.bf16.mxu1 %v17562_v3  ;;  %v17325_v1 = vpack.c.bf16 %v14937_v0, %v14936_v49 }
0x6391   : > { %17311 = vmatpush3.bf16.msra.mxu1 %v17310_v61 }
0x6392   : > { %17318 = vmatprep.subr.bf16.mxu1 %v17562_v3 }
0x6394   : > { %16752 = vmatmul.mubr.msk.f32.vlgmr.msra.gmra.mrb[150].mxu1 %vm1184_vm3, %v18974_v62 }
0x6395   : > { %17320 = vmatpush3.bf16.msra.mxu1 %v17319_v7  ;;  %16773 = vmatprep.mubr.msk.f32.mxu1 %vm17563_vm0, %v17564_v6  ;;  %v14945_v7 = vld [vmem:[%s19262_s3 + $0x50] sm:$0xff] }
0x6396   : > { %17321 = vmatprep.subr.bf16.mxu1 %v17562_v3 }
0x6399   : > { %17323 = vmatpush3.bf16.msra.mxu1 %v17322_v10  ;;  %v17334_v10 = vpack.c.bf16 %v14946_v9, %v14945_v7 }
0x639a   : > { %16786 = vmatprep.subr.mxu1 %v17564_v6 }
0x639c   : > { %16774 = vmatmul.mubr.msk.f32.vlgmr.msra.gmra.mrb[152].mxu1 %vm1184_vm3, %v18507_v50 }
0x639d   : > { %16788 = vmatprep.mubr.msk.f32.mxu1 %vm17563_vm0, %v17564_v6  ;;  %16787 = vmatpush3.msra.mxu1 %v14928_v21 }
0x639e   : > { %17330 = vmatprep.subr.bf16.mxu1 %v17562_v3 }
0x645f   : > { %v13219_v63 = vpop.f32.mrb[148].mxu1 }
0x6460   : > { %v16737_v17 = vpop.f32.mrb[149].mxu1  ;;  %16741 = vmatmul.mubr.msk.f32.vlgmr.msra.gmra.mrb[140].mxu0 %vm1424_vm4, %v13219_v63 }
0x6461   : > { %17314 = vmatpush3.bf16.msra.mxu0 %v17313_v13  ;;  %16762 = vmatprep.mubr.msk.f32.mxu0 %vm17563_vm0, %v17564_v6  ;;  %v17337_v13 = vpack.c.bf16 %v14948_v12, %v14947_v11 }
0x6462   : > { %17315 = vmatprep.subr.bf16.mxu0 %v17562_v3 }
0x6465   : > { %17317 = vmatpush3.bf16.msra.mxu0 %v17316_v18  ;;  %v14934_v18 = vld [vmem:[%s19256_s23 + $0x4] ss:$0 sm:$0xff] }
0x6466   : > { %16776 = vmatprep.subr.mxu0 %v17564_v6 }
0x6467   : > { %v13378_v5 = vpop.f32.mrb[150].mxu1 }
0x6468   : > { %v16753_v19 = vpop.f32.mrb[151].mxu1  ;;  %16763 = vmatmul.mubr.msk.f32.vlgmr.msra.gmra.mrb[142].mxu0 %vm1184_vm3, %v18507_v50  ;;  %v13379_v34 = vadd.f32 %v14909_v29, %v13378_v5 }
0x6469   : > { %16778 = vmatprep.mubr.msk.f32.mxu0 %vm17563_vm0, %v17564_v6  ;;  %v14935_v19 = vld [vmem:[%s19257_s26 + $0x4] ss:$0 sm:$0xff] }
0x646f   : > { %v13544_v20 = vpop.f32.mrb[152].mxu1 }
0x6470   : > { %v16775_v22 = vpop.f32.mrb[153].mxu1  ;;  %v13545_v50 = vadd.f32 %v14923_v33, %v13544_v20  ;;  %v14952_v33 = vld [vmem:[%s19264_s6 + $0x1] ss:$0 sm:$0xff] }
0x6533   : > { %v13294_v23 = vpop.f32.mrb[140].mxu0 }
0x6534   : > { %v13298_v24 = vadd.f32 %v13294_v23, %v19086_v37  ;;  %v16742_v25 = vpop.f32.mrb[141].mxu0  ;;  %v14949_v23 = vld [vmem:[%s19262_s3 + $0x70] sm:$0xff] }
0x653b   : > { %v13461_v27 = vpop.f32.mrb[142].mxu0 }
0x653c   : > { %v13462_v31 = vadd.f32 %v14916_v26, %v13461_v27  ;;  %v16764_v32 = vpop.f32.mrb[143].mxu0  ;;  %v14941_v26 = vld [vmem:[%s19263_s5 + $0x1] ss:$0 sm:$0xff] }
0x653e   : > { %16777 = vmatpush3.xpose.msk.msra.mxu0 %vm1424_vm4, %v13462_v31 }
0x653f   : > { %16781 = vmatprep.subr.mxu0 %v17564_v6 }
0x6541   : > { %16779 = vmatmul.mubr.msk.f32.vlgmr.msra.gmra.mrb[144].mxu0 %vm1424_vm4, %v13379_v34 }
0x6542   : > { %16782 = vmatpush3.msra.mxu0 %v13545_v50  ;;  %16783 = vmatprep.mubr.msk.f32.mxu0 %vm17563_vm0, %v17564_v6 }
0x6543   : > { %17324 = vmatprep.subr.bf16.mxu0 %v17562_v3 }
0x6614   : > { %v13620_v14 = vpop.f32.mrb[144].mxu0 }
0x6615   : > { %v13624_v35 = vmul.f32 0.35355338, %v13620_v14  ;;  %v16780_v36 = vpop.f32.mrb[145].mxu0 }
0x6617   : > { %v13625_v37 = vsel %vm1424_vm4, %v13624_v35, -inf }
0x6618   : > { %13626 = vmax.xlane.f32.xlu0 %v13625_v37 }
0x66a5   : > { %v13627_v55 = vpop.xlane.xlu0 %13626 }
0x66a6   : > { %v13628_v38 = vsub.f32 %v13624_v35, %v13627_v55 }
0x66a8   : > { %v13629_v39 = vmul.f32 1.442695, %v13628_v38 }
0x66aa   : > { %17507 = vpow2.f32 %v13629_v39 }
0x66b4   : > { %v17508_v40 = vpop.eup %17507 }
0x66b5   : > { %v13631_v41 = vsel %vm1424_vm4, %v17508_v40, 0.0 }
0x66b6   : > { %13632 = vadd.xlane.f32.xlu1 %v13631_v41 }
0x6743   : > { %v13633_v42 = vpop.xlane.xlu1 %13632 }
0x6744   : > { %17509 = vrcp.f32 %v13633_v42 }
0x674e   : > { %v17510_v43 = vpop.eup %17509 }
0x674f   : > { %v13635_v45 = vmul.f32 %v17510_v43, %v17508_v40  ;;  %v14956_v43 = vld [vmem:[%s19256_s23 + $0x5] ss:$0 sm:$0xff] }
0x6751   : > { %16784 = vmatmul.mubr.msk.f32.vlgmr.msra.gmra.mrb[146].mxu0 %vm1424_vm4, %v13635_v45 }
0x6752   : > { %16799 = vmatprep.mubr.msk.f32.mxu0 %vm17563_vm0, %v17564_v6  ;;  %17326 = vmatpush3.bf16.msra.mxu0 %v17325_v1 }
0x6753   : > { %17327 = vmatprep.subr.bf16.mxu0 %v17562_v3 }
0x6824   : > { %v13705_v44 = vpop.f32.mrb[146].mxu0 }
0x6825   : > { %v16785_v46 = vpop.f32.mrb[147].mxu0  ;;  %16789 = vmatmul.mubr.msk.f32.vlgmr.msra.gmra.mrb[154].mxu1 %vm1424_vm4, %v13705_v44  ;;  %v14957_v44 = vld [vmem:[%s19257_s26 + $0x5] ss:$0 sm:$0xff] }
0x6826   : > { %16818 = vmatprep.mubr.msk.f32.mxu1 %vm17563_vm0, %v17564_v6  ;;  %17332 = vmatpush3.bf16.msra.mxu1 %v17331_v8 }
0x6827   : > { %17333 = vmatprep.subr.bf16.mxu1 %v17562_v3 }
0x682a   : > { %17335 = vmatpush3.bf16.msra.mxu1 %v17334_v10 }
0x682b   : > { %17336 = vmatprep.subr.bf16.mxu1 %v17562_v3 }
0x682e   : > { %17338 = vmatpush3.bf16.msra.mxu1 %v17337_v13 }
0x682f   : > { %17339 = vmatprep.subr.bf16.mxu1 %v17562_v3 }
0x68f8   : > { %v13780_v28 = vpop.f32.mrb[154].mxu1 }
0x68f9   : > { %v13784_v48 = vadd.f32 %v13780_v28, %v13298_v24  ;;  %v16790_v51 = vpop.f32.mrb[155].mxu1  ;;  %v14950_v24 = vld [vmem:[%s19262_s3 + $0x78] sm:$0xff] }
0x68fa   : > { %v17340_v25 = vpack.c.bf16 %v14950_v24, %v14949_v23 }
0x68fb   : > { %v13793_v52 = vadd.f32 %v14931_v47, %v13784_v48 }
0x68fc   : > { %17341 = vmatpush3.bf16.msra.mxu1 %v17340_v25 }
0x68fd   : > { %v13794_v53 = vadd.f32 %v13793_v52, %v18974_v62  ;;  %v14938_v62 = vld [vmem:[%s19261_s1 + $0x30] sm:$0xff]  ;;  %s19265_s1 = sld [smem:[#allocation22_spill]] }
0x68fe   : > { %v17328_v61 = vpack.c.bf16 %v14939_v2, %v14938_v62 }
0x68ff   : > { %v13799_v54 = vsel %vm1184_vm3, %v13794_v53, 0.0 }
0x6900   : > { %13800 = vadd.xlane.f32.xlu0 %v13799_v54  ;;  %17329 = vmatpush3.bf16.msra.mxu0 %v17328_v61 }
0x6901   : > { %17342 = vmatprep.subr.bf16.mxu0 %v17562_v3 }
0x6903   : > { %v14958_v61 = vld [vmem:[%s19265_s1] ss:$0 sm:$0xff] }
0x698d   : > { %v13801_v56 = vpop.xlane.xlu0 %13800 }
0x698e   : > { %v13802_v57 = vmul.f32 0.03125, %v13801_v56  ;;  %v14064_v56 = vld [vmem:[%s17739_s4] sm:$0xff] }
0x6990   : > { %v13803_v58 = vsub.f32 %v13794_v53, %v13802_v57  ;;  %v14065_v57 = vld [vmem:[%s17739_s4 + $0x8] sm:$0xff] }
0x6992   : > { %v13804_v59 = vmul.f32 %v13803_v58, %v13803_v58 }
0x6994   : > { %v13805_v60 = vsel %vm1184_vm3, %v13804_v59, 0.0  ;;  %v14066_v59 = vld [vmem:[%s17739_s4 + $0x10] sm:$0xff] }
0x6995   : > { %13806 = vadd.xlane.f32.xlu1 %v13805_v60  ;;  %v14067_v60 = vld [vmem:[%s17739_s4 + $0x18] sm:$0xff] }
0x6996   : > { %v17346_v49 = vpack.c.bf16 %v14067_v60, %v14066_v59 }
0x6a22   : > { %v13807_v15 = vpop.xlane.xlu1 %13806 }
0x6a23   : > { %v13808_v16 = vmul.f32 0.03125, %v13807_v15 }
0x6a25   : > { %v13809_v63 = vadd.f32 1e-05, %v13808_v16 }
0x6a27   : > { %17511 = vrsqrt.f32 %v13809_v63 }
0x6a31   : > { %v17512_v17 = vpop.eup %17511 }
0x6a32   : > { %v13811_v5 = vmul.f32 %v17512_v17, %v13803_v58  ;;  %v17343_v58 = vpack.c.bf16 %v14065_v57, %v14064_v56 }
0x6a34   : > { %v13818_v20 = vmul.f32 %v14934_v18, %v13811_v5 }
0x6a36   : > { %v13825_v22 = vadd.f32 %v14935_v19, %v13818_v20 }
0x6a38   : > { %16800 = vmatmul.mubr.msk.f32.vlgmr.msra.gmra.mrb[148].mxu0 %vm1184_vm3, %v13825_v22 }
0x6a39   : > { %16829 = vmatprep.mubr.msk.f32.mxu0 %vm17563_vm0, %v17564_v6  ;;  %17344 = vmatpush3.bf16.msra.mxu0 %v17343_v58 }
0x6a3a   : > { %17345 = vmatprep.subr.bf16.mxu0 %v17562_v3  ;;  %v14960_v3 = vld [vmem:[%s17744_s21] ss:$0 sm:$0xff] }
0x6a3d   : > { %17347 = vmatpush3.bf16.msra.mxu0 %v17346_v49 }
0x6b0b   : > { %v13908_v27 = vpop.f32.mrb[148].mxu0 }
0x6b0c   : > { %v13909_v29 = vadd.f32 %v14941_v26, %v13908_v27  ;;  %v16801_v31 = vpop.f32.mrb[149].mxu0 }
0x6b0e   : > { %v13912_v32 = vmax.f32 %v13909_v29, 0.0 }
0x6b10   : > { %16819 = vmatmul.mubr.msk.f32.vlgmr.msra.gmra.mrb[156].mxu1 %vm3260_vm6, %v13912_v32 }
0x6be3   : > { %v13999_v34 = vpop.f32.mrb[156].mxu1 }
0x6be4   : > { %v14000_v50 = vadd.f32 %v14952_v33, %v13999_v34  ;;  %v16820_v14 = vpop.f32.mrb[157].mxu1 }
0x6be6   : > { %v14003_v35 = vadd.f32 %v14000_v50, %v13825_v22 }
0x6be8   : > { %v14008_v6 = vsel %vm1184_vm3, %v14003_v35, 0.0 }
0x6be9   : > { %14009 = vadd.xlane.f32.xlu0 %v14008_v6 }
0x6c76   : > { %v14010_v36 = vpop.xlane.xlu0 %14009 }
0x6c77   : > { %v14011_v37 = vmul.f32 0.03125, %v14010_v36 }
0x6c79   : > { %v14012_v55 = vsub.f32 %v14003_v35, %v14011_v37 }
0x6c7b   : > { %v14013_v38 = vmul.f32 %v14012_v55, %v14012_v55 }
0x6c7d   : > { %v14014_v39 = vsel %vm1184_vm3, %v14013_v38, 0.0 }
0x6c7e   : > { %14015 = vadd.xlane.f32.xlu1 %v14014_v39 }
0x6d0b   : > { %v14016_v40 = vpop.xlane.xlu1 %14015 }
0x6d0c   : > { %v14017_v41 = vmul.f32 0.03125, %v14016_v40 }
0x6d0e   : > { %v14018_v21 = vadd.f32 1e-05, %v14017_v41 }
0x6d10   : > { %17513 = vrsqrt.f32 %v14018_v21 }
0x6d1a   : > { %v17514_v42 = vpop.eup %17513 }
0x6d1b   : > { %v14020_v45 = vmul.f32 %v17514_v42, %v14012_v55 }
0x6d1d   : > { %v14027_v46 = vmul.f32 %v14956_v43, %v14020_v45 }
0x6d1f   : > { %v14034_v28 = vadd.f32 %v14957_v44, %v14027_v46 }
0x6d21   : > { %v14037_v47 = vsel %vm1184_vm3, %v14034_v28, 0.0 }
0x6d22   : > { %14038 = vadd.xlane.f32.xlu0 %v14037_v47 }
0x6daf   : > { %v14039_v48 = vpop.xlane.xlu0 %14038 }
0x6db0   : > { %v14040_v51 = vmul.f32 0.03125, %v14039_v48 }
0x6db2   : > { %v14041_v52 = vsub.f32 %v14034_v28, %v14040_v51 }
0x6db4   : > { %v14042_v53 = vmul.f32 %v14041_v52, %v14041_v52 }
0x6db6   : > { %v14043_v54 = vsel %vm1184_vm3, %v14042_v53, 0.0 }
0x6db7   : > { %14044 = vadd.xlane.f32.xlu1 %v14043_v54 }
0x6e44   : > { %v14045_v0 = vpop.xlane.xlu1 %14044 }
0x6e45   : > { %v14046_v1 = vmul.f32 0.03125, %v14045_v0 }
0x6e47   : > { %v14047_v62 = vadd.f32 1e-05, %v14046_v1 }
0x6e49   : > { %17515 = vrsqrt.f32 %v14047_v62 }
0x6e53   : > { %v17516_v2 = vpop.eup %17515 }
0x6e54   : > { %v14049_v4 = vmul.f32 %v17516_v2, %v14041_v52 }
0x6e56   : > { %v14056_v7 = vmul.f32 %v14958_v61, %v14049_v4 }
0x6e58   : > { %v14063_v8 = vadd.f32 %v14959_v30, %v14056_v7 }
0x6e5a   : > { %16830 = vmatmul.mubr.msk.f32.vlgmr.msra.gmra.mrb[150].mxu0 %vm1184_vm3, %v14063_v8 }
0x6f2d   : > { %v14144_v9 = vpop.f32.mrb[150].mxu0 }
0x6f2e   : > { %v14145_v10 = vadd.f32 %v14960_v3, %v14144_v9  ;;  %v16831_v11 = vpop.f32.mrb[151].mxu0 }
0x6f30   : > { %14148 = vst [vmem:[%s1082_s2] sm:$0xff] %v14145_v10 }
0x6f31 PF: > { %s81_s22 = sadd.s32 1, %s17524_s22  }
0x6f32   : > { %p78_p4 = scmp.ge.s32.totalorder %s81_s22, 4  }
0x6f34   :  { %80 = sbr.rel (!%p78_p4) target bundleno = 67 (0x43), region = 414 }

</bundles_post_ra>
